<compile_context>
chip_gen: v5e
topology: v5e:2x2
jax: 0.10.0
libtpu: 0.0.40
codegen_flags: <defaults>
</compile_context>

<pallas_src>
import functools

import jax
import jax.numpy as jnp
from jax.experimental import pallas as pl
from jax.experimental.pallas import tpu as pltpu


# ----------------------------------------------------------------------------
# Pallas kernels: fused matmul + bias (+ optional ReLU)
# ----------------------------------------------------------------------------
def _mm_bias_act_kernel(x_ref, w_ref, b_ref, o_ref, *, relu):
    # x: (1, R, K) bf16, w: (K, N) bf16, b: (1, N) f32 -> o: (1, R, N) f32
    y = jnp.dot(x_ref[0], w_ref[...], preferred_element_type=jnp.float32)
    y = y + b_ref[...]
    if relu:
        y = jnp.maximum(y, 0.0)
    o_ref[0] = y.astype(o_ref.dtype)


def matmul_bias_act(x3, w, b, *, relu):
    """x3: (G, R, K) bf16; w: (K, N) bf16; b: (1, N) f32 -> (G, R, N) f32."""
    G, R, K = x3.shape
    N = w.shape[1]
    kernel = functools.partial(_mm_bias_act_kernel, relu=relu)
    return pl.pallas_call(
        kernel,
        out_shape=jax.ShapeDtypeStruct((G, R, N), jnp.float32),
        grid=(G,),
        in_specs=[
            pl.BlockSpec((1, R, K), lambda g: (g, 0, 0)),
            pl.BlockSpec((K, N), lambda g: (0, 0)),
            pl.BlockSpec((1, N), lambda g: (0, 0)),
        ],
        out_specs=pl.BlockSpec((1, R, N), lambda g: (g, 0, 0)),
        compiler_params=pltpu.CompilerParams(
            dimension_semantics=("parallel",),
        ),
    )(x3, w, b)


def _mm_bias_act_T_kernel(w_ref, x_ref, b_ref, o_ref, *, relu):
    # Lane-dense variant: w: (N, K) bf16, x: (1, K, R) bf16, b: (N, 1) f32
    # -> o: (1, N, R) f32  (R spatial positions on the lane dim).
    y = jnp.dot(w_ref[...], x_ref[0], preferred_element_type=jnp.float32)
    y = y + b_ref[...]
    if relu:
        y = jnp.maximum(y, 0.0)
    o_ref[0] = y.astype(o_ref.dtype)


def matmul_bias_act_T(w, x3, b, *, relu):
    """w: (N, K) bf16; x3: (G, K, R) bf16; b: (N, 1) f32 -> (G, N, R) f32."""
    G, K, R = x3.shape
    N = w.shape[0]
    kernel = functools.partial(_mm_bias_act_T_kernel, relu=relu)
    return pl.pallas_call(
        kernel,
        out_shape=jax.ShapeDtypeStruct((G, N, R), jnp.float32),
        grid=(G,),
        in_specs=[
            pl.BlockSpec((N, K), lambda g: (0, 0)),
            pl.BlockSpec((1, K, R), lambda g: (g, 0, 0)),
            pl.BlockSpec((N, 1), lambda g: (0, 0)),
        ],
        out_specs=pl.BlockSpec((1, N, R), lambda g: (g, 0, 0)),
        compiler_params=pltpu.CompilerParams(
            dimension_semantics=("parallel",),
        ),
    )(w, x3, b)


# ----------------------------------------------------------------------------
# Layout glue (tiny, layout-only): im2col windows and weight preparation
# ----------------------------------------------------------------------------
def _im2col(xpad_nhwc, win, out_hw):
    """(B, Hp, Wp, C) -> (B, out_hw*out_hw, win*win*C), flattened (jh, jw, c)."""
    B = xpad_nhwc.shape[0]
    C = xpad_nhwc.shape[-1]
    cols = jnp.stack(
        [xpad_nhwc[:, i:i + out_hw, j:j + out_hw, :]
         for i in range(win) for j in range(win)],
        axis=3,
    )
    return cols.reshape(B, out_hw * out_hw, win * win * C)


def _full_conv_weight(w_pt):
    # ConvTranspose2d(stride=1) == VALID conv of (pad K-1) input with the
    # spatially flipped kernel.  Rows flattened (kh, kw, ci), cols = co.
    Cin, Cout, K, _ = w_pt.shape
    return jnp.transpose(w_pt[:, :, ::-1, ::-1], (2, 3, 0, 1)).reshape(K * K * Cin, Cout)


def _phase_conv_weight(w_pt, s):
    # Sub-pixel decomposition of ConvTranspose2d with stride s, K = 2*s:
    #   out[:, s*q + r] = sum_{j in {0,1}} xpad[:, q + j] * W[..., s*(1-j) + r]
    # with the input padded by 1 on each side (window 2x2).
    # Rows flattened (jh, jw, ci); cols flattened (rh, rw, co).
    Cin, Cout, K, _ = w_pt.shape
    m = K // s
    assert m == 2 and K == m * s
    w6 = w_pt.reshape(Cin, Cout, m, s, m, s)        # [ci, co, dh, rh, dw, rw]
    w6 = w6[:, :, ::-1, :, ::-1, :]                 # flip d -> [ci, co, jh, rh, jw, rw]
    w6 = jnp.transpose(w6, (2, 4, 0, 3, 5, 1))      # [jh, jw, ci, rh, rw, co]
    return w6.reshape(m * m * Cin, s * s * Cout)


# ----------------------------------------------------------------------------
# Parameters
# ----------------------------------------------------------------------------
def init_raw_params(key):
    """PyTorch-native shapes, f32 (used by the reference)."""
    ks = jax.random.split(key, 8)

    def unif(k, shape, fan_in):
        bound = 1.0 / jnp.sqrt(jnp.float32(fan_in))
        return jax.random.uniform(k, shape, jnp.float32, -bound, bound)

    return {
        "fc1_w": unif(ks[0], (3136, 519), 519),     # nn.Linear: (out, in)
        "fc1_b": unif(ks[1], (3136,), 519),
        "d1_w": unif(ks[2], (64, 64, 3, 3), 64 * 3 * 3),   # (Cin, Cout, K, K)
        "d1_b": unif(ks[3], (64,), 64 * 3 * 3),
        "d2_w": unif(ks[4], (64, 32, 4, 4), 64 * 4 * 4),
        "d2_b": unif(ks[5], (32,), 64 * 4 * 4),
        "d3_w": unif(ks[6], (32, 3, 8, 8), 32 * 8 * 8),
        "d3_b": unif(ks[7], (3,), 32 * 8 * 8),
    }


def prepare_params(raw):
    """Kernel-ready layouts: bf16 matmul weights, f32 biases, all built at init."""
    bf16 = jnp.bfloat16

    # fc1: pre-transpose to (519, 3136) and permute output columns (c,h,w)->(h,w,c)
    # so fc1's output reshapes directly to NHWC (B, 7, 7, 64).
    fc1_w = raw["fc1_w"].T.reshape(519, 64, 7, 7)
    fc1_w = jnp.transpose(fc1_w, (0, 2, 3, 1)).reshape(519, 3136)
    fc1_b = jnp.transpose(raw["fc1_b"].reshape(64, 7, 7), (1, 2, 0)).reshape(3136)

    d2_w = _phase_conv_weight(raw["d2_w"], 2)          # (256, 128)
    d2_b = jnp.tile(raw["d2_b"], 4)                    # (128,)  (rh, rw, co)
    d3_w = _phase_conv_weight(raw["d3_w"], 4)          # (128, 48)
    d3_b = jnp.tile(raw["d3_b"], 16)                   # (48,)   (rh, rw, co)

    return {
        "fc1_w": fc1_w.astype(bf16),
        "fc1_b": fc1_b.astype(jnp.float32),
        "d1_w": _full_conv_weight(raw["d1_w"]).astype(bf16),   # (576, 64)
        "d1_b": raw["d1_b"].astype(jnp.float32),
        "d2_w": d2_w.astype(bf16),
        "d2_b": d2_b.astype(jnp.float32),
        "d3_w": jnp.transpose(d3_w).astype(bf16),              # (48, 128) lane-dense form
        "d3_b": d3_b.reshape(48, 1).astype(jnp.float32),
    }


# ----------------------------------------------------------------------------
# Forward pass (matches BasicDeconv.forward; output NCHW (B, 3, 84, 84))
# ----------------------------------------------------------------------------
@jax.jit
def basic_deconv_forward(params, x):
    B = x.shape[0]
    bf16 = jnp.bfloat16

    # fc1 (no activation); weight columns pre-permuted -> output is already NHWC.
    h = matmul_bias_act(x.astype(bf16)[None], params["fc1_w"],
                        params["fc1_b"][None], relu=False)[0]       # (B, 3136)
    h = h.reshape(B, 7, 7, 64)                                      # NHWC

    # deconv1: K=3, stride=1 -> flipped-kernel VALID conv on pad-2 input.
    xp = jnp.pad(h, ((0, 0), (2, 2), (2, 2), (0, 0)))               # (B, 11, 11, 64)
    cols = _im2col(xp, 3, 9).astype(bf16)                           # (B, 81, 576)
    h = matmul_bias_act(cols, params["d1_w"], params["d1_b"][None], relu=True)
    h = h.reshape(B, 9, 9, 64)                                      # (B, 9, 9, 64)

    # deconv2: K=4, stride=2 -> 4-phase sub-pixel decomposition (2x2 window).
    xp = jnp.pad(h, ((0, 0), (1, 1), (1, 1), (0, 0)))               # (B, 11, 11, 64)
    cols = _im2col(xp, 2, 10).astype(bf16)                          # (B, 100, 256)
    h = matmul_bias_act(cols, params["d2_w"], params["d2_b"][None], relu=True)
    h = h.reshape(B, 10, 10, 2, 2, 32)                              # [qh,qw,rh,rw,c]
    h = jnp.transpose(h, (0, 1, 3, 2, 4, 5)).reshape(B, 20, 20, 32) # (B, 20, 20, 32)

    # deconv3: K=8, stride=4 -> 16-phase decomposition; lane-dense transposed
    # matmul (441 spatial positions on lanes); pixel shuffle emits NCHW directly.
    xp = jnp.pad(h, ((0, 0), (1, 1), (1, 1), (0, 0)))               # (B, 22, 22, 32)
    cols = _im2col(xp, 2, 21)                                       # (B, 441, 128)
    cols_t = jnp.transpose(cols, (0, 2, 1)).astype(bf16)            # (B, 128, 441)
    out = matmul_bias_act_T(params["d3_w"], cols_t, params["d3_b"], relu=True)
    out = out.reshape(B, 4, 4, 3, 21, 21)                           # [rh,rw,co,qh,qw]
    out = jnp.transpose(out, (0, 3, 4, 1, 5, 2))                    # [co,qh,rh,qw,rw]
    return out.reshape(B, 3, 84, 84)                                # NCHW


# ----------------------------------------------------------------------------
# Pure-JAX reference (direct ConvTranspose2d definition), for validation only
# ----------------------------------------------------------------------------
def _conv_transpose2d_ref(x_nchw, w_pt, b, stride):
    B, Cin, H, W = x_nchw.shape
    _, Cout, K, _ = w_pt.shape
    Ho = (H - 1) * stride + K
    Wo = (W - 1) * stride + K
    out = jnp.zeros((B, Cout, Ho, Wo), jnp.float32)
    for kh in range(K):
        for kw in range(K):
            contrib = jnp.einsum("bchw,cd->bdhw", x_nchw, w_pt[:, :, kh, kw])
            out = out.at[:, :, kh:kh + stride * (H - 1) + 1:stride,
                         kw:kw + stride * (W - 1) + 1:stride].add(contrib)
    return out + b[None, :, None, None]


@jax.jit
def reference_forward(raw, x):
    h = x @ raw["fc1_w"].T + raw["fc1_b"]
    h = h.reshape(-1, 64, 7, 7)
    h = jax.nn.relu(_conv_transpose2d_ref(h, raw["d1_w"], raw["d1_b"], 1))
    h = jax.nn.relu(_conv_transpose2d_ref(h, raw["d2_w"], raw["d2_b"], 2))
    h = jax.nn.relu(_conv_transpose2d_ref(h, raw["d3_w"], raw["d3_b"], 4))
    return h


if __name__ == "__main__":
    key = jax.random.PRNGKey(0)
    pkey, xkey = jax.random.split(key)
    raw = init_raw_params(pkey)
    params = prepare_params(raw)
    x = jax.random.normal(xkey, (2, 519), jnp.float32)

    out = jax.block_until_ready(basic_deconv_forward(params, x))
    assert out.shape == (2, 3, 84, 84), out.shape
    assert bool(jnp.all(jnp.isfinite(out)))
    assert bool(jnp.all(out >= 0.0))  # final ReLU

    # Validate against the f32 reference (bf16 matmul operands -> loose tolerance).
    ref = jax.block_until_ready(reference_forward(raw, x))
    max_abs = float(jnp.max(jnp.abs(ref)))
    err = float(jnp.max(jnp.abs(out - ref)))
    tol = max(2e-3, 2e-2 * max_abs)
    assert err <= tol, (err, tol)

    print("KERNEL_OK")
</pallas_src>

<mosaic_0001>
module attributes {stable_mosaic.version = 11 : i64} {
  func.func @_mm_bias_act_kernel(%arg0: i32, %arg1: memref<1x2x519xbf16, #tpu.memory_space<vmem>>, %arg2: memref<519x3136xbf16, #tpu.memory_space<vmem>>, %arg3: memref<1x3136xf32, #tpu.memory_space<vmem>>, %arg4: memref<1x2x3136xf32, #tpu.memory_space<vmem>>) attributes {dimension_semantics = [#tpu.dimension_semantics<parallel>], iteration_bounds = array<i64: 1>, scalar_prefetch = 0 : i64, scratch_operands = 0 : i64, tpu.core_type = #tpu.core_type<tc>, window_params = [{transform_indices = @transform_0, window_bounds = array<i64: 1, 2, 519>}, {pipeline_mode = #tpu.pipeline_mode<synchronous>, transform_indices = @transform_1, window_bounds = array<i64: 519, 3136>}, {pipeline_mode = #tpu.pipeline_mode<synchronous>, transform_indices = @transform_2, window_bounds = array<i64: 1, 3136>}, {transform_indices = @transform_3, window_bounds = array<i64: 1, 2, 3136>}]} {
    %c0 = arith.constant 0 : index
    %c0_0 = arith.constant 0 : index
    %c0_1 = arith.constant 0 : index
    %0 = vector.load %arg1[%c0, %c0_0, %c0_1] : memref<1x2x519xbf16, #tpu.memory_space<vmem>>, vector<1x2x519xbf16>
    %1 = vector.shape_cast %0 : vector<1x2x519xbf16> to vector<2x519xbf16>
    %c0_2 = arith.constant 0 : index
    %c0_3 = arith.constant 0 : index
    %2 = vector.load %arg2[%c0_2, %c0_3] : memref<519x3136xbf16, #tpu.memory_space<vmem>>, vector<519x3136xbf16>
    %cst = arith.constant dense<0.000000e+00> : vector<2x3136xf32>
    %3 = tpu.matmul %1, %2, %cst {dimension_numbers = #tpu.dot_dimension_numbers<[1], [0], [0], [1], [0, 0, 1, 1], [], []>} : vector<2x519xbf16>, vector<519x3136xbf16>, vector<2x3136xf32> -> vector<2x3136xf32>
    %c0_4 = arith.constant 0 : index
    %c0_5 = arith.constant 0 : index
    %4 = vector.load %arg3[%c0_4, %c0_5] : memref<1x3136xf32, #tpu.memory_space<vmem>>, vector<1x3136xf32>
    %5 = vector.broadcast %4 : vector<1x3136xf32> to vector<2x3136xf32>
    %6 = arith.addf %3, %5 : vector<2x3136xf32>
    %c0_6 = arith.constant 0 : index
    %c0_7 = arith.constant 0 : index
    %c0_8 = arith.constant 0 : index
    %7 = vector.load %arg4[%c0_6, %c0_7, %c0_8] : memref<1x2x3136xf32, #tpu.memory_space<vmem>>, vector<1x2x3136xf32>
    %8 = vector.shape_cast %7 : vector<1x2x3136xf32> to vector<2x3136xf32>
    %9 = vector.shape_cast %6 : vector<2x3136xf32> to vector<1x2x3136xf32>
    tpu.vector_store %arg4[%c0_6, %c0_7, %c0_8], %9 {strides = array<i32>} : memref<1x2x3136xf32, #tpu.memory_space<vmem>>, vector<1x2x3136xf32>,
    return
  }
  func.func @transform_0(%arg0: i32) -> (i32, i32, i32) {
    %c0_i32 = arith.constant 0 : i32
    %c0_i32_0 = arith.constant 0 : i32
    %c0_i32_1 = arith.constant 0 : i32
    return %arg0, %c0_i32, %c0_i32_0 : i32, i32, i32
  }
  func.func @transform_1(%arg0: i32) -> (i32, i32) {
    %c0_i32 = arith.constant 0 : i32
    %c0_i32_0 = arith.constant 0 : i32
    %c0_i32_1 = arith.constant 0 : i32
    return %c0_i32, %c0_i32_0 : i32, i32
  }
  func.func @transform_2(%arg0: i32) -> (i32, i32) {
    %c0_i32 = arith.constant 0 : i32
    %c0_i32_0 = arith.constant 0 : i32
    %c0_i32_1 = arith.constant 0 : i32
    return %c0_i32, %c0_i32_0 : i32, i32
  }
  func.func @transform_3(%arg0: i32) -> (i32, i32, i32) {
    %c0_i32 = arith.constant 0 : i32
    %c0_i32_0 = arith.constant 0 : i32
    %c0_i32_1 = arith.constant 0 : i32
    return %arg0, %c0_i32, %c0_i32_0 : i32, i32, i32
  }
}

module attributes {stable_mosaic.version = 11 : i64} {
  func.func @_mm_bias_act_kernel(%arg0: i32, %arg1: memref<1x81x576xbf16, #tpu.memory_space<vmem>>, %arg2: memref<576x64xbf16, #tpu.memory_space<vmem>>, %arg3: memref<1x64xf32, #tpu.memory_space<vmem>>, %arg4: memref<1x81x64xf32, #tpu.memory_space<vmem>>) attributes {dimension_semantics = [#tpu.dimension_semantics<parallel>], iteration_bounds = array<i64: 2>, scalar_prefetch = 0 : i64, scratch_operands = 0 : i64, tpu.core_type = #tpu.core_type<tc>, window_params = [{transform_indices = @transform_0, window_bounds = array<i64: 1, 81, 576>}, {pipeline_mode = #tpu.pipeline_mode<synchronous>, transform_indices = @transform_1, window_bounds = array<i64: 576, 64>}, {pipeline_mode = #tpu.pipeline_mode<synchronous>, transform_indices = @transform_2, window_bounds = array<i64: 1, 64>}, {transform_indices = @transform_3, window_bounds = array<i64: 1, 81, 64>}]} {
    %c0 = arith.constant 0 : index
    %c0_0 = arith.constant 0 : index
    %c0_1 = arith.constant 0 : index
    %0 = vector.load %arg1[%c0, %c0_0, %c0_1] : memref<1x81x576xbf16, #tpu.memory_space<vmem>>, vector<1x81x576xbf16>
    %1 = vector.shape_cast %0 : vector<1x81x576xbf16> to vector<81x576xbf16>
    %c0_2 = arith.constant 0 : index
    %c0_3 = arith.constant 0 : index
    %2 = vector.load %arg2[%c0_2, %c0_3] : memref<576x64xbf16, #tpu.memory_space<vmem>>, vector<576x64xbf16>
    %cst = arith.constant dense<0.000000e+00> : vector<81x64xf32>
    %3 = tpu.matmul %1, %2, %cst {dimension_numbers = #tpu.dot_dimension_numbers<[1], [0], [0], [1], [0, 0, 1, 1], [], []>} : vector<81x576xbf16>, vector<576x64xbf16>, vector<81x64xf32> -> vector<81x64xf32>
    %c0_4 = arith.constant 0 : index
    %c0_5 = arith.constant 0 : index
    %4 = vector.load %arg3[%c0_4, %c0_5] : memref<1x64xf32, #tpu.memory_space<vmem>>, vector<1x64xf32>
    %5 = vector.broadcast %4 : vector<1x64xf32> to vector<81x64xf32>
    %6 = arith.addf %3, %5 : vector<81x64xf32>
    %cst_6 = arith.constant 0.000000e+00 : f32
    %7 = vector.broadcast %cst_6 : f32 to vector<81x64xf32>
    %8 = arith.maximumf %6, %7 : vector<81x64xf32>
    %c0_7 = arith.constant 0 : index
    %c0_8 = arith.constant 0 : index
    %c0_9 = arith.constant 0 : index
    %9 = vector.load %arg4[%c0_7, %c0_8, %c0_9] : memref<1x81x64xf32, #tpu.memory_space<vmem>>, vector<1x81x64xf32>
    %10 = vector.shape_cast %9 : vector<1x81x64xf32> to vector<81x64xf32>
    %11 = vector.shape_cast %8 : vector<81x64xf32> to vector<1x81x64xf32>
    tpu.vector_store %arg4[%c0_7, %c0_8, %c0_9], %11 {strides = array<i32>} : memref<1x81x64xf32, #tpu.memory_space<vmem>>, vector<1x81x64xf32>,
    return
  }
  func.func @transform_0(%arg0: i32) -> (i32, i32, i32) {
    %c0_i32 = arith.constant 0 : i32
    %c0_i32_0 = arith.constant 0 : i32
    %c0_i32_1 = arith.constant 0 : i32
    return %arg0, %c0_i32, %c0_i32_0 : i32, i32, i32
  }
  func.func @transform_1(%arg0: i32) -> (i32, i32) {
    %c0_i32 = arith.constant 0 : i32
    %c0_i32_0 = arith.constant 0 : i32
    %c0_i32_1 = arith.constant 0 : i32
    return %c0_i32, %c0_i32_0 : i32, i32
  }
  func.func @transform_2(%arg0: i32) -> (i32, i32) {
    %c0_i32 = arith.constant 0 : i32
    %c0_i32_0 = arith.constant 0 : i32
    %c0_i32_1 = arith.constant 0 : i32
    return %c0_i32, %c0_i32_0 : i32, i32
  }
  func.func @transform_3(%arg0: i32) -> (i32, i32, i32) {
    %c0_i32 = arith.constant 0 : i32
    %c0_i32_0 = arith.constant 0 : i32
    %c0_i32_1 = arith.constant 0 : i32
    return %arg0, %c0_i32, %c0_i32_0 : i32, i32, i32
  }
}

module attributes {stable_mosaic.version = 11 : i64} {
  func.func @_mm_bias_act_kernel(%arg0: i32, %arg1: memref<1x100x256xbf16, #tpu.memory_space<vmem>>, %arg2: memref<256x128xbf16, #tpu.memory_space<vmem>>, %arg3: memref<1x128xf32, #tpu.memory_space<vmem>>, %arg4: memref<1x100x128xf32, #tpu.memory_space<vmem>>) attributes {dimension_semantics = [#tpu.dimension_semantics<parallel>], iteration_bounds = array<i64: 2>, scalar_prefetch = 0 : i64, scratch_operands = 0 : i64, tpu.core_type = #tpu.core_type<tc>, window_params = [{transform_indices = @transform_0, window_bounds = array<i64: 1, 100, 256>}, {pipeline_mode = #tpu.pipeline_mode<synchronous>, transform_indices = @transform_1, window_bounds = array<i64: 256, 128>}, {pipeline_mode = #tpu.pipeline_mode<synchronous>, transform_indices = @transform_2, window_bounds = array<i64: 1, 128>}, {transform_indices = @transform_3, window_bounds = array<i64: 1, 100, 128>}]} {
    %c0 = arith.constant 0 : index
    %c0_0 = arith.constant 0 : index
    %c0_1 = arith.constant 0 : index
    %0 = vector.load %arg1[%c0, %c0_0, %c0_1] : memref<1x100x256xbf16, #tpu.memory_space<vmem>>, vector<1x100x256xbf16>
    %1 = vector.shape_cast %0 : vector<1x100x256xbf16> to vector<100x256xbf16>
    %c0_2 = arith.constant 0 : index
    %c0_3 = arith.constant 0 : index
    %2 = vector.load %arg2[%c0_2, %c0_3] : memref<256x128xbf16, #tpu.memory_space<vmem>>, vector<256x128xbf16>
    %cst = arith.constant dense<0.000000e+00> : vector<100x128xf32>
    %3 = tpu.matmul %1, %2, %cst {dimension_numbers = #tpu.dot_dimension_numbers<[1], [0], [0], [1], [0, 0, 1, 1], [], []>} : vector<100x256xbf16>, vector<256x128xbf16>, vector<100x128xf32> -> vector<100x128xf32>
    %c0_4 = arith.constant 0 : index
    %c0_5 = arith.constant 0 : index
    %4 = vector.load %arg3[%c0_4, %c0_5] : memref<1x128xf32, #tpu.memory_space<vmem>>, vector<1x128xf32>
    %5 = vector.broadcast %4 : vector<1x128xf32> to vector<100x128xf32>
    %6 = arith.addf %3, %5 : vector<100x128xf32>
    %cst_6 = arith.constant 0.000000e+00 : f32
    %7 = vector.broadcast %cst_6 : f32 to vector<100x128xf32>
    %8 = arith.maximumf %6, %7 : vector<100x128xf32>
    %c0_7 = arith.constant 0 : index
    %c0_8 = arith.constant 0 : index
    %c0_9 = arith.constant 0 : index
    %9 = vector.load %arg4[%c0_7, %c0_8, %c0_9] : memref<1x100x128xf32, #tpu.memory_space<vmem>>, vector<1x100x128xf32>
    %10 = vector.shape_cast %9 : vector<1x100x128xf32> to vector<100x128xf32>
    %11 = vector.shape_cast %8 : vector<100x128xf32> to vector<1x100x128xf32>
    tpu.vector_store %arg4[%c0_7, %c0_8, %c0_9], %11 {strides = array<i32>} : memref<1x100x128xf32, #tpu.memory_space<vmem>>, vector<1x100x128xf32>,
    return
  }
  func.func @transform_0(%arg0: i32) -> (i32, i32, i32) {
    %c0_i32 = arith.constant 0 : i32
    %c0_i32_0 = arith.constant 0 : i32
    %c0_i32_1 = arith.constant 0 : i32
    return %arg0, %c0_i32, %c0_i32_0 : i32, i32, i32
  }
  func.func @transform_1(%arg0: i32) -> (i32, i32) {
    %c0_i32 = arith.constant 0 : i32
    %c0_i32_0 = arith.constant 0 : i32
    %c0_i32_1 = arith.constant 0 : i32
    return %c0_i32, %c0_i32_0 : i32, i32
  }
  func.func @transform_2(%arg0: i32) -> (i32, i32) {
    %c0_i32 = arith.constant 0 : i32
    %c0_i32_0 = arith.constant 0 : i32
    %c0_i32_1 = arith.constant 0 : i32
    return %c0_i32, %c0_i32_0 : i32, i32
  }
  func.func @transform_3(%arg0: i32) -> (i32, i32, i32) {
    %c0_i32 = arith.constant 0 : i32
    %c0_i32_0 = arith.constant 0 : i32
    %c0_i32_1 = arith.constant 0 : i32
    return %arg0, %c0_i32, %c0_i32_0 : i32, i32, i32
  }
}

module attributes {stable_mosaic.version = 11 : i64} {
  func.func @_mm_bias_act_T_kernel(%arg0: i32, %arg1: memref<48x128xbf16, #tpu.memory_space<vmem>>, %arg2: memref<1x128x441xbf16, #tpu.memory_space<vmem>>, %arg3: memref<48x1xf32, #tpu.memory_space<vmem>>, %arg4: memref<1x48x441xf32, #tpu.memory_space<vmem>>) attributes {dimension_semantics = [#tpu.dimension_semantics<parallel>], iteration_bounds = array<i64: 2>, scalar_prefetch = 0 : i64, scratch_operands = 0 : i64, tpu.core_type = #tpu.core_type<tc>, window_params = [{pipeline_mode = #tpu.pipeline_mode<synchronous>, transform_indices = @transform_0, window_bounds = array<i64: 48, 128>}, {transform_indices = @transform_1, window_bounds = array<i64: 1, 128, 441>}, {pipeline_mode = #tpu.pipeline_mode<synchronous>, transform_indices = @transform_2, window_bounds = array<i64: 48, 1>}, {transform_indices = @transform_3, window_bounds = array<i64: 1, 48, 441>}]} {
    %c0 = arith.constant 0 : index
    %c0_0 = arith.constant 0 : index
    %0 = vector.load %arg1[%c0, %c0_0] : memref<48x128xbf16, #tpu.memory_space<vmem>>, vector<48x128xbf16>
    %c0_1 = arith.constant 0 : index
    %c0_2 = arith.constant 0 : index
    %c0_3 = arith.constant 0 : index
    %1 = vector.load %arg2[%c0_1, %c0_2, %c0_3] : memref<1x128x441xbf16, #tpu.memory_space<vmem>>, vector<1x128x441xbf16>
    %2 = vector.shape_cast %1 : vector<1x128x441xbf16> to vector<128x441xbf16>
    %cst = arith.constant dense<0.000000e+00> : vector<48x441xf32>
    %3 = tpu.matmul %0, %2, %cst {dimension_numbers = #tpu.dot_dimension_numbers<[1], [0], [0], [1], [0, 0, 1, 1], [], []>} : vector<48x128xbf16>, vector<128x441xbf16>, vector<48x441xf32> -> vector<48x441xf32>
    %c0_4 = arith.constant 0 : index
    %c0_5 = arith.constant 0 : index
    %4 = vector.load %arg3[%c0_4, %c0_5] : memref<48x1xf32, #tpu.memory_space<vmem>>, vector<48x1xf32>
    %5 = vector.broadcast %4 : vector<48x1xf32> to vector<48x441xf32>
    %6 = arith.addf %3, %5 : vector<48x441xf32>
    %cst_6 = arith.constant 0.000000e+00 : f32
    %7 = vector.broadcast %cst_6 : f32 to vector<48x441xf32>
    %8 = arith.maximumf %6, %7 : vector<48x441xf32>
    %c0_7 = arith.constant 0 : index
    %c0_8 = arith.constant 0 : index
    %c0_9 = arith.constant 0 : index
    %9 = vector.load %arg4[%c0_7, %c0_8, %c0_9] : memref<1x48x441xf32, #tpu.memory_space<vmem>>, vector<1x48x441xf32>
    %10 = vector.shape_cast %9 : vector<1x48x441xf32> to vector<48x441xf32>
    %11 = vector.shape_cast %8 : vector<48x441xf32> to vector<1x48x441xf32>
    tpu.vector_store %arg4[%c0_7, %c0_8, %c0_9], %11 {strides = array<i32>} : memref<1x48x441xf32, #tpu.memory_space<vmem>>, vector<1x48x441xf32>,
    return
  }
  func.func @transform_0(%arg0: i32) -> (i32, i32) {
    %c0_i32 = arith.constant 0 : i32
    %c0_i32_0 = arith.constant 0 : i32
    %c0_i32_1 = arith.constant 0 : i32
    return %c0_i32, %c0_i32_0 : i32, i32
  }
  func.func @transform_1(%arg0: i32) -> (i32, i32, i32) {
    %c0_i32 = arith.constant 0 : i32
    %c0_i32_0 = arith.constant 0 : i32
    %c0_i32_1 = arith.constant 0 : i32
    return %arg0, %c0_i32, %c0_i32_0 : i32, i32, i32
  }
  func.func @transform_2(%arg0: i32) -> (i32, i32) {
    %c0_i32 = arith.constant 0 : i32
    %c0_i32_0 = arith.constant 0 : i32
    %c0_i32_1 = arith.constant 0 : i32
    return %c0_i32, %c0_i32_0 : i32, i32
  }
  func.func @transform_3(%arg0: i32) -> (i32, i32, i32) {
    %c0_i32 = arith.constant 0 : i32
    %c0_i32_0 = arith.constant 0 : i32
    %c0_i32_1 = arith.constant 0 : i32
    return %arg0, %c0_i32, %c0_i32_0 : i32, i32, i32
  }
}

</mosaic_0001>

<bundles_post_ra>
// kernel: squeeze.1
= control target key start
LH: loop header
LB: loop body
LE: loop exit
PB: predicated region body
PF: predicated region fallthrough
CT: control target
= control target key end

     0   :  { %vm103_vm0 = vcmask 523264   ;;  %s226_s22 = smov 3  ;;  %s229_s23 = smov 12  ;;  %vm231_vm1 = vcmask 1043458   ;;  %vm236_vm2 = vcmask 1045508   ;;  %vm241_vm3 = vcmask 1047558   ;;  %s756_s0 = inlined_call_operand.vmem [shape: f32[1,2,3136], index: 0, kind: input, shape index: {}]   ;;  %s757_s1 = inlined_call_operand.vmem [shape: bf16[2,7,7,64], index: 1, kind: output, shape index: {}]  }
   0x1   :  { %v515_v0 = vld [vmem:[%s756_s0 + $0xc] sm:$0x3]  ;;  %v516_v1 = vld [vmem:[%s756_s0 + $0xa] sm:$0x3]  ;;  %v517_v2 = vld [vmem:[%s756_s0 + $0x8] sm:$0x3] }
   0x2   :  { %79 = vst [vmem:[#allocation1 + $0x30] sm:$0x3] %v515_v0  ;;  %v518_v3 = vld [vmem:[%s756_s0 + $0x6] sm:$0x3]  ;;  %v519_v4 = vld [vmem:[%s756_s0 + $0x4] sm:$0x3] }
   0x3   :  { %83 = vst [vmem:[#allocation1 + $0x28] sm:$0x3] %v516_v1  ;;  %v520_v5 = vld [vmem:[%s756_s0 + $0x2] sm:$0x3]  ;;  %v100_v6 = vld [vmem:[%s756_s0] sm:$0x3] }
   0x4   :  { %87 = vst [vmem:[#allocation1 + $0x20] sm:$0x3] %v517_v2  ;;  %v511_v7 = vld [vmem:[%s756_s0 + $0x14] sm:$0x3]  ;;  %s234_s24 = smov 48  ;;  %s239_s27 = smov 192 }
   0x5   :  { %91 = vst [vmem:[#allocation1 + $0x18] sm:$0x3] %v518_v3  ;;  %v512_v9 = vld [vmem:[%s756_s0 + $0x12] sm:$0x3]  ;;  %v513_v11 = vld [vmem:[%s756_s0 + $0x10] sm:$0x3] }
   0x6   :  { %95 = vst [vmem:[#allocation1 + $0x10] sm:$0x3] %v519_v4  ;;  %v514_v12 = vld [vmem:[%s756_s0 + $0xe] sm:$0x3]  ;;  %v501_v22 = vld [vmem:[%s756_s0 + $0x28] sm:$0x3] }
   0x7   :  { %99 = vst [vmem:[#allocation1 + $0x8] sm:$0x3] %v520_v5  ;;  %s287_s5 = smov 12  ;;  %s292_s6 = smov 48  ;;  %v502_v25 = vld [vmem:[%s756_s0 + $0x26] sm:$0x3] }
   0x8   :  { %101 = vst [vmem:[#allocation1] sm:$0x3] %v100_v6  ;;  %s576_s9 = smov 64   ;;  %v503_v27 = vld [vmem:[%s756_s0 + $0x24] sm:$0x3]  ;;  %s284_s12 = smov 3 }
   0x9   :  { %v131_v8 = vld [vmem:[#allocation1 + $0x30] sm:$0x3]   ;;  %63 = vst [vmem:[#allocation1 + $0x50] sm:$0x3] %v511_v7  ;;  %s297_s13 = smov 192  ;;  %s263_s26 = smov 48 }
   0xa   :  { %v126_v10 = vld [vmem:[#allocation1 + $0x28] sm:$0x3]   ;;  %134 = vst.msk [vmem:[#allocation0 + $0xd] ss:$56 sm:$0x3] %vm103_vm0, %v131_v8   ;;  %s268_s28 = smov 192 }
   0xb   :  { %129 = vst.msk [vmem:[#allocation0 + $0xb] ss:$56 sm:$0x3] %vm103_vm0, %v126_v10   ;;  %v121_v14 = vld [vmem:[#allocation1 + $0x20] sm:$0x3]   ;;  %s255_s4 = smov 3 }
   0xc   :  { %v116_v13 = vld [vmem:[#allocation1 + $0x18] sm:$0x3]   ;;  %67 = vst [vmem:[#allocation1 + $0x48] sm:$0x3] %v512_v9  ;;  %v504_v29 = vld [vmem:[%s756_s0 + $0x22] sm:$0x3] }
   0xd   :  { %v111_v15 = vld [vmem:[#allocation1 + $0x10] sm:$0x3]   ;;  %119 = vst.msk [vmem:[#allocation0 + $0x6] ss:$56 sm:$0x3] %vm103_vm0, %v116_v13   ;;  %s316_s7 = smov 12 }
   0xe   :  { %v240_v16 = vld [vmem:[#allocation1 + $0xc7] ss:$-25 sm:%s239_s27]   ;;  %114 = vst.msk [vmem:[#allocation0 + $0x4] ss:$56 sm:$0x3] %vm103_vm0, %v111_v15   ;;  %s258_s27 = smov 12 }
   0xf   :  { %v230_v17 = vld [vmem:[#allocation1 + $0x53] ss:$-25 sm:%s229_s23]   ;;  %v227_v18 = vld [vmem:[#allocation1 + $0x19] ss:$-25 sm:%s226_s22]   ;;  %v235_v19 = vld [vmem:[#allocation1 + $0x8d] ss:$-25 sm:%s234_s24]  }
  0x10   :  { %71 = vst [vmem:[#allocation1 + $0x40] sm:$0x3] %v513_v11  ;;  %v232_v20 = vsel %vm231_vm1, %v230_v17, %v227_v18  ;;  %v151_v21 = vld [vmem:[#allocation1 + $0x50] sm:$0x3]   ;;  %v506_v36 = vld [vmem:[%s756_s0 + $0x1e] sm:$0x3] }
  0x11   :  { %75 = vst [vmem:[#allocation1 + $0x38] sm:$0x3] %v514_v12  ;;  %v237_v23 = vsel %vm236_vm2, %v235_v19, %v232_v20  ;;  %v505_v31 = vld [vmem:[%s756_s0 + $0x20] sm:$0x3]  ;;  %v507_v38 = vld [vmem:[%s756_s0 + $0x1c] sm:$0x3] }
  0x12   :  { %124 = vst.msk [vmem:[#allocation0 + $0x9] ss:$56 sm:$0x3] %vm103_vm0, %v121_v14   ;;  %v242_v24 = vsel %vm241_vm3, %v240_v16, %v237_v23  ;;  %v498_v42 = vld [vmem:[%s756_s0 + $0x2e] sm:$0x3]  ;;  %s321_s8 = smov 48 }
  0x13   :  { %154 = vst.msk [vmem:[#allocation0 + $0x16] ss:$56 sm:$0x3] %vm103_vm0, %v151_v21   ;;  %243 = vrot.lane.b32.xlu0 %v242_v24, %s576_s9  ;;  %v146_v26 = vld [vmem:[#allocation1 + $0x48] sm:$0x3]   ;;  %s350_s14 = smov 48 }
  0x14   :  { %23 = vst [vmem:[#allocation1 + $0xa0] sm:$0x3] %v501_v22  ;;  %v293_v28 = vld [vmem:[#allocation1 + $0xad] ss:$-25 sm:%s292_s6]   ;;  %v499_v43 = vld [vmem:[%s756_s0 + $0x2c] sm:$0x3] }
  0x15   :  { %149 = vst.msk [vmem:[#allocation0 + $0x14] ss:$56 sm:$0x3] %vm103_vm0, %v146_v26   ;;  %v500_v44 = vld [vmem:[%s756_s0 + $0x2a] sm:$0x3]  ;;  %s345_s15 = smov 12 }
  0x16   :  { %27 = vst [vmem:[#allocation1 + $0x98] sm:$0x3] %v502_v25  ;;  %v510_v46 = vld [vmem:[%s756_s0 + $0x16] sm:$0x3]  ;;  %v508_v52 = vld [vmem:[%s756_s0 + $0x1a] sm:$0x3] }
  0x17   :  { %v288_v30 = vld [vmem:[#allocation1 + $0x73] ss:$-25 sm:%s287_s5]   ;;  %31 = vst [vmem:[#allocation1 + $0x90] sm:$0x3] %v503_v27  ;;  %s355_s18 = smov 192  ;;  %s374_s19 = smov 12 }
  0x18   :  { %v136_v32 = vld [vmem:[#allocation1 + $0x38] sm:$0x3]   ;;  %35 = vst [vmem:[#allocation1 + $0x88] sm:$0x3] %v504_v29  ;;  %v509_v56 = vld [vmem:[%s756_s0 + $0x18] sm:$0x3] }
  0x19   :  { %v285_v33 = vld [vmem:[#allocation1 + $0x39] ss:$-25 sm:%s284_s12]   ;;  %139 = vst.msk [vmem:[#allocation0 + $0x10] ss:$56 sm:$0x3] %vm103_vm0, %v136_v32   ;;  %s313_s12 = smov 3 }
  0x1a   :  { %v298_v34 = vld [vmem:[#allocation1 + $0xe7] ss:$-25 sm:%s297_s13]   ;;  %v290_v35 = vsel %vm231_vm1, %v288_v30, %v285_v33  ;;  %39 = vst [vmem:[#allocation1 + $0x80] sm:$0x3] %v505_v31  ;;  %v102_v58 = vld [vmem:[#allocation1] sm:$0x3]  }
  0x1b   :  { %v295_v37 = vsel %vm236_vm2, %v293_v28, %v290_v35  ;;  %43 = vst [vmem:[#allocation1 + $0x78] sm:$0x3] %v506_v36  ;;  %v201_v40 = vld [vmem:[#allocation1 + $0xa0] sm:$0x3]   ;;  %v106_v62 = vld [vmem:[#allocation1 + $0x8] sm:$0x3]  }
  0x1c   :  { %v300_v39 = vsel %vm241_vm3, %v298_v34, %v295_v37  ;;  %47 = vst [vmem:[#allocation1 + $0x70] sm:$0x3] %v507_v38  ;;  %s326_s13 = smov 192  ;;  %v141_v3 = vld [vmem:[#allocation1 + $0x40] sm:$0x3]   ;;  %s379_s20 = smov 48 }
  0x1d   :  { %301 = vrot.lane.b32.xlu1 %v300_v39, %s576_s9  ;;  %v196_v41 = vld [vmem:[#allocation1 + $0x98] sm:$0x3]   ;;  %204 = vst.msk [vmem:[#allocation0 + $0x2d] ss:$56 sm:$0x3] %vm103_vm0, %v201_v40   ;;  %s371_s21 = smov 3 }
  0x1e   :  { %199 = vst.msk [vmem:[#allocation0 + $0x2b] ss:$56 sm:$0x3] %vm103_vm0, %v196_v41   ;;  %v191_v48 = vld [vmem:[#allocation1 + $0x90] sm:$0x3]   ;;  %s384_s22 = smov 192 }
  0x1f   :  { %11 = vst [vmem:[#allocation1 + $0xb8] sm:$0x3] %v498_v42  ;;  %v186_v45 = vld [vmem:[#allocation1 + $0x88] sm:$0x3]   ;;  %v497_v5 = vld [vmem:[%s756_s0 + $0x30] sm:$0x3] }
  0x20   :  { %15 = vst [vmem:[#allocation1 + $0xb0] sm:$0x3] %v499_v43  ;;  %v269_v51 = vld [vmem:[#allocation1 + $0x137] ss:$-25 sm:%s268_s28]   ;;  %s342_s0 = smov 3 }
  0x21   :  { %189 = vst.msk [vmem:[#allocation0 + $0x26] ss:$56 sm:$0x3] %vm103_vm0, %v186_v45   ;;  %v264_v47 = vld [vmem:[#allocation1 + $0xfd] ss:$-25 sm:%s263_s26]  }
  0x22   :  { %v176_v49 = vld [vmem:[#allocation1 + $0x78] sm:$0x3]   ;;  %19 = vst [vmem:[#allocation1 + $0xa8] sm:$0x3] %v500_v44  ;;  %v351_v9 = vld [vmem:[#allocation1 + $0x18c] ss:$-79 sm:%s350_s14]  }
  0x23   :  { %v259_v50 = vld [vmem:[#allocation1 + $0xc3] ss:$-25 sm:%s258_s27]   ;;  %179 = vst.msk [vmem:[#allocation0 + $0x22] ss:$56 sm:$0x3] %vm103_vm0, %v176_v49  }
  0x24   :  { %v171_v53 = vld [vmem:[#allocation1 + $0x70] sm:$0x3]   ;;  %59 = vst [vmem:[#allocation1 + $0x58] sm:$0x3] %v510_v46  ;;  %v181_v12 = vld [vmem:[#allocation1 + $0x80] sm:$0x3]  }
  0x25   :  { %174 = vst.msk [vmem:[#allocation0 + $0x20] ss:$56 sm:$0x3] %vm103_vm0, %v171_v53   ;;  %v256_v54 = vld [vmem:[#allocation1 + $0x89] ss:$-25 sm:%s255_s4]  }
  0x26   :  { %v261_v55 = vsel %vm231_vm1, %v259_v50, %v256_v54  ;;  %194 = vst.msk [vmem:[#allocation0 + $0x29] ss:$56 sm:$0x3] %vm103_vm0, %v191_v48   ;;  %v216_v61 = vld [vmem:[#allocation1 + $0xb8] sm:$0x3]  }
  0x27   :  { %v266_v57 = vsel %vm236_vm2, %v264_v47, %v261_v55  ;;  %v317_v60 = vld [vmem:[#allocation1 + $0xe3] ss:$-25 sm:%s316_s7]   ;;  %51 = vst [vmem:[#allocation1 + $0x68] sm:$0x3] %v508_v52  ;;  %v322_v63 = vld [vmem:[#allocation1 + $0x11d] ss:$-25 sm:%s321_s8]  }
  0x28   :  { %v271_v59 = vsel %vm241_vm3, %v269_v51, %v266_v57  ;;  %219 = vst.msk [vmem:[#allocation0 + $0x34] ss:$56 sm:$0x3] %vm103_vm0, %v216_v61   ;;  %v211_v17 = vld [vmem:[#allocation1 + $0xb0] sm:$0x3]  }
  0x29   :  { %272 = vrot.lane.b32.xlu0 %v271_v59, %s576_s9  ;;  %v206_v0 = vld [vmem:[#allocation1 + $0xa8] sm:$0x3]   ;;  %55 = vst [vmem:[#allocation1 + $0x60] sm:$0x3] %v509_v56 }
  0x2a   :  { %v314_v1 = vld [vmem:[#allocation1 + $0xa9] ss:$-25 sm:%s313_s12]   ;;  %209 = vst.msk [vmem:[#allocation0 + $0x30] ss:$56 sm:$0x3] %vm103_vm0, %v206_v0  }
  0x2b   :  { %v319_v2 = vsel %vm231_vm1, %v317_v60, %v314_v1  ;;  %104 = vst.msk [vmem:[#allocation0] ss:$56 sm:$0x3] %vm103_vm0, %v102_v58   ;;  %v327_v6 = vld [vmem:[#allocation1 + $0x282] ss:$-79 sm:%s326_s13]  }
  0x2c   :  { %v324_v4 = vsel %vm236_vm2, %v322_v63, %v319_v2  ;;  %109 = vst.msk [vmem:[#allocation0 + $0x2] ss:$56 sm:$0x3] %vm103_vm0, %v106_v62   ;;  %v156_v8 = vld [vmem:[#allocation1 + $0x58] sm:$0x3]  }
  0x2d   :  { %v329_v7 = vsel %vm241_vm3, %v327_v6, %v324_v4  ;;  %144 = vst.msk [vmem:[#allocation0 + $0x12] ss:$56 sm:$0x3] %vm103_vm0, %v141_v3   ;;  %v356_v14 = vld [vmem:[#allocation1 + $0x232] ss:$-79 sm:%s355_s18]  }
  0x2e   :  { %330 = vrot.lane.b32.xlu1 %v329_v7, %s576_s9  ;;  %159 = vst.msk [vmem:[#allocation0 + $0x19] ss:$56 sm:$0x3] %vm103_vm0, %v156_v8   ;;  %v346_v10 = vld [vmem:[#allocation1 + $0x6] ss:$33 sm:%s345_s15]  }
  0x2f   :  { %7 = vst [vmem:[#allocation1 + $0xc0] sm:$0x3] %v497_v5  ;;  %v166_v11 = vld [vmem:[#allocation1 + $0x68] sm:$0x3]  }
  0x30   :  { %v343_v13 = vld [vmem:[#allocation1 + $0x40] ss:$33 sm:%s342_s0]   ;;  %169 = vst.msk [vmem:[#allocation0 + $0x1d] ss:$56 sm:$0x3] %vm103_vm0, %v166_v11  }
  0x31   :  { %v161_v15 = vld [vmem:[#allocation1 + $0x60] sm:$0x3]   ;;  %v348_v16 = vsel %vm231_vm1, %v346_v10, %v343_v13  ;;  %184 = vst.msk [vmem:[#allocation0 + $0x24] ss:$56 sm:$0x3] %vm103_vm0, %v181_v12  }
  0x32   :  { %164 = vst.msk [vmem:[#allocation0 + $0x1b] ss:$56 sm:$0x3] %vm103_vm0, %v161_v15   ;;  %v353_v18 = vsel %vm236_vm2, %v351_v9, %v348_v16  ;;  %v375_v20 = vld [vmem:[#allocation1 + $0x61] ss:$8 sm:%s374_s19]  }
  0x33   :  { %v358_v19 = vsel %vm241_vm3, %v356_v14, %v353_v18  ;;  %214 = vst.msk [vmem:[#allocation0 + $0x32] ss:$56 sm:$0x3] %vm103_vm0, %v211_v17   ;;  %v380_v21 = vld [vmem:[#allocation1 + $0x19c] ss:$-79 sm:%s379_s20]  }
  0x34   :  { %359 = vrot.lane.b32.xlu2 %v358_v19, %s576_s9  ;;  %v385_v23 = vld [vmem:[#allocation1 - $0x2e] ss:$25 sm:%s384_s22]  }
  0x36   :  { %v372_v22 = vld [vmem:[#allocation1 + $0xb0] ss:$8 sm:%s371_s21]  }
  0x37   :  { %v221_v24 = vld [vmem:[#allocation1 + $0xc0] sm:$0x3]   ;;  %v377_v25 = vsel %vm231_vm1, %v375_v20, %v372_v22 }
  0x38   :  { %224 = vst.msk [vmem:[#allocation0 + $0x36] ss:$56 sm:$0x3] %vm103_vm0, %v221_v24   ;;  %v382_v26 = vsel %vm236_vm2, %v380_v21, %v377_v25 }
  0x39   :  { %v387_v27 = vsel %vm241_vm3, %v385_v23, %v382_v26 }
  0x3c   :  { %388 = vrot.lane.b32.xlu2 %v387_v27, %s576_s9 }
  0x85   :  { %v244_v28 = vpop.permute.xlu0 %243  }
  0x86   :  { %247 = vst.msk [vmem:[#allocation0 + $0x40] ss:$-63 sm:$0x3] %vm103_vm0, %v244_v28  }
  0x87   :  { %249 = vst.msk [vmem:[#allocation0 + $0xc0] ss:$-63 sm:$0xc] %vm103_vm0, %v244_v28  }
  0x88   :  { %251 = vst.msk [vmem:[#allocation0 + $0x140] ss:$-63 sm:$0x30] %vm103_vm0, %v244_v28  }
  0x89   :  { %253 = vst.msk [vmem:[#allocation0 + $0x1ba] ss:$-62 sm:$0xc0] %vm103_vm0, %v244_v28  }
  0x8e   :  { %v360_v30 = vpop.permute.xlu2 %359  }
  0x8f   :  { %v302_v29 = vpop.permute.xlu1 %301   ;;  %363 = vst.msk [vmem:[#allocation0 + $0x13] ss:$65 sm:$0x3] %vm103_vm0, %v360_v30   ;;  %v401_v32 = vld [vmem:[#allocation0] sm:$0xff] }
  0x90   :  { %305 = vst.msk [vmem:[#allocation0 + $0x49] ss:$-63 sm:$0x3] %vm103_vm0, %v302_v29   ;;  %v456_v33 = vld [vmem:[#allocation0 + $0x40] sm:$0xff] }
  0x91   :  { %365 = vst.msk [vmem:[#allocation0 - $0x6d] ss:$65 sm:$0xc] %vm103_vm0, %v360_v30  }
  0x92   :  { %367 = vst.msk [vmem:[#allocation0 - $0x6c] ss:$33 sm:$0x30] %vm103_vm0, %v360_v30  }
  0x93   :  { %369 = vst.msk [vmem:[#allocation0 - $0xac] ss:$33 sm:$0xc0] %vm103_vm0, %v360_v30  }
  0x94   :  { %307 = vst.msk [vmem:[#allocation0 + $0xc9] ss:$-63 sm:$0xc] %vm103_vm0, %v302_v29  }
  0x95   :  { %309 = vst.msk [vmem:[#allocation0 + $0x149] ss:$-63 sm:$0x30] %vm103_vm0, %v302_v29  }
  0x96   :  { %311 = vst.msk [vmem:[#allocation0 + $0x1ca] ss:$-63 sm:$0xc0] %vm103_vm0, %v302_v29   ;;  %v389_v31 = vpop.permute.xlu2 %388  }
  0x97   :  { %392 = vst.msk [vmem:[#allocation0 + $0x33] ss:$2 sm:$0x3] %vm103_vm0, %v389_v31  }
  0x98   :  { %394 = vst.msk [vmem:[#allocation0 + $0x55] ss:$2 sm:$0xc] %vm103_vm0, %v389_v31  }
  0x99   :  { %396 = vst.msk [vmem:[#allocation0 - $0x68] ss:$33 sm:$0x30] %vm103_vm0, %v389_v31  }
  0x9a   :  { %398 = vst.msk [vmem:[#allocation0 - $0x15c] ss:$63 sm:$0xc0] %vm103_vm0, %v389_v31  }
  0x9b   :  { %v273_v34 = vpop.permute.xlu0 %272  }
  0x9c   :  { %v407_v35 = vld [vmem:[#allocation0 + $0x8] sm:$0xff]  ;;  %276 = vst.msk [vmem:[#allocation0 + $0x60] ss:$-63 sm:$0x3] %vm103_vm0, %v273_v34  }
  0x9d   :  { %v463_v36 = vld [vmem:[#allocation0 + $0x48] sm:$0xff]  ;;  %v537_v37 = vpack.c.bf16 %v407_v35, %v401_v32  ;;  %278 = vst.msk [vmem:[#allocation0 + $0xe0] ss:$-63 sm:$0xc] %vm103_vm0, %v273_v34   ;;  %v414_v39 = vld [vmem:[#allocation0 + $0x10] sm:$0xff] }
  0x9e   :  { %v557_v38 = vpack.c.bf16 %v463_v36, %v456_v33  ;;  %280 = vst.msk [vmem:[#allocation0 + $0x160] ss:$-63 sm:$0x30] %vm103_vm0, %v273_v34  }
  0x9f   :  { %538 = vst [vmem:[%s757_s1] sm:$0xff] %v537_v37  }
  0xa0   :  { %572 = vst [vmem:[%s757_s1 + $0x20] sm:$0xff] %v557_v38   ;;  %v331_v40 = vpop.permute.xlu1 %330   ;;  %v449_v50 = vld [vmem:[#allocation0 + $0x38] sm:$0xff] }
  0xa1   :  { %282 = vst.msk [vmem:[#allocation0 + $0x1da] ss:$-62 sm:$0xc0] %vm103_vm0, %v273_v34   ;;  %v421_v41 = vld [vmem:[#allocation0 + $0x18] sm:$0xff] }
  0xa2   :  { %334 = vst.msk [vmem:[#allocation0 + $0x69] ss:$-63 sm:$0x3] %vm103_vm0, %v331_v40   ;;  %v542_v42 = vpack.c.bf16 %v421_v41, %v414_v39  ;;  %v477_v45 = vld [vmem:[#allocation0 + $0x58] sm:$0xff] }
  0xa3   :  { %336 = vst.msk [vmem:[#allocation0 + $0xe9] ss:$-63 sm:$0xc] %vm103_vm0, %v331_v40  }
  0xa4   :  { %338 = vst.msk [vmem:[#allocation0 + $0x169] ss:$-63 sm:$0x30] %vm103_vm0, %v331_v40  }
  0xa5   :  { %569 = vst [vmem:[%s757_s1 + $0x8] sm:$0xff] %v542_v42   ;;  %v428_v43 = vld [vmem:[#allocation0 + $0x20] sm:$0xff] }
  0xa6   :  { %340 = vst.msk [vmem:[#allocation0 - $0x95] ss:$33 sm:$0xc0] %vm103_vm0, %v331_v40  }
  0xa8   :  { %v484_v44 = vld [vmem:[#allocation0 + $0x60] sm:$0xff] }
  0xab   :  { %v435_v46 = vld [vmem:[#allocation0 + $0x28] sm:$0xff] }
  0xac   :  { %v491_v47 = vld [vmem:[#allocation0 + $0x68] sm:$0xff]  ;;  %v547_v49 = vpack.c.bf16 %v435_v46, %v428_v43 }
  0xad   :  { %v567_v48 = vpack.c.bf16 %v491_v47, %v484_v44  ;;  %v442_v51 = vld [vmem:[#allocation0 + $0x30] sm:$0xff] }
  0xae   :  { %v470_v52 = vld [vmem:[#allocation0 + $0x50] sm:$0xff]  ;;  %v552_v53 = vpack.c.bf16 %v449_v50, %v442_v51  ;;  %570 = vst [vmem:[%s757_s1 + $0x10] sm:$0xff] %v547_v49  }
  0xaf   :  { %574 = vst [vmem:[%s757_s1 + $0x30] sm:$0xff] %v567_v48   ;;  %v562_v54 = vpack.c.bf16 %v477_v45, %v470_v52 }
  0xb0   :  { %571 = vst [vmem:[%s757_s1 + $0x18] sm:$0xff] %v552_v53  }
  0xb1   :  { %573 = vst [vmem:[%s757_s1 + $0x28] sm:$0xff] %v562_v54  }

// kernel: basic_deconv_forward.5
= control target key start
LH: loop header
LB: loop body
LE: loop exit
PB: predicated region body
PF: predicated region fallthrough
CT: control target
= control target key end

     0   :  { %s1301_s12 = smov 0   ;;  %s1555_s0 = inlined_call_operand.vmem [shape: bf16[2,81,576], index: 0, kind: input, shape index: {}]   ;;  %s1556_s1 = inlined_call_operand.vmem [shape: bf16[576,64], index: 1, kind: input, shape index: {}]   ;;  %s1557_s2 = inlined_call_operand.vmem [shape: f32[1,64], index: 2, kind: input, shape index: {}]   ;;  %s1558_s3 = inlined_call_operand.vmem [shape: f32[2,81,64], index: 3, kind: output, shape index: {}]  }
   0x1 LB: > { %s926_s13 = sadd.s32 4294967295, %s1279_s12   ;;  %p930_p0 = scmp.ge.s32.totalorder %s1279_s12, 1  ;;  %s1279_s12 = sphi %s1301_s12, %s13_s12  }
   0x2   : > { %p137_p1 = scmp.lt.s32.totalorder %s1279_s12, 3 }
   0x4   : > { %p138_p2 = pnand %p930_p0, %p137_p1 }
   0x5   : > { %p161_p3 = scmp.lt.s32.totalorder (!%p138_p2), %s926_s13, 1 }
   0x6   : > { %141 = sbr.rel (%p138_p2) target bundleno = 299 (0x12b), region = 32 }
   0xb   : > { %v1217_v0 = vld [vmem:[%s1556_s1 + $0x38] sm:$0xff]  ;;  %v1216_v1 = vld [vmem:[%s1556_s1 + $0x30] sm:$0xff]  ;;  %v1215_v4 = vld [vmem:[%s1556_s1 + $0x28] sm:$0xff]  ;;  %s1560_s13 = smov (!%p161_p3, %s926_s13), 1  ;;  %vm639_vm0 = vcmask 523264   ;;  %vm869_vm1 = vcmask 516096  }
   0xc   : > { %658 = vmatpush.bf16.msra.mxu0 %v1217_v0  ;;  %1246 = vmatpush.bf16.msra.mxu1 %v1217_v0  ;;  %v1241_v2 = vld [vmem:[%s1556_s1 + $0xf8] sm:$0xff]  ;;  %v1240_v3 = vld [vmem:[%s1556_s1 + $0xf0] sm:$0xff]  ;;  %v1239_v5 = vld [vmem:[%s1556_s1 + $0xe8] sm:$0xff]  ;;  %s1262_s9 = smul.u32 220, %s1560_s13 }
   0xd   : > { %1247 = vmatpush.bf16.msra.mxu2 %v1217_v0  ;;  %772 = vmatpush.bf16.msra.mxu3 %v1241_v2  ;;  %v1214_v6 = vld [vmem:[%s1556_s1 + $0x20] sm:$0xff]  ;;  %v1213_v8 = vld [vmem:[%s1556_s1 + $0x18] sm:$0xff]  ;;  %v1212_v10 = vld [vmem:[%s1556_s1 + $0x10] sm:$0xff] }
   0xe   : > { %v1238_v7 = vld [vmem:[%s1556_s1 + $0xe0] sm:$0xff]  ;;  %v1237_v9 = vld [vmem:[%s1556_s1 + $0xd8] sm:$0xff]  ;;  %v1236_v11 = vld [vmem:[%s1556_s1 + $0xd0] sm:$0xff]  ;;  %s1354_s18 = scalar_lea.vmem %s1555_s0, %s1262_s9 }
   0xf   : > { %v1211_v12 = vld [vmem:[%s1556_s1 + $0x8] sm:$0xff]  ;;  %v1210_v14 = vld [vmem:[%s1556_s1] sm:$0xff]  ;;  %v1187_v16 = vld [vmem:[%s1354_s18 + $0x10] sm:$0xf0] }
  0x10   : > { %659 = vmatpush.bf16.msra.mxu0 %v1216_v1  ;;  %1248 = vmatpush.bf16.msra.mxu1 %v1216_v1  ;;  %v1235_v13 = vld [vmem:[%s1556_s1 + $0xc8] sm:$0xff]  ;;  %v935_v15 = vld [vmem:[%s1354_s18] sm:$0xf]  ;;  %v975_v17 = vld [vmem:[%s1354_s18 + $0x50] sm:$0xf] }
  0x11   : > { %1249 = vmatpush.bf16.msra.mxu2 %v1216_v1  ;;  %773 = vmatpush.bf16.msra.mxu3 %v1240_v3  ;;  %v1197_v18 = vld [vmem:[%s1354_s18 + $0x60] sm:$0xf0]  ;;  %v1015_v19 = vld [vmem:[%s1354_s18 + $0xa0] sm:$0xf]  ;;  %v1207_v20 = vld [vmem:[%s1354_s18 + $0xb0] sm:$0xf0]  ;;  %v936_v24 = vor.u32 %v1187_v16, %v935_v15 }
  0x12   : > { %v1225_v21 = vld [vmem:[%s1556_s1 + $0x78] sm:$0xff]  ;;  %v976_v25 = vor.u32 %v1197_v18, %v975_v17  ;;  %v1016_v26 = vor.u32 %v1207_v20, %v1015_v19  ;;  %v1234_v27 = vld [vmem:[%s1556_s1 + $0xc0] sm:$0xff]  ;;  %v1186_v28 = vld [vmem:[%s1354_s18 + $0xc] sm:$0xf] }
  0x13   : > { %v1233_v22 = vld [vmem:[%s1556_s1 + $0xb8] sm:$0xff]  ;;  %v945_v29 = vld [vmem:[%s1354_s18 + $0x1c] sm:$0xf0]  ;;  %v1224_v30 = vld [vmem:[%s1556_s1 + $0x70] sm:$0xff] }
  0x14   : > { %660 = vmatpush.bf16.msra.mxu0 %v1215_v4  ;;  %1250 = vmatpush.bf16.msra.mxu1 %v1215_v4  ;;  %v1245_v23 = vld [vmem:[%s1556_s1 + $0x118] sm:$0xff]  ;;  %v1232_v31 = vld [vmem:[%s1556_s1 + $0xb0] sm:$0xff]  ;;  %v948_v33 = vor.u32 %v1186_v28, %v945_v29  ;;  %v1223_v34 = vld [vmem:[%s1556_s1 + $0x68] sm:$0xff] }
  0x15   : > { %1251 = vmatpush.bf16.msra.mxu2 %v1215_v4  ;;  %774 = vmatpush.bf16.msra.mxu3 %v1239_v5  ;;  %v1244_v32 = vld [vmem:[%s1556_s1 + $0x110] sm:$0xff]  ;;  %v1231_v35 = vld [vmem:[%s1556_s1 + $0xa8] sm:$0xff]  ;;  %v1222_v37 = vld [vmem:[%s1556_s1 + $0x60] sm:$0xff] }
  0x16   : > { %v1243_v36 = vld [vmem:[%s1556_s1 + $0x108] sm:$0xff]  ;;  %v1230_v39 = vld [vmem:[%s1556_s1 + $0xa0] sm:$0xff]  ;;  %v1192_v42 = vld [vmem:[%s1354_s18 + $0x38] sm:$0xf0] }
  0x17   : > { %v1404_v38 = vld [vmem:[%s1354_s18 + $0xc8] sm:$0x11]  ;;  %v1242_v40 = vld [vmem:[%s1556_s1 + $0x100] sm:$0xff]  ;;  %v995_v43 = vld [vmem:[%s1354_s18 + $0x78] sm:$0xf] }
  0x18   : > { %661 = vmatpush.bf16.msra.mxu0 %v1214_v6  ;;  %1252 = vmatpush.bf16.msra.mxu1 %v1214_v6  ;;  %v955_v41 = vld [vmem:[%s1354_s18 + $0x28] sm:$0xf]  ;;  %v1202_v44 = vld [vmem:[%s1354_s18 + $0x88] sm:$0xf0]  ;;  %v364_v45 = vunpack.c.l.b16 %v1404_v38  ;;  %v1221_v46 = vld [vmem:[%s1556_s1 + $0x58] sm:$0xff] }
  0x19   : > { %1253 = vmatpush.bf16.msra.mxu2 %v1214_v6  ;;  %775 = vmatpush.bf16.msra.mxu3 %v1238_v7  ;;  %v1229_v47 = vld [vmem:[%s1556_s1 + $0x98] sm:$0xff]  ;;  %v956_v48 = vor.u32 %v1192_v42, %v955_v41  ;;  %v996_v49 = vor.u32 %v1202_v44, %v995_v43  ;;  %v1191_v51 = vld [vmem:[%s1354_s18 + $0x34] sm:$0xf]  ;;  %v965_v52 = vld [vmem:[%s1354_s18 + $0x44] sm:$0xf0] }
  0x1a   : > { %v394_v50 = vpack.c.b16 %v364_v45, %v364_v45  ;;  %v1220_v53 = vld [vmem:[%s1556_s1 + $0x50] sm:$0xff]  ;;  %v968_v55 = vor.u32 %v1191_v51, %v965_v52  ;;  %v1219_v56 = vld [vmem:[%s1556_s1 + $0x48] sm:$0xff]  ;;  %v1218_v58 = vld [vmem:[%s1556_s1 + $0x40] sm:$0xff] }
  0x1b   : > { %v1228_v54 = vld [vmem:[%s1556_s1 + $0x90] sm:$0xff]  ;;  %v1227_v57 = vld [vmem:[%s1556_s1 + $0x88] sm:$0xff]  ;;  %v1226_v59 = vld [vmem:[%s1556_s1 + $0x80] sm:$0xff] }
  0x1c   : > { %662 = vmatpush.bf16.msra.mxu0 %v1213_v8  ;;  %1254 = vmatpush.bf16.msra.mxu1 %v1213_v8  ;;  %v1185_v60 = vld [vmem:[%s1354_s18 + $0x4] sm:$0xf]  ;;  %v937_v61 = vld [vmem:[%s1354_s18 + $0x14] sm:$0xf0]  ;;  %v951_v62 = vld [vmem:[%s1354_s18 + $0x10] sm:$0xf] }
  0x1d   : > { %1255 = vmatpush.bf16.msra.mxu2 %v1213_v8  ;;  %776 = vmatpush.bf16.msra.mxu3 %v1237_v9  ;;  %v1189_v63 = vld [vmem:[%s1354_s18 + $0x20] sm:$0xf0]  ;;  %v943_v0 = vld [vmem:[%s1354_s18 + $0x8] sm:$0xf]  ;;  %v1188_v1 = vld [vmem:[%s1354_s18 + $0x18] sm:$0xf0]  ;;  %v940_v2 = vor.u32 %v1185_v60, %v937_v61 }
  0x1e   : > { %v952_v3 = vor.u32 %v1189_v63, %v951_v62  ;;  %v944_v4 = vor.u32 %v1188_v1, %v943_v0  ;;  %v1196_v5 = vld [vmem:[%s1354_s18 + $0x5c] sm:$0xf]  ;;  %v985_v6 = vld [vmem:[%s1354_s18 + $0x6c] sm:$0xf0]  ;;  %v1190_v8 = vld [vmem:[%s1354_s18 + $0x2c] sm:$0xf] }
  0x1f   : > { %v988_v7 = vor.u32 %v1196_v5, %v985_v6  ;;  %v957_v9 = vld [vmem:[%s1354_s18 + $0x3c] sm:$0xf0]  ;;  %v1201_v17 = vld [vmem:[%s1354_s18 + $0x84] sm:$0xf]  ;;  %v1005_v18 = vld [vmem:[%s1354_s18 + $0x94] sm:$0xf0] }
  0x20   : > { %663 = vmatpush.bf16.msra.mxu0 %v1212_v10  ;;  %1256 = vmatpush.bf16.msra.mxu1 %v1212_v10  ;;  %v1008_v19 = vor.u32 %v1201_v17, %v1005_v18  ;;  %v1195_v20 = vld [vmem:[%s1354_s18 + $0x54] sm:$0xf]  ;;  %v1206_v29 = vld [vmem:[%s1354_s18 + $0xac] sm:$0xf]  ;;  %v1205_v45 = vld [vmem:[%s1354_s18 + $0xa4] sm:$0xf] }
  0x21   : > { %1257 = vmatpush.bf16.msra.mxu2 %v1212_v10  ;;  %777 = vmatpush.bf16.msra.mxu3 %v1236_v11  ;;  %v971_v10 = vld [vmem:[%s1354_s18 + $0x38] sm:$0xf]  ;;  %v1194_v11 = vld [vmem:[%s1354_s18 + $0x48] sm:$0xf0]  ;;  %v1493_v63 = vld [vmem:[%s1557_s2] ss:$0 sm:$0xff] }
  0x22   : > { %v972_v15 = vor.u32 %v1194_v11, %v971_v10 }
  0x24   : > { %664 = vmatpush.bf16.msra.mxu0 %v1211_v12  ;;  %1258 = vmatpush.bf16.msra.mxu1 %v1211_v12 }
  0x25   : > { %1259 = vmatpush.bf16.msra.mxu2 %v1211_v12  ;;  %778 = vmatpush.bf16.msra.mxu3 %v1235_v13  ;;  %v963_v12 = vld [vmem:[%s1354_s18 + $0x30] sm:$0xf]  ;;  %v1193_v13 = vld [vmem:[%s1354_s18 + $0x40] sm:$0xf0] }
  0x26   : > { %v964_v16 = vor.u32 %v1193_v13, %v963_v12 }
  0x28   : > { %665 = vmatpush.bf16.msra.mxu0 %v1210_v14  ;;  %1260 = vmatpush.bf16.msra.mxu1 %v1210_v14 }
  0x29   : > { %1261 = vmatpush.bf16.msra.mxu2 %v1210_v14  ;;  %779 = vmatpush.bf16.msra.mxu3 %v1234_v27  ;;  %v960_v14 = vor.u32 %v1190_v8, %v957_v9 }
  0x2b   : > { %666 = vmatmul.bf16.vlgmr.msra.gmra.mxu0 %v936_v24  ;;  %676 = vmatmul.bf16.vlgmr.msra.gmra.mxu1 %v976_v25  ;;  %v983_v24 = vld [vmem:[%s1354_s18 + $0x58] sm:$0xf]  ;;  %v1198_v25 = vld [vmem:[%s1354_s18 + $0x68] sm:$0xf0] }
  0x2c   : > { %696 = vmatpush.bf16.msrb.mxu1 %v1225_v21  ;;  %814 = vmatpush.bf16.msrb.mxu0 %v1245_v23  ;;  %v977_v21 = vld [vmem:[%s1354_s18 + $0x64] sm:$0xf0]  ;;  %v1199_v23 = vld [vmem:[%s1354_s18 + $0x70] sm:$0xf0]  ;;  %v984_v28 = vor.u32 %v1198_v25, %v983_v24 }
  0x2d   : > { %734 = vmatpush.bf16.msrb.mxu2 %v1233_v22  ;;  %780 = vmatmul.bf16.vlgmr.msra.gmra.mxu3 %v948_v33  ;;  %v991_v22 = vld [vmem:[%s1354_s18 + $0x60] sm:$0xf]  ;;  %v997_v33 = vld [vmem:[%s1354_s18 + $0x8c] sm:$0xf0] }
  0x2e   : > { %686 = vmatmul.bf16.vlgmr.msra.gmra.mxu2 %v1016_v26  ;;  %v980_v26 = vor.u32 %v1195_v20, %v977_v21  ;;  %v992_v27 = vor.u32 %v1199_v23, %v991_v22 }
  0x30   : > { %697 = vmatpush.bf16.msrb.mxu1 %v1224_v30  ;;  %815 = vmatpush.bf16.msrb.mxu0 %v1244_v32  ;;  %v1025_v30 = vld [vmem:[%s1354_s18 + $0xbc] sm:$0xf0]  ;;  %v1200_v32 = vld [vmem:[%s1354_s18 + $0x7c] sm:$0xf] }
  0x31   : > { %735 = vmatpush.bf16.msrb.mxu2 %v1232_v31  ;;  %v1028_v31 = vor.u32 %v1206_v29, %v1025_v30 }
  0x34   : > { %698 = vmatpush.bf16.msrb.mxu1 %v1223_v34  ;;  %816 = vmatpush.bf16.msrb.mxu0 %v1243_v36  ;;  %v1011_v34 = vld [vmem:[%s1354_s18 + $0x88] sm:$0xf]  ;;  %v203_v36 = vld [vmem:[%s1354_s18 + $0xd0] sm:$0x11] }
  0x35   : > { %736 = vmatpush.bf16.msrb.mxu2 %v1231_v35  ;;  %v1204_v35 = vld [vmem:[%s1354_s18 + $0x98] sm:$0xf0]  ;;  %v367_v42 = vunpack.c.h.b16 %v203_v36 }
  0x36   : > { %v1012_v41 = vor.u32 %v1204_v35, %v1011_v34 }
  0x37   : > { %v397_v44 = vpack.c.b16 %v367_v42, %v367_v42 }
  0x38   : > { %699 = vmatpush.bf16.msrb.mxu1 %v1222_v37  ;;  %817 = vmatpush.bf16.msrb.mxu0 %v1242_v40  ;;  %v1003_v37 = vld [vmem:[%s1354_s18 + $0x80] sm:$0xf]  ;;  %v1000_v40 = vor.u32 %v1200_v32, %v997_v33 }
  0x39   : > { %737 = vmatpush.bf16.msrb.mxu2 %v1230_v39  ;;  %v1203_v39 = vld [vmem:[%s1354_s18 + $0x90] sm:$0xf0] }
  0x3a   : > { %v1004_v43 = vor.u32 %v1203_v39, %v1003_v37 }
  0x3b   : > { %671 = vmatmul.bf16.gmra.mxu0 %v956_v48  ;;  %681 = vmatmul.bf16.gmra.mxu1 %v996_v49  ;;  %v1209_v48 = vld [vmem:[%s1354_s18 + $0xc0] sm:$0xf0]  ;;  %v1023_v49 = vld [vmem:[%s1354_s18 + $0xa8] sm:$0xf] }
  0x3c   : > { %700 = vmatpush.bf16.msrb.mxu1 %v1221_v46  ;;  %v1017_v46 = vld [vmem:[%s1354_s18 + $0xb4] sm:$0xf0] }
  0x3d   : > { %738 = vmatpush.bf16.msrb.mxu2 %v1229_v47  ;;  %785 = vmatmul.bf16.gmra.mxu3 %v968_v55  ;;  %v1031_v47 = vld [vmem:[%s1354_s18 + $0xb0] sm:$0xf]  ;;  %v1020_v51 = vor.u32 %v1205_v45, %v1017_v46  ;;  %v365_v55 = vunpack.c.h.b16 %v1404_v38 }
  0x3e   : > { %691 = vmatmul.bf16.gmra.mxu2 %v394_v50  ;;  %v1208_v50 = vld [vmem:[%s1354_s18 + $0xb8] sm:$0xf0]  ;;  %v1032_v52 = vor.u32 %v1209_v48, %v1031_v47 }
  0x40   : > { %701 = vmatpush.bf16.msrb.mxu1 %v1220_v53  ;;  %v1024_v53 = vor.u32 %v1208_v50, %v1023_v49 }
  0x41   : > { %739 = vmatpush.bf16.msrb.mxu2 %v1228_v54  ;;  %v204_v54 = vld [vmem:[%s1354_s18 + $0xd8] sm:$0x1]  ;;  %s1263_s18 = smul.u32 88, %s1560_s13 }
  0x43   : > { %s1516_s21 = scalar_lea.vmem %s1558_s3, %s1263_s18 }
  0x44   : > { %702 = vmatpush.bf16.msrb.mxu1 %v1219_v56  ;;  %v368_v56 = vunpack.c.l.b16 %v204_v54 }
  0x45   : > { %740 = vmatpush.bf16.msrb.mxu2 %v1227_v57  ;;  %v366_v57 = vunpack.c.l.b16 %v203_v36 }
  0x47   : > { %v396_v60 = vpack.c.b16 %v366_v57, %v366_v57 }
  0x48   : > { %703 = vmatpush.bf16.msrb.mxu1 %v1218_v58  ;;  %v395_v58 = vpack.c.b16 %v365_v55, %v365_v55 }
  0x49   : > { %741 = vmatpush.bf16.msrb.mxu2 %v1226_v59  ;;  %v398_v59 = vpack.c.b16 %v368_v56, %v368_v56 }
  0x4b   : > { %704 = vmatmul.bf16.vlgmr.msrb.gmra.mxu1 %v940_v2  ;;  %1177 = vmatmul.msk.bf16.vlgmr.msrb.gmra.mxu0 %vm639_vm0, %v952_v3 }
  0x4d   : > { %790 = vmatmul.bf16.gmra.mxu3 %v988_v7 }
  0x4e   : > { %742 = vmatmul.bf16.vlgmr.msrb.gmra.mxu2 %v944_v4 }
  0x5b   : > { %709 = vmatmul.bf16.gmra.mxu1 %v960_v14  ;;  %1178 = vmatmul.msk.bf16.gmra.mxu0 %vm639_vm0, %v972_v15 }
  0x5d   : > { %795 = vmatmul.bf16.gmra.mxu3 %v1008_v19 }
  0x5e   : > { %747 = vmatmul.bf16.gmra.mxu2 %v964_v16 }
  0x6b   : > { %714 = vmatmul.bf16.gmra.mxu1 %v980_v26  ;;  %1179 = vmatmul.msk.bf16.gmra.mxu0 %vm639_vm0, %v992_v27 }
  0x6d   : > { %800 = vmatmul.bf16.gmra.mxu3 %v1028_v31 }
  0x6e   : > { %752 = vmatmul.bf16.gmra.mxu2 %v984_v28 }
  0x7b   : > { %719 = vmatmul.bf16.gmra.mxu1 %v1000_v40  ;;  %1180 = vmatmul.msk.bf16.gmra.mxu0 %vm639_vm0, %v1012_v41 }
  0x7d   : > { %805 = vmatmul.bf16.gmra.mxu3 %v397_v44 }
  0x7e   : > { %757 = vmatmul.bf16.gmra.mxu2 %v1004_v43 }
  0x8b   : > { %724 = vmatmul.bf16.gmra.mxu1 %v1020_v51  ;;  %1181 = vmatmul.msk.bf16.gmra.mxu0 %vm639_vm0, %v1032_v52 }
  0x8e   : > { %762 = vmatmul.bf16.gmra.mxu2 %v1024_v53 }
  0x9b   : > { %729 = vmatmul.bf16.gmra.mxu1 %v395_v58  ;;  %1182 = vmatmul.msk.bf16.gmra.mxu0 %vm639_vm0, %v398_v59 }
  0x9e   : > { %767 = vmatmul.bf16.gmra.mxu2 %v396_v60 }
  0xa8   : > { %v667_v61 = vpop.f32.mrf.mxu0  ;;  %v1488_v62 = vpop.f32.mrf.mxu1 }
  0xa9   : > { %v668_v18 = vadd.f32 %v1493_v63, %v667_v61  ;;  %v678_v57 = vadd.f32 %v1493_v63, %v1488_v62 }
  0xb0   : > { %v669_v1 = vpop.f32.mrf.mxu0  ;;  %v1498_v2 = vpop.f32.mrf.mxu1 }
  0xb1   : > { %v687_v0 = vpop.f32.mrf.mxu2  ;;  %v781_v3 = vpop.f32.mrf.mxu3  ;;  %v670_v26 = vadd.f32 %v1493_v63, %v669_v1 }
  0xb2   : > { %v1496_v38 = vadd.f32 %v1493_v63, %v687_v0 }
  0xb8   : > { %v672_v6 = vpop.f32.mrf.mxu0  ;;  %v1503_v7 = vpop.f32.mrf.mxu1 }
  0xb9   : > { %v689_v4 = vpop.f32.mrf.mxu2  ;;  %v783_v8 = vpop.f32.mrf.mxu3  ;;  %v673_v36 = vadd.f32 %v1493_v63, %v672_v6 }
  0xba   : > { %v1501_v5 = vadd.f32 %v1493_v63, %v689_v4 }
  0xc0   : > { %v674_v11 = vpop.f32.mrf.mxu0  ;;  %v1508_v12 = vpop.f32.mrf.mxu1 }
  0xc1   : > { %v692_v9 = vpop.f32.mrf.mxu2  ;;  %v786_v13 = vpop.f32.mrf.mxu3  ;;  %v675_v47 = vadd.f32 %v1493_v63, %v674_v11 }
  0xc2   : > { %v1506_v10 = vadd.f32 %v1493_v63, %v692_v9 }
  0xc8   : > { %v705_v15 = vpop.f32.mrf.mxu1  ;;  %v819_v16 = vpop.f32.mrf.mxu0 }
  0xc9   : > { %v694_v14 = vpop.f32.mrf.mxu2  ;;  %v788_v17 = vpop.f32.mrf.mxu3  ;;  %v706_v19 = vadd.f32 %v705_v15, %v668_v18 }
  0xd0   : > { %v707_v22 = vpop.f32.mrf.mxu1  ;;  %v821_v23 = vpop.f32.mrf.mxu0 }
  0xd1   : > { %v743_v20 = vpop.f32.mrf.mxu2  ;;  %v791_v25 = vpop.f32.mrf.mxu3  ;;  %v708_v29 = vadd.f32 %v707_v22, %v670_v26 }
  0xd2   : > { %v744_v21 = vadd.f32 %v743_v20, %v706_v19  ;;  %v683_v19 = vadd.f32 %v1493_v63, %v1503_v7 }
  0xd4   : > { %v782_v24 = vadd.f32 %v781_v3, %v744_v21 }
  0xd6   : > { %v820_v27 = vadd.f32 %v819_v16, %v782_v24 }
  0xd8   : > { %v848_v28 = vmax.f32 %v820_v27, 0.0  ;;  %v710_v32 = vpop.f32.mrf.mxu1  ;;  %v824_v33 = vpop.f32.mrf.mxu0 }
  0xd9   : > { %v745_v30 = vpop.f32.mrf.mxu2  ;;  %v793_v35 = vpop.f32.mrf.mxu3  ;;  %v711_v40 = vadd.f32 %v710_v32, %v673_v36 }
  0xda   : > { %859 = vst.msk [vmem:[%s1516_s21] sm:$0xff] %vm639_vm0, %v848_v28  ;;  %v746_v31 = vadd.f32 %v745_v30, %v708_v29  ;;  %v685_v28 = vadd.f32 %v1493_v63, %v1508_v12 }
  0xdc   : > { %v784_v34 = vadd.f32 %v783_v8, %v746_v31  ;;  %v680_v8 = vadd.f32 %v1493_v63, %v1498_v2 }
  0xde   : > { %v822_v37 = vadd.f32 %v821_v23, %v784_v34 }
  0xe0   : > { %v849_v39 = vmax.f32 %v822_v37, 0.0  ;;  %v712_v43 = vpop.f32.mrf.mxu1  ;;  %v826_v44 = vpop.f32.mrf.mxu0 }
  0xe1   : > { %v748_v41 = vpop.f32.mrf.mxu2  ;;  %v796_v46 = vpop.f32.mrf.mxu3  ;;  %v713_v50 = vadd.f32 %v712_v43, %v675_v47 }
  0xe2   : > { %860 = vst.msk [vmem:[%s1516_s21 + $0x8] sm:$0xff] %vm639_vm0, %v849_v39  ;;  %v749_v42 = vadd.f32 %v748_v41, %v711_v40 }
  0xe4   : > { %v787_v45 = vadd.f32 %v786_v13, %v749_v42 }
  0xe6   : > { %v825_v48 = vadd.f32 %v824_v33, %v787_v45 }
  0xe8   : > { %v850_v49 = vmax.f32 %v825_v48, 0.0  ;;  %v715_v53 = vpop.f32.mrf.mxu1  ;;  %v829_v54 = vpop.f32.mrf.mxu0 }
  0xe9   : > { %v750_v51 = vpop.f32.mrf.mxu2  ;;  %v798_v56 = vpop.f32.mrf.mxu3  ;;  %v716_v60 = vadd.f32 %v715_v53, %v678_v57 }
  0xea   : > { %861 = vst.msk [vmem:[%s1516_s21 + $0x10] sm:$0xff] %vm639_vm0, %v850_v49  ;;  %v751_v52 = vadd.f32 %v750_v51, %v713_v50 }
  0xec   : > { %v789_v55 = vadd.f32 %v788_v17, %v751_v52 }
  0xee   : > { %v827_v58 = vadd.f32 %v826_v44, %v789_v55 }
  0xf0   : > { %v851_v59 = vmax.f32 %v827_v58, 0.0  ;;  %v717_v1 = vpop.f32.mrf.mxu1  ;;  %v831_v3 = vpop.f32.mrf.mxu0 }
  0xf1   : > { %v753_v61 = vpop.f32.mrf.mxu2  ;;  %v801_v6 = vpop.f32.mrf.mxu3  ;;  %v718_v13 = vadd.f32 %v717_v1, %v680_v8 }
  0xf2   : > { %862 = vst.msk [vmem:[%s1516_s21 + $0x18] sm:$0xff] %vm639_vm0, %v851_v59  ;;  %v754_v0 = vadd.f32 %v753_v61, %v716_v60 }
  0xf4   : > { %v792_v4 = vadd.f32 %v791_v25, %v754_v0 }
  0xf6   : > { %v830_v9 = vadd.f32 %v829_v54, %v792_v4 }
  0xf8   : > { %v852_v11 = vmax.f32 %v830_v9, 0.0  ;;  %v720_v15 = vpop.f32.mrf.mxu1  ;;  %v834_v16 = vpop.f32.mrf.mxu0 }
  0xf9   : > { %v755_v62 = vpop.f32.mrf.mxu2  ;;  %v803_v18 = vpop.f32.mrf.mxu3  ;;  %v721_v22 = vadd.f32 %v720_v15, %v683_v19 }
  0xfa   : > { %863 = vst.msk [vmem:[%s1516_s21 + $0x20] sm:$0xff] %vm639_vm0, %v852_v11  ;;  %v756_v14 = vadd.f32 %v755_v62, %v718_v13 }
  0xfc   : > { %v794_v17 = vadd.f32 %v793_v35, %v756_v14 }
  0xfe   : > { %v832_v20 = vadd.f32 %v831_v3, %v794_v17 }
 0x100   : > { %v853_v21 = vmax.f32 %v832_v20, 0.0  ;;  %v722_v24 = vpop.f32.mrf.mxu1  ;;  %v836_v25 = vpop.f32.mrf.mxu0 }
 0x101   : > { %v758_v2 = vpop.f32.mrf.mxu2  ;;  %v806_v27 = vpop.f32.mrf.mxu3  ;;  %v723_v31 = vadd.f32 %v722_v24, %v685_v28 }
 0x102   : > { %864 = vst.msk [vmem:[%s1516_s21 + $0x28] sm:$0xff] %vm639_vm0, %v853_v21  ;;  %v759_v23 = vadd.f32 %v758_v2, %v721_v22 }
 0x104   : > { %v797_v26 = vadd.f32 %v796_v46, %v759_v23 }
 0x106   : > { %v835_v29 = vadd.f32 %v834_v16, %v797_v26 }
 0x108   : > { %v854_v30 = vmax.f32 %v835_v29, 0.0  ;;  %v725_v33 = vpop.f32.mrf.mxu1  ;;  %v839_v34 = vpop.f32.mrf.mxu0 }
 0x109   : > { %v760_v7 = vpop.f32.mrf.mxu2  ;;  %v808_v36 = vpop.f32.mrf.mxu3  ;;  %v726_v40 = vadd.f32 %v725_v33, %v1496_v38 }
 0x10a   : > { %865 = vst.msk [vmem:[%s1516_s21 + $0x30] sm:$0xff] %vm639_vm0, %v854_v30  ;;  %v761_v32 = vadd.f32 %v760_v7, %v723_v31 }
 0x10c   : > { %v799_v35 = vadd.f32 %v798_v56, %v761_v32 }
 0x10e   : > { %v837_v37 = vadd.f32 %v836_v25, %v799_v35 }
 0x110   : > { %v855_v39 = vmax.f32 %v837_v37, 0.0  ;;  %v727_v12 = vpop.f32.mrf.mxu1  ;;  %v841_v42 = vpop.f32.mrf.mxu0 }
 0x111   : > { %v763_v41 = vpop.f32.mrf.mxu2  ;;  %v728_v46 = vadd.f32 %v727_v12, %v1501_v5 }
 0x112   : > { %866 = vst.msk [vmem:[%s1516_s21 + $0x38] sm:$0xff] %vm639_vm0, %v855_v39  ;;  %v764_v63 = vadd.f32 %v763_v41, %v726_v40 }
 0x114   : > { %v802_v43 = vadd.f32 %v801_v6, %v764_v63 }
 0x116   : > { %v840_v44 = vadd.f32 %v839_v34, %v802_v43 }
 0x118   : > { %v856_v45 = vmax.f32 %v840_v44, 0.0  ;;  %v730_v49 = vpop.f32.mrf.mxu1  ;;  %v844_v50 = vpop.f32.mrf.mxu0 }
 0x119   : > { %v765_v47 = vpop.f32.mrf.mxu2  ;;  %v731_v53 = vadd.f32 %v730_v49, %v1506_v10 }
 0x11a   : > { %867 = vst.msk [vmem:[%s1516_s21 + $0x40] sm:$0xff] %vm639_vm0, %v856_v45  ;;  %v766_v48 = vadd.f32 %v765_v47, %v728_v46 }
 0x11c   : > { %v804_v38 = vadd.f32 %v803_v18, %v766_v48 }
 0x11e   : > { %v842_v51 = vadd.f32 %v841_v42, %v804_v38 }
 0x120   : > { %v857_v52 = vmax.f32 %v842_v51, 0.0  ;;  %v732_v56 = vpop.f32.mrf.mxu1  ;;  %v846_v57 = vpop.f32.mrf.mxu0 }
 0x121   : > { %v768_v54 = vpop.f32.mrf.mxu2 }
 0x122   : > { %868 = vst.msk [vmem:[%s1516_s21 + $0x48] sm:$0xff] %vm639_vm0, %v857_v52  ;;  %v769_v55 = vadd.f32 %v768_v54, %v731_v53 }
 0x124   : > { %v807_v58 = vadd.f32 %v806_v27, %v769_v55 }
 0x126   : > { %v845_v5 = vadd.f32 %v844_v50, %v807_v58 }
 0x128   : > { %v858_v59 = vmax.f32 %v845_v5, 0.0 }
 0x129   : > { %v770_v60 = vpop.f32.mrf.mxu2 }
 0x12a   : > { %870 = vst.msk [vmem:[%s1516_s21 + $0x50] sm:$0x1] %vm869_vm1, %v858_v59 }
 0x12b PF: > { %s13_s12 = sadd.s32 1, %s1279_s12  }
 0x12c   : > { %p10_p4 = scmp.ge.s32.totalorder %s13_s12, 4  }
 0x12e   :  { %12 = sbr.rel (!%p10_p4) target bundleno = 1 (0x1), region = 62 }

// kernel: basic_deconv_forward.6
= control target key start
LH: loop header
LB: loop body
LE: loop exit
PB: predicated region body
PF: predicated region fallthrough
CT: control target
= control target key end

     0   :  { %s753_s12 = smov 0   ;;  %s885_s0 = inlined_call_operand.vmem [shape: bf16[2,100,256], index: 0, kind: input, shape index: {}]   ;;  %s886_s1 = inlined_call_operand.vmem [shape: bf16[256,128], index: 1, kind: input, shape index: {}]   ;;  %s887_s2 = inlined_call_operand.vmem [shape: f32[1,128], index: 2, kind: input, shape index: {}]   ;;  %s888_s3 = inlined_call_operand.vmem [shape: f32[2,100,128], index: 3, kind: output, shape index: {}]  }
   0x1 LB: > { %s550_s13 = sadd.s32 4294967295, %s731_s12   ;;  %p554_p0 = scmp.ge.s32.totalorder %s731_s12, 1  ;;  %s731_s12 = sphi %s753_s12, %s13_s12  }
   0x2   : > { %p137_p1 = scmp.lt.s32.totalorder %s731_s12, 3 }
   0x4   : > { %p138_p2 = pnand %p554_p0, %p137_p1 }
   0x5   : > { %p161_p3 = scmp.lt.s32.totalorder (!%p138_p2), %s550_s13, 1 }
   0x6   : > { %141 = sbr.rel (%p138_p2) target bundleno = 231 (0xe7), region = 32 }
   0xb   : > { %v690_v0 = vld [vmem:[%s886_s1 + $0x38] sm:$0xff]  ;;  %v689_v2 = vld [vmem:[%s886_s1 + $0x30] sm:$0xff]  ;;  %v688_v4 = vld [vmem:[%s886_s1 + $0x28] sm:$0xff]  ;;  %s890_s13 = smov (!%p161_p3, %s550_s13), 1 }
   0xc   : > { %v698_v1 = vld [vmem:[%s886_s1 + $0x78] sm:$0xff]  ;;  %383 = vmatpush.bf16.msra.mxu0 %v690_v0  ;;  %699 = vmatpush.bf16.msra.mxu2 %v690_v0  ;;  %v697_v3 = vld [vmem:[%s886_s1 + $0x70] sm:$0xff]  ;;  %v696_v5 = vld [vmem:[%s886_s1 + $0x68] sm:$0xff]  ;;  %s715_s9 = smul.u32 104, %s890_s13 }
   0xd   : > { %426 = vmatpush.bf16.msra.mxu1 %v698_v1  ;;  %707 = vmatpush.bf16.msra.mxu3 %v698_v1  ;;  %v687_v6 = vld [vmem:[%s886_s1 + $0x20] sm:$0xff]  ;;  %v686_v8 = vld [vmem:[%s886_s1 + $0x18] sm:$0xff]  ;;  %v685_v10 = vld [vmem:[%s886_s1 + $0x10] sm:$0xff] }
   0xe   : > { %v695_v7 = vld [vmem:[%s886_s1 + $0x60] sm:$0xff]  ;;  %v694_v9 = vld [vmem:[%s886_s1 + $0x58] sm:$0xff]  ;;  %v693_v11 = vld [vmem:[%s886_s1 + $0x50] sm:$0xff]  ;;  %s808_s18 = scalar_lea.vmem %s885_s0, %s715_s9  ;;  %s855_s29 = scalar_lea.vmem %s888_s3, %s715_s9 }
   0xf   : > { %v684_v12 = vld [vmem:[%s886_s1 + $0x8] sm:$0xff]  ;;  %v683_v14 = vld [vmem:[%s886_s1] sm:$0xff]  ;;  %v583_v18 = vld [vmem:[%s808_s18 + $0x30] sm:$0xf] }
  0x10   : > { %384 = vmatpush.bf16.msra.mxu0 %v689_v2  ;;  %700 = vmatpush.bf16.msra.mxu2 %v689_v2  ;;  %v692_v13 = vld [vmem:[%s886_s1 + $0x48] sm:$0xff]  ;;  %v691_v15 = vld [vmem:[%s886_s1 + $0x40] sm:$0xff]  ;;  %v678_v19 = vld [vmem:[%s808_s18 + $0x34] sm:$0xf0] }
  0x11   : > { %427 = vmatpush.bf16.msra.mxu1 %v697_v3  ;;  %708 = vmatpush.bf16.msra.mxu3 %v697_v3  ;;  %v559_v16 = vld [vmem:[%s808_s18] sm:$0xf]  ;;  %v672_v17 = vld [vmem:[%s808_s18 + $0x4] sm:$0xf0]  ;;  %v671_v20 = vld [vmem:[%s808_s18 + $0x4] sm:$0xf]  ;;  %v584_v25 = vor.u32 %v678_v19, %v583_v18 }
  0x12   : > { %v561_v21 = vld [vmem:[%s808_s18 + $0x8] sm:$0xf0]  ;;  %v679_v22 = vld [vmem:[%s808_s18 + $0x44] sm:$0xf]  ;;  %v560_v24 = vor.u32 %v672_v17, %v559_v16  ;;  %v567_v28 = vld [vmem:[%s808_s18 + $0x10] sm:$0xf] }
  0x13   : > { %v593_v23 = vld [vmem:[%s808_s18 + $0x48] sm:$0xf0]  ;;  %v564_v26 = vor.u32 %v671_v20, %v561_v21  ;;  %v674_v29 = vld [vmem:[%s808_s18 + $0x14] sm:$0xf0]  ;;  %v591_v30 = vld [vmem:[%s808_s18 + $0x40] sm:$0xf] }
  0x14   : > { %385 = vmatpush.bf16.msra.mxu0 %v688_v4  ;;  %701 = vmatpush.bf16.msra.mxu2 %v688_v4  ;;  %v596_v27 = vor.u32 %v679_v22, %v593_v23  ;;  %v680_v31 = vld [vmem:[%s808_s18 + $0x44] sm:$0xf0]  ;;  %v673_v32 = vld [vmem:[%s808_s18 + $0x14] sm:$0xf]  ;;  %v569_v33 = vld [vmem:[%s808_s18 + $0x18] sm:$0xf0]  ;;  %v568_v36 = vor.u32 %v674_v29, %v567_v28 }
  0x15   : > { %428 = vmatpush.bf16.msra.mxu1 %v696_v5  ;;  %709 = vmatpush.bf16.msra.mxu3 %v696_v5  ;;  %v681_v34 = vld [vmem:[%s808_s18 + $0x54] sm:$0xf]  ;;  %v601_v35 = vld [vmem:[%s808_s18 + $0x58] sm:$0xf0]  ;;  %v592_v37 = vor.u32 %v680_v31, %v591_v30  ;;  %v572_v38 = vor.u32 %v673_v32, %v569_v33  ;;  %v183_v40 = vld [vmem:[%s808_s18 + $0x60] sm:$0x33] }
  0x16   : > { %v604_v39 = vor.u32 %v681_v34, %v601_v35  ;;  %v575_v41 = vld [vmem:[%s808_s18 + $0x20] sm:$0xf]  ;;  %v676_v42 = vld [vmem:[%s808_s18 + $0x24] sm:$0xf0]  ;;  %v599_v43 = vld [vmem:[%s808_s18 + $0x50] sm:$0xf]  ;;  %v258_v45 = vunpack.c.h.b16 %v183_v40  ;;  %v257_v52 = vunpack.c.l.b16 %v183_v40 }
  0x17   : > { %v682_v44 = vld [vmem:[%s808_s18 + $0x54] sm:$0xf0]  ;;  %v675_v46 = vld [vmem:[%s808_s18 + $0x24] sm:$0xf]  ;;  %v577_v47 = vld [vmem:[%s808_s18 + $0x28] sm:$0xf0]  ;;  %v576_v48 = vor.u32 %v676_v42, %v575_v41 }
  0x18   : > { %386 = vmatpush.bf16.msra.mxu0 %v687_v6  ;;  %702 = vmatpush.bf16.msra.mxu2 %v687_v6  ;;  %v600_v49 = vor.u32 %v682_v44, %v599_v43  ;;  %v580_v50 = vor.u32 %v675_v46, %v577_v47  ;;  %v272_v51 = vpack.c.b16 %v258_v45, %v258_v45  ;;  %v677_v53 = vld [vmem:[%s808_s18 + $0x34] sm:$0xf]  ;;  %v585_v54 = vld [vmem:[%s808_s18 + $0x38] sm:$0xf0]  ;;  %v847_v57 = vld [vmem:[%s887_s2] ss:$0 sm:$0xff] }
  0x19   : > { %429 = vmatpush.bf16.msra.mxu1 %v695_v7  ;;  %710 = vmatpush.bf16.msra.mxu3 %v695_v7  ;;  %v271_v55 = vpack.c.b16 %v257_v52, %v257_v52  ;;  %v588_v56 = vor.u32 %v677_v53, %v585_v54 }
  0x1c   : > { %387 = vmatpush.bf16.msra.mxu0 %v686_v8  ;;  %703 = vmatpush.bf16.msra.mxu2 %v686_v8 }
  0x1d   : > { %430 = vmatpush.bf16.msra.mxu1 %v694_v9  ;;  %711 = vmatpush.bf16.msra.mxu3 %v694_v9 }
  0x20   : > { %388 = vmatpush.bf16.msra.mxu0 %v685_v10  ;;  %704 = vmatpush.bf16.msra.mxu2 %v685_v10 }
  0x21   : > { %431 = vmatpush.bf16.msra.mxu1 %v693_v11  ;;  %712 = vmatpush.bf16.msra.mxu3 %v693_v11 }
  0x24   : > { %389 = vmatpush.bf16.msra.mxu0 %v684_v12  ;;  %705 = vmatpush.bf16.msra.mxu2 %v684_v12 }
  0x25   : > { %432 = vmatpush.bf16.msra.mxu1 %v692_v13  ;;  %713 = vmatpush.bf16.msra.mxu3 %v692_v13 }
  0x28   : > { %390 = vmatpush.bf16.msra.mxu0 %v683_v14  ;;  %706 = vmatpush.bf16.msra.mxu2 %v683_v14 }
  0x29   : > { %433 = vmatpush.bf16.msra.mxu1 %v691_v15  ;;  %714 = vmatpush.bf16.msra.mxu3 %v691_v15 }
  0x2b   : > { %391 = vmatmul.bf16.vlgmr.msra.gmra.mxu0 %v560_v24  ;;  %406 = vmatmul.bf16.vlgmr.msra.gmra.mxu2 %v584_v25 }
  0x2c   : > { %434 = vmatmul.bf16.vlgmr.msra.gmra.mxu1 %v564_v26  ;;  %454 = vmatmul.bf16.vlgmr.msra.gmra.mxu3 %v596_v27 }
  0x3b   : > { %396 = vmatmul.bf16.gmra.mxu0 %v568_v36  ;;  %411 = vmatmul.bf16.gmra.mxu2 %v592_v37 }
  0x3c   : > { %439 = vmatmul.bf16.gmra.mxu1 %v572_v38  ;;  %459 = vmatmul.bf16.gmra.mxu3 %v604_v39 }
  0x4b   : > { %401 = vmatmul.bf16.gmra.mxu0 %v576_v48  ;;  %416 = vmatmul.bf16.gmra.mxu2 %v600_v49 }
  0x4c   : > { %444 = vmatmul.bf16.gmra.mxu1 %v580_v50  ;;  %464 = vmatmul.bf16.gmra.mxu3 %v272_v51 }
  0x5b   : > { %421 = vmatmul.bf16.gmra.mxu2 %v271_v55 }
  0x5c   : > { %449 = vmatmul.bf16.gmra.mxu1 %v588_v56 }
  0xa8   : > { %v392_v58 = vpop.f32.mrf.mxu0 }
  0xa9   : > { %v393_v59 = vadd.f32 %v847_v57, %v392_v58  ;;  %v435_v60 = vpop.f32.mrf.mxu1 }
  0xab   : > { %v436_v61 = vadd.f32 %v435_v60, %v393_v59 }
  0xad   : > { %v469_v62 = vmax.f32 %v436_v61, 0.0 }
  0xae   : > { %v407_v63 = vpop.f32.mrf.mxu2 }
  0xaf   : > { %482 = vst [vmem:[%s855_s29] sm:$0xff] %v469_v62  ;;  %v455_v0 = vpop.f32.mrf.mxu3  ;;  %v408_v46 = vadd.f32 %v847_v57, %v407_v63 }
  0xb0   : > { %v394_v1 = vpop.f32.mrf.mxu0 }
  0xb1   : > { %v395_v2 = vadd.f32 %v847_v57, %v394_v1  ;;  %v437_v3 = vpop.f32.mrf.mxu1 }
  0xb3   : > { %v438_v4 = vadd.f32 %v437_v3, %v395_v2 }
  0xb5   : > { %v470_v5 = vmax.f32 %v438_v4, 0.0 }
  0xb6   : > { %v409_v6 = vpop.f32.mrf.mxu2 }
  0xb7   : > { %483 = vst [vmem:[%s855_s29 + $0x8] sm:$0xff] %v470_v5  ;;  %v457_v7 = vpop.f32.mrf.mxu3  ;;  %v410_v54 = vadd.f32 %v847_v57, %v409_v6 }
  0xb8   : > { %v397_v8 = vpop.f32.mrf.mxu0 }
  0xb9   : > { %v398_v9 = vadd.f32 %v847_v57, %v397_v8  ;;  %v440_v10 = vpop.f32.mrf.mxu1 }
  0xbb   : > { %v441_v11 = vadd.f32 %v440_v10, %v398_v9 }
  0xbd   : > { %v471_v12 = vmax.f32 %v441_v11, 0.0 }
  0xbe   : > { %v412_v13 = vpop.f32.mrf.mxu2 }
  0xbf   : > { %484 = vst [vmem:[%s855_s29 + $0x10] sm:$0xff] %v471_v12  ;;  %v413_v14 = vadd.f32 %v847_v57, %v412_v13  ;;  %v460_v15 = vpop.f32.mrf.mxu3 }
  0xc0   : > { %v399_v16 = vpop.f32.mrf.mxu0 }
  0xc1   : > { %v456_v17 = vadd.f32 %v455_v0, %v413_v14  ;;  %v400_v18 = vadd.f32 %v847_v57, %v399_v16  ;;  %v442_v19 = vpop.f32.mrf.mxu1 }
  0xc3   : > { %v477_v20 = vmax.f32 %v456_v17, 0.0  ;;  %v443_v21 = vadd.f32 %v442_v19, %v400_v18 }
  0xc5   : > { %490 = vst [vmem:[%s855_s29 + $0x40] sm:$0xff] %v477_v20  ;;  %v472_v22 = vmax.f32 %v443_v21, 0.0 }
  0xc6   : > { %v414_v23 = vpop.f32.mrf.mxu2 }
  0xc7   : > { %485 = vst [vmem:[%s855_s29 + $0x18] sm:$0xff] %v472_v22  ;;  %v415_v24 = vadd.f32 %v847_v57, %v414_v23  ;;  %v462_v25 = vpop.f32.mrf.mxu3 }
  0xc8   : > { %v402_v26 = vpop.f32.mrf.mxu0 }
  0xc9   : > { %v458_v27 = vadd.f32 %v457_v7, %v415_v24  ;;  %v403_v28 = vadd.f32 %v847_v57, %v402_v26  ;;  %v445_v29 = vpop.f32.mrf.mxu1 }
  0xcb   : > { %v478_v30 = vmax.f32 %v458_v27, 0.0  ;;  %v446_v31 = vadd.f32 %v445_v29, %v403_v28 }
  0xcd   : > { %491 = vst [vmem:[%s855_s29 + $0x48] sm:$0xff] %v478_v30  ;;  %v473_v32 = vmax.f32 %v446_v31, 0.0 }
  0xce   : > { %v417_v33 = vpop.f32.mrf.mxu2 }
  0xcf   : > { %486 = vst [vmem:[%s855_s29 + $0x20] sm:$0xff] %v473_v32  ;;  %v418_v34 = vadd.f32 %v847_v57, %v417_v33  ;;  %v465_v35 = vpop.f32.mrf.mxu3 }
  0xd0   : > { %v404_v36 = vpop.f32.mrf.mxu0 }
  0xd1   : > { %v461_v37 = vadd.f32 %v460_v15, %v418_v34  ;;  %v405_v38 = vadd.f32 %v847_v57, %v404_v36  ;;  %v447_v39 = vpop.f32.mrf.mxu1 }
  0xd3   : > { %v479_v40 = vmax.f32 %v461_v37, 0.0  ;;  %v448_v41 = vadd.f32 %v447_v39, %v405_v38 }
  0xd5   : > { %492 = vst [vmem:[%s855_s29 + $0x50] sm:$0xff] %v479_v40  ;;  %v474_v42 = vmax.f32 %v448_v41, 0.0 }
  0xd6   : > { %v419_v43 = vpop.f32.mrf.mxu2 }
  0xd7   : > { %487 = vst [vmem:[%s855_s29 + $0x28] sm:$0xff] %v474_v42  ;;  %v420_v44 = vadd.f32 %v847_v57, %v419_v43  ;;  %v467_v45 = vpop.f32.mrf.mxu3 }
  0xd9   : > { %v463_v47 = vadd.f32 %v462_v25, %v420_v44  ;;  %v450_v48 = vpop.f32.mrf.mxu1 }
  0xda   : > { %v451_v49 = vadd.f32 %v450_v48, %v408_v46 }
  0xdb   : > { %v480_v50 = vmax.f32 %v463_v47, 0.0 }
  0xdc   : > { %v475_v51 = vmax.f32 %v451_v49, 0.0 }
  0xdd   : > { %493 = vst [vmem:[%s855_s29 + $0x58] sm:$0xff] %v480_v50 }
  0xde   : > { %488 = vst [vmem:[%s855_s29 + $0x30] sm:$0xff] %v475_v51  ;;  %v422_v52 = vpop.f32.mrf.mxu2 }
  0xdf   : > { %v423_v53 = vadd.f32 %v847_v57, %v422_v52 }
  0xe1   : > { %v466_v55 = vadd.f32 %v465_v35, %v423_v53  ;;  %v452_v56 = vpop.f32.mrf.mxu1 }
  0xe2   : > { %v453_v58 = vadd.f32 %v452_v56, %v410_v54 }
  0xe3   : > { %v481_v59 = vmax.f32 %v466_v55, 0.0 }
  0xe4   : > { %v476_v60 = vmax.f32 %v453_v58, 0.0 }
  0xe5   : > { %494 = vst [vmem:[%s855_s29 + $0x60] sm:$0xf] %v481_v59 }
  0xe6   : > { %489 = vst [vmem:[%s855_s29 + $0x38] sm:$0xff] %v476_v60  ;;  %v424_v61 = vpop.f32.mrf.mxu2 }
  0xe7 PF: > { %s13_s12 = sadd.s32 1, %s731_s12  }
  0xe8   : > { %p10_p4 = scmp.ge.s32.totalorder %s13_s12, 4  }
  0xea   :  { %12 = sbr.rel (!%p10_p4) target bundleno = 1 (0x1), region = 62 }

// kernel: basic_deconv_forward.4
= control target key start
LH: loop header
LB: loop body
LE: loop exit
PB: predicated region body
PF: predicated region fallthrough
CT: control target
= control target key end

     0   :  { %8 = vsyncpa [#allocation3], 0  ;;  %s10918_s15 = smov [#allocation2]   ;;  %s10919_s17 = smov 1600   ;;  %s11425_s0 = inlined_call_operand.vmem [shape: bf16[1,2,519], index: 0, kind: input, shape index: {}]   ;;  %s11426_s1 = inlined_call_operand.hbm [shape: bf16[519,3136], index: 1, kind: input, shape index: {}]   ;;  %s11427_s2 = inlined_call_operand.vmem [shape: f32[1,3136], index: 2, kind: input, shape index: {}]   ;;  %s11428_s3 = inlined_call_operand.vmem [shape: f32[1,2,3136], index: 3, kind: output, shape index: {}]  }
   0x1   :  { %s15_s14 = sshll.u32 %s11426_s1, 4  ;;  %s17_s16 = sshll.u32 %s10918_s15, 4  ;;  %s16_s14 = int_to_ptr.hbm [resolvable:$true] %s15_s14  ;;  %s18_s16 = int_to_ptr.vmem [resolvable:$true] %s17_s16 }
   0x2   :  { %s10920_s18 = smov 100  }
   0x3   :  { %23 = dma.hbm_to_vmem [thread:$0]  %s16_s14, 104000, %s18_s16, [#allocation3], %s10919_s17, %s10919_s17, %s10920_s18  }
   0x4   :  { %10916 = dma.done.wait [#allocation3], 104000  }
   0x5   :  { %10917 = vsyncadd [#allocation3], 4294863296  ;;  %v7531_v0 = vld [vmem:[#allocation2 + $0x578] sm:$0xf]  ;;  %v10241_v1 = vld [vmem:[#allocation2 + $0x5d8] sm:$0xf0] }
   0x6   :  { %v8331_v2 = vld [vmem:[#allocation2 + $0xbb8] sm:$0xf]  ;;  %v7532_v3 = vor.u32 %v10241_v1, %v7531_v0  ;;  %v10441_v4 = vld [vmem:[#allocation2 + $0xc18] sm:$0xf0]  ;;  %v7431_v11 = vld [vmem:[#allocation2 + $0x4b0] sm:$0xf] }
   0x7   :  { %v9131_v5 = vld [vmem:[#allocation2 + $0x11f8] sm:$0xf]  ;;  %v10641_v6 = vld [vmem:[#allocation2 + $0x1258] sm:$0xf0]  ;;  %v8332_v7 = vor.u32 %v10441_v4, %v8331_v2  ;;  %v10216_v13 = vld [vmem:[#allocation2 + $0x510] sm:$0xf0] }
   0x8   :  { %v9132_v8 = vor.u32 %v10641_v6, %v9131_v5  ;;  %v9931_v9 = vld [vmem:[#allocation2 + $0x1838] sm:$0xf]  ;;  %v10841_v10 = vld [vmem:[#allocation2 + $0x1898] sm:$0xf0]  ;;  %5123 = vmatpush.bf16.msra.mxu0 %v7532_v3  ;;  %v8231_v14 = vld [vmem:[#allocation2 + $0xaf0] sm:$0xf]  ;;  %v7432_v16 = vor.u32 %v10216_v13, %v7431_v11 }
   0x9   :  { %v9932_v12 = vor.u32 %v10841_v10, %v9931_v9  ;;  %v10416_v15 = vld [vmem:[#allocation2 + $0xb50] sm:$0xf0]  ;;  %5136 = vmatpush.bf16.msra.mxu1 %v8332_v7  ;;  %v9031_v18 = vld [vmem:[#allocation2 + $0x1130] sm:$0xf]  ;;  %v7331_v23 = vld [vmem:[#allocation2 + $0x3e8] sm:$0xf] }
   0xa   :  { %5149 = vmatpush.bf16.msra.mxu2 %v9132_v8  ;;  %v8232_v17 = vor.u32 %v10416_v15, %v8231_v14  ;;  %v10616_v19 = vld [vmem:[#allocation2 + $0x1190] sm:$0xf0]  ;;  %v9831_v20 = vld [vmem:[#allocation2 + $0x1770] sm:$0xf]  ;;  %v10191_v24 = vld [vmem:[#allocation2 + $0x448] sm:$0xf0] }
   0xb   :  { %5162 = vmatpush.bf16.msra.mxu3 %v9932_v12  ;;  %v9032_v21 = vor.u32 %v10616_v19, %v9031_v18  ;;  %v10816_v22 = vld [vmem:[#allocation2 + $0x17d0] sm:$0xf0]  ;;  %v8131_v26 = vld [vmem:[#allocation2 + $0xa28] sm:$0xf]  ;;  %v10391_v27 = vld [vmem:[#allocation2 + $0xa88] sm:$0xf0]  ;;  %v7332_v29 = vor.u32 %v10191_v24, %v7331_v23 }
   0xc   :  { %v9832_v25 = vor.u32 %v10816_v22, %v9831_v20  ;;  %v8931_v28 = vld [vmem:[#allocation2 + $0x1068] sm:$0xf]  ;;  %5124 = vmatpush.bf16.msra.mxu0 %v7432_v16  ;;  %v10591_v30 = vld [vmem:[#allocation2 + $0x10c8] sm:$0xf0]  ;;  %v8132_v33 = vor.u32 %v10391_v27, %v8131_v26  ;;  %v7231_v35 = vld [vmem:[#allocation2 + $0x320] sm:$0xf] }
   0xd   :  { %v9731_v31 = vld [vmem:[#allocation2 + $0x16a8] sm:$0xf]  ;;  %v10791_v32 = vld [vmem:[#allocation2 + $0x1708] sm:$0xf0]  ;;  %5137 = vmatpush.bf16.msra.mxu1 %v8232_v17  ;;  %v8932_v34 = vor.u32 %v10591_v30, %v8931_v28  ;;  %v10166_v36 = vld [vmem:[#allocation2 + $0x380] sm:$0xf0] }
   0xe   :  { %5150 = vmatpush.bf16.msra.mxu2 %v9032_v21  ;;  %v8031_v37 = vld [vmem:[#allocation2 + $0x960] sm:$0xf]  ;;  %v9732_v38 = vor.u32 %v10791_v32, %v9731_v31  ;;  %v10366_v39 = vld [vmem:[#allocation2 + $0x9c0] sm:$0xf0]  ;;  %v7232_v44 = vor.u32 %v10166_v36, %v7231_v35  ;;  %v7131_v47 = vld [vmem:[#allocation2 + $0x258] sm:$0xf] }
   0xf   :  { %5163 = vmatpush.bf16.msra.mxu3 %v9832_v25  ;;  %v8831_v40 = vld [vmem:[#allocation2 + $0xfa0] sm:$0xf]  ;;  %v10566_v41 = vld [vmem:[#allocation2 + $0x1000] sm:$0xf0]  ;;  %v8032_v45 = vor.u32 %v10366_v39, %v8031_v37  ;;  %v10141_v48 = vld [vmem:[#allocation2 + $0x2b8] sm:$0xf0] }
  0x10   :  { %v9631_v42 = vld [vmem:[#allocation2 + $0x15e0] sm:$0xf]  ;;  %v10766_v43 = vld [vmem:[#allocation2 + $0x1640] sm:$0xf0]  ;;  %5125 = vmatpush.bf16.msra.mxu0 %v7332_v29  ;;  %v8832_v46 = vor.u32 %v10566_v41, %v8831_v40  ;;  %v7931_v49 = vld [vmem:[#allocation2 + $0x898] sm:$0xf]  ;;  %v7132_v56 = vor.u32 %v10141_v48, %v7131_v47 }
  0x11   :  { %5138 = vmatpush.bf16.msra.mxu1 %v8132_v33  ;;  %v9632_v50 = vor.u32 %v10766_v43, %v9631_v42  ;;  %v10341_v51 = vld [vmem:[#allocation2 + $0x8f8] sm:$0xf0]  ;;  %v8731_v52 = vld [vmem:[#allocation2 + $0xed8] sm:$0xf]  ;;  %v7031_v59 = vld [vmem:[#allocation2 + $0x190] sm:$0xf] }
  0x12   :  { %5151 = vmatpush.bf16.msra.mxu2 %v8932_v34  ;;  %v10541_v53 = vld [vmem:[#allocation2 + $0xf38] sm:$0xf0]  ;;  %v9531_v54 = vld [vmem:[#allocation2 + $0x1518] sm:$0xf]  ;;  %v7932_v57 = vor.u32 %v10341_v51, %v7931_v49  ;;  %v10116_v60 = vld [vmem:[#allocation2 + $0x1f0] sm:$0xf0] }
  0x13   :  { %5164 = vmatpush.bf16.msra.mxu3 %v9732_v38  ;;  %v10741_v55 = vld [vmem:[#allocation2 + $0x1578] sm:$0xf0]  ;;  %v8732_v58 = vor.u32 %v10541_v53, %v8731_v52  ;;  %v7831_v61 = vld [vmem:[#allocation2 + $0x7d0] sm:$0xf]  ;;  %v10316_v63 = vld [vmem:[#allocation2 + $0x830] sm:$0xf0]  ;;  %v7032_v4 = vor.u32 %v10116_v60, %v7031_v59 }
  0x14   :  { %5126 = vmatpush.bf16.msra.mxu0 %v7232_v44  ;;  %v9532_v62 = vor.u32 %v10741_v55, %v9531_v54  ;;  %v8631_v0 = vld [vmem:[#allocation2 + $0xe10] sm:$0xf]  ;;  %v10516_v1 = vld [vmem:[#allocation2 + $0xe70] sm:$0xf0]  ;;  %v6931_v5 = vld [vmem:[#allocation2 + $0xc8] sm:$0xf]  ;;  %v7832_v6 = vor.u32 %v10316_v63, %v7831_v61 }
  0x15   :  { %5139 = vmatpush.bf16.msra.mxu1 %v8032_v45  ;;  %v9431_v2 = vld [vmem:[#allocation2 + $0x1450] sm:$0xf]  ;;  %v10716_v3 = vld [vmem:[#allocation2 + $0x14b0] sm:$0xf0]  ;;  %vm5044_vm0 = vcmask 1042432   ;;  %v8632_v7 = vor.u32 %v10516_v1, %v8631_v0  ;;  %v10948_v22 = vld [vmem:[#allocation2 + $0x1900] sm:$0xff] }
  0x16   :  { %5152 = vmatpush.bf16.msra.mxu2 %v8832_v46  ;;  %v10091_v8 = vld [vmem:[#allocation2 + $0x128] sm:$0xf0]  ;;  %v7731_v9 = vld [vmem:[#allocation2 + $0x708] sm:$0xf]  ;;  %v9432_v11 = vor.u32 %v10716_v3, %v9431_v2  ;;  %v6831_v16 = vld [vmem:[#allocation2] sm:$0xf]  ;;  %v3391_v27 = vunpack.c.l.b16 %v10948_v22 }
  0x17   :  { %5165 = vmatpush.bf16.msra.mxu3 %v9632_v50  ;;  %v10291_v10 = vld [vmem:[#allocation2 + $0x768] sm:$0xf0]  ;;  %v8531_v12 = vld [vmem:[#allocation2 + $0xd48] sm:$0xf]  ;;  %v10066_v17 = vld [vmem:[#allocation2 + $0x60] sm:$0xf0]  ;;  %v6932_v18 = vor.u32 %v10091_v8, %v6931_v5 }
  0x18   :  { %5127 = vmatpush.bf16.msra.mxu0 %v7132_v56  ;;  %v10491_v13 = vld [vmem:[#allocation2 + $0xda8] sm:$0xf0]  ;;  %v9331_v14 = vld [vmem:[#allocation2 + $0x1388] sm:$0xf]  ;;  %v7631_v19 = vld [vmem:[#allocation2 + $0x640] sm:$0xf]  ;;  %v7732_v23 = vor.u32 %v10291_v10, %v7731_v9  ;;  %v6832_v36 = vor.u32 %v10066_v17, %v6831_v16  ;;  %v4216_v42 = vpack.c.b16 %v3391_v27, %v3391_v27 }
  0x19   :  { %5140 = vmatpush.bf16.msra.mxu1 %v7932_v57  ;;  %v10691_v15 = vld [vmem:[#allocation2 + $0x13e8] sm:$0xf0]  ;;  %v10266_v20 = vld [vmem:[#allocation2 + $0x6a0] sm:$0xf0]  ;;  %v31_v21 = vld [vmem:[%s11425_s0] sm:$0x1f]  ;;  %v8532_v24 = vor.u32 %v10491_v13, %v8531_v12 }
  0x1a   :  { %5153 = vmatpush.bf16.msra.mxu2 %v8732_v58  ;;  %v8431_v25 = vld [vmem:[#allocation2 + $0xc80] sm:$0xf]  ;;  %v10466_v26 = vld [vmem:[#allocation2 + $0xce0] sm:$0xf0]  ;;  %936 = vst [vmem:[#allocation1] ss:$9 sm:$0xff] %v31_v21  ;;  %v9332_v28 = vor.u32 %v10691_v15, %v9331_v14  ;;  %v7632_v40 = vor.u32 %v10266_v20, %v7631_v19 }
  0x1b   :  { %5166 = vmatpush.bf16.msra.mxu3 %v9532_v62  ;;  %v9231_v29 = vld [vmem:[#allocation2 + $0x12c0] sm:$0xf]  ;;  %v10666_v30 = vld [vmem:[#allocation2 + $0x1320] sm:$0xf0]  ;;  %v10229_v31 = vld [vmem:[#allocation2 + $0x57c] sm:$0xf]  ;;  %v8432_v41 = vor.u32 %v10466_v26, %v8431_v25 }
  0x1c   :  { %5128 = vmatpush.bf16.msra.mxu0 %v7032_v4  ;;  %v7533_v32 = vld [vmem:[#allocation2 + $0x5dc] sm:$0xf0]  ;;  %v10429_v33 = vld [vmem:[#allocation2 + $0xbbc] sm:$0xf]  ;;  %vm5045_vm1 = vcmask 1043456   ;;  %v10921_v34 = vmov 65535   ;;  %v9232_v43 = vor.u32 %v10666_v30, %v9231_v29 }
  0x1d   :  { %5141 = vmatpush.bf16.msra.mxu1 %v7832_v6  ;;  %v5046_v35 = vsel %vm5044_vm0, 4294967295, %v10921_v34  ;;  %v8333_v37 = vld [vmem:[#allocation2 + $0xc1c] sm:$0xf0]  ;;  %v10629_v38 = vld [vmem:[#allocation2 + $0x11fc] sm:$0xf]  ;;  %v7536_v44 = vor.u32 %v10229_v31, %v7533_v32  ;;  %vm5041_vm2 = vcmask 56320  }
  0x1e   :  { %5154 = vmatpush.bf16.msra.mxu2 %v8632_v7  ;;  %v9133_v39 = vld [vmem:[#allocation2 + $0x125c] sm:$0xf0]  ;;  %v10953_v45 = vsel %vm5045_vm1, %v5046_v35, 0  ;;  %v10829_v46 = vld [vmem:[#allocation2 + $0x183c] sm:$0xf]  ;;  %v8336_v48 = vor.u32 %v10429_v33, %v8333_v37  ;;  %vm6790_vm3 = vcmask 1041408  }
  0x1f   :  { %5167 = vmatpush.bf16.msra.mxu3 %v9432_v11  ;;  %v9933_v47 = vld [vmem:[#allocation2 + $0x189c] sm:$0xf0]  ;;  %v9136_v49 = vor.u32 %v10629_v38, %v9133_v39  ;;  %v10204_v50 = vld [vmem:[#allocation2 + $0x4b4] sm:$0xf]  ;;  %v7433_v51 = vld [vmem:[#allocation2 + $0x514] sm:$0xf0]  ;;  %v5049_v58 = vand.u32 %v10953_v45, %v4216_v42 }
  0x20   :  { %5129 = vmatpush.bf16.msra.mxu0 %v6932_v18  ;;  %v10404_v52 = vld [vmem:[#allocation2 + $0xaf4] sm:$0xf]  ;;  %v8233_v53 = vld [vmem:[#allocation2 + $0xb54] sm:$0xf0]  ;;  %v9936_v59 = vor.u32 %v10829_v46, %v9933_v47  ;;  %v7436_v61 = vor.u32 %v10204_v50, %v7433_v51  ;;  %v10179_v2 = vld [vmem:[#allocation2 + $0x3ec] sm:$0xf] }
  0x21   :  { %5142 = vmatpush.bf16.msra.mxu1 %v7732_v23  ;;  %v10604_v54 = vld [vmem:[#allocation2 + $0x1134] sm:$0xf]  ;;  %v9033_v55 = vld [vmem:[#allocation2 + $0x1194] sm:$0xf0]  ;;  %v10957_v57 = vld [vmem:[#allocation1 + $0x12] sm:$0xff]  ;;  %v8236_v0 = vor.u32 %v10404_v52, %v8233_v53  ;;  %vm6792_vm4 = vcmask 1045508  }
  0x22   :  { %5155 = vmatpush.bf16.msra.mxu2 %v8532_v24  ;;  %v10955_v56 = vld [vmem:[#allocation1] sm:$0xff]  ;;  %v10804_v62 = vld [vmem:[#allocation2 + $0x1774] sm:$0xf]  ;;  %v9036_v1 = vor.u32 %v10604_v54, %v9033_v55  ;;  %v7333_v3 = vld [vmem:[#allocation2 + $0x44c] sm:$0xf0]  ;;  %vm6822_vm5 = vcmask 517120  }
  0x23   :  { %5168 = vmatpush.bf16.msra.mxu3 %v9332_v28  ;;  %v10960_v60 = vld [vmem:[#allocation1 + $0x1b] sm:$0xff]  ;;  %v10379_v4 = vld [vmem:[#allocation2 + $0xa2c] sm:$0xf]  ;;  %v10965_v8 = vld [vmem:[#allocation1 + $0x9] sm:$0xff]  ;;  %v7336_v10 = vor.u32 %v10179_v2, %v7333_v3 }
  0x24   :  { %5130 = vmatpush.bf16.msra.mxu0 %v6832_v36  ;;  %v9833_v63 = vld [vmem:[#allocation2 + $0x17d4] sm:$0xf0]  ;;  %v8133_v5 = vld [vmem:[#allocation2 + $0xa8c] sm:$0xf0]  ;;  %v10579_v6 = vld [vmem:[#allocation2 + $0x106c] sm:$0xf] }
  0x25   :  { %5143 = vmatpush.bf16.msra.mxu1 %v7632_v40  ;;  %v8933_v7 = vld [vmem:[#allocation2 + $0x10cc] sm:$0xf0]  ;;  %v9836_v9 = vor.u32 %v10804_v62, %v9833_v63  ;;  %v10779_v11 = vld [vmem:[#allocation2 + $0x16ac] sm:$0xf]  ;;  %v8136_v13 = vor.u32 %v10379_v4, %v8133_v5  ;;  %v10154_v15 = vld [vmem:[#allocation2 + $0x324] sm:$0xf]  ;;  %v3392_v63 = vunpack.c.h.b16 %v10948_v22 }
  0x26   :  { %5156 = vmatpush.bf16.msra.mxu2 %v8432_v41  ;;  %v9733_v12 = vld [vmem:[#allocation2 + $0x170c] sm:$0xf0]  ;;  %v8936_v14 = vor.u32 %v10579_v6, %v8933_v7  ;;  %v7233_v16 = vld [vmem:[#allocation2 + $0x384] sm:$0xf0]  ;;  %v10354_v17 = vld [vmem:[#allocation2 + $0x964] sm:$0xf] }
  0x27   :  { %5169 = vmatpush.bf16.msra.mxu3 %v9232_v43  ;;  %5131 = vmatmul.bf16.vlgmr.msra.gmra.mxu0 %v10955_v56  ;;  %v8033_v18 = vld [vmem:[#allocation2 + $0x9c4] sm:$0xf0]  ;;  %v10554_v19 = vld [vmem:[#allocation2 + $0xfa4] sm:$0xf]  ;;  %v9736_v21 = vor.u32 %v10779_v11, %v9733_v12  ;;  %v7236_v23 = vor.u32 %v10154_v15, %v7233_v16  ;;  %v10129_v28 = vld [vmem:[#allocation2 + $0x25c] sm:$0xf]  ;;  %v4217_v16 = vpack.c.b16 %v3392_v63, %v3392_v63 }
  0x28   :  { %5182 = vmatpush.bf16.msrb.mxu0 %v5049_v58  ;;  %5144 = vmatmul.bf16.vlgmr.msra.gmra.mxu1 %v10965_v8  ;;  %v8833_v20 = vld [vmem:[#allocation2 + $0x1004] sm:$0xf0]  ;;  %v10754_v24 = vld [vmem:[#allocation2 + $0x15e4] sm:$0xf]  ;;  %v8036_v26 = vor.u32 %v10354_v17, %v8033_v18  ;;  %v7133_v29 = vld [vmem:[#allocation2 + $0x2bc] sm:$0xf0] }
  0x29   :  { %5188 = vmatpush.bf16.msrb.mxu1 %v7536_v44  ;;  %5157 = vmatmul.bf16.vlgmr.msra.gmra.mxu2 %v10957_v57  ;;  %v9633_v25 = vld [vmem:[#allocation2 + $0x1644] sm:$0xf0]  ;;  %v8836_v27 = vor.u32 %v10554_v19, %v8833_v20  ;;  %v10329_v30 = vld [vmem:[#allocation2 + $0x89c] sm:$0xf]  ;;  %v7933_v31 = vld [vmem:[#allocation2 + $0x8fc] sm:$0xf0]  ;;  %v7136_v35 = vor.u32 %v10129_v28, %v7133_v29 }
  0x2a   :  { %5201 = vmatpush.bf16.msrb.mxu2 %v8336_v48  ;;  %5170 = vmatmul.bf16.vlgmr.msra.gmra.mxu3 %v10960_v60  ;;  %v10529_v32 = vld [vmem:[#allocation2 + $0xedc] sm:$0xf]  ;;  %v8733_v33 = vld [vmem:[#allocation2 + $0xf3c] sm:$0xf0]  ;;  %v9636_v34 = vor.u32 %v10754_v24, %v9633_v25  ;;  %v7936_v38 = vor.u32 %v10329_v30, %v7933_v31  ;;  %v10104_v40 = vld [vmem:[#allocation2 + $0x194] sm:$0xf] }
  0x2b   :  { %5214 = vmatpush.bf16.msrb.mxu3 %v9136_v49  ;;  %v10729_v36 = vld [vmem:[#allocation2 + $0x151c] sm:$0xf]  ;;  %v9533_v37 = vld [vmem:[#allocation2 + $0x157c] sm:$0xf0]  ;;  %v8736_v39 = vor.u32 %v10529_v32, %v8733_v33  ;;  %v7033_v41 = vld [vmem:[#allocation2 + $0x1f4] sm:$0xf0] }
  0x2c   :  { %5227 = vmatpush.bf16.msra.mxu0 %v9936_v59  ;;  %v10304_v42 = vld [vmem:[#allocation2 + $0x7d4] sm:$0xf]  ;;  %v7833_v43 = vld [vmem:[#allocation2 + $0x834] sm:$0xf0]  ;;  %v10968_v47 = vld [vmem:[#allocation1 + $0x24] sm:$0xff]  ;;  %v9536_v48 = vor.u32 %v10729_v36, %v9533_v37  ;;  %v7036_v49 = vor.u32 %v10104_v40, %v7033_v41 }
  0x2d   :  { %5189 = vmatpush.bf16.msrb.mxu1 %v7436_v61  ;;  %v10504_v44 = vld [vmem:[#allocation2 + $0xe14] sm:$0xf]  ;;  %v8633_v46 = vld [vmem:[#allocation2 + $0xe74] sm:$0xf0]  ;;  %v7836_v52 = vor.u32 %v10304_v42, %v7833_v43  ;;  %v10079_v54 = vld [vmem:[#allocation2 + $0xcc] sm:$0xf] }
  0x2e   :  { %5202 = vmatpush.bf16.msrb.mxu2 %v8236_v0  ;;  %v10704_v50 = vld [vmem:[#allocation2 + $0x1454] sm:$0xf]  ;;  %v9433_v51 = vld [vmem:[#allocation2 + $0x14b4] sm:$0xf0]  ;;  %v8636_v53 = vor.u32 %v10504_v44, %v8633_v46  ;;  %v6933_v55 = vld [vmem:[#allocation2 + $0x12c] sm:$0xf0] }
  0x2f   :  { %5215 = vmatpush.bf16.msrb.mxu3 %v9036_v1  ;;  %v10279_v58 = vld [vmem:[#allocation2 + $0x70c] sm:$0xf]  ;;  %v7733_v59 = vld [vmem:[#allocation2 + $0x76c] sm:$0xf0]  ;;  %v9436_v0 = vor.u32 %v10704_v50, %v9433_v51  ;;  %v6936_v1 = vor.u32 %v10079_v54, %v6933_v55  ;;  %v10054_v4 = vld [vmem:[#allocation2 + $0x4] sm:$0xf] }
  0x30   :  { %5228 = vmatpush.bf16.msra.mxu0 %v9836_v9  ;;  %v10479_v61 = vld [vmem:[#allocation2 + $0xd4c] sm:$0xf]  ;;  %v8533_v62 = vld [vmem:[#allocation2 + $0xdac] sm:$0xf0]  ;;  %v7736_v5 = vor.u32 %v10279_v58, %v7733_v59  ;;  %v6833_v7 = vld [vmem:[#allocation2 + $0x64] sm:$0xf0] }
  0x31   :  { %5190 = vmatpush.bf16.msrb.mxu1 %v7336_v10  ;;  %v10679_v2 = vld [vmem:[#allocation2 + $0x138c] sm:$0xf]  ;;  %v9333_v3 = vld [vmem:[#allocation2 + $0x13ec] sm:$0xf0]  ;;  %v8536_v6 = vor.u32 %v10479_v61, %v8533_v62  ;;  %v10254_v9 = vld [vmem:[#allocation2 + $0x644] sm:$0xf]  ;;  %v6836_v18 = vor.u32 %v10054_v4, %v6833_v7 }
  0x32   :  { %5203 = vmatpush.bf16.msrb.mxu2 %v8136_v13  ;;  %v7633_v10 = vld [vmem:[#allocation2 + $0x6a4] sm:$0xf0]  ;;  %v10454_v11 = vld [vmem:[#allocation2 + $0xc84] sm:$0xf]  ;;  %v7539_v13 = vld [vmem:[#allocation2 + $0x580] sm:$0xf]  ;;  %v9336_v17 = vor.u32 %v10679_v2, %v9333_v3 }
  0x33   :  { %5216 = vmatpush.bf16.msrb.mxu3 %v8936_v14  ;;  %v8433_v12 = vld [vmem:[#allocation2 + $0xce4] sm:$0xf0]  ;;  %v10242_v14 = vld [vmem:[#allocation2 + $0x5e0] sm:$0xf0]  ;;  %v8339_v15 = vld [vmem:[#allocation2 + $0xbc0] sm:$0xf]  ;;  %v7636_v20 = vor.u32 %v10254_v9, %v7633_v10 }
  0x34   :  { %5229 = vmatpush.bf16.msra.mxu0 %v9736_v21  ;;  %v10442_v22 = vld [vmem:[#allocation2 + $0xc20] sm:$0xf0]  ;;  %v8436_v21 = vor.u32 %v10454_v11, %v8433_v12  ;;  %v9139_v24 = vld [vmem:[#allocation2 + $0x1200] sm:$0xf]  ;;  %v7439_v30 = vld [vmem:[#allocation2 + $0x4b8] sm:$0xf] }
  0x35   :  { %5191 = vmatpush.bf16.msrb.mxu1 %v7236_v23  ;;  %v10654_v19 = vld [vmem:[#allocation2 + $0x12c4] sm:$0xf]  ;;  %v9233_v23 = vld [vmem:[#allocation2 + $0x1324] sm:$0xf0]  ;;  %v9939_v28 = vld [vmem:[#allocation2 + $0x1840] sm:$0xf] }
  0x36   :  { %5204 = vmatpush.bf16.msrb.mxu2 %v8036_v26  ;;  %v10642_v25 = vld [vmem:[#allocation2 + $0x1260] sm:$0xf0]  ;;  %v7540_v26 = vor.u32 %v10242_v14, %v7539_v13  ;;  %v10217_v31 = vld [vmem:[#allocation2 + $0x518] sm:$0xf0]  ;;  %v8239_v32 = vld [vmem:[#allocation2 + $0xaf8] sm:$0xf] }
  0x37   :  { %5217 = vmatpush.bf16.msrb.mxu3 %v8836_v27  ;;  %10029 = vmatmul.msk.bf16.vlgmr.msrb.gmra.mxu0 %vm5041_vm2, %v10968_v47  ;;  %v8340_v27 = vor.u32 %v10442_v22, %v8339_v15  ;;  %v10842_v29 = vld [vmem:[#allocation2 + $0x18a0] sm:$0xf0]  ;;  %v10417_v33 = vld [vmem:[#allocation2 + $0xb58] sm:$0xf0]  ;;  %v9140_v36 = vor.u32 %v10642_v25, %v9139_v24  ;;  %v7440_v40 = vor.u32 %v10217_v31, %v7439_v30  ;;  %v9839_v42 = vld [vmem:[#allocation2 + $0x1778] sm:$0xf] }
  0x38   :  { %5230 = vmatpush.bf16.msra.mxu0 %v9636_v34  ;;  %v9236_v34 = vor.u32 %v10654_v19, %v9233_v23  ;;  %v9940_v37 = vor.u32 %v10842_v29, %v9939_v28  ;;  %v8240_v41 = vor.u32 %v10417_v33, %v8239_v32  ;;  %v10817_v43 = vld [vmem:[#allocation2 + $0x17d8] sm:$0xf0]  ;;  %v7339_v44 = vld [vmem:[#allocation2 + $0x3f0] sm:$0xf]  ;;  %v10192_v46 = vld [vmem:[#allocation2 + $0x450] sm:$0xf0] }
  0x39   :  { %5192 = vmatpush.bf16.msrb.mxu1 %v7136_v35  ;;  %v5052_v35 = vand.u32 %v10953_v45, %v4217_v16  ;;  %v9840_v51 = vor.u32 %v10817_v43, %v9839_v42  ;;  %v7340_v54 = vor.u32 %v10192_v46, %v7339_v44  ;;  %v9739_v58 = vld [vmem:[#allocation2 + $0x16b0] sm:$0xf]  ;;  %v10792_v59 = vld [vmem:[#allocation2 + $0x1710] sm:$0xf0]  ;;  %v7239_v61 = vld [vmem:[#allocation2 + $0x328] sm:$0xf] }
  0x3a   :  { %5205 = vmatpush.bf16.msrb.mxu2 %v7936_v38  ;;  %v9039_v38 = vld [vmem:[#allocation2 + $0x1138] sm:$0xf]  ;;  %v10167_v62 = vld [vmem:[#allocation2 + $0x388] sm:$0xf0]  ;;  %v8039_v63 = vld [vmem:[#allocation2 + $0x968] sm:$0xf]  ;;  %v9740_v2 = vor.u32 %v10792_v59, %v9739_v58 }
  0x3b   :  { %5218 = vmatpush.bf16.msrb.mxu3 %v8736_v39  ;;  %v10617_v39 = vld [vmem:[#allocation2 + $0x1198] sm:$0xf0]  ;;  %v8839_v3 = vld [vmem:[#allocation2 + $0xfa8] sm:$0xf]  ;;  %v10567_v4 = vld [vmem:[#allocation2 + $0x1008] sm:$0xf0] }
  0x3c   :  { %5231 = vmatpush.bf16.msra.mxu0 %v9536_v48  ;;  %v8139_v48 = vld [vmem:[#allocation2 + $0xa30] sm:$0xf]  ;;  %v9040_v50 = vor.u32 %v10617_v39, %v9039_v38  ;;  %v9639_v7 = vld [vmem:[#allocation2 + $0x15e8] sm:$0xf]  ;;  %v10767_v9 = vld [vmem:[#allocation2 + $0x1648] sm:$0xf0]  ;;  %v8840_v14 = vor.u32 %v10567_v4, %v8839_v3 }
  0x3d   :  { %5193 = vmatpush.bf16.msrb.mxu1 %v7036_v49  ;;  %v10392_v49 = vld [vmem:[#allocation2 + $0xa90] sm:$0xf0]  ;;  %v7139_v10 = vld [vmem:[#allocation2 + $0x260] sm:$0xf]  ;;  %v10142_v11 = vld [vmem:[#allocation2 + $0x2c0] sm:$0xf0]  ;;  %v9640_v15 = vor.u32 %v10767_v9, %v9639_v7 }
  0x3e   :  { %5206 = vmatpush.bf16.msrb.mxu2 %v7836_v52  ;;  %v8939_v52 = vld [vmem:[#allocation2 + $0x1070] sm:$0xf]  ;;  %v8140_v55 = vor.u32 %v10392_v49, %v8139_v48  ;;  %v7939_v12 = vld [vmem:[#allocation2 + $0x8a0] sm:$0xf]  ;;  %v10342_v13 = vld [vmem:[#allocation2 + $0x900] sm:$0xf0] }
  0x3f   :  { %5219 = vmatpush.bf16.msrb.mxu3 %v8636_v53  ;;  %v10592_v53 = vld [vmem:[#allocation2 + $0x10d0] sm:$0xf0]  ;;  %v8739_v22 = vld [vmem:[#allocation2 + $0xee0] sm:$0xf]  ;;  %v10542_v16 = vld [vmem:[#allocation2 + $0xf40] sm:$0xf0] }
  0x40   :  { %5232 = vmatpush.bf16.msra.mxu0 %v9436_v0  ;;  %v10367_v0 = vld [vmem:[#allocation2 + $0x9c8] sm:$0xf0]  ;;  %v9539_v19 = vld [vmem:[#allocation2 + $0x1520] sm:$0xf]  ;;  %v10117_v23 = vld [vmem:[#allocation2 + $0x1f8] sm:$0xf0] }
  0x41   :  { %5194 = vmatpush.bf16.msrb.mxu1 %v6936_v1  ;;  %v8940_v1 = vor.u32 %v10592_v53, %v8939_v52  ;;  %v7839_v24 = vld [vmem:[#allocation2 + $0x7d8] sm:$0xf]  ;;  %v10317_v25 = vld [vmem:[#allocation2 + $0x838] sm:$0xf0]  ;;  %v10292_v38 = vld [vmem:[#allocation2 + $0x770] sm:$0xf0] }
  0x42   :  { %5207 = vmatpush.bf16.msrb.mxu2 %v7736_v5  ;;  %v7240_v5 = vor.u32 %v10167_v62, %v7239_v61  ;;  %v8639_v29 = vld [vmem:[#allocation2 + $0xe18] sm:$0xf]  ;;  %v10517_v30 = vld [vmem:[#allocation2 + $0xe78] sm:$0xf0]  ;;  %v7840_v32 = vor.u32 %v10317_v25, %v7839_v24  ;;  %v8539_v42 = vld [vmem:[#allocation2 + $0xd50] sm:$0xf] }
  0x43   :  { %5220 = vmatpush.bf16.msrb.mxu3 %v8536_v6  ;;  %v8040_v6 = vor.u32 %v10367_v0, %v8039_v63  ;;  %v9439_v33 = vld [vmem:[#allocation2 + $0x1458] sm:$0xf]  ;;  %v10492_v43 = vld [vmem:[#allocation2 + $0xdb0] sm:$0xf0]  ;;  %v9339_v44 = vld [vmem:[#allocation2 + $0x1390] sm:$0xf] }
  0x44   :  { %5233 = vmatpush.bf16.msra.mxu0 %v9336_v17  ;;  %v7140_v17 = vor.u32 %v10142_v11, %v7139_v10  ;;  %v10692_v49 = vld [vmem:[#allocation2 + $0x13f0] sm:$0xf0]  ;;  %v7639_v52 = vld [vmem:[#allocation2 + $0x648] sm:$0xf]  ;;  %v10267_v53 = vld [vmem:[#allocation2 + $0x6a8] sm:$0xf0]  ;;  %v8540_v59 = vor.u32 %v10492_v43, %v8539_v42 }
  0x45   :  { %5195 = vmatpush.bf16.msrb.mxu1 %v6836_v18  ;;  %v7940_v18 = vor.u32 %v10342_v13, %v7939_v12  ;;  %v7541_v58 = vld [vmem:[#allocation2 + $0x5e4] sm:$0xf0]  ;;  %v9340_v61 = vor.u32 %v10692_v49, %v9339_v44  ;;  %v7640_v0 = vor.u32 %v10267_v53, %v7639_v52  ;;  %v10667_v3 = vld [vmem:[#allocation2 + $0x1328] sm:$0xf0]  ;;  %v10630_v9 = vld [vmem:[#allocation2 + $0x1204] sm:$0xf] }
  0x46   :  { %5208 = vmatpush.bf16.msrb.mxu2 %v7636_v20  ;;  %v10742_v20 = vld [vmem:[#allocation2 + $0x1580] sm:$0xf0]  ;;  %v8439_v62 = vld [vmem:[#allocation2 + $0xc88] sm:$0xf]  ;;  %v9041_v24 = vld [vmem:[#allocation2 + $0x119c] sm:$0xf0] }
  0x47   :  { %5221 = vmatpush.bf16.msrb.mxu3 %v8436_v21  ;;  %v7039_v21 = vld [vmem:[#allocation2 + $0x198] sm:$0xf]  ;;  %v9540_v28 = vor.u32 %v10742_v20, %v9539_v19  ;;  %v8341_v7 = vld [vmem:[#allocation2 + $0xc24] sm:$0xf0]  ;;  %v10830_v11 = vld [vmem:[#allocation2 + $0x1844] sm:$0xf] }
  0x48   :  { %5196 = vmatmul.bf16.vlgmr.msrb.gmra.mxu1 %v10955_v56  ;;  %5234 = vmatpush.bf16.msra.mxu0 %v9236_v34  ;;  %v7040_v31 = vor.u32 %v10117_v23, %v7039_v21  ;;  %v10717_v34 = vld [vmem:[#allocation2 + $0x14b8] sm:$0xf0]  ;;  %v9141_v10 = vld [vmem:[#allocation2 + $0x1264] sm:$0xf0]  ;;  %v8241_v20 = vld [vmem:[#allocation2 + $0xb5c] sm:$0xf0] }
  0x49   :  { %5247 = vmatpush.bf16.msra.mxu1 %v5052_v35  ;;  %5209 = vmatmul.bf16.vlgmr.msrb.gmra.mxu2 %v10965_v8  ;;  %v6939_v35 = vld [vmem:[#allocation2 + $0xd0] sm:$0xf]  ;;  %v9941_v12 = vld [vmem:[#allocation2 + $0x18a4] sm:$0xf0]  ;;  %v10405_v19 = vld [vmem:[#allocation2 + $0xafc] sm:$0xf] }
  0x4a   :  { %5253 = vmatpush.bf16.msra.mxu2 %v7540_v26  ;;  %5222 = vmatmul.bf16.vlgmr.msrb.gmra.mxu3 %v10957_v57  ;;  %v10978_v26 = vld [vmem:[#allocation2 + $0x1908] sm:$0xff]  ;;  %v10605_v21 = vld [vmem:[#allocation2 + $0x113c] sm:$0xf]  ;;  %v9641_v53 = vld [vmem:[#allocation2 + $0x164c] sm:$0xf0] }
  0x4b   :  { %5266 = vmatpush.bf16.msra.mxu3 %v8340_v27  ;;  %5235 = vmatmul.bf16.vlgmr.msra.gmra.mxu0 %v10960_v60  ;;  %v8740_v27 = vor.u32 %v10542_v16, %v8739_v22  ;;  %v3393_v39 = vunpack.c.l.b16 %v10978_v26  ;;  %v7441_v22 = vld [vmem:[#allocation2 + $0x51c] sm:$0xf0]  ;;  %v10805_v25 = vld [vmem:[#allocation2 + $0x177c] sm:$0xf]  ;;  %v10555_v49 = vld [vmem:[#allocation2 + $0xfac] sm:$0xf] }
  0x4c   :  { %5279 = vmatpush.bf16.msrb.mxu0 %v9140_v36  ;;  %v10092_v36 = vld [vmem:[#allocation2 + $0x130] sm:$0xf0]  ;;  %v10755_v52 = vld [vmem:[#allocation2 + $0x15ec] sm:$0xf] }
  0x4d   :  { %5292 = vmatpush.bf16.msrb.mxu1 %v9940_v37  ;;  %v7739_v37 = vld [vmem:[#allocation2 + $0x710] sm:$0xf]  ;;  %v6940_v46 = vor.u32 %v10092_v36, %v6939_v35  ;;  %v10580_v35 = vld [vmem:[#allocation2 + $0x1074] sm:$0xf] }
  0x4e   :  { %5254 = vmatpush.bf16.msra.mxu2 %v7440_v40  ;;  %v8640_v40 = vor.u32 %v10517_v30, %v8639_v29  ;;  %v7740_v48 = vor.u32 %v10292_v38, %v7739_v37  ;;  %v7341_v29 = vld [vmem:[#allocation2 + $0x454] sm:$0xf0]  ;;  %v8244_v30 = vor.u32 %v10405_v19, %v8241_v20  ;;  %v10780_v38 = vld [vmem:[#allocation2 + $0x16b4] sm:$0xf]  ;;  %v3394_v19 = vunpack.c.h.b16 %v10978_v26 }
  0x4f   :  { %5267 = vmatpush.bf16.msra.mxu3 %v8240_v41  ;;  %v9440_v41 = vor.u32 %v10717_v34, %v9439_v33  ;;  %v10380_v33 = vld [vmem:[#allocation2 + $0xa34] sm:$0xf]  ;;  %v8141_v34 = vld [vmem:[#allocation2 + $0xa94] sm:$0xf0] }
  0x50   :  { %5280 = vmatpush.bf16.msrb.mxu0 %v9040_v50  ;;  %v6839_v50 = vld [vmem:[#allocation2 + $0x8] sm:$0xf]  ;;  %v8941_v37 = vld [vmem:[#allocation2 + $0x10d4] sm:$0xf0]  ;;  %v8144_v42 = vor.u32 %v10380_v33, %v8141_v34  ;;  %v6841_v33 = vld [vmem:[#allocation2 + $0x6c] sm:$0xf0]  ;;  %v4219_v26 = vpack.c.b16 %v3394_v19, %v3394_v19 }
  0x51   :  { %5293 = vmatpush.bf16.msrb.mxu1 %v9840_v51  ;;  %v10067_v51 = vld [vmem:[#allocation2 + $0x68] sm:$0xf0]  ;;  %v8944_v43 = vor.u32 %v10580_v35, %v8941_v37  ;;  %v10793_v19 = vld [vmem:[#allocation2 + $0x1718] sm:$0xf0] }
  0x52   :  { %5255 = vmatpush.bf16.msra.mxu2 %v7340_v54  ;;  %v4218_v54 = vpack.c.b16 %v3393_v39, %v3393_v39  ;;  %v6840_v63 = vor.u32 %v10067_v51, %v6839_v50  ;;  %v9741_v39 = vld [vmem:[#allocation2 + $0x1714] sm:$0xf0]  ;;  %v8841_v51 = vld [vmem:[#allocation2 + $0x100c] sm:$0xf0]  ;;  %v10255_v37 = vld [vmem:[#allocation2 + $0x64c] sm:$0xf] }
  0x53   :  { %5268 = vmatpush.bf16.msra.mxu3 %v8140_v55  ;;  %v10230_v55 = vld [vmem:[#allocation2 + $0x584] sm:$0xf]  ;;  %v9744_v44 = vor.u32 %v10780_v38, %v9741_v39  ;;  %v7641_v38 = vld [vmem:[#allocation2 + $0x6ac] sm:$0xf0]  ;;  %v10455_v39 = vld [vmem:[#allocation2 + $0xc8c] sm:$0xf] }
  0x54   :  { %5281 = vmatpush.bf16.msrb.mxu0 %v8940_v1  ;;  %v10467_v1 = vld [vmem:[#allocation2 + $0xce8] sm:$0xf0]  ;;  %v7544_v4 = vor.u32 %v10230_v55, %v7541_v58  ;;  %v7141_v55 = vld [vmem:[#allocation2 + $0x2c4] sm:$0xf0] }
  0x55   :  { %5294 = vmatpush.bf16.msrb.mxu1 %v9740_v2  ;;  %v9239_v2 = vld [vmem:[#allocation2 + $0x12c8] sm:$0xf]  ;;  %v8440_v13 = vor.u32 %v10467_v1, %v8439_v62  ;;  %v10330_v62 = vld [vmem:[#allocation2 + $0x8a4] sm:$0xf] }
  0x56   :  { %5256 = vmatpush.bf16.msra.mxu2 %v7240_v5  ;;  %v5055_v5 = vand.u32 %v10953_v45, %v4218_v54  ;;  %v10130_v54 = vld [vmem:[#allocation2 + $0x264] sm:$0xf] }
  0x57   :  { %5269 = vmatpush.bf16.msra.mxu3 %v8040_v6  ;;  %v10430_v6 = vld [vmem:[#allocation2 + $0xbc4] sm:$0xf]  ;;  %v7144_v1 = vor.u32 %v10130_v54, %v7141_v55  ;;  %v9947_v55 = vld [vmem:[#allocation2 + $0x1848] sm:$0xf] }
  0x58   :  { %5282 = vmatpush.bf16.msrb.mxu0 %v8840_v14  ;;  %10030 = vmatmul.msk.bf16.vlgmr.msra.gmra.mxu1 %vm5041_vm2, %v10968_v47  ;;  %v9240_v14 = vor.u32 %v10667_v3, %v9239_v2  ;;  %v8344_v16 = vor.u32 %v10430_v6, %v8341_v7  ;;  %v8741_v2 = vld [vmem:[#allocation2 + $0xf44] sm:$0xf0]  ;;  %v10730_v3 = vld [vmem:[#allocation2 + $0x1524] sm:$0xf]  ;;  %v7041_v6 = vld [vmem:[#allocation2 + $0x1fc] sm:$0xf0] }
  0x59   :  { %5295 = vmatpush.bf16.msrb.mxu1 %v9640_v15  ;;  %v10205_v15 = vld [vmem:[#allocation2 + $0x4bc] sm:$0xf] }
  0x5a   :  { %5257 = vmatpush.bf16.msra.mxu2 %v7140_v17  ;;  %v9144_v17 = vor.u32 %v10630_v9, %v9141_v10  ;;  %v7444_v23 = vor.u32 %v10205_v15, %v7441_v22  ;;  %v8641_v15 = vld [vmem:[#allocation2 + $0xe7c] sm:$0xf0]  ;;  %v10705_v22 = vld [vmem:[#allocation2 + $0x145c] sm:$0xf] }
  0x5b   :  { %5270 = vmatpush.bf16.msra.mxu3 %v7940_v18  ;;  %v9944_v18 = vor.u32 %v10830_v11, %v9941_v12  ;;  %v10305_v11 = vld [vmem:[#allocation2 + $0x7dc] sm:$0xf]  ;;  %v7841_v12 = vld [vmem:[#allocation2 + $0x83c] sm:$0xf0] }
  0x5c   :  { %5283 = vmatpush.bf16.msrb.mxu0 %v8740_v27  ;;  %v9841_v27 = vld [vmem:[#allocation2 + $0x17dc] sm:$0xf0]  ;;  %v7844_v20 = vor.u32 %v10305_v11, %v7841_v12 }
  0x5d   :  { %5296 = vmatpush.bf16.msrb.mxu1 %v9540_v28  ;;  %v10180_v28 = vld [vmem:[#allocation2 + $0x3f4] sm:$0xf] }
  0x5e   :  { %5258 = vmatpush.bf16.msra.mxu2 %v7040_v31  ;;  %v9044_v31 = vor.u32 %v10605_v21, %v9041_v24  ;;  %v7344_v36 = vor.u32 %v10180_v28, %v7341_v29  ;;  %v10280_v24 = vld [vmem:[#allocation2 + $0x714] sm:$0xf]  ;;  %v8541_v29 = vld [vmem:[#allocation2 + $0xdb4] sm:$0xf0] }
  0x5f   :  { %5271 = vmatpush.bf16.msra.mxu3 %v7840_v32  ;;  %v9844_v32 = vor.u32 %v10805_v25, %v9841_v27  ;;  %v7741_v25 = vld [vmem:[#allocation2 + $0x774] sm:$0xf0]  ;;  %v10480_v27 = vld [vmem:[#allocation2 + $0xd54] sm:$0xf] }
  0x60   :  { %5284 = vmatpush.bf16.msrb.mxu0 %v8640_v40  ;;  %v10155_v40 = vld [vmem:[#allocation2 + $0x32c] sm:$0xf]  ;;  %v7744_v34 = vor.u32 %v10280_v24, %v7741_v25  ;;  %v8544_v35 = vor.u32 %v10480_v27, %v8541_v29  ;;  %v7247_v24 = vld [vmem:[#allocation2 + $0x330] sm:$0xf]  ;;  %v10168_v25 = vld [vmem:[#allocation2 + $0x390] sm:$0xf0] }
  0x61   :  { %5297 = vmatpush.bf16.msrb.mxu1 %v9440_v41  ;;  %v7241_v41 = vld [vmem:[#allocation2 + $0x38c] sm:$0xf0] }
  0x62   :  { %5259 = vmatpush.bf16.msra.mxu2 %v6940_v46  ;;  %v10355_v46 = vld [vmem:[#allocation2 + $0x96c] sm:$0xf]  ;;  %v7244_v50 = vor.u32 %v10155_v40, %v7241_v41  ;;  %v8441_v41 = vld [vmem:[#allocation2 + $0xcec] sm:$0xf0] }
  0x63   :  { %5272 = vmatpush.bf16.msra.mxu3 %v7740_v48  ;;  %v8041_v48 = vld [vmem:[#allocation2 + $0x9cc] sm:$0xf0]  ;;  %v8444_v54 = vor.u32 %v10455_v39, %v8441_v41  ;;  %v10543_v39 = vld [vmem:[#allocation2 + $0xf48] sm:$0xf0] }
  0x64   :  { %5285 = vmatpush.bf16.msrb.mxu0 %v8540_v59  ;;  %v8044_v58 = vor.u32 %v10355_v46, %v8041_v48  ;;  %v8844_v59 = vor.u32 %v10555_v49, %v8841_v51  ;;  %v7547_v46 = vld [vmem:[#allocation2 + $0x588] sm:$0xf]  ;;  %v10243_v48 = vld [vmem:[#allocation2 + $0x5e8] sm:$0xf0]  ;;  %v8047_v27 = vld [vmem:[#allocation2 + $0x970] sm:$0xf] }
  0x65   :  { %5298 = vmatpush.bf16.msrb.mxu1 %v9340_v61  ;;  %v9644_v61 = vor.u32 %v10755_v52, %v9641_v53  ;;  %v8347_v49 = vld [vmem:[#allocation2 + $0xbc8] sm:$0xf]  ;;  %v10443_v51 = vld [vmem:[#allocation2 + $0xc28] sm:$0xf0]  ;;  %v8847_v29 = vld [vmem:[#allocation2 + $0xfb0] sm:$0xf] }
  0x66   :  { %5260 = vmatpush.bf16.msra.mxu2 %v6840_v63  ;;  %v7941_v63 = vld [vmem:[#allocation2 + $0x904] sm:$0xf0]  ;;  %v10643_v53 = vld [vmem:[#allocation2 + $0x1268] sm:$0xf0] }
  0x67   :  { %5273 = vmatpush.bf16.msra.mxu3 %v7640_v0  ;;  %v10530_v0 = vld [vmem:[#allocation2 + $0xee4] sm:$0xf]  ;;  %v7944_v7 = vor.u32 %v10330_v62, %v7941_v63  ;;  %v9147_v52 = vld [vmem:[#allocation2 + $0x1208] sm:$0xf]  ;;  %v8348_v62 = vor.u32 %v10443_v51, %v8347_v49  ;;  %v10743_v41 = vld [vmem:[#allocation2 + $0x1588] sm:$0xf0] }
  0x68   :  { %5286 = vmatpush.bf16.msrb.mxu0 %v8440_v13  ;;  %v8744_v9 = vor.u32 %v10530_v0, %v8741_v2  ;;  %v10505_v13 = vld [vmem:[#allocation2 + $0xe1c] sm:$0xf]  ;;  %v9148_v63 = vor.u32 %v10643_v53, %v9147_v52  ;;  %v7447_v0 = vld [vmem:[#allocation2 + $0x4c0] sm:$0xf]  ;;  %v10318_v51 = vld [vmem:[#allocation2 + $0x840] sm:$0xf0] }
  0x69   :  { %5299 = vmatpush.bf16.msrb.mxu1 %v9240_v14  ;;  %5261 = vmatmul.bf16.vlgmr.msra.gmra.mxu2 %v10955_v56  ;;  %v8644_v21 = vor.u32 %v10505_v13, %v8641_v15  ;;  %v8247_v2 = vld [vmem:[#allocation2 + $0xb00] sm:$0xf]  ;;  %v7347_v13 = vld [vmem:[#allocation2 + $0x3f8] sm:$0xf]  ;;  %v10518_v53 = vld [vmem:[#allocation2 + $0xe80] sm:$0xf0] }
  0x6a   :  { %5312 = vmatpush.bf16.msrb.mxu2 %v5055_v5  ;;  %5274 = vmatmul.bf16.vlgmr.msra.gmra.mxu3 %v10965_v8  ;;  %v10105_v5 = vld [vmem:[#allocation2 + $0x19c] sm:$0xf]  ;;  %v8147_v15 = vld [vmem:[#allocation2 + $0xa38] sm:$0xf]  ;;  %v7847_v49 = vld [vmem:[#allocation2 + $0x7e0] sm:$0xf] }
  0x6b   :  { %5318 = vmatpush.bf16.msrb.mxu3 %v7544_v4  ;;  %5287 = vmatmul.bf16.vlgmr.msrb.gmra.mxu0 %v10957_v57  ;;  %v9541_v4 = vld [vmem:[#allocation2 + $0x1584] sm:$0xf0]  ;;  %v7044_v14 = vor.u32 %v10105_v5, %v7041_v6  ;;  %v9047_v5 = vld [vmem:[#allocation2 + $0x1140] sm:$0xf]  ;;  %v10618_v6 = vld [vmem:[#allocation2 + $0x11a0] sm:$0xf0] }
  0x6c   :  { %5331 = vmatpush.bf16.msra.mxu0 %v8344_v16  ;;  %5300 = vmatmul.bf16.vlgmr.msrb.gmra.mxu1 %v10960_v60  ;;  %v9544_v10 = vor.u32 %v10730_v3, %v9541_v4  ;;  %v9441_v16 = vld [vmem:[#allocation2 + $0x14bc] sm:$0xf0]  ;;  %v10418_v4 = vld [vmem:[#allocation2 + $0xb60] sm:$0xf0]  ;;  %v9048_v12 = vor.u32 %v10618_v6, %v9047_v5  ;;  %v10998_v5 = vld [vmem:[#allocation2 + $0x1910] sm:$0xff] }
  0x6d   :  { %5344 = vmatpush.bf16.msra.mxu1 %v9144_v17  ;;  %v10080_v17 = vld [vmem:[#allocation2 + $0xd4] sm:$0xf]  ;;  %v8248_v11 = vor.u32 %v10418_v4, %v8247_v2  ;;  %v8647_v52 = vld [vmem:[#allocation2 + $0xe20] sm:$0xf]  ;;  %v10493_v4 = vld [vmem:[#allocation2 + $0xdb8] sm:$0xf0] }
  0x6e   :  { %5357 = vmatpush.bf16.msra.mxu2 %v9944_v18  ;;  %v6941_v18 = vld [vmem:[#allocation2 + $0x134] sm:$0xf0] }
  0x6f   :  { %5319 = vmatpush.bf16.msrb.mxu3 %v7444_v23  ;;  %v9444_v23 = vor.u32 %v10705_v22, %v9441_v16  ;;  %v6944_v28 = vor.u32 %v10080_v17, %v6941_v18  ;;  %v10393_v16 = vld [vmem:[#allocation2 + $0xa98] sm:$0xf0]  ;;  %v8947_v17 = vld [vmem:[#allocation2 + $0x1078] sm:$0xf] }
  0x70   :  { %5332 = vmatpush.bf16.msra.mxu0 %v8244_v30  ;;  %v10680_v30 = vld [vmem:[#allocation2 + $0x1394] sm:$0xf]  ;;  %v9747_v18 = vld [vmem:[#allocation2 + $0x16b8] sm:$0xf] }
  0x71   :  { %5345 = vmatpush.bf16.msra.mxu1 %v9044_v31  ;;  %v9341_v31 = vld [vmem:[#allocation2 + $0x13f4] sm:$0xf0] }
  0x72   :  { %5358 = vmatpush.bf16.msra.mxu2 %v9844_v32  ;;  %v10055_v32 = vld [vmem:[#allocation2 + $0xc] sm:$0xf]  ;;  %v9347_v6 = vld [vmem:[#allocation2 + $0x1398] sm:$0xf] }
  0x73   :  { %5320 = vmatpush.bf16.msrb.mxu3 %v7344_v36  ;;  %v9344_v36 = vor.u32 %v10680_v30, %v9341_v31  ;;  %v6844_v40 = vor.u32 %v10055_v32, %v6841_v33  ;;  %v10568_v30 = vld [vmem:[#allocation2 + $0x1010] sm:$0xf0]  ;;  %v9647_v31 = vld [vmem:[#allocation2 + $0x15f0] sm:$0xf] }
  0x74   :  { %5333 = vmatpush.bf16.msra.mxu0 %v8144_v42  ;;  %v10655_v42 = vld [vmem:[#allocation2 + $0x12cc] sm:$0xf]  ;;  %v10768_v32 = vld [vmem:[#allocation2 + $0x1650] sm:$0xf0]  ;;  %v8848_v33 = vor.u32 %v10568_v30, %v8847_v29 }
  0x75   :  { %5346 = vmatpush.bf16.msra.mxu1 %v8944_v43  ;;  %v9241_v43 = vld [vmem:[#allocation2 + $0x132c] sm:$0xf0] }
  0x76   :  { %5359 = vmatpush.bf16.msra.mxu2 %v9744_v44  ;;  %v5058_v44 = vand.u32 %v10953_v45, %v4219_v26  ;;  %v7147_v26 = vld [vmem:[#allocation2 + $0x268] sm:$0xf] }
  0x77   :  { %5321 = vmatpush.bf16.msrb.mxu3 %v7244_v50  ;;  %v7644_v50 = vor.u32 %v10255_v37, %v7641_v38  ;;  %v10343_v37 = vld [vmem:[#allocation2 + $0x908] sm:$0xf0]  ;;  %v8747_v38 = vld [vmem:[#allocation2 + $0xee8] sm:$0xf] }
  0x78   :  { %5334 = vmatpush.bf16.msra.mxu0 %v8044_v58  ;;  %v10843_v58 = vld [vmem:[#allocation2 + $0x18a8] sm:$0xf0] }
  0x79   :  { %5347 = vmatpush.bf16.msra.mxu1 %v8844_v59  ;;  %10031 = vmatmul.msk.bf16.vlgmr.msrb.gmra.mxu2 %vm5041_vm2, %v10968_v47  ;;  %v9244_v59 = vor.u32 %v10655_v42, %v9241_v43  ;;  %v9948_v3 = vor.u32 %v10843_v58, %v9947_v55  ;;  %v10718_v55 = vld [vmem:[#allocation2 + $0x14c0] sm:$0xf0] }
  0x7a   :  { %5360 = vmatpush.bf16.msra.mxu2 %v9644_v61  ;;  %v7548_v61 = vor.u32 %v10243_v48, %v7547_v46  ;;  %v7047_v46 = vld [vmem:[#allocation2 + $0x1a0] sm:$0xf]  ;;  %v10118_v48 = vld [vmem:[#allocation2 + $0x200] sm:$0xf0] }
  0x7b   :  { %5322 = vmatpush.bf16.msrb.mxu3 %v7144_v1  ;;  %v10218_v1 = vld [vmem:[#allocation2 + $0x520] sm:$0xf0]  ;;  %v7048_v58 = vor.u32 %v10118_v48, %v7047_v46  ;;  %v10181_v46 = vld [vmem:[#allocation2 + $0x3fc] sm:$0xf] }
  0x7c   :  { %5335 = vmatpush.bf16.msra.mxu0 %v7944_v7  ;;  %v9847_v7 = vld [vmem:[#allocation2 + $0x1780] sm:$0xf] }
  0x7d   :  { %5348 = vmatpush.bf16.msra.mxu1 %v8744_v9  ;;  %v10818_v9 = vld [vmem:[#allocation2 + $0x17e0] sm:$0xf0] }
  0x7e   :  { %5361 = vmatpush.bf16.msra.mxu2 %v9544_v10  ;;  %v7448_v10 = vor.u32 %v10218_v1, %v7447_v0  ;;  %v9848_v22 = vor.u32 %v10818_v9, %v9847_v7  ;;  %v7747_v0 = vld [vmem:[#allocation2 + $0x718] sm:$0xf]  ;;  %v10293_v1 = vld [vmem:[#allocation2 + $0x778] sm:$0xf0]  ;;  %v6847_v9 = vld [vmem:[#allocation2 + $0x10] sm:$0xf] }
  0x7f   :  { %5323 = vmatpush.bf16.msrb.mxu3 %v7044_v14  ;;  %v10193_v14 = vld [vmem:[#allocation2 + $0x458] sm:$0xf0] }
  0x80   :  { %5336 = vmatpush.bf16.msra.mxu0 %v7844_v20  ;;  %v7348_v20 = vor.u32 %v10193_v14, %v7347_v13  ;;  %v7647_v13 = vld [vmem:[#allocation2 + $0x650] sm:$0xf]  ;;  %v10268_v14 = vld [vmem:[#allocation2 + $0x6b0] sm:$0xf0] }
  0x81   :  { %5349 = vmatpush.bf16.msra.mxu1 %v8644_v21  ;;  %v8148_v21 = vor.u32 %v10393_v16, %v8147_v15  ;;  %v8447_v15 = vld [vmem:[#allocation2 + $0xc90] sm:$0xf] }
  0x82   :  { %5362 = vmatpush.bf16.msra.mxu2 %v9444_v23 }
  0x83   :  { %5324 = vmatpush.bf16.msrb.mxu3 %v6944_v28  ;;  %v10368_v28 = vld [vmem:[#allocation2 + $0x9d0] sm:$0xf0] }
  0x84   :  { %5337 = vmatpush.bf16.msra.mxu0 %v7744_v34  ;;  %v10143_v34 = vld [vmem:[#allocation2 + $0x2c8] sm:$0xf0] }
  0x85   :  { %5350 = vmatpush.bf16.msra.mxu1 %v8544_v35  ;;  %v7947_v35 = vld [vmem:[#allocation2 + $0x8a8] sm:$0xf]  ;;  %v7148_v42 = vor.u32 %v10143_v34, %v7147_v26  ;;  %v10206_v26 = vld [vmem:[#allocation2 + $0x4c4] sm:$0xf] }
  0x86   :  { %5363 = vmatpush.bf16.msra.mxu2 %v9344_v36  ;;  %v9648_v36 = vor.u32 %v10768_v32, %v9647_v31  ;;  %v7948_v43 = vor.u32 %v10343_v37, %v7947_v35  ;;  %v10831_v32 = vld [vmem:[#allocation2 + $0x184c] sm:$0xf]  ;;  %v7449_v34 = vld [vmem:[#allocation2 + $0x524] sm:$0xf0]  ;;  %v10406_v35 = vld [vmem:[#allocation2 + $0xb04] sm:$0xf] }
  0x87   :  { %5325 = vmatpush.bf16.msrb.mxu3 %v6844_v40  ;;  %v9547_v40 = vld [vmem:[#allocation2 + $0x1528] sm:$0xf]  ;;  %v10606_v37 = vld [vmem:[#allocation2 + $0x1144] sm:$0xf] }
  0x88   :  { %5338 = vmatpush.bf16.msra.mxu0 %v7644_v50  ;;  %v9548_v50 = vor.u32 %v10743_v41, %v9547_v40  ;;  %v11005_v40 = vld [vmem:[%s11427_s2] sm:$0xff] }
  0x89   :  { %5351 = vmatpush.bf16.msra.mxu1 %v8444_v54  ;;  %v9447_v54 = vld [vmem:[#allocation2 + $0x1460] sm:$0xf] }
  0x8a   :  { %5326 = vmatmul.bf16.vlgmr.msrb.gmra.mxu3 %v10955_v56  ;;  %5364 = vmatpush.bf16.msra.mxu2 %v9244_v59  ;;  %v10593_v56 = vld [vmem:[#allocation2 + $0x10d8] sm:$0xf0]  ;;  %v6947_v59 = vld [vmem:[#allocation2 + $0xd8] sm:$0xf]  ;;  %v9448_v2 = vor.u32 %v10718_v55, %v9447_v54  ;;  %v11010_v54 = vld [vmem:[#allocation1 + $0x12] sm:$0xff]  ;;  %v885_v55 = vperm.slane %v11005_v40, 0 }
  0x8b   :  { %5377 = vmatpush.bf16.msra.mxu3 %v5058_v44  ;;  %5339 = vmatmul.bf16.vlgmr.msra.gmra.mxu0 %v10965_v8  ;;  %v8948_v23 = vor.u32 %v10593_v56, %v8947_v17  ;;  %v9748_v8 = vor.u32 %v10793_v19, %v9747_v18  ;;  %v8748_v44 = vor.u32 %v10543_v39, %v8747_v38  ;;  %v10468_v17 = vld [vmem:[#allocation2 + $0xcf0] sm:$0xf0]  ;;  %v9247_v56 = vld [vmem:[#allocation2 + $0x12d0] sm:$0xf]  ;;  %v10231_v19 = vld [vmem:[#allocation2 + $0x58c] sm:$0xf] }
  0x8c   :  { %5383 = vmatpush.bf16.msrb.mxu0 %v7548_v61  ;;  %5352 = vmatmul.bf16.vlgmr.msra.gmra.mxu1 %v10957_v57  ;;  %v8048_v57 = vor.u32 %v10368_v28, %v8047_v27  ;;  %v7848_v61 = vor.u32 %v10318_v51, %v7847_v49  ;;  %v10668_v18 = vld [vmem:[#allocation2 + $0x1330] sm:$0xf0]  ;;  %v9149_v27 = vld [vmem:[#allocation2 + $0x126c] sm:$0xf0]  ;;  %v8448_v28 = vor.u32 %v10468_v17, %v8447_v15  ;;  %v9049_v38 = vld [vmem:[#allocation2 + $0x11a4] sm:$0xf0] }
  0x8d   :  { %5396 = vmatpush.bf16.msrb.mxu1 %v8348_v62  ;;  %5365 = vmatmul.bf16.vlgmr.msra.gmra.mxu2 %v10960_v60  ;;  %v7248_v60 = vor.u32 %v10168_v25, %v7247_v24  ;;  %v8648_v62 = vor.u32 %v10518_v53, %v8647_v52  ;;  %v8349_v24 = vld [vmem:[#allocation2 + $0xc2c] sm:$0xf0]  ;;  %v10631_v25 = vld [vmem:[#allocation2 + $0x120c] sm:$0xf]  ;;  %v9248_v30 = vor.u32 %v10668_v18, %v9247_v56  ;;  %v10381_v51 = vld [vmem:[#allocation2 + $0xa3c] sm:$0xf] }
  0x8e   :  { %5409 = vmatpush.bf16.msrb.mxu2 %v9148_v63  ;;  %v10093_v63 = vld [vmem:[#allocation2 + $0x138] sm:$0xf0]  ;;  %v9052_v49 = vor.u32 %v10606_v37, %v9049_v38  ;;  %v8149_v52 = vld [vmem:[#allocation2 + $0xa9c] sm:$0xf0]  ;;  %v7849_v38 = vld [vmem:[#allocation2 + $0x844] sm:$0xf0] }
  0x8f   :  { %5422 = vmatpush.bf16.msrb.mxu3 %v9948_v3  ;;  %v8547_v3 = vld [vmem:[#allocation2 + $0xd58] sm:$0xf]  ;;  %v6948_v7 = vor.u32 %v10093_v63, %v6947_v59  ;;  %v8949_v59 = vld [vmem:[#allocation2 + $0x10dc] sm:$0xf0] }
  0x90   :  { %5384 = vmatpush.bf16.msrb.mxu0 %v7448_v10  ;;  %v10068_v10 = vld [vmem:[#allocation2 + $0x70] sm:$0xf0]  ;;  %v11007_v53 = vld [vmem:[#allocation1] sm:$0xff] }
  0x91   :  { %5397 = vmatpush.bf16.msrb.mxu1 %v8248_v11  ;;  %v7748_v11 = vor.u32 %v10293_v1, %v7747_v0  ;;  %v10781_v0 = vld [vmem:[#allocation2 + $0x16bc] sm:$0xf]  ;;  %v9749_v1 = vld [vmem:[#allocation2 + $0x171c] sm:$0xf0] }
  0x92   :  { %5410 = vmatpush.bf16.msrb.mxu2 %v9048_v12  ;;  %v8548_v12 = vor.u32 %v10493_v4, %v8547_v3  ;;  %v8152_v3 = vor.u32 %v10381_v51, %v8149_v52  ;;  %v6949_v51 = vld [vmem:[#allocation2 + $0x13c] sm:$0xf0]  ;;  %v10281_v52 = vld [vmem:[#allocation2 + $0x71c] sm:$0xf] }
  0x93   :  { %5423 = vmatpush.bf16.msrb.mxu3 %v9848_v22  ;;  %v3395_v22 = vunpack.c.l.b16 %v10998_v5 }
  0x94   :  { %5385 = vmatpush.bf16.msrb.mxu0 %v7348_v20  ;;  %v7549_v20 = vld [vmem:[#allocation2 + $0x5ec] sm:$0xf0] }
  0x95   :  { %5398 = vmatpush.bf16.msrb.mxu1 %v8148_v21  ;;  %v10431_v21 = vld [vmem:[#allocation2 + $0xbcc] sm:$0xf]  ;;  %v4220_v29 = vpack.c.b16 %v3395_v22, %v3395_v22  ;;  %v7552_v31 = vor.u32 %v10231_v19, %v7549_v20  ;;  %v10756_v22 = vld [vmem:[#allocation2 + $0x15f4] sm:$0xf]  ;;  %v7149_v20 = vld [vmem:[#allocation2 + $0x2cc] sm:$0xf0] }
  0x96   :  { %5411 = vmatpush.bf16.msrb.mxu2 %v8948_v23  ;;  %v6848_v23 = vor.u32 %v10068_v10, %v6847_v9  ;;  %v11017_v9 = vld [vmem:[#allocation1 + $0x9] sm:$0xff]  ;;  %v10131_v19 = vld [vmem:[#allocation2 + $0x26c] sm:$0xf] }
  0x97   :  { %5424 = vmatpush.bf16.msrb.mxu3 %v9748_v8  ;;  %v7648_v8 = vor.u32 %v10268_v14, %v7647_v13  ;;  %v5061_v39 = vand.u32 %v10953_v45, %v4220_v29  ;;  %v8849_v13 = vld [vmem:[#allocation2 + $0x1014] sm:$0xf0]  ;;  %v9752_v14 = vor.u32 %v10781_v0, %v9749_v1 }
  0x98   :  { %5386 = vmatpush.bf16.msrb.mxu0 %v7248_v60  ;;  %v9949_v60 = vld [vmem:[#allocation2 + $0x18ac] sm:$0xf0] }
  0x99   :  { %5399 = vmatpush.bf16.msrb.mxu1 %v8048_v57  ;;  %v8352_v57 = vor.u32 %v10431_v21, %v8349_v24  ;;  %v9952_v41 = vor.u32 %v10831_v32, %v9949_v60  ;;  %v10331_v21 = vld [vmem:[#allocation2 + $0x8ac] sm:$0xf]  ;;  %v7949_v24 = vld [vmem:[#allocation2 + $0x90c] sm:$0xf0] }
  0x9a   :  { %5412 = vmatpush.bf16.msrb.mxu2 %v8848_v33  ;;  %10032 = vmatmul.msk.bf16.vlgmr.msra.gmra.mxu3 %vm5041_vm2, %v10968_v47  ;;  %v10693_v47 = vld [vmem:[#allocation2 + $0x13f8] sm:$0xf0]  ;;  %v9152_v33 = vor.u32 %v10631_v25, %v9149_v27  ;;  %v10531_v25 = vld [vmem:[#allocation2 + $0xeec] sm:$0xf]  ;;  %v8749_v27 = vld [vmem:[#allocation2 + $0xf4c] sm:$0xf0] }
  0x9b   :  { %5425 = vmatpush.bf16.msrb.mxu3 %v9648_v36  ;;  %v9348_v16 = vor.u32 %v10693_v47, %v9347_v6  ;;  %v8249_v36 = vld [vmem:[#allocation2 + $0xb64] sm:$0xf0]  ;;  %v10156_v6 = vld [vmem:[#allocation2 + $0x334] sm:$0xf]  ;;  %v7249_v47 = vld [vmem:[#allocation2 + $0x394] sm:$0xf0] }
  0x9c   :  { %5387 = vmatpush.bf16.msrb.mxu0 %v7148_v42  ;;  %v7452_v42 = vor.u32 %v10206_v26, %v7449_v34  ;;  %v8252_v48 = vor.u32 %v10406_v35, %v8249_v36  ;;  %v7252_v15 = vor.u32 %v10156_v6, %v7249_v47  ;;  %v10731_v32 = vld [vmem:[#allocation2 + $0x152c] sm:$0xf]  ;;  %v9549_v60 = vld [vmem:[#allocation2 + $0x158c] sm:$0xf0]  ;;  %v8752_v26 = vor.u32 %v10531_v25, %v8749_v27  ;;  %v10106_v34 = vld [vmem:[#allocation2 + $0x1a4] sm:$0xf] }
  0x9d   :  { %5400 = vmatpush.bf16.msrb.mxu1 %v7948_v43  ;;  %v10806_v43 = vld [vmem:[#allocation2 + $0x1784] sm:$0xf]  ;;  %v7049_v35 = vld [vmem:[#allocation2 + $0x204] sm:$0xf0]  ;;  %v10056_v6 = vld [vmem:[#allocation2 + $0x14] sm:$0xf]  ;;  %v3396_v47 = vunpack.c.h.b16 %v10998_v5 }
  0x9e   :  { %5413 = vmatpush.bf16.msrb.mxu2 %v8748_v44  ;;  %v9849_v44 = vld [vmem:[#allocation2 + $0x17e4] sm:$0xf0]  ;;  %v10306_v36 = vld [vmem:[#allocation2 + $0x7e4] sm:$0xf] }
  0x9f   :  { %5426 = vmatpush.bf16.msrb.mxu3 %v9548_v50  ;;  %v7349_v50 = vld [vmem:[#allocation2 + $0x45c] sm:$0xf0] }
  0xa0   :  { %5388 = vmatpush.bf16.msrb.mxu0 %v7048_v58  ;;  %v10581_v58 = vld [vmem:[#allocation2 + $0x107c] sm:$0xf]  ;;  %v7352_v63 = vor.u32 %v10181_v46, %v7349_v50  ;;  %v9449_v46 = vld [vmem:[#allocation2 + $0x14c4] sm:$0xf0] }
  0xa1   :  { %5401 = vmatpush.bf16.msrb.mxu1 %v7848_v61  ;;  %v11014_v61 = vld [vmem:[#allocation1 + $0x1b] sm:$0xff]  ;;  %v8952_v4 = vor.u32 %v10581_v58, %v8949_v59  ;;  %v10081_v50 = vld [vmem:[#allocation2 + $0xdc] sm:$0xf]  ;;  %v7749_v59 = vld [vmem:[#allocation2 + $0x77c] sm:$0xf0] }
  0xa2   :  { %5414 = vmatpush.bf16.msrb.mxu2 %v8648_v62  ;;  %v9852_v62 = vor.u32 %v10806_v43, %v9849_v44  ;;  %v7052_v43 = vor.u32 %v10106_v34, %v7049_v35  ;;  %v10706_v44 = vld [vmem:[#allocation2 + $0x1464] sm:$0xf]  ;;  %v11020_v58 = vld [vmem:[#allocation1 + $0x24] sm:$0xff]  ;;  %v10419_v34 = vld [vmem:[#allocation2 + $0xb68] sm:$0xf0] }
  0xa3   :  { %5427 = vmatpush.bf16.msrb.mxu3 %v9448_v2  ;;  %v9452_v1 = vor.u32 %v10706_v44, %v9449_v46  ;;  %v9855_v46 = vld [vmem:[#allocation2 + $0x1788] sm:$0xf] }
  0xa4   :  { %5389 = vmatpush.bf16.msrb.mxu0 %v6948_v7  ;;  %v5132_v2 = vpop.f32.mrf.mxu0  ;;  %v10356_v7 = vld [vmem:[#allocation2 + $0x974] sm:$0xf] }
  0xa5   :  { %5402 = vmatpush.bf16.msrb.mxu1 %v7748_v11  ;;  %v5133_v10 = vadd.f32 %v5132_v2, %v885_v55  ;;  %v8049_v11 = vld [vmem:[#allocation2 + $0x9d4] sm:$0xf0]  ;;  %v5145_v17 = vpop.f32.mrf.mxu1  ;;  %v6952_v2 = vor.u32 %v10081_v50, %v6949_v51  ;;  %v10194_v50 = vld [vmem:[#allocation2 + $0x460] sm:$0xf0]  ;;  %v8155_v51 = vld [vmem:[#allocation2 + $0xa40] sm:$0xf] }
  0xa6   :  { %5415 = vmatpush.bf16.msrb.mxu2 %v8548_v12  ;;  %v10556_v12 = vld [vmem:[#allocation2 + $0xfb4] sm:$0xf]  ;;  %v8052_v56 = vor.u32 %v10356_v7, %v8049_v11  ;;  %v7752_v11 = vor.u32 %v10281_v52, %v7749_v59  ;;  %v10394_v52 = vld [vmem:[#allocation2 + $0xaa0] sm:$0xf0] }
  0xa7   :  { %5428 = vmatpush.bf16.msrb.mxu3 %v9348_v16  ;;  %v9649_v16 = vld [vmem:[#allocation2 + $0x1654] sm:$0xf0]  ;;  %v8852_v18 = vor.u32 %v10556_v12, %v8849_v13 }
  0xa8   :  { %5390 = vmatpush.bf16.msrb.mxu0 %v6848_v23  ;;  %v5146_v23 = vadd.f32 %v5145_v17, %v5133_v10  ;;  %v9652_v29 = vor.u32 %v10756_v22, %v9649_v16  ;;  %v6849_v13 = vld [vmem:[#allocation2 + $0x74] sm:$0xf0]  ;;  %v10456_v16 = vld [vmem:[#allocation2 + $0xc94] sm:$0xf] }
  0xa9   :  { %5403 = vmatpush.bf16.msrb.mxu1 %v7648_v8  ;;  %v8449_v17 = vld [vmem:[#allocation2 + $0xcf4] sm:$0xf0] }
  0xaa   :  { %5416 = vmatpush.bf16.msrb.mxu2 %v8448_v28  ;;  %v8452_v27 = vor.u32 %v10456_v16, %v8449_v17 }
  0xab   :  { %5429 = vmatpush.bf16.msrb.mxu3 %v9248_v30  ;;  %5391 = vmatmul.bf16.vlgmr.msrb.gmra.mxu0 %v11007_v53 }
  0xac   :  { %5442 = vmatpush.bf16.msra.mxu0 %v5061_v39  ;;  %5404 = vmatmul.bf16.vlgmr.msrb.gmra.mxu1 %v11017_v9  ;;  %v5158_v8 = vpop.f32.mrf.mxu2  ;;  %v10506_v39 = vld [vmem:[#allocation2 + $0xe24] sm:$0xf] }
  0xad   :  { %5448 = vmatpush.bf16.msra.mxu1 %v7552_v31  ;;  %5417 = vmatmul.bf16.vlgmr.msrb.gmra.mxu2 %v11010_v54  ;;  %v5159_v28 = vadd.f32 %v5158_v8, %v5146_v23  ;;  %v5171_v30 = vpop.f32.mrf.mxu3  ;;  %v7152_v31 = vor.u32 %v10131_v19, %v7149_v20  ;;  %v5147_v55 = vpop.f32.mrf.mxu1  ;;  %v8355_v19 = vld [vmem:[#allocation2 + $0xbd0] sm:$0xf]  ;;  %v10444_v20 = vld [vmem:[#allocation2 + $0xc30] sm:$0xf0]  ;;  %v9249_v8 = vld [vmem:[#allocation2 + $0x1334] sm:$0xf0] }
  0xae   :  { %5461 = vmatpush.bf16.msra.mxu2 %v8352_v57  ;;  %5430 = vmatmul.bf16.vlgmr.msrb.gmra.mxu3 %v11014_v61  ;;  %v5134_v57 = vpop.f32.mrf.mxu0  ;;  %v10656_v23 = vld [vmem:[#allocation2 + $0x12d4] sm:$0xf] }
  0xaf   :  { %5474 = vmatpush.bf16.msra.mxu3 %v9152_v33  ;;  %v7952_v33 = vor.u32 %v10331_v21, %v7949_v24  ;;  %v5172_v37 = vadd.f32 %v5171_v30, %v5159_v28  ;;  %v6852_v21 = vor.u32 %v10056_v6, %v6849_v13  ;;  %v4221_v24 = vpack.c.b16 %v3396_v47, %v3396_v47  ;;  %v9155_v28 = vld [vmem:[#allocation2 + $0x1210] sm:$0xf]  ;;  %v7455_v57 = vld [vmem:[#allocation2 + $0x4c8] sm:$0xf]  ;;  %v7255_v6 = vld [vmem:[#allocation2 + $0x338] sm:$0xf] }
  0xb0   :  { %5487 = vmatpush.bf16.msrb.mxu0 %v9952_v41  ;;  %v8649_v41 = vld [vmem:[#allocation2 + $0xe84] sm:$0xf0]  ;;  %v9252_v35 = vor.u32 %v10656_v23, %v9249_v8  ;;  %v10169_v47 = vld [vmem:[#allocation2 + $0x398] sm:$0xf0]  ;;  %v8755_v8 = vld [vmem:[#allocation2 + $0xef0] sm:$0xf] }
  0xb1   :  { %5449 = vmatpush.bf16.msra.mxu1 %v7452_v42  ;;  %v9552_v42 = vor.u32 %v10731_v32, %v9549_v60  ;;  %v9955_v32 = vld [vmem:[#allocation2 + $0x1850] sm:$0xf]  ;;  %v10844_v60 = vld [vmem:[#allocation2 + $0x18b0] sm:$0xf0]  ;;  %v7256_v16 = vor.u32 %v10169_v47, %v7255_v6 }
  0xb2   :  { %5462 = vmatpush.bf16.msra.mxu2 %v8252_v48  ;;  %v7852_v48 = vor.u32 %v10306_v36, %v7849_v38  ;;  %v5064_v36 = vand.u32 %v10953_v45, %v4221_v24  ;;  %v9956_v38 = vor.u32 %v10844_v60, %v9955_v32  ;;  %v9555_v32 = vld [vmem:[#allocation2 + $0x1530] sm:$0xf]  ;;  %v10744_v60 = vld [vmem:[#allocation2 + $0x1590] sm:$0xf0] }
  0xb3   :  { %5475 = vmatpush.bf16.msra.mxu3 %v9052_v49  ;;  %v8652_v49 = vor.u32 %v10506_v39, %v8649_v41  ;;  %v9055_v39 = vld [vmem:[#allocation2 + $0x1148] sm:$0xf]  ;;  %v10619_v41 = vld [vmem:[#allocation2 + $0x11a8] sm:$0xf0] }
  0xb4   :  { %5488 = vmatpush.bf16.msrb.mxu0 %v9852_v62  ;;  %v10481_v62 = vld [vmem:[#allocation2 + $0xd5c] sm:$0xf]  ;;  %v5160_v0 = vpop.f32.mrf.mxu2  ;;  %v9056_v55 = vor.u32 %v10619_v41, %v9055_v39  ;;  %v9556_v41 = vor.u32 %v10744_v60, %v9555_v32  ;;  %v10432_v60 = vld [vmem:[#allocation2 + $0xbd4] sm:$0xf] }
  0xb5   :  { %5450 = vmatpush.bf16.msra.mxu1 %v7352_v63  ;;  %v8549_v63 = vld [vmem:[#allocation2 + $0xdbc] sm:$0xf0]  ;;  %v5173_v7 = vpop.f32.mrf.mxu3 }
  0xb6   :  { %5463 = vmatpush.bf16.msra.mxu2 %v8152_v3  ;;  %v10681_v3 = vld [vmem:[#allocation2 + $0x139c] sm:$0xf]  ;;  %v5184_v10 = vpop.f32.mrf.mxu0  ;;  %v8552_v12 = vor.u32 %v10481_v62, %v8549_v63  ;;  %v8955_v62 = vld [vmem:[#allocation2 + $0x1080] sm:$0xf]  ;;  %v10594_v63 = vld [vmem:[#allocation2 + $0x10e0] sm:$0xf0] }
  0xb7   :  { %5476 = vmatpush.bf16.msra.mxu3 %v8952_v4  ;;  %v9349_v4 = vld [vmem:[#allocation2 + $0x13fc] sm:$0xf0]  ;;  %v11025_v22 = vadd.f32 %v5184_v10, %v5172_v37  ;;  %v8055_v7 = vld [vmem:[#allocation2 + $0x978] sm:$0xf]  ;;  %v10369_v10 = vld [vmem:[#allocation2 + $0x9d8] sm:$0xf0] }
  0xb8   :  { %5489 = vmatpush.bf16.msrb.mxu0 %v9752_v14  ;;  %v10256_v14 = vld [vmem:[#allocation2 + $0x654] sm:$0xf]  ;;  %v9352_v5 = vor.u32 %v10681_v3, %v9349_v4  ;;  %v9755_v3 = vld [vmem:[#allocation2 + $0x16c0] sm:$0xf]  ;;  %v10794_v4 = vld [vmem:[#allocation2 + $0x1720] sm:$0xf0]  ;;  %v8056_v17 = vor.u32 %v10369_v10, %v8055_v7 }
  0xb9   :  { %5451 = vmatpush.bf16.msra.mxu1 %v7252_v15  ;;  %v7649_v15 = vld [vmem:[#allocation2 + $0x6b4] sm:$0xf0]  ;;  %v9756_v13 = vor.u32 %v10794_v4, %v9755_v3  ;;  %v8555_v3 = vld [vmem:[#allocation2 + $0xd60] sm:$0xf]  ;;  %v10494_v4 = vld [vmem:[#allocation2 + $0xdc0] sm:$0xf0] }
  0xba   :  { %5464 = vmatpush.bf16.msra.mxu2 %v8052_v56  ;;  %v7555_v56 = vld [vmem:[#allocation2 + $0x590] sm:$0xf]  ;;  %v7652_v25 = vor.u32 %v10256_v14, %v7649_v15  ;;  %v8855_v14 = vld [vmem:[#allocation2 + $0xfb8] sm:$0xf]  ;;  %v10569_v15 = vld [vmem:[#allocation2 + $0x1018] sm:$0xf0] }
  0xbb   :  { %5477 = vmatpush.bf16.msra.mxu3 %v8852_v18  ;;  %10033 = vmatmul.msk.bf16.vlgmr.msra.gmra.mxu0 %vm5041_vm2, %v11020_v58  ;;  %v10244_v18 = vld [vmem:[#allocation2 + $0x5f0] sm:$0xf0]  ;;  %v9355_v10 = vld [vmem:[#allocation2 + $0x13a0] sm:$0xf] }
  0xbc   :  { %5490 = vmatpush.bf16.msrb.mxu0 %v9652_v29  ;;  %v10644_v29 = vld [vmem:[#allocation2 + $0x1270] sm:$0xf0]  ;;  %v7556_v30 = vor.u32 %v10244_v18, %v7555_v56  ;;  %v9655_v56 = vld [vmem:[#allocation2 + $0x15f8] sm:$0xf]  ;;  %v10769_v18 = vld [vmem:[#allocation2 + $0x1658] sm:$0xf0] }
  0xbd   :  { %5452 = vmatpush.bf16.msra.mxu1 %v7152_v31  ;;  %v8356_v31 = vor.u32 %v10444_v20, %v8355_v19  ;;  %v9156_v37 = vor.u32 %v10644_v29, %v9155_v28  ;;  %v7155_v19 = vld [vmem:[#allocation2 + $0x270] sm:$0xf]  ;;  %v10144_v20 = vld [vmem:[#allocation2 + $0x2d0] sm:$0xf0] }
  0xbe   :  { %5465 = vmatpush.bf16.msra.mxu2 %v7952_v33  ;;  %v10219_v33 = vld [vmem:[#allocation2 + $0x528] sm:$0xf0]  ;;  %v10544_v28 = vld [vmem:[#allocation2 + $0xf50] sm:$0xf0] }
  0xbf   :  { %5478 = vmatpush.bf16.msra.mxu3 %v8752_v26  ;;  %v8255_v26 = vld [vmem:[#allocation2 + $0xb08] sm:$0xf]  ;;  %v8756_v39 = vor.u32 %v10544_v28, %v8755_v8  ;;  %v10469_v8 = vld [vmem:[#allocation2 + $0xcf8] sm:$0xf0]  ;;  %v9255_v28 = vld [vmem:[#allocation2 + $0x12d8] sm:$0xf] }
  0xc0   :  { %5491 = vmatpush.bf16.msrb.mxu0 %v9552_v42  ;;  %v5186_v42 = vpop.f32.mrf.mxu0  ;;  %v8256_v44 = vor.u32 %v10419_v34, %v8255_v26  ;;  %v7855_v26 = vld [vmem:[#allocation2 + $0x7e8] sm:$0xf]  ;;  %v10319_v34 = vld [vmem:[#allocation2 + $0x848] sm:$0xf0] }
  0xc1   :  { %5453 = vmatpush.bf16.msra.mxu1 %v7052_v43  ;;  %v7456_v43 = vor.u32 %v10219_v33, %v7455_v57  ;;  %v7055_v57 = vld [vmem:[#allocation2 + $0x1a8] sm:$0xf]  ;;  %v10119_v33 = vld [vmem:[#allocation2 + $0x208] sm:$0xf0] }
  0xc2   :  { %5466 = vmatpush.bf16.msra.mxu2 %v7852_v48  ;;  %v10819_v48 = vld [vmem:[#allocation2 + $0x17e8] sm:$0xf0]  ;;  %v8655_v42 = vld [vmem:[#allocation2 + $0xe28] sm:$0xf] }
  0xc3   :  { %5479 = vmatpush.bf16.msra.mxu3 %v8652_v49  ;;  %v7355_v49 = vld [vmem:[#allocation2 + $0x400] sm:$0xf]  ;;  %v9856_v59 = vor.u32 %v10819_v48, %v9855_v46  ;;  %v7856_v46 = vor.u32 %v10319_v34, %v7855_v26  ;;  %v9455_v48 = vld [vmem:[#allocation2 + $0x1468] sm:$0xf]  ;;  %v9157_v26 = vld [vmem:[#allocation2 + $0x1274] sm:$0xf0] }
  0xc4   :  { %5492 = vmatpush.bf16.msrb.mxu0 %v9452_v1  ;;  %v7356_v1 = vor.u32 %v10194_v50, %v7355_v49  ;;  %v10719_v49 = vld [vmem:[#allocation2 + $0x14c8] sm:$0xf0]  ;;  %v6955_v50 = vld [vmem:[#allocation2 + $0xe0] sm:$0xf]  ;;  %v10832_v34 = vld [vmem:[#allocation2 + $0x1854] sm:$0xf] }
  0xc5   :  { %5454 = vmatpush.bf16.msra.mxu1 %v6952_v2  ;;  %v5197_v0 = vpop.f32.mrf.mxu1  ;;  %v8156_v2 = vor.u32 %v10394_v52, %v8155_v51  ;;  %v10094_v52 = vld [vmem:[#allocation2 + $0x140] sm:$0xf0] }
  0xc6   :  { %5467 = vmatpush.bf16.msra.mxu2 %v7752_v11  ;;  %v886_v11 = vperm.slane %v11005_v40, 1  ;;  %v6956_v47 = vor.u32 %v10094_v52, %v6955_v50  ;;  %v10807_v52 = vld [vmem:[#allocation2 + $0x178c] sm:$0xf] }
  0xc7   :  { %5480 = vmatpush.bf16.msra.mxu3 %v8552_v12  ;;  %v8956_v12 = vor.u32 %v10594_v63, %v8955_v62 }
  0xc8   :  { %5493 = vmatpush.bf16.msrb.mxu0 %v9352_v5  ;;  %v7955_v5 = vld [vmem:[#allocation2 + $0x8b0] sm:$0xf]  ;;  %v5236_v23 = vpop.f32.mrf.mxu0  ;;  %v5198_v24 = vadd.f32 %v5197_v0, %v886_v11  ;;  %v10694_v11 = vld [vmem:[#allocation2 + $0x1400] sm:$0xf0] }
  0xc9   :  { %5455 = vmatpush.bf16.msra.mxu1 %v6852_v21  ;;  %v10344_v21 = vld [vmem:[#allocation2 + $0x910] sm:$0xf0] }
  0xca   :  { %5468 = vmatpush.bf16.msra.mxu2 %v7652_v25  ;;  %v8856_v25 = vor.u32 %v10569_v15, %v8855_v14  ;;  %v10069_v14 = vld [vmem:[#allocation2 + $0x78] sm:$0xf0]  ;;  %v7655_v15 = vld [vmem:[#allocation2 + $0x658] sm:$0xf] }
  0xcb   :  { %5481 = vmatpush.bf16.msra.mxu3 %v8452_v27  ;;  %v9656_v27 = vor.u32 %v10769_v18, %v9655_v56  ;;  %v10232_v56 = vld [vmem:[#allocation2 + $0x594] sm:$0xf]  ;;  %v7557_v18 = vld [vmem:[#allocation2 + $0x5f4] sm:$0xf0] }
  0xcc   :  { %5456 = vmatmul.bf16.vlgmr.msra.gmra.mxu1 %v11007_v53  ;;  %5494 = vmatpush.bf16.msrb.mxu0 %v9252_v35  ;;  %v5210_v35 = vpop.f32.mrf.mxu2 }
  0xcd   :  { %5507 = vmatpush.bf16.msrb.mxu1 %v5064_v36  ;;  %5469 = vmatmul.bf16.vlgmr.msra.gmra.mxu2 %v11017_v9  ;;  %v5199_v29 = vpop.f32.mrf.mxu1  ;;  %v5223_v36 = vpop.f32.mrf.mxu3 }
  0xce   :  { %5513 = vmatpush.bf16.msrb.mxu2 %v7556_v30  ;;  %5482 = vmatmul.bf16.vlgmr.msra.gmra.mxu3 %v11010_v54  ;;  %v7156_v30 = vor.u32 %v10144_v20, %v7155_v19  ;;  %v10669_v29 = vld [vmem:[#allocation2 + $0x1338] sm:$0xf0] }
  0xcf   :  { %5526 = vmatpush.bf16.msrb.mxu3 %v8356_v31  ;;  %5495 = vmatmul.bf16.vlgmr.msrb.gmra.mxu0 %v11014_v61  ;;  %v7956_v31 = vor.u32 %v10344_v21, %v7955_v5  ;;  %v8556_v21 = vor.u32 %v10494_v4, %v8555_v3  ;;  %v8157_v3 = vld [vmem:[#allocation2 + $0xaa4] sm:$0xf0]  ;;  %v10582_v4 = vld [vmem:[#allocation2 + $0x1084] sm:$0xf] }
  0xd0   :  { %5539 = vmatpush.bf16.msra.mxu0 %v9156_v37  ;;  %v11033_v37 = vld [vmem:[#allocation2 + $0x1918] sm:$0xff]  ;;  %v5238_v63 = vpop.f32.mrf.mxu0 }
  0xd1   :  { %5552 = vmatpush.bf16.msra.mxu1 %v9956_v38  ;;  %v5211_v38 = vadd.f32 %v5210_v35, %v5198_v24  ;;  %v3397_v62 = vunpack.c.l.b16 %v11033_v37  ;;  %v8455_v24 = vld [vmem:[#allocation2 + $0xc98] sm:$0xf] }
  0xd2   :  { %5514 = vmatpush.bf16.msrb.mxu2 %v7456_v43  ;;  %v10519_v43 = vld [vmem:[#allocation2 + $0xe88] sm:$0xf0]  ;;  %v9957_v35 = vld [vmem:[#allocation2 + $0x18b4] sm:$0xf0] }
  0xd3   :  { %5527 = vmatpush.bf16.msrb.mxu3 %v8256_v44  ;;  %v7056_v44 = vor.u32 %v10119_v33, %v7055_v57  ;;  %v5224_v51 = vadd.f32 %v5223_v36, %v5211_v38  ;;  %v8357_v57 = vld [vmem:[#allocation2 + $0xc34] sm:$0xf0]  ;;  %v10632_v33 = vld [vmem:[#allocation2 + $0x1214] sm:$0xf]  ;;  %v8456_v36 = vor.u32 %v10469_v8, %v8455_v24  ;;  %v9256_v38 = vor.u32 %v10669_v29, %v9255_v28 }
  0xd4   :  { %5540 = vmatpush.bf16.msra.mxu0 %v9056_v55  ;;  %v7755_v55 = vld [vmem:[#allocation2 + $0x720] sm:$0xf]  ;;  %v5212_v19 = vpop.f32.mrf.mxu2  ;;  %v10132_v24 = vld [vmem:[#allocation2 + $0x274] sm:$0xf] }
  0xd5   :  { %5553 = vmatpush.bf16.msra.mxu1 %v9856_v59  ;;  %v10294_v59 = vld [vmem:[#allocation2 + $0x780] sm:$0xf0]  ;;  %v5237_v0 = vadd.f32 %v5236_v23, %v5224_v51  ;;  %v5249_v6 = vpop.f32.mrf.mxu1  ;;  %v5225_v20 = vpop.f32.mrf.mxu3  ;;  %v9356_v23 = vor.u32 %v10694_v11, %v9355_v10  ;;  %v9057_v51 = vld [vmem:[#allocation2 + $0x11ac] sm:$0xf0]  ;;  %v9757_v10 = vld [vmem:[#allocation2 + $0x1724] sm:$0xf0] }
  0xd6   :  { %5515 = vmatpush.bf16.msrb.mxu2 %v7356_v1  ;;  %v8656_v1 = vor.u32 %v10519_v43, %v8655_v42  ;;  %v7756_v7 = vor.u32 %v10294_v59, %v7755_v55  ;;  %v8360_v42 = vor.u32 %v10432_v60, %v8357_v57  ;;  %v9160_v43 = vor.u32 %v10632_v33, %v9157_v26  ;;  %v9857_v55 = vld [vmem:[#allocation2 + $0x17ec] sm:$0xf0]  ;;  %v10182_v59 = vld [vmem:[#allocation2 + $0x404] sm:$0xf]  ;;  %v10157_v11 = vld [vmem:[#allocation2 + $0x33c] sm:$0xf] }
  0xd7   :  { %5528 = vmatpush.bf16.msrb.mxu3 %v8156_v2  ;;  %v9456_v2 = vor.u32 %v10719_v49, %v9455_v48  ;;  %v8257_v48 = vld [vmem:[#allocation2 + $0xb6c] sm:$0xf0]  ;;  %v10607_v49 = vld [vmem:[#allocation2 + $0x114c] sm:$0xf]  ;;  %v8857_v20 = vld [vmem:[#allocation2 + $0x101c] sm:$0xf0] }
  0xd8   :  { %5541 = vmatpush.bf16.msra.mxu0 %v8956_v12  ;;  %v6855_v12 = vld [vmem:[#allocation2 + $0x18] sm:$0xf]  ;;  %v10532_v60 = vld [vmem:[#allocation2 + $0xef4] sm:$0xf] }
  0xd9   :  { %5554 = vmatpush.bf16.msra.mxu1 %v9756_v13  ;;  %v5250_v13 = vadd.f32 %v5249_v6, %v5237_v0  ;;  %v9060_v0 = vor.u32 %v10607_v49, %v9057_v51  ;;  %v8757_v33 = vld [vmem:[#allocation2 + $0xf54] sm:$0xf0]  ;;  %v10732_v26 = vld [vmem:[#allocation2 + $0x1534] sm:$0xf]  ;;  %v8657_v49 = vld [vmem:[#allocation2 + $0xe8c] sm:$0xf0] }
  0xda   :  { %5516 = vmatpush.bf16.msrb.mxu2 %v7256_v16  ;;  %v10269_v16 = vld [vmem:[#allocation2 + $0x6b8] sm:$0xf0]  ;;  %v9457_v51 = vld [vmem:[#allocation2 + $0x14cc] sm:$0xf0] }
  0xdb   :  { %5529 = vmatpush.bf16.msrb.mxu3 %v8056_v17  ;;  %v4222_v17 = vpack.c.b16 %v3397_v62, %v3397_v62  ;;  %v6772_v5 = vrot.slane %v5250_v13, 6  ;;  %v7357_v62 = vld [vmem:[#allocation2 + $0x464] sm:$0xf0] }
  0xdc   :  { %5542 = vmatpush.bf16.msra.mxu0 %v8856_v25  ;;  %10034 = vmatmul.msk.bf16.vlgmr.msrb.gmra.mxu1 %vm5041_vm2, %v11020_v58  ;;  %v6856_v25 = vor.u32 %v10069_v14, %v6855_v12  ;;  %v7360_v6 = vor.u32 %v10182_v59, %v7357_v62  ;;  %v7257_v12 = vld [vmem:[#allocation2 + $0x39c] sm:$0xf0]  ;;  %v6957_v59 = vld [vmem:[#allocation2 + $0x144] sm:$0xf0]  ;;  %v3398_v62 = vunpack.c.h.b16 %v11033_v37 }
  0xdd   :  { %5555 = vmatpush.bf16.msra.mxu1 %v9656_v27  ;;  %v7656_v27 = vor.u32 %v10269_v16, %v7655_v15  ;;  %v5067_v32 = vand.u32 %v10953_v45, %v4222_v17  ;;  %v10357_v16 = vld [vmem:[#allocation2 + $0x97c] sm:$0xf]  ;;  %v8057_v17 = vld [vmem:[#allocation2 + $0x9dc] sm:$0xf0]  ;;  %v7260_v19 = vor.u32 %v10157_v11, %v7257_v12  ;;  %v9357_v11 = vld [vmem:[#allocation2 + $0x1404] sm:$0xf0] }
  0xde   :  { %5517 = vmatpush.bf16.msrb.mxu2 %v7156_v30  ;;  %v11040_v30 = vsel %vm6790_vm3, %v11025_v22, %v6772_v5  ;;  %v5251_v22 = vpop.f32.mrf.mxu1  ;;  %v10757_v5 = vld [vmem:[#allocation2 + $0x15fc] sm:$0xf]  ;;  %v6857_v37 = vld [vmem:[#allocation2 + $0x7c] sm:$0xf0] }
  0xdf   :  { %5530 = vmatpush.bf16.msrb.mxu3 %v7956_v31  ;;  %v7560_v31 = vor.u32 %v10232_v56, %v7557_v18  ;;  %v10557_v56 = vld [vmem:[#allocation2 + $0xfbc] sm:$0xf]  ;;  %v10307_v22 = vld [vmem:[#allocation2 + $0x7ec] sm:$0xf] }
  0xe0   :  { %5543 = vmatpush.bf16.msra.mxu0 %v8756_v39  ;;  %v10207_v39 = vld [vmem:[#allocation2 + $0x4cc] sm:$0xf]  ;;  %v8860_v8 = vor.u32 %v10557_v56, %v8857_v20  ;;  %v10057_v12 = vld [vmem:[#allocation2 + $0x1c] sm:$0xf] }
  0xe1   :  { %5556 = vmatpush.bf16.msra.mxu1 %v9556_v41  ;;  %v7457_v41 = vld [vmem:[#allocation2 + $0x52c] sm:$0xf0]  ;;  %v10257_v56 = vld [vmem:[#allocation2 + $0x65c] sm:$0xf] }
  0xe2   :  { %5518 = vmatpush.bf16.msrb.mxu2 %v7056_v44  ;;  %v9960_v44 = vor.u32 %v10832_v34, %v9957_v35  ;;  %v7460_v50 = vor.u32 %v10207_v39, %v7457_v41  ;;  %v9557_v34 = vld [vmem:[#allocation2 + $0x1594] sm:$0xf0]  ;;  %v10107_v35 = vld [vmem:[#allocation2 + $0x1ac] sm:$0xf]  ;;  %v8760_v41 = vor.u32 %v10532_v60, %v8757_v33  ;;  %v10457_v20 = vld [vmem:[#allocation2 + $0xc9c] sm:$0xf] }
  0xe3   :  { %5531 = vmatpush.bf16.msrb.mxu3 %v7856_v46  ;;  %v10407_v46 = vld [vmem:[#allocation2 + $0xb0c] sm:$0xf]  ;;  %v10445_v60 = vld [vmem:[#allocation2 + $0xc38] sm:$0xf0] }
  0xe4   :  { %5544 = vmatpush.bf16.msra.mxu0 %v8656_v1  ;;  %v8260_v63 = vor.u32 %v10407_v46, %v8257_v48  ;;  %v9860_v1 = vor.u32 %v10807_v52, %v9857_v55  ;;  %v10082_v55 = vld [vmem:[#allocation2 + $0xe4] sm:$0xf]  ;;  %v10645_v33 = vld [vmem:[#allocation2 + $0x1278] sm:$0xf0] }
  0xe5   :  { %5557 = vmatpush.bf16.msra.mxu1 %v9456_v2  ;;  %v10382_v2 = vld [vmem:[#allocation2 + $0xa44] sm:$0xf] }
  0xe6   :  { %5519 = vmatpush.bf16.msrb.mxu2 %v6956_v47  ;;  %v8957_v47 = vld [vmem:[#allocation2 + $0x10e4] sm:$0xf0]  ;;  %v8160_v13 = vor.u32 %v10382_v2, %v8157_v3  ;;  %v10282_v3 = vld [vmem:[#allocation2 + $0x724] sm:$0xf] }
  0xe7   :  { %5532 = vmatpush.bf16.msrb.mxu3 %v7756_v7  ;;  %v10782_v7 = vld [vmem:[#allocation2 + $0x16c4] sm:$0xf]  ;;  %v8960_v14 = vor.u32 %v10582_v4, %v8957_v47  ;;  %v7757_v4 = vld [vmem:[#allocation2 + $0x784] sm:$0xf0]  ;;  %v6960_v47 = vor.u32 %v10082_v55, %v6957_v59  ;;  %v10820_v55 = vld [vmem:[#allocation2 + $0x17f0] sm:$0xf0] }
  0xe8   :  { %5545 = vmatpush.bf16.msra.mxu0 %v8556_v21  ;;  %v9760_v15 = vor.u32 %v10782_v7, %v9757_v10  ;;  %v11047_v18 = vpop.f32.mrf.mxu0  ;;  %v9657_v21 = vld [vmem:[#allocation2 + $0x165c] sm:$0xf0]  ;;  %v8557_v7 = vld [vmem:[#allocation2 + $0xdc4] sm:$0xf0]  ;;  %v10682_v10 = vld [vmem:[#allocation2 + $0x13a4] sm:$0xf] }
  0xe9   :  { %5558 = vmatpush.bf16.msra.mxu1 %v9356_v23  ;;  %v11049_v23 = vpop.f32.mrf.mxu1  ;;  %v9660_v28 = vor.u32 %v10757_v5, %v9657_v21  ;;  %v6860_v5 = vor.u32 %v10057_v12, %v6857_v37  ;;  %v8457_v21 = vld [vmem:[#allocation2 + $0xcfc] sm:$0xf0]  ;;  %v888_v37 = vperm.slane %v11005_v40, 3 }
  0xea   :  { %5520 = vmatpush.bf16.msrb.mxu2 %v6856_v25  ;;  %v7157_v25 = vld [vmem:[#allocation2 + $0x2d4] sm:$0xf0] }
  0xeb   :  { %5533 = vmatpush.bf16.msrb.mxu3 %v7656_v27  ;;  %v8060_v27 = vor.u32 %v10357_v16, %v8057_v17  ;;  %v7160_v57 = vor.u32 %v10132_v24, %v7157_v25  ;;  %v9360_v17 = vor.u32 %v10682_v10, %v9357_v11  ;;  %v10657_v24 = vld [vmem:[#allocation2 + $0x12dc] sm:$0xf]  ;;  %v9257_v25 = vld [vmem:[#allocation2 + $0x133c] sm:$0xf0]  ;;  %v10795_v10 = vld [vmem:[#allocation2 + $0x1728] sm:$0xf0] }
  0xec   :  { %5546 = vmatpush.bf16.msra.mxu0 %v8456_v36  ;;  %v11051_v29 = vpop.f32.mrf.mxu2  ;;  %v7057_v36 = vld [vmem:[#allocation2 + $0x20c] sm:$0xf0] }
  0xed   :  { %5559 = vmatpush.bf16.msra.mxu1 %v9256_v38  ;;  %5521 = vmatmul.bf16.vlgmr.msrb.gmra.mxu2 %v11007_v53  ;;  %v11053_v39 = vpop.f32.mrf.mxu3  ;;  %v7060_v48 = vor.u32 %v10107_v35, %v7057_v36  ;;  %v10845_v35 = vld [vmem:[#allocation2 + $0x18b8] sm:$0xf0] }
  0xee   :  { %5572 = vmatpush.bf16.msra.mxu2 %v5067_v32  ;;  %5534 = vmatmul.bf16.vlgmr.msrb.gmra.mxu3 %v11017_v9  ;;  %v7957_v32 = vld [vmem:[#allocation2 + $0x914] sm:$0xf0] }
  0xef   :  { %5578 = vmatpush.bf16.msra.mxu3 %v7560_v31  ;;  %5547 = vmatmul.bf16.vlgmr.msra.gmra.mxu0 %v11010_v54  ;;  %v10332_v31 = vld [vmem:[#allocation2 + $0x8b4] sm:$0xf] }
  0xf0   :  { %5591 = vmatpush.bf16.msrb.mxu0 %v8360_v42  ;;  %5560 = vmatmul.bf16.vlgmr.msra.gmra.mxu1 %v11014_v61  ;;  %v7960_v38 = vor.u32 %v10332_v31, %v7957_v32  ;;  %v9560_v42 = vor.u32 %v10732_v26, %v9557_v34  ;;  %v5290_v46 = vpop.f32.mrf.mxu0  ;;  %v8363_v31 = vld [vmem:[#allocation2 + $0xbd8] sm:$0xf]  ;;  %v8460_v26 = vor.u32 %v10457_v20, %v8457_v21  ;;  %v8863_v20 = vld [vmem:[#allocation2 + $0xfc0] sm:$0xf] }
  0xf1   :  { %5604 = vmatpush.bf16.msrb.mxu1 %v9160_v43  ;;  %v7857_v43 = vld [vmem:[#allocation2 + $0x84c] sm:$0xf0]  ;;  %v5303_v52 = vpop.f32.mrf.mxu1  ;;  %v9963_v34 = vld [vmem:[#allocation2 + $0x1858] sm:$0xf]  ;;  %v9663_v21 = vld [vmem:[#allocation2 + $0x1600] sm:$0xf] }
  0xf2   :  { %5617 = vmatpush.bf16.msrb.mxu2 %v9960_v44  ;;  %v10507_v44 = vld [vmem:[#allocation2 + $0xe2c] sm:$0xf]  ;;  %v8263_v46 = vld [vmem:[#allocation2 + $0xb10] sm:$0xf] }
  0xf3   :  { %5579 = vmatpush.bf16.msra.mxu3 %v7460_v50  ;;  %v10707_v50 = vld [vmem:[#allocation2 + $0x146c] sm:$0xf]  ;;  %v9863_v52 = vld [vmem:[#allocation2 + $0x1790] sm:$0xf] }
  0xf4   :  { %5592 = vmatpush.bf16.msrb.mxu0 %v8260_v63  ;;  %v7860_v63 = vor.u32 %v10307_v22, %v7857_v43  ;;  %v5264_v2 = vpop.f32.mrf.mxu2  ;;  %v7463_v43 = vld [vmem:[#allocation2 + $0x4d0] sm:$0xf] }
  0xf5   :  { %5605 = vmatpush.bf16.msrb.mxu1 %v9060_v0  ;;  %v8660_v0 = vor.u32 %v10507_v44, %v8657_v49  ;;  %v10220_v44 = vld [vmem:[#allocation2 + $0x530] sm:$0xf0]  ;;  %v8163_v2 = vld [vmem:[#allocation2 + $0xa48] sm:$0xf] }
  0xf6   :  { %5618 = vmatpush.bf16.msrb.mxu2 %v9860_v1  ;;  %v9460_v1 = vor.u32 %v10707_v50, %v9457_v51  ;;  %v10420_v49 = vld [vmem:[#allocation2 + $0xb70] sm:$0xf0]  ;;  %v9063_v50 = vld [vmem:[#allocation2 + $0x1150] sm:$0xf]  ;;  %v7464_v59 = vor.u32 %v10220_v44, %v7463_v43 }
  0xf7   :  { %5580 = vmatpush.bf16.msra.mxu3 %v7360_v6  ;;  %v10482_v6 = vld [vmem:[#allocation2 + $0xd64] sm:$0xf]  ;;  %v10620_v51 = vld [vmem:[#allocation2 + $0x11b0] sm:$0xf0] }
  0xf8   :  { %5593 = vmatpush.bf16.msrb.mxu0 %v8160_v13  ;;  %v4223_v13 = vpack.c.b16 %v3398_v62, %v3398_v62  ;;  %v8560_v16 = vor.u32 %v10482_v6, %v8557_v7  ;;  %v8264_v62 = vor.u32 %v10420_v49, %v8263_v46  ;;  %v8963_v6 = vld [vmem:[#allocation2 + $0x1088] sm:$0xf]  ;;  %v7063_v46 = vld [vmem:[#allocation2 + $0x1b0] sm:$0xf] }
  0xf9   :  { %5606 = vmatpush.bf16.msrb.mxu1 %v8960_v14  ;;  %v7760_v14 = vor.u32 %v10282_v3, %v7757_v4  ;;  %v9864_v3 = vor.u32 %v10820_v55, %v9863_v52  ;;  %v10395_v4 = vld [vmem:[#allocation2 + $0xaa8] sm:$0xf0]  ;;  %v9763_v7 = vld [vmem:[#allocation2 + $0x16c8] sm:$0xf]  ;;  %v7863_v49 = vld [vmem:[#allocation2 + $0x7f0] sm:$0xf] }
  0xfa   :  { %5619 = vmatpush.bf16.msrb.mxu2 %v9760_v15  ;;  %v5277_v15 = vpop.f32.mrf.mxu3  ;;  %v10320_v52 = vld [vmem:[#allocation2 + $0x850] sm:$0xf0]  ;;  %v8663_v55 = vld [vmem:[#allocation2 + $0xe30] sm:$0xf] }
  0xfb   :  { %5581 = vmatpush.bf16.msra.mxu3 %v7260_v19  ;;  %v7657_v19 = vld [vmem:[#allocation2 + $0x6bc] sm:$0xf0]  ;;  %v10170_v15 = vld [vmem:[#allocation2 + $0x3a0] sm:$0xf0] }
  0xfc   :  { %5594 = vmatpush.bf16.msrb.mxu0 %v8060_v27  ;;  %v5070_v27 = vand.u32 %v10953_v45, %v4223_v13  ;;  %v7660_v32 = vor.u32 %v10257_v56, %v7657_v19  ;;  %v11059_v36 = vpop.f32.mrf.mxu2  ;;  %v8164_v13 = vor.u32 %v10395_v4, %v8163_v2  ;;  %v9764_v56 = vor.u32 %v10795_v10, %v9763_v7  ;;  %v10370_v19 = vld [vmem:[#allocation2 + $0x9e0] sm:$0xf0]  ;;  %v7763_v7 = vld [vmem:[#allocation2 + $0x728] sm:$0xf]  ;;  %v10295_v10 = vld [vmem:[#allocation2 + $0x788] sm:$0xf0] }
  0xfd   :  { %5607 = vmatpush.bf16.msrb.mxu1 %v8860_v8  ;;  %10035 = vmatmul.msk.bf16.vlgmr.msra.gmra.mxu2 %vm5041_vm2, %v11020_v58  ;;  %v7563_v8 = vld [vmem:[#allocation2 + $0x598] sm:$0xf]  ;;  %v7864_v4 = vor.u32 %v10320_v52, %v7863_v49 }
  0xfe   :  { %5620 = vmatpush.bf16.msrb.mxu2 %v9660_v28  ;;  %v10245_v28 = vld [vmem:[#allocation2 + $0x5f8] sm:$0xf0]  ;;  %v8265_v52 = vld [vmem:[#allocation2 + $0xb74] sm:$0xf0] }
  0xff   :  { %5582 = vmatpush.bf16.msra.mxu3 %v7160_v57  ;;  %v9163_v57 = vld [vmem:[#allocation2 + $0x1218] sm:$0xf] }
 0x100   :  { %5595 = vmatpush.bf16.msrb.mxu0 %v7960_v38  ;;  %v9260_v38 = vor.u32 %v10657_v24, %v9257_v25  ;;  %v9164_v22 = vor.u32 %v10645_v33, %v9163_v57  ;;  %v10770_v24 = vld [vmem:[#allocation2 + $0x1660] sm:$0xf0]  ;;  %v10345_v33 = vld [vmem:[#allocation2 + $0x918] sm:$0xf0] }
 0x101   :  { %5608 = vmatpush.bf16.msrb.mxu1 %v8760_v41  ;;  %v7564_v41 = vor.u32 %v10245_v28, %v7563_v8  ;;  %v9664_v57 = vor.u32 %v10770_v24, %v9663_v21 }
 0x102   :  { %5621 = vmatpush.bf16.msrb.mxu2 %v9560_v42  ;;  %v8364_v42 = vor.u32 %v10445_v60, %v8363_v31  ;;  %v7163_v31 = vld [vmem:[#allocation2 + $0x278] sm:$0xf] }
 0x103   :  { %5583 = vmatpush.bf16.msra.mxu3 %v7060_v48  ;;  %v9964_v48 = vor.u32 %v10845_v35, %v9963_v34  ;;  %v7963_v60 = vld [vmem:[#allocation2 + $0x8b8] sm:$0xf]  ;;  %v10545_v34 = vld [vmem:[#allocation2 + $0xf58] sm:$0xf0] }
 0x104   :  { %5596 = vmatpush.bf16.msrb.mxu0 %v7860_v63  ;;  %v9064_v63 = vor.u32 %v10620_v51, %v9063_v50  ;;  %v5316_v11 = vpop.f32.mrf.mxu2  ;;  %v9563_v35 = vld [vmem:[#allocation2 + $0x1538] sm:$0xf]  ;;  %v7964_v43 = vor.u32 %v10345_v33, %v7963_v60  ;;  %v8365_v33 = vld [vmem:[#allocation2 + $0xc3c] sm:$0xf0] }
 0x105   :  { %5609 = vmatpush.bf16.msrb.mxu1 %v8660_v0  ;;  %v7363_v0 = vld [vmem:[#allocation2 + $0x408] sm:$0xf] }
 0x106   :  { %5622 = vmatpush.bf16.msrb.mxu2 %v9460_v1  ;;  %v10195_v1 = vld [vmem:[#allocation2 + $0x468] sm:$0xf0] }
 0x107   :  { %5584 = vmatpush.bf16.msra.mxu3 %v6960_v47  ;;  %v887_v47 = vperm.slane %v11005_v40, 2  ;;  %v7364_v12 = vor.u32 %v10195_v1, %v7363_v0  ;;  %v10720_v0 = vld [vmem:[#allocation2 + $0x14d0] sm:$0xf0] }
 0x108   :  { %5597 = vmatpush.bf16.msrb.mxu0 %v7760_v14  ;;  %v7263_v14 = vld [vmem:[#allocation2 + $0x340] sm:$0xf] }
 0x109   :  { %5610 = vmatpush.bf16.msrb.mxu1 %v8560_v16  ;;  %v8063_v16 = vld [vmem:[#allocation2 + $0x980] sm:$0xf]  ;;  %v7264_v25 = vor.u32 %v10170_v15, %v7263_v14 }
 0x10a   :  { %5623 = vmatpush.bf16.msrb.mxu2 %v9360_v17  ;;  %v5340_v17 = vpop.f32.mrf.mxu0  ;;  %v8064_v8 = vor.u32 %v10370_v19, %v8063_v16  ;;  %v6863_v15 = vld [vmem:[#allocation2 + $0x20] sm:$0xf]  ;;  %v10070_v16 = vld [vmem:[#allocation2 + $0x80] sm:$0xf0] }
 0x10b   :  { %5585 = vmatpush.bf16.msra.mxu3 %v6860_v5  ;;  %v5353_v5 = vpop.f32.mrf.mxu1  ;;  %v6864_v60 = vor.u32 %v10070_v16, %v6863_v15 }
 0x10c   :  { %5598 = vmatpush.bf16.msrb.mxu0 %v7660_v32  ;;  %v10145_v32 = vld [vmem:[#allocation2 + $0x2d8] sm:$0xf0] }
 0x10d   :  { %5611 = vmatpush.bf16.msrb.mxu1 %v8460_v26  ;;  %v5327_v40 = vpop.f32.mrf.mxu3  ;;  %v8763_v26 = vld [vmem:[#allocation2 + $0xef8] sm:$0xf] }
 0x10e   :  { %5586 = vmatmul.bf16.vlgmr.msra.gmra.mxu3 %v11007_v53  ;;  %5624 = vmatpush.bf16.msrb.mxu2 %v9260_v38  ;;  %v10595_v53 = vld [vmem:[#allocation2 + $0x10e8] sm:$0xf0]  ;;  %v10745_v38 = vld [vmem:[#allocation2 + $0x1598] sm:$0xf0]  ;;  %v8764_v44 = vor.u32 %v10545_v34, %v8763_v26  ;;  %v9165_v34 = vld [vmem:[#allocation2 + $0x127c] sm:$0xf0] }
 0x10f   :  { %5637 = vmatpush.bf16.msrb.mxu3 %v5070_v27  ;;  %5599 = vmatmul.bf16.vlgmr.msrb.gmra.mxu0 %v11017_v9  ;;  %v8964_v9 = vor.u32 %v10595_v53, %v8963_v6  ;;  %v5328_v27 = vadd.f32 %v5327_v40, %v888_v37  ;;  %v9564_v51 = vor.u32 %v10745_v38, %v9563_v35  ;;  %v11072_v37 = vld [vmem:[#allocation2 + $0x1920] sm:$0xff]  ;;  %v10633_v26 = vld [vmem:[#allocation2 + $0x121c] sm:$0xf] }
 0x110   :  { %5643 = vmatpush.bf16.msra.mxu0 %v7564_v41  ;;  %5612 = vmatmul.bf16.vlgmr.msrb.gmra.mxu1 %v11010_v54  ;;  %v5263_v54 = vadd.f32 %v11051_v29, %v887_v47  ;;  %v7164_v41 = vor.u32 %v10145_v32, %v7163_v31  ;;  %v10095_v47 = vld [vmem:[#allocation2 + $0x148] sm:$0xf0]  ;;  %v3399_v21 = vunpack.c.l.b16 %v11072_v37  ;;  %v9263_v40 = vld [vmem:[#allocation2 + $0x12e0] sm:$0xf]  ;;  %v10433_v31 = vld [vmem:[#allocation2 + $0xbdc] sm:$0xf]  ;;  %v9168_v49 = vor.u32 %v10633_v26, %v9165_v34 }
 0x111   :  { %5656 = vmatpush.bf16.msra.mxu1 %v8364_v42  ;;  %5625 = vmatmul.bf16.vlgmr.msrb.gmra.mxu2 %v11014_v61  ;;  %v10570_v61 = vld [vmem:[#allocation2 + $0x1020] sm:$0xf0]  ;;  %v5366_v42 = vpop.f32.mrf.mxu2  ;;  %v10133_v26 = vld [vmem:[#allocation2 + $0x27c] sm:$0xf]  ;;  %v7165_v34 = vld [vmem:[#allocation2 + $0x2dc] sm:$0xf0] }
 0x112   :  { %5669 = vmatpush.bf16.msra.mxu2 %v9164_v22  ;;  %v8864_v28 = vor.u32 %v10570_v61, %v8863_v20  ;;  %v5276_v29 = vadd.f32 %v11053_v39, %v5263_v54  ;;  %v5341_v22 = vadd.f32 %v5340_v17, %v5328_v27  ;;  %v5342_v50 = vpop.f32.mrf.mxu0  ;;  %v7663_v61 = vld [vmem:[#allocation2 + $0x660] sm:$0xf]  ;;  %v4224_v38 = vpack.c.b16 %v3399_v21, %v3399_v21  ;;  %v10358_v21 = vld [vmem:[#allocation2 + $0x984] sm:$0xf] }
 0x113   :  { %5682 = vmatpush.bf16.msra.mxu3 %v9964_v48  ;;  %v10120_v48 = vld [vmem:[#allocation2 + $0x210] sm:$0xf0]  ;;  %v5355_v39 = vpop.f32.mrf.mxu1  ;;  %v8463_v54 = vld [vmem:[#allocation2 + $0xca0] sm:$0xf]  ;;  %v7465_v50 = vld [vmem:[#allocation2 + $0x534] sm:$0xf0] }
 0x114   :  { %5644 = vmatpush.bf16.msra.mxu0 %v7464_v59  ;;  %v10520_v59 = vld [vmem:[#allocation2 + $0xe90] sm:$0xf0]  ;;  %v7064_v2 = vor.u32 %v10120_v48, %v7063_v46  ;;  %v5354_v53 = vadd.f32 %v5353_v5, %v5341_v22  ;;  %v10270_v5 = vld [vmem:[#allocation2 + $0x6c0] sm:$0xf0]  ;;  %v9965_v22 = vld [vmem:[#allocation2 + $0x18bc] sm:$0xf0]  ;;  %v8368_v48 = vor.u32 %v10433_v31, %v8365_v33 }
 0x115   :  { %5657 = vmatpush.bf16.msra.mxu1 %v8264_v62  ;;  %v5289_v62 = vadd.f32 %v11047_v18, %v5276_v29  ;;  %v5329_v1 = vpop.f32.mrf.mxu3  ;;  %v8664_v6 = vor.u32 %v10520_v59, %v8663_v55  ;;  %v8563_v18 = vld [vmem:[#allocation2 + $0xd68] sm:$0xf]  ;;  %v10608_v55 = vld [vmem:[#allocation2 + $0x1154] sm:$0xf]  ;;  %v9065_v59 = vld [vmem:[#allocation2 + $0x11b4] sm:$0xf0] }
 0x116   :  { %5670 = vmatpush.bf16.msra.mxu2 %v9064_v63  ;;  %v9463_v63 = vld [vmem:[#allocation2 + $0x1470] sm:$0xf]  ;;  %v5367_v20 = vadd.f32 %v5366_v42, %v5354_v53  ;;  %v9068_v53 = vor.u32 %v10608_v55, %v9065_v59  ;;  %v10758_v31 = vld [vmem:[#allocation2 + $0x1604] sm:$0xf]  ;;  %v10108_v55 = vld [vmem:[#allocation2 + $0x1b4] sm:$0xf] }
 0x117   :  { %5683 = vmatpush.bf16.msra.mxu3 %v9864_v3  ;;  %v6963_v3 = vld [vmem:[#allocation2 + $0xe8] sm:$0xf]  ;;  %v9464_v11 = vor.u32 %v10720_v0, %v9463_v63  ;;  %v7065_v59 = vld [vmem:[#allocation2 + $0x214] sm:$0xf0] }
 0x118   :  { %5645 = vmatpush.bf16.msra.mxu0 %v7364_v12  ;;  %v10495_v12 = vld [vmem:[#allocation2 + $0xdc8] sm:$0xf0]  ;;  %v6964_v14 = vor.u32 %v10095_v47, %v6963_v3  ;;  %v9865_v3 = vld [vmem:[#allocation2 + $0x17f4] sm:$0xf0]  ;;  %v7365_v47 = vld [vmem:[#allocation2 + $0x46c] sm:$0xf0] }
 0x119   :  { %5658 = vmatpush.bf16.msra.mxu1 %v8164_v13  ;;  %v9363_v13 = vld [vmem:[#allocation2 + $0x13a8] sm:$0xf]  ;;  %v5368_v17 = vpop.f32.mrf.mxu2  ;;  %v8564_v19 = vor.u32 %v10495_v12, %v8563_v18  ;;  %v11093_v12 = vld [vmem:[%s11427_s2] sm:$0xff] }
 0x11a   :  { %5671 = vmatpush.bf16.msra.mxu2 %v8964_v9  ;;  %v10695_v9 = vld [vmem:[#allocation2 + $0x1408] sm:$0xf0] }
 0x11b   :  { %5684 = vmatpush.bf16.msra.mxu3 %v9764_v56  ;;  %v7764_v56 = vor.u32 %v10295_v10, %v7763_v7  ;;  %v9364_v24 = vor.u32 %v10695_v9, %v9363_v13  ;;  %v10383_v7 = vld [vmem:[#allocation2 + $0xa4c] sm:$0xf]  ;;  %v8165_v10 = vld [vmem:[#allocation2 + $0xaac] sm:$0xf0] }
 0x11c   :  { %5646 = vmatpush.bf16.msra.mxu0 %v7264_v25  ;;  %v10670_v25 = vld [vmem:[#allocation2 + $0x1340] sm:$0xf0]  ;;  %v10583_v13 = vld [vmem:[#allocation2 + $0x108c] sm:$0xf]  ;;  %v8965_v9 = vld [vmem:[#allocation2 + $0x10ec] sm:$0xf0] }
 0x11d   :  { %5659 = vmatpush.bf16.msra.mxu1 %v8064_v8  ;;  %v10233_v8 = vld [vmem:[#allocation2 + $0x59c] sm:$0xf]  ;;  %v5379_v32 = vpop.f32.mrf.mxu3  ;;  %v10783_v17 = vld [vmem:[#allocation2 + $0x16cc] sm:$0xf] }
 0x11e   :  { %5672 = vmatpush.bf16.msra.mxu2 %v8864_v28  ;;  %10036 = vmatmul.msk.bf16.vlgmr.msrb.gmra.mxu3 %vm5041_vm2, %v11020_v58  ;;  %v5302_v58 = vadd.f32 %v11049_v23, %v5289_v62  ;;  %v10470_v23 = vld [vmem:[#allocation2 + $0xd00] sm:$0xf0]  ;;  %v7565_v28 = vld [vmem:[#allocation2 + $0x5fc] sm:$0xf0]  ;;  %v5380_v29 = vadd.f32 %v5379_v32, %v5367_v20  ;;  %v5073_v62 = vand.u32 %v10953_v45, %v4224_v38  ;;  %v9665_v32 = vld [vmem:[#allocation2 + $0x1664] sm:$0xf0] }
 0x11f   :  { %5685 = vmatpush.bf16.msra.mxu3 %v9664_v57  ;;  %v7664_v57 = vor.u32 %v10270_v5, %v7663_v61  ;;  %v8464_v35 = vor.u32 %v10470_v23, %v8463_v54  ;;  %v7568_v42 = vor.u32 %v10233_v8, %v7565_v28  ;;  %v8168_v20 = vor.u32 %v10383_v7, %v8165_v10  ;;  %v10158_v5 = vld [vmem:[#allocation2 + $0x344] sm:$0xf]  ;;  %v7265_v54 = vld [vmem:[#allocation2 + $0x3a4] sm:$0xf0]  ;;  %v7965_v38 = vld [vmem:[#allocation2 + $0x91c] sm:$0xf0] }
 0x120   :  { %5647 = vmatpush.bf16.msra.mxu0 %v7164_v41  ;;  %v5315_v27 = vadd.f32 %v11059_v36, %v5302_v58  ;;  %v9264_v41 = vor.u32 %v10670_v25, %v9263_v40  ;;  %v10833_v36 = vld [vmem:[#allocation2 + $0x185c] sm:$0xf]  ;;  %v6774_v46 = vrot.slane %v5380_v29, 2  ;;  %v889_v58 = vperm.slane %v11093_v12, 4  ;;  %v8065_v40 = vld [vmem:[#allocation2 + $0x9e4] sm:$0xf0] }
 0x121   :  { %5660 = vmatpush.bf16.msra.mxu1 %v7964_v43  ;;  %v10208_v43 = vld [vmem:[#allocation2 + $0x4d4] sm:$0xf]  ;;  %v9968_v0 = vor.u32 %v10833_v36, %v9965_v22  ;;  %v8968_v61 = vor.u32 %v10583_v13, %v8965_v9  ;;  %v10558_v25 = vld [vmem:[#allocation2 + $0xfc4] sm:$0xf]  ;;  %v7268_v28 = vor.u32 %v10158_v5, %v7265_v54  ;;  %v10333_v29 = vld [vmem:[#allocation2 + $0x8bc] sm:$0xf]  ;;  %v3400_v54 = vunpack.c.h.b16 %v11072_v37 }
 0x122   :  { %5673 = vmatpush.bf16.msra.mxu2 %v8764_v44  ;;  %v6773_v44 = vrot.slane %v5315_v27, 4  ;;  %v7468_v1 = vor.u32 %v10208_v43, %v7465_v50  ;;  %v8865_v27 = vld [vmem:[#allocation2 + $0x1024] sm:$0xf0]  ;;  %v9668_v43 = vor.u32 %v10758_v31, %v9665_v32  ;;  %v10083_v7 = vld [vmem:[#allocation2 + $0xec] sm:$0xf]  ;;  %v11102_v13 = vld [vmem:[#allocation1 + $0x24] sm:$0xff] }
 0x123   :  { %5686 = vmatpush.bf16.msra.mxu3 %v9564_v51  ;;  %v10408_v51 = vld [vmem:[#allocation2 + $0xb14] sm:$0xf]  ;;  %v8868_v33 = vor.u32 %v10558_v25, %v8865_v27  ;;  %v6965_v10 = vld [vmem:[#allocation2 + $0x14c] sm:$0xf0]  ;;  %v10058_v5 = vld [vmem:[#allocation2 + $0x24] sm:$0xf] }
 0x124   :  { %5648 = vmatpush.bf16.msra.mxu0 %v7064_v2  ;;  %v6793_v39 = vsel %vm6792_vm4, %v6773_v44, %v6774_v46  ;;  %v10808_v2 = vld [vmem:[#allocation2 + $0x1794] sm:$0xf]  ;;  %v7168_v46 = vor.u32 %v10133_v26, %v7165_v34  ;;  %v7765_v9 = vld [vmem:[#allocation2 + $0x78c] sm:$0xf0]  ;;  %v6865_v27 = vld [vmem:[#allocation2 + $0x84] sm:$0xf0] }
 0x125   :  { %5661 = vmatpush.bf16.msra.mxu1 %v7864_v4  ;;  %v6794_v63 = vsel %vm5045_vm1, %v11040_v30, %v6793_v39  ;;  %v10183_v4 = vld [vmem:[#allocation2 + $0x40c] sm:$0xf]  ;;  %v5381_v18 = vpop.f32.mrf.mxu3  ;;  %v9868_v15 = vor.u32 %v10808_v2, %v9865_v3  ;;  %v10308_v39 = vld [vmem:[#allocation2 + $0x7f4] sm:$0xf]  ;;  %v7068_v3 = vor.u32 %v10108_v55, %v7065_v59  ;;  %v10458_v32 = vld [vmem:[#allocation2 + $0xca4] sm:$0xf] }
 0x126   :  { %5674 = vmatpush.bf16.msra.mxu2 %v8664_v6  ;;  %6816 = vst [vmem:[%s11428_s3] sm:$0xff] %v6794_v63  ;;  %v8268_v6 = vor.u32 %v10408_v51, %v8265_v52  ;;  %v11087_v30 = vld [vmem:[#allocation1 + $0x12] sm:$0xff]  ;;  %v7368_v16 = vor.u32 %v10183_v4, %v7365_v47  ;;  %v7968_v51 = vor.u32 %v10333_v29, %v7965_v38  ;;  %v7865_v63 = vld [vmem:[#allocation2 + $0x854] sm:$0xf0]  ;;  %v10708_v4 = vld [vmem:[#allocation2 + $0x1474] sm:$0xf] }
 0x127   :  { %5687 = vmatpush.bf16.msra.mxu3 %v9464_v11  ;;  %v11084_v11 = vld [vmem:[#allocation1] sm:$0xff]  ;;  %v10283_v18 = vld [vmem:[#allocation2 + $0x72c] sm:$0xf]  ;;  %v8371_v26 = vld [vmem:[#allocation2 + $0xbe0] sm:$0xf]  ;;  %v6868_v29 = vor.u32 %v10058_v5, %v6865_v27  ;;  %v4225_v38 = vpack.c.b16 %v3400_v54, %v3400_v54 }
 0x128   :  { %5649 = vmatpush.bf16.msra.mxu0 %v6964_v14  ;;  %v11096_v14 = vld [vmem:[#allocation1 + $0x1b] sm:$0xff]  ;;  %v10446_v34 = vld [vmem:[#allocation2 + $0xc40] sm:$0xf0]  ;;  %v10421_v55 = vld [vmem:[#allocation2 + $0xb78] sm:$0xf0] }
 0x129   :  { %5662 = vmatpush.bf16.msra.mxu1 %v7764_v56  ;;  %v9765_v56 = vld [vmem:[#allocation2 + $0x172c] sm:$0xf0]  ;;  %v7271_v5 = vld [vmem:[#allocation2 + $0x348] sm:$0xf]  ;;  %v10171_v54 = vld [vmem:[#allocation2 + $0x3a8] sm:$0xf0] }
 0x12a   :  { %5675 = vmatpush.bf16.msra.mxu2 %v8564_v19  ;;  %v5392_v19 = vpop.f32.mrf.mxu0  ;;  %v9768_v8 = vor.u32 %v10783_v17, %v9765_v56 }
 0x12b   :  { %5688 = vmatpush.bf16.msra.mxu3 %v9364_v24  ;;  %v11099_v24 = vld [vmem:[#allocation1 + $0x9] sm:$0xff]  ;;  %v5393_v23 = vadd.f32 %v5392_v19, %v889_v58  ;;  %v6968_v19 = vor.u32 %v10083_v7, %v6965_v10  ;;  %v10196_v7 = vld [vmem:[#allocation2 + $0x470] sm:$0xf0]  ;;  %v8171_v10 = vld [vmem:[#allocation2 + $0xa50] sm:$0xf] }
 0x12c   :  { %5650 = vmatpush.bf16.msra.mxu0 %v6864_v60  ;;  %v5405_v60 = vpop.f32.mrf.mxu1 }
 0x12d   :  { %5663 = vmatpush.bf16.msra.mxu1 %v7664_v57  ;;  %v8068_v57 = vor.u32 %v10358_v21, %v8065_v40  ;;  %v7768_v40 = vor.u32 %v10283_v18, %v7765_v9  ;;  %v10396_v18 = vld [vmem:[#allocation2 + $0xab0] sm:$0xf0] }
 0x12e   :  { %5676 = vmatpush.bf16.msra.mxu2 %v8464_v35  ;;  %v5406_v35 = vadd.f32 %v5405_v60, %v5393_v23  ;;  %v8465_v60 = vld [vmem:[#allocation2 + $0xd04] sm:$0xf0] }
 0x12f   :  { %5689 = vmatpush.bf16.msra.mxu3 %v9264_v41  ;;  %5651 = vmatmul.bf16.vlgmr.msra.gmra.mxu0 %v11084_v11  ;;  %v10533_v41 = vld [vmem:[#allocation2 + $0xefc] sm:$0xf] }
 0x130   :  { %5702 = vmatpush.bf16.msrb.mxu0 %v5073_v62  ;;  %5664 = vmatmul.bf16.vlgmr.msra.gmra.mxu1 %v11099_v24  ;;  %v5418_v36 = vpop.f32.mrf.mxu2 }
 0x131   :  { %5708 = vmatpush.bf16.msrb.mxu1 %v7568_v42  ;;  %5677 = vmatmul.bf16.vlgmr.msra.gmra.mxu2 %v11087_v30  ;;  %v8765_v42 = vld [vmem:[#allocation2 + $0xf5c] sm:$0xf0]  ;;  %v5419_v22 = vadd.f32 %v5418_v36, %v5406_v35  ;;  %v5431_v44 = vpop.f32.mrf.mxu3  ;;  %v10658_v35 = vld [vmem:[#allocation2 + $0x12e4] sm:$0xf]  ;;  %v9265_v36 = vld [vmem:[#allocation2 + $0x1344] sm:$0xf0] }
 0x132   :  { %5721 = vmatpush.bf16.msrb.mxu2 %v8368_v48  ;;  %5690 = vmatmul.bf16.vlgmr.msra.gmra.mxu3 %v11096_v14  ;;  %v10733_v48 = vld [vmem:[#allocation2 + $0x153c] sm:$0xf]  ;;  %v5394_v50 = vpop.f32.mrf.mxu0  ;;  %v8768_v52 = vor.u32 %v10533_v41, %v8765_v42  ;;  %v8468_v42 = vor.u32 %v10458_v32, %v8465_v60  ;;  %v9268_v59 = vor.u32 %v10658_v35, %v9265_v36  ;;  %v8771_v36 = vld [vmem:[#allocation2 + $0xf00] sm:$0xf] }
 0x133   :  { %5734 = vmatpush.bf16.msrb.mxu3 %v9168_v49  ;;  %v9565_v49 = vld [vmem:[#allocation2 + $0x159c] sm:$0xf0]  ;;  %v5432_v62 = vadd.f32 %v5431_v44, %v5419_v22  ;;  %v7471_v50 = vld [vmem:[#allocation2 + $0x4d8] sm:$0xf]  ;;  %v7272_v32 = vor.u32 %v10171_v54, %v7271_v5 }
 0x134   :  { %5747 = vmatpush.bf16.msra.mxu0 %v9968_v0  ;;  %v10508_v0 = vld [vmem:[#allocation2 + $0xe34] sm:$0xf]  ;;  %v9568_v2 = vor.u32 %v10733_v48, %v9565_v49  ;;  %v5407_v58 = vpop.f32.mrf.mxu1  ;;  %v9171_v22 = vld [vmem:[#allocation2 + $0x1220] sm:$0xf]  ;;  %v10846_v49 = vld [vmem:[#allocation2 + $0x18c0] sm:$0xf0] }
 0x135   :  { %5709 = vmatpush.bf16.msrb.mxu1 %v7468_v1  ;;  %v8665_v1 = vld [vmem:[#allocation2 + $0xe94] sm:$0xf0]  ;;  %v9971_v48 = vld [vmem:[#allocation2 + $0x1860] sm:$0xf] }
 0x136   :  { %5722 = vmatpush.bf16.msrb.mxu2 %v8268_v6  ;;  %v9465_v6 = vld [vmem:[#allocation2 + $0x14d4] sm:$0xf0]  ;;  %v8668_v47 = vor.u32 %v10508_v0, %v8665_v1  ;;  %v10621_v1 = vld [vmem:[#allocation2 + $0x11b8] sm:$0xf0] }
 0x137   :  { %5735 = vmatpush.bf16.msrb.mxu3 %v9068_v53  ;;  %v7868_v53 = vor.u32 %v10308_v39, %v7865_v63  ;;  %v9468_v56 = vor.u32 %v10708_v4, %v9465_v6  ;;  %v5076_v39 = vand.u32 %v10953_v45, %v4225_v38  ;;  %v9972_v63 = vor.u32 %v10846_v49, %v9971_v48  ;;  %v9071_v0 = vld [vmem:[#allocation2 + $0x1158] sm:$0xf]  ;;  %v9571_v48 = vld [vmem:[#allocation2 + $0x1540] sm:$0xf]  ;;  %v10746_v49 = vld [vmem:[#allocation2 + $0x15a0] sm:$0xf0] }
 0x138   :  { %5748 = vmatpush.bf16.msra.mxu0 %v9868_v15  ;;  %v10483_v15 = vld [vmem:[#allocation2 + $0xd6c] sm:$0xf]  ;;  %v5420_v17 = vpop.f32.mrf.mxu2  ;;  %v9871_v6 = vld [vmem:[#allocation2 + $0x1798] sm:$0xf]  ;;  %v9072_v58 = vor.u32 %v10621_v1, %v9071_v0  ;;  %v9572_v1 = vor.u32 %v10746_v49, %v9571_v48  ;;  %v10434_v49 = vld [vmem:[#allocation2 + $0xbe4] sm:$0xf] }
 0x139   :  { %5710 = vmatpush.bf16.msrb.mxu1 %v7368_v16  ;;  %v8565_v16 = vld [vmem:[#allocation2 + $0xdcc] sm:$0xf0]  ;;  %v5433_v21 = vpop.f32.mrf.mxu3 }
 0x13a   :  { %5723 = vmatpush.bf16.msrb.mxu2 %v8168_v20  ;;  %v10683_v20 = vld [vmem:[#allocation2 + $0x13ac] sm:$0xf]  ;;  %v5444_v23 = vpop.f32.mrf.mxu0  ;;  %v8568_v25 = vor.u32 %v10483_v15, %v8565_v16  ;;  %v8971_v15 = vld [vmem:[#allocation2 + $0x1090] sm:$0xf]  ;;  %v10596_v16 = vld [vmem:[#allocation2 + $0x10f0] sm:$0xf0] }
 0x13b   :  { %5736 = vmatpush.bf16.msrb.mxu3 %v8968_v61  ;;  %v9365_v61 = vld [vmem:[#allocation2 + $0x140c] sm:$0xf0]  ;;  %v11107_v31 = vadd.f32 %v5444_v23, %v5432_v62  ;;  %v8071_v21 = vld [vmem:[#allocation2 + $0x988] sm:$0xf]  ;;  %v10371_v23 = vld [vmem:[#allocation2 + $0x9e8] sm:$0xf0] }
 0x13c   :  { %5749 = vmatpush.bf16.msra.mxu0 %v9768_v8  ;;  %v10258_v8 = vld [vmem:[#allocation2 + $0x664] sm:$0xf]  ;;  %v9368_v37 = vor.u32 %v10683_v20, %v9365_v61  ;;  %v9771_v20 = vld [vmem:[#allocation2 + $0x16d0] sm:$0xf]  ;;  %v10796_v61 = vld [vmem:[#allocation2 + $0x1730] sm:$0xf0]  ;;  %v8072_v60 = vor.u32 %v10371_v23, %v8071_v21 }
 0x13d   :  { %5711 = vmatpush.bf16.msrb.mxu1 %v7268_v28  ;;  %v7665_v28 = vld [vmem:[#allocation2 + $0x6c4] sm:$0xf0]  ;;  %v9772_v27 = vor.u32 %v10796_v61, %v9771_v20  ;;  %v8571_v20 = vld [vmem:[#allocation2 + $0xd70] sm:$0xf]  ;;  %v10496_v61 = vld [vmem:[#allocation2 + $0xdd0] sm:$0xf0] }
 0x13e   :  { %5724 = vmatpush.bf16.msrb.mxu2 %v8068_v57  ;;  %v7571_v57 = vld [vmem:[#allocation2 + $0x5a0] sm:$0xf]  ;;  %v7668_v41 = vor.u32 %v10258_v8, %v7665_v28  ;;  %v8871_v8 = vld [vmem:[#allocation2 + $0xfc8] sm:$0xf]  ;;  %v10571_v28 = vld [vmem:[#allocation2 + $0x1028] sm:$0xf0] }
 0x13f   :  { %5737 = vmatpush.bf16.msrb.mxu3 %v8868_v33  ;;  %10037 = vmatmul.msk.bf16.vlgmr.msrb.gmra.mxu0 %vm5041_vm2, %v11102_v13  ;;  %v10246_v33 = vld [vmem:[#allocation2 + $0x600] sm:$0xf0]  ;;  %v9371_v23 = vld [vmem:[#allocation2 + $0x13b0] sm:$0xf] }
 0x140   :  { %5750 = vmatpush.bf16.msra.mxu0 %v9668_v43  ;;  %v10646_v43 = vld [vmem:[#allocation2 + $0x1280] sm:$0xf0]  ;;  %v7572_v44 = vor.u32 %v10246_v33, %v7571_v57  ;;  %v9671_v57 = vld [vmem:[#allocation2 + $0x1608] sm:$0xf]  ;;  %v10771_v33 = vld [vmem:[#allocation2 + $0x1668] sm:$0xf0] }
 0x141   :  { %5712 = vmatpush.bf16.msrb.mxu1 %v7168_v46  ;;  %v8372_v46 = vor.u32 %v10446_v34, %v8371_v26  ;;  %v9172_v62 = vor.u32 %v10646_v43, %v9171_v22  ;;  %v7171_v26 = vld [vmem:[#allocation2 + $0x280] sm:$0xf]  ;;  %v10146_v34 = vld [vmem:[#allocation2 + $0x2e0] sm:$0xf0] }
 0x142   :  { %5725 = vmatpush.bf16.msrb.mxu2 %v7968_v51  ;;  %v10221_v51 = vld [vmem:[#allocation2 + $0x538] sm:$0xf0]  ;;  %v10546_v22 = vld [vmem:[#allocation2 + $0xf60] sm:$0xf0] }
 0x143   :  { %5738 = vmatpush.bf16.msrb.mxu3 %v8768_v52  ;;  %v8271_v52 = vld [vmem:[#allocation2 + $0xb18] sm:$0xf]  ;;  %v8772_v0 = vor.u32 %v10546_v22, %v8771_v36  ;;  %v10471_v36 = vld [vmem:[#allocation2 + $0xd08] sm:$0xf0]  ;;  %v9271_v22 = vld [vmem:[#allocation2 + $0x12e8] sm:$0xf] }
 0x144   :  { %5751 = vmatpush.bf16.msra.mxu0 %v9568_v2  ;;  %v5446_v2 = vpop.f32.mrf.mxu0  ;;  %v8272_v4 = vor.u32 %v10421_v55, %v8271_v52  ;;  %v7871_v52 = vld [vmem:[#allocation2 + $0x7f8] sm:$0xf]  ;;  %v10321_v55 = vld [vmem:[#allocation2 + $0x858] sm:$0xf0] }
 0x145   :  { %5713 = vmatpush.bf16.msrb.mxu1 %v7068_v3  ;;  %v7472_v3 = vor.u32 %v10221_v51, %v7471_v50  ;;  %v7071_v50 = vld [vmem:[#allocation2 + $0x1b8] sm:$0xf]  ;;  %v10121_v51 = vld [vmem:[#allocation2 + $0x218] sm:$0xf0] }
 0x146   :  { %5726 = vmatpush.bf16.msrb.mxu2 %v7868_v53  ;;  %v10821_v53 = vld [vmem:[#allocation2 + $0x17f8] sm:$0xf0]  ;;  %v8671_v2 = vld [vmem:[#allocation2 + $0xe38] sm:$0xf] }
 0x147   :  { %5739 = vmatpush.bf16.msrb.mxu3 %v8668_v47  ;;  %v7371_v47 = vld [vmem:[#allocation2 + $0x410] sm:$0xf]  ;;  %v9872_v9 = vor.u32 %v10821_v53, %v9871_v6  ;;  %v7872_v6 = vor.u32 %v10321_v55, %v7871_v52  ;;  %v9471_v53 = vld [vmem:[#allocation2 + $0x1478] sm:$0xf]  ;;  %v9173_v52 = vld [vmem:[#allocation2 + $0x1284] sm:$0xf0] }
 0x148   :  { %5752 = vmatpush.bf16.msra.mxu0 %v9468_v56  ;;  %v7372_v56 = vor.u32 %v10196_v7, %v7371_v47  ;;  %v10721_v47 = vld [vmem:[#allocation2 + $0x14d8] sm:$0xf0]  ;;  %v6971_v7 = vld [vmem:[#allocation2 + $0xf0] sm:$0xf]  ;;  %v10834_v55 = vld [vmem:[#allocation2 + $0x1864] sm:$0xf] }
 0x149   :  { %5714 = vmatpush.bf16.msrb.mxu1 %v6968_v19  ;;  %v5457_v17 = vpop.f32.mrf.mxu1  ;;  %v8172_v19 = vor.u32 %v10396_v18, %v8171_v10  ;;  %v10096_v18 = vld [vmem:[#allocation2 + $0x150] sm:$0xf0] }
 0x14a   :  { %5727 = vmatpush.bf16.msrb.mxu2 %v7768_v40  ;;  %v890_v40 = vperm.slane %v11093_v12, 5  ;;  %v6972_v54 = vor.u32 %v10096_v18, %v6971_v7  ;;  %v10809_v18 = vld [vmem:[#allocation2 + $0x179c] sm:$0xf] }
 0x14b   :  { %5740 = vmatpush.bf16.msrb.mxu3 %v8568_v25  ;;  %v8972_v25 = vor.u32 %v10596_v16, %v8971_v15 }
 0x14c   :  { %5753 = vmatpush.bf16.msra.mxu0 %v9368_v37  ;;  %v7971_v37 = vld [vmem:[#allocation2 + $0x8c0] sm:$0xf]  ;;  %v5496_v35 = vpop.f32.mrf.mxu0  ;;  %v5458_v38 = vadd.f32 %v5457_v17, %v890_v40  ;;  %v10696_v40 = vld [vmem:[#allocation2 + $0x1410] sm:$0xf0] }
 0x14d   :  { %5715 = vmatpush.bf16.msrb.mxu1 %v6868_v29  ;;  %v10346_v29 = vld [vmem:[#allocation2 + $0x920] sm:$0xf0] }
 0x14e   :  { %5728 = vmatpush.bf16.msrb.mxu2 %v7668_v41  ;;  %v8872_v41 = vor.u32 %v10571_v28, %v8871_v8  ;;  %v10071_v8 = vld [vmem:[#allocation2 + $0x88] sm:$0xf0]  ;;  %v7671_v28 = vld [vmem:[#allocation2 + $0x668] sm:$0xf] }
 0x14f   :  { %5741 = vmatpush.bf16.msrb.mxu3 %v8468_v42  ;;  %v9672_v42 = vor.u32 %v10771_v33, %v9671_v57  ;;  %v10234_v57 = vld [vmem:[#allocation2 + $0x5a4] sm:$0xf]  ;;  %v7573_v33 = vld [vmem:[#allocation2 + $0x604] sm:$0xf0] }
 0x150   :  { %5716 = vmatmul.bf16.vlgmr.msrb.gmra.mxu1 %v11084_v11  ;;  %5754 = vmatpush.bf16.msra.mxu0 %v9268_v59  ;;  %v5470_v59 = vpop.f32.mrf.mxu2 }
 0x151   :  { %5767 = vmatpush.bf16.msra.mxu1 %v5076_v39  ;;  %5729 = vmatmul.bf16.vlgmr.msrb.gmra.mxu2 %v11099_v24  ;;  %v5459_v43 = vpop.f32.mrf.mxu1  ;;  %v5483_v39 = vpop.f32.mrf.mxu3 }
 0x152   :  { %5773 = vmatpush.bf16.msra.mxu2 %v7572_v44  ;;  %5742 = vmatmul.bf16.vlgmr.msrb.gmra.mxu3 %v11087_v30  ;;  %v7172_v44 = vor.u32 %v10146_v34, %v7171_v26  ;;  %v10671_v43 = vld [vmem:[#allocation2 + $0x1348] sm:$0xf0] }
 0x153   :  { %5786 = vmatpush.bf16.msra.mxu3 %v8372_v46  ;;  %5755 = vmatmul.bf16.vlgmr.msra.gmra.mxu0 %v11096_v14  ;;  %v7972_v46 = vor.u32 %v10346_v29, %v7971_v37  ;;  %v8572_v29 = vor.u32 %v10496_v61, %v8571_v20  ;;  %v8173_v20 = vld [vmem:[#allocation2 + $0xab4] sm:$0xf0]  ;;  %v10584_v61 = vld [vmem:[#allocation2 + $0x1094] sm:$0xf] }
 0x154   :  { %5799 = vmatpush.bf16.msrb.mxu0 %v9172_v62  ;;  %v11115_v62 = vld [vmem:[#allocation2 + $0x1928] sm:$0xff]  ;;  %v5498_v16 = vpop.f32.mrf.mxu0 }
 0x155   :  { %5812 = vmatpush.bf16.msrb.mxu1 %v9972_v63  ;;  %v5471_v63 = vadd.f32 %v5470_v59, %v5458_v38  ;;  %v3401_v15 = vunpack.c.l.b16 %v11115_v62  ;;  %v8471_v38 = vld [vmem:[#allocation2 + $0xca8] sm:$0xf] }
 0x156   :  { %5774 = vmatpush.bf16.msra.mxu2 %v7472_v3  ;;  %v10521_v3 = vld [vmem:[#allocation2 + $0xe98] sm:$0xf0]  ;;  %v9973_v59 = vld [vmem:[#allocation2 + $0x18c4] sm:$0xf0] }
 0x157   :  { %5787 = vmatpush.bf16.msra.mxu3 %v8272_v4  ;;  %v7072_v4 = vor.u32 %v10121_v51, %v7071_v50  ;;  %v5484_v10 = vadd.f32 %v5483_v39, %v5471_v63  ;;  %v8373_v50 = vld [vmem:[#allocation2 + $0xc44] sm:$0xf0]  ;;  %v10634_v51 = vld [vmem:[#allocation2 + $0x1224] sm:$0xf]  ;;  %v8472_v39 = vor.u32 %v10471_v36, %v8471_v38  ;;  %v9272_v63 = vor.u32 %v10671_v43, %v9271_v22 }
 0x158   :  { %5800 = vmatpush.bf16.msrb.mxu0 %v9072_v58  ;;  %v7771_v58 = vld [vmem:[#allocation2 + $0x730] sm:$0xf]  ;;  %v5472_v26 = vpop.f32.mrf.mxu2  ;;  %v10134_v38 = vld [vmem:[#allocation2 + $0x284] sm:$0xf] }
 0x159   :  { %5813 = vmatpush.bf16.msrb.mxu1 %v9872_v9  ;;  %v10296_v9 = vld [vmem:[#allocation2 + $0x790] sm:$0xf0]  ;;  %v5497_v17 = vadd.f32 %v5496_v35, %v5484_v10  ;;  %v5509_v5 = vpop.f32.mrf.mxu1  ;;  %v5485_v34 = vpop.f32.mrf.mxu3  ;;  %v9372_v35 = vor.u32 %v10696_v40, %v9371_v23  ;;  %v9073_v10 = vld [vmem:[#allocation2 + $0x11bc] sm:$0xf0]  ;;  %v9773_v23 = vld [vmem:[#allocation2 + $0x1734] sm:$0xf0] }
 0x15a   :  { %5775 = vmatpush.bf16.msra.mxu2 %v7372_v56  ;;  %v8672_v56 = vor.u32 %v10521_v3, %v8671_v2  ;;  %v7772_v21 = vor.u32 %v10296_v9, %v7771_v58  ;;  %v8376_v2 = vor.u32 %v10434_v49, %v8373_v50  ;;  %v9176_v3 = vor.u32 %v10634_v51, %v9173_v52  ;;  %v9873_v58 = vld [vmem:[#allocation2 + $0x17fc] sm:$0xf0]  ;;  %v10184_v9 = vld [vmem:[#allocation2 + $0x414] sm:$0xf]  ;;  %v10159_v40 = vld [vmem:[#allocation2 + $0x34c] sm:$0xf] }
 0x15b   :  { %5788 = vmatpush.bf16.msra.mxu3 %v8172_v19  ;;  %v9472_v19 = vor.u32 %v10721_v47, %v9471_v53  ;;  %v8273_v53 = vld [vmem:[#allocation2 + $0xb7c] sm:$0xf0]  ;;  %v10609_v47 = vld [vmem:[#allocation2 + $0x115c] sm:$0xf]  ;;  %v8873_v34 = vld [vmem:[#allocation2 + $0x102c] sm:$0xf0] }
 0x15c   :  { %5801 = vmatpush.bf16.msrb.mxu0 %v8972_v25  ;;  %v6871_v25 = vld [vmem:[#allocation2 + $0x28] sm:$0xf]  ;;  %v10534_v49 = vld [vmem:[#allocation2 + $0xf04] sm:$0xf] }
 0x15d   :  { %5814 = vmatpush.bf16.msrb.mxu1 %v9772_v27  ;;  %v5510_v27 = vadd.f32 %v5509_v5, %v5497_v17  ;;  %v9076_v17 = vor.u32 %v10609_v47, %v9073_v10  ;;  %v8773_v51 = vld [vmem:[#allocation2 + $0xf64] sm:$0xf0]  ;;  %v10734_v52 = vld [vmem:[#allocation2 + $0x1544] sm:$0xf]  ;;  %v8673_v47 = vld [vmem:[#allocation2 + $0xe9c] sm:$0xf0] }
 0x15e   :  { %5776 = vmatpush.bf16.msra.mxu2 %v7272_v32  ;;  %v10271_v32 = vld [vmem:[#allocation2 + $0x6c8] sm:$0xf0]  ;;  %v9473_v10 = vld [vmem:[#allocation2 + $0x14dc] sm:$0xf0] }
 0x15f   :  { %5789 = vmatpush.bf16.msra.mxu3 %v8072_v60  ;;  %v4226_v60 = vpack.c.b16 %v3401_v15, %v3401_v15  ;;  %v6775_v37 = vrot.slane %v5510_v27, 6  ;;  %v7373_v15 = vld [vmem:[#allocation2 + $0x474] sm:$0xf0] }
 0x160   :  { %5802 = vmatpush.bf16.msrb.mxu0 %v8872_v41  ;;  %10038 = vmatmul.msk.bf16.vlgmr.msra.gmra.mxu1 %vm5041_vm2, %v11102_v13  ;;  %v6872_v41 = vor.u32 %v10071_v8, %v6871_v25  ;;  %v7376_v5 = vor.u32 %v10184_v9, %v7373_v15  ;;  %v7273_v25 = vld [vmem:[#allocation2 + $0x3ac] sm:$0xf0]  ;;  %v6973_v9 = vld [vmem:[#allocation2 + $0x154] sm:$0xf0]  ;;  %v3402_v15 = vunpack.c.h.b16 %v11115_v62 }
 0x161   :  { %5815 = vmatpush.bf16.msrb.mxu1 %v9672_v42  ;;  %v7672_v42 = vor.u32 %v10271_v32, %v7671_v28  ;;  %v5079_v48 = vand.u32 %v10953_v45, %v4226_v60  ;;  %v10359_v32 = vld [vmem:[#allocation2 + $0x98c] sm:$0xf]  ;;  %v8073_v60 = vld [vmem:[#allocation2 + $0x9ec] sm:$0xf0]  ;;  %v7276_v26 = vor.u32 %v10159_v40, %v7273_v25  ;;  %v9373_v40 = vld [vmem:[#allocation2 + $0x1414] sm:$0xf0] }
 0x162   :  { %5777 = vmatpush.bf16.msra.mxu2 %v7172_v44  ;;  %v11122_v44 = vsel %vm6790_vm3, %v11107_v31, %v6775_v37  ;;  %v5511_v31 = vpop.f32.mrf.mxu1  ;;  %v10759_v37 = vld [vmem:[#allocation2 + $0x160c] sm:$0xf]  ;;  %v6873_v62 = vld [vmem:[#allocation2 + $0x8c] sm:$0xf0] }
 0x163   :  { %5790 = vmatpush.bf16.msra.mxu3 %v7972_v46  ;;  %v7576_v46 = vor.u32 %v10234_v57, %v7573_v33  ;;  %v10559_v57 = vld [vmem:[#allocation2 + $0xfcc] sm:$0xf]  ;;  %v10309_v31 = vld [vmem:[#allocation2 + $0x7fc] sm:$0xf] }
 0x164   :  { %5803 = vmatpush.bf16.msrb.mxu0 %v8772_v0  ;;  %v10209_v0 = vld [vmem:[#allocation2 + $0x4dc] sm:$0xf]  ;;  %v8876_v36 = vor.u32 %v10559_v57, %v8873_v34  ;;  %v10059_v25 = vld [vmem:[#allocation2 + $0x2c] sm:$0xf] }
 0x165   :  { %5816 = vmatpush.bf16.msrb.mxu1 %v9572_v1  ;;  %v7473_v1 = vld [vmem:[#allocation2 + $0x53c] sm:$0xf0]  ;;  %v10259_v57 = vld [vmem:[#allocation2 + $0x66c] sm:$0xf] }
 0x166   :  { %5778 = vmatpush.bf16.msra.mxu2 %v7072_v4  ;;  %v9976_v4 = vor.u32 %v10834_v55, %v9973_v59  ;;  %v7476_v7 = vor.u32 %v10209_v0, %v7473_v1  ;;  %v9573_v55 = vld [vmem:[#allocation2 + $0x15a4] sm:$0xf0]  ;;  %v10109_v59 = vld [vmem:[#allocation2 + $0x1bc] sm:$0xf]  ;;  %v8776_v1 = vor.u32 %v10534_v49, %v8773_v51  ;;  %v10459_v34 = vld [vmem:[#allocation2 + $0xcac] sm:$0xf] }
 0x167   :  { %5791 = vmatpush.bf16.msra.mxu3 %v7872_v6  ;;  %v10409_v6 = vld [vmem:[#allocation2 + $0xb1c] sm:$0xf]  ;;  %v10447_v49 = vld [vmem:[#allocation2 + $0xc48] sm:$0xf0] }
 0x168   :  { %5804 = vmatpush.bf16.msrb.mxu0 %v8672_v56  ;;  %v8276_v16 = vor.u32 %v10409_v6, %v8273_v53  ;;  %v9876_v56 = vor.u32 %v10809_v18, %v9873_v58  ;;  %v10084_v58 = vld [vmem:[#allocation2 + $0xf4] sm:$0xf]  ;;  %v10647_v51 = vld [vmem:[#allocation2 + $0x1288] sm:$0xf0] }
 0x169   :  { %5817 = vmatpush.bf16.msrb.mxu1 %v9472_v19  ;;  %v10384_v19 = vld [vmem:[#allocation2 + $0xa54] sm:$0xf] }
 0x16a   :  { %5779 = vmatpush.bf16.msra.mxu2 %v6972_v54  ;;  %v8973_v54 = vld [vmem:[#allocation2 + $0x10f4] sm:$0xf0]  ;;  %v8176_v27 = vor.u32 %v10384_v19, %v8173_v20  ;;  %v10284_v20 = vld [vmem:[#allocation2 + $0x734] sm:$0xf] }
 0x16b   :  { %5792 = vmatpush.bf16.msra.mxu3 %v7772_v21  ;;  %v10784_v21 = vld [vmem:[#allocation2 + $0x16d4] sm:$0xf]  ;;  %v8976_v8 = vor.u32 %v10584_v61, %v8973_v54  ;;  %v7773_v61 = vld [vmem:[#allocation2 + $0x794] sm:$0xf0]  ;;  %v6976_v54 = vor.u32 %v10084_v58, %v6973_v9  ;;  %v10822_v58 = vld [vmem:[#allocation2 + $0x1800] sm:$0xf0] }
 0x16c   :  { %5805 = vmatpush.bf16.msrb.mxu0 %v8572_v29  ;;  %v9776_v28 = vor.u32 %v10784_v21, %v9773_v23  ;;  %v11129_v33 = vpop.f32.mrf.mxu0  ;;  %v9673_v29 = vld [vmem:[#allocation2 + $0x166c] sm:$0xf0]  ;;  %v8573_v21 = vld [vmem:[#allocation2 + $0xdd4] sm:$0xf0]  ;;  %v10684_v23 = vld [vmem:[#allocation2 + $0x13b4] sm:$0xf] }
 0x16d   :  { %5818 = vmatpush.bf16.msrb.mxu1 %v9372_v35  ;;  %v11131_v35 = vpop.f32.mrf.mxu1  ;;  %v9676_v22 = vor.u32 %v10759_v37, %v9673_v29  ;;  %v6876_v37 = vor.u32 %v10059_v25, %v6873_v62  ;;  %v8473_v29 = vld [vmem:[#allocation2 + $0xd0c] sm:$0xf0]  ;;  %v892_v62 = vperm.slane %v11093_v12, 7 }
 0x16e   :  { %5780 = vmatpush.bf16.msra.mxu2 %v6872_v41  ;;  %v7173_v41 = vld [vmem:[#allocation2 + $0x2e4] sm:$0xf0] }
 0x16f   :  { %5793 = vmatpush.bf16.msra.mxu3 %v7672_v42  ;;  %v8076_v42 = vor.u32 %v10359_v32, %v8073_v60  ;;  %v7176_v50 = vor.u32 %v10134_v38, %v7173_v41  ;;  %v9376_v60 = vor.u32 %v10684_v23, %v9373_v40  ;;  %v10659_v38 = vld [vmem:[#allocation2 + $0x12ec] sm:$0xf]  ;;  %v9273_v41 = vld [vmem:[#allocation2 + $0x134c] sm:$0xf0]  ;;  %v10797_v23 = vld [vmem:[#allocation2 + $0x1738] sm:$0xf0] }
 0x170   :  { %5806 = vmatpush.bf16.msrb.mxu0 %v8472_v39  ;;  %v11133_v43 = vpop.f32.mrf.mxu2  ;;  %v7073_v39 = vld [vmem:[#allocation2 + $0x21c] sm:$0xf0] }
 0x171   :  { %5819 = vmatpush.bf16.msrb.mxu1 %v9272_v63  ;;  %5781 = vmatmul.bf16.vlgmr.msra.gmra.mxu2 %v11084_v11  ;;  %v11135_v0 = vpop.f32.mrf.mxu3  ;;  %v7076_v53 = vor.u32 %v10109_v59, %v7073_v39  ;;  %v10847_v59 = vld [vmem:[#allocation2 + $0x18c8] sm:$0xf0] }
 0x172   :  { %5832 = vmatpush.bf16.msrb.mxu2 %v5079_v48  ;;  %5794 = vmatmul.bf16.vlgmr.msra.gmra.mxu3 %v11099_v24  ;;  %v7973_v48 = vld [vmem:[#allocation2 + $0x924] sm:$0xf0] }
 0x173   :  { %5838 = vmatpush.bf16.msrb.mxu3 %v7576_v46  ;;  %5807 = vmatmul.bf16.vlgmr.msrb.gmra.mxu0 %v11087_v30  ;;  %v10334_v46 = vld [vmem:[#allocation2 + $0x8c4] sm:$0xf] }
 0x174   :  { %5851 = vmatpush.bf16.msra.mxu0 %v8376_v2  ;;  %5820 = vmatmul.bf16.vlgmr.msrb.gmra.mxu1 %v11096_v14  ;;  %v7976_v63 = vor.u32 %v10334_v46, %v7973_v48  ;;  %v9576_v2 = vor.u32 %v10734_v52, %v9573_v55  ;;  %v5550_v6 = vpop.f32.mrf.mxu0  ;;  %v8379_v46 = vld [vmem:[#allocation2 + $0xbe8] sm:$0xf]  ;;  %v8476_v52 = vor.u32 %v10459_v34, %v8473_v29  ;;  %v8879_v34 = vld [vmem:[#allocation2 + $0xfd0] sm:$0xf] }
 0x175   :  { %5864 = vmatpush.bf16.msra.mxu1 %v9176_v3  ;;  %v7873_v3 = vld [vmem:[#allocation2 + $0x85c] sm:$0xf0]  ;;  %v5563_v18 = vpop.f32.mrf.mxu1  ;;  %v9979_v55 = vld [vmem:[#allocation2 + $0x1868] sm:$0xf]  ;;  %v9679_v29 = vld [vmem:[#allocation2 + $0x1610] sm:$0xf] }
 0x176   :  { %5877 = vmatpush.bf16.msra.mxu2 %v9976_v4  ;;  %v10509_v4 = vld [vmem:[#allocation2 + $0xe3c] sm:$0xf]  ;;  %v8279_v6 = vld [vmem:[#allocation2 + $0xb20] sm:$0xf] }
 0x177   :  { %5839 = vmatpush.bf16.msrb.mxu3 %v7476_v7  ;;  %v10709_v7 = vld [vmem:[#allocation2 + $0x147c] sm:$0xf]  ;;  %v9879_v18 = vld [vmem:[#allocation2 + $0x17a0] sm:$0xf] }
 0x178   :  { %5852 = vmatpush.bf16.msra.mxu0 %v8276_v16  ;;  %v7876_v16 = vor.u32 %v10309_v31, %v7873_v3  ;;  %v5524_v19 = vpop.f32.mrf.mxu2  ;;  %v7479_v3 = vld [vmem:[#allocation2 + $0x4e0] sm:$0xf] }
 0x179   :  { %5865 = vmatpush.bf16.msra.mxu1 %v9076_v17  ;;  %v8676_v17 = vor.u32 %v10509_v4, %v8673_v47  ;;  %v10222_v4 = vld [vmem:[#allocation2 + $0x540] sm:$0xf0]  ;;  %v8179_v19 = vld [vmem:[#allocation2 + $0xa58] sm:$0xf] }
 0x17a   :  { %5878 = vmatpush.bf16.msra.mxu2 %v9876_v56  ;;  %v9476_v56 = vor.u32 %v10709_v7, %v9473_v10  ;;  %v10422_v47 = vld [vmem:[#allocation2 + $0xb80] sm:$0xf0]  ;;  %v9079_v7 = vld [vmem:[#allocation2 + $0x1160] sm:$0xf]  ;;  %v7480_v9 = vor.u32 %v10222_v4, %v7479_v3 }
 0x17b   :  { %5840 = vmatpush.bf16.msrb.mxu3 %v7376_v5  ;;  %v10484_v5 = vld [vmem:[#allocation2 + $0xd74] sm:$0xf]  ;;  %v10622_v10 = vld [vmem:[#allocation2 + $0x11c0] sm:$0xf0] }
 0x17c   :  { %5853 = vmatpush.bf16.msra.mxu0 %v8176_v27  ;;  %v4227_v27 = vpack.c.b16 %v3402_v15, %v3402_v15  ;;  %v8576_v32 = vor.u32 %v10484_v5, %v8573_v21  ;;  %v8280_v15 = vor.u32 %v10422_v47, %v8279_v6  ;;  %v8979_v5 = vld [vmem:[#allocation2 + $0x1098] sm:$0xf]  ;;  %v7079_v6 = vld [vmem:[#allocation2 + $0x1c0] sm:$0xf] }
 0x17d   :  { %5866 = vmatpush.bf16.msra.mxu1 %v8976_v8  ;;  %v7776_v8 = vor.u32 %v10284_v20, %v7773_v61  ;;  %v9880_v20 = vor.u32 %v10822_v58, %v9879_v18  ;;  %v10397_v61 = vld [vmem:[#allocation2 + $0xab8] sm:$0xf0]  ;;  %v9779_v21 = vld [vmem:[#allocation2 + $0x16d8] sm:$0xf]  ;;  %v7879_v47 = vld [vmem:[#allocation2 + $0x800] sm:$0xf] }
 0x17e   :  { %5879 = vmatpush.bf16.msra.mxu2 %v9776_v28  ;;  %v5537_v28 = vpop.f32.mrf.mxu3  ;;  %v10322_v18 = vld [vmem:[#allocation2 + $0x860] sm:$0xf0]  ;;  %v8679_v58 = vld [vmem:[#allocation2 + $0xe40] sm:$0xf] }
 0x17f   :  { %5841 = vmatpush.bf16.msrb.mxu3 %v7276_v26  ;;  %v7673_v26 = vld [vmem:[#allocation2 + $0x6cc] sm:$0xf0]  ;;  %v10172_v28 = vld [vmem:[#allocation2 + $0x3b0] sm:$0xf0] }
 0x180   :  { %5854 = vmatpush.bf16.msra.mxu0 %v8076_v42  ;;  %v5082_v42 = vand.u32 %v10953_v45, %v4227_v27  ;;  %v7676_v48 = vor.u32 %v10259_v57, %v7673_v26  ;;  %v11141_v39 = vpop.f32.mrf.mxu2  ;;  %v8180_v27 = vor.u32 %v10397_v61, %v8179_v19  ;;  %v9780_v57 = vor.u32 %v10797_v23, %v9779_v21  ;;  %v10372_v26 = vld [vmem:[#allocation2 + $0x9f0] sm:$0xf0]  ;;  %v7779_v21 = vld [vmem:[#allocation2 + $0x738] sm:$0xf]  ;;  %v10297_v23 = vld [vmem:[#allocation2 + $0x798] sm:$0xf0] }
 0x181   :  { %5867 = vmatpush.bf16.msra.mxu1 %v8876_v36  ;;  %10039 = vmatmul.msk.bf16.vlgmr.msrb.gmra.mxu2 %vm5041_vm2, %v11102_v13  ;;  %v7579_v36 = vld [vmem:[#allocation2 + $0x5a8] sm:$0xf]  ;;  %v7880_v61 = vor.u32 %v10322_v18, %v7879_v47 }
 0x182   :  { %5880 = vmatpush.bf16.msra.mxu2 %v9676_v22  ;;  %v10247_v22 = vld [vmem:[#allocation2 + $0x608] sm:$0xf0]  ;;  %v8281_v18 = vld [vmem:[#allocation2 + $0xb84] sm:$0xf0] }
 0x183   :  { %5842 = vmatpush.bf16.msrb.mxu3 %v7176_v50  ;;  %v9179_v50 = vld [vmem:[#allocation2 + $0x1228] sm:$0xf] }
 0x184   :  { %5855 = vmatpush.bf16.msra.mxu0 %v7976_v63  ;;  %v9276_v63 = vor.u32 %v10659_v38, %v9273_v41  ;;  %v9180_v31 = vor.u32 %v10647_v51, %v9179_v50  ;;  %v10772_v38 = vld [vmem:[#allocation2 + $0x1670] sm:$0xf0]  ;;  %v10347_v51 = vld [vmem:[#allocation2 + $0x928] sm:$0xf0] }
 0x185   :  { %5868 = vmatpush.bf16.msra.mxu1 %v8776_v1  ;;  %v7580_v1 = vor.u32 %v10247_v22, %v7579_v36  ;;  %v9680_v50 = vor.u32 %v10772_v38, %v9679_v29 }
 0x186   :  { %5881 = vmatpush.bf16.msra.mxu2 %v9576_v2  ;;  %v8380_v2 = vor.u32 %v10447_v49, %v8379_v46  ;;  %v7179_v46 = vld [vmem:[#allocation2 + $0x288] sm:$0xf] }
 0x187   :  { %5843 = vmatpush.bf16.msrb.mxu3 %v7076_v53  ;;  %v9980_v53 = vor.u32 %v10847_v59, %v9979_v55  ;;  %v7979_v49 = vld [vmem:[#allocation2 + $0x8c8] sm:$0xf]  ;;  %v10547_v55 = vld [vmem:[#allocation2 + $0xf68] sm:$0xf0] }
 0x188   :  { %5856 = vmatpush.bf16.msra.mxu0 %v7876_v16  ;;  %v9080_v16 = vor.u32 %v10622_v10, %v9079_v7  ;;  %v5576_v40 = vpop.f32.mrf.mxu2  ;;  %v9579_v59 = vld [vmem:[#allocation2 + $0x1548] sm:$0xf]  ;;  %v7980_v3 = vor.u32 %v10347_v51, %v7979_v49  ;;  %v8381_v51 = vld [vmem:[#allocation2 + $0xc4c] sm:$0xf0] }
 0x189   :  { %5869 = vmatpush.bf16.msra.mxu1 %v8676_v17  ;;  %v7379_v17 = vld [vmem:[#allocation2 + $0x418] sm:$0xf] }
 0x18a   :  { %5882 = vmatpush.bf16.msra.mxu2 %v9476_v56  ;;  %v10197_v56 = vld [vmem:[#allocation2 + $0x478] sm:$0xf0] }
 0x18b   :  { %5844 = vmatpush.bf16.msrb.mxu3 %v6976_v54  ;;  %v891_v54 = vperm.slane %v11093_v12, 6  ;;  %v7380_v25 = vor.u32 %v10197_v56, %v7379_v17  ;;  %v10722_v17 = vld [vmem:[#allocation2 + $0x14e0] sm:$0xf0] }
 0x18c   :  { %5857 = vmatpush.bf16.msra.mxu0 %v7776_v8  ;;  %v7279_v8 = vld [vmem:[#allocation2 + $0x350] sm:$0xf] }
 0x18d   :  { %5870 = vmatpush.bf16.msra.mxu1 %v8576_v32  ;;  %v8079_v32 = vld [vmem:[#allocation2 + $0x990] sm:$0xf]  ;;  %v7280_v41 = vor.u32 %v10172_v28, %v7279_v8 }
 0x18e   :  { %5883 = vmatpush.bf16.msra.mxu2 %v9376_v60  ;;  %v5600_v60 = vpop.f32.mrf.mxu0  ;;  %v8080_v36 = vor.u32 %v10372_v26, %v8079_v32  ;;  %v6879_v28 = vld [vmem:[#allocation2 + $0x30] sm:$0xf]  ;;  %v10072_v32 = vld [vmem:[#allocation2 + $0x90] sm:$0xf0] }
 0x18f   :  { %5845 = vmatpush.bf16.msrb.mxu3 %v6876_v37  ;;  %v5613_v37 = vpop.f32.mrf.mxu1  ;;  %v6880_v49 = vor.u32 %v10072_v32, %v6879_v28 }
 0x190   :  { %5858 = vmatpush.bf16.msra.mxu0 %v7676_v48  ;;  %v10147_v48 = vld [vmem:[#allocation2 + $0x2e8] sm:$0xf0] }
 0x191   :  { %5871 = vmatpush.bf16.msra.mxu1 %v8476_v52  ;;  %v5587_v12 = vpop.f32.mrf.mxu3  ;;  %v8779_v52 = vld [vmem:[#allocation2 + $0xf08] sm:$0xf] }
 0x192   :  { %5846 = vmatmul.bf16.vlgmr.msrb.gmra.mxu3 %v11084_v11  ;;  %5884 = vmatpush.bf16.msra.mxu2 %v9276_v63  ;;  %v10597_v11 = vld [vmem:[#allocation2 + $0x10f8] sm:$0xf0]  ;;  %v10747_v63 = vld [vmem:[#allocation2 + $0x15a8] sm:$0xf0]  ;;  %v8780_v4 = vor.u32 %v10547_v55, %v8779_v52  ;;  %v9181_v55 = vld [vmem:[#allocation2 + $0x128c] sm:$0xf0] }
 0x193   :  { %5897 = vmatpush.bf16.msra.mxu3 %v5082_v42  ;;  %5859 = vmatmul.bf16.vlgmr.msra.gmra.mxu0 %v11099_v24  ;;  %v8980_v24 = vor.u32 %v10597_v11, %v8979_v5  ;;  %v5588_v42 = vadd.f32 %v5587_v12, %v892_v62  ;;  %v9580_v10 = vor.u32 %v10747_v63, %v9579_v59  ;;  %v11154_v62 = vld [vmem:[#allocation2 + $0x1930] sm:$0xff]  ;;  %v10635_v52 = vld [vmem:[#allocation2 + $0x122c] sm:$0xf] }
 0x194   :  { %5903 = vmatpush.bf16.msrb.mxu0 %v7580_v1  ;;  %5872 = vmatmul.bf16.vlgmr.msra.gmra.mxu1 %v11087_v30  ;;  %v5523_v30 = vadd.f32 %v11133_v43, %v891_v54  ;;  %v7180_v1 = vor.u32 %v10147_v48, %v7179_v46  ;;  %v10097_v54 = vld [vmem:[#allocation2 + $0x158] sm:$0xf0]  ;;  %v3403_v29 = vunpack.c.l.b16 %v11154_v62  ;;  %v9279_v12 = vld [vmem:[#allocation2 + $0x12f0] sm:$0xf]  ;;  %v10435_v46 = vld [vmem:[#allocation2 + $0xbec] sm:$0xf]  ;;  %v9184_v47 = vor.u32 %v10635_v52, %v9181_v55 }
 0x195   :  { %5916 = vmatpush.bf16.msrb.mxu1 %v8380_v2  ;;  %5885 = vmatmul.bf16.vlgmr.msra.gmra.mxu2 %v11096_v14  ;;  %v10572_v14 = vld [vmem:[#allocation2 + $0x1030] sm:$0xf0]  ;;  %v5626_v2 = vpop.f32.mrf.mxu2  ;;  %v10135_v52 = vld [vmem:[#allocation2 + $0x28c] sm:$0xf]  ;;  %v7181_v55 = vld [vmem:[#allocation2 + $0x2ec] sm:$0xf0] }
 0x196   :  { %5929 = vmatpush.bf16.msrb.mxu2 %v9180_v31  ;;  %v8880_v22 = vor.u32 %v10572_v14, %v8879_v34  ;;  %v5536_v43 = vadd.f32 %v11135_v0, %v5523_v30  ;;  %v5601_v31 = vadd.f32 %v5600_v60, %v5588_v42  ;;  %v5602_v7 = vpop.f32.mrf.mxu0  ;;  %v7679_v14 = vld [vmem:[#allocation2 + $0x670] sm:$0xf]  ;;  %v4228_v63 = vpack.c.b16 %v3403_v29, %v3403_v29  ;;  %v10360_v29 = vld [vmem:[#allocation2 + $0x994] sm:$0xf] }
 0x197   :  { %5942 = vmatpush.bf16.msrb.mxu3 %v9980_v53  ;;  %v10122_v53 = vld [vmem:[#allocation2 + $0x220] sm:$0xf0]  ;;  %v5615_v0 = vpop.f32.mrf.mxu1  ;;  %v8479_v30 = vld [vmem:[#allocation2 + $0xcb0] sm:$0xf]  ;;  %v7481_v7 = vld [vmem:[#allocation2 + $0x544] sm:$0xf0] }
 0x198   :  { %5904 = vmatpush.bf16.msrb.mxu0 %v7480_v9  ;;  %v10522_v9 = vld [vmem:[#allocation2 + $0xea0] sm:$0xf0]  ;;  %v7080_v19 = vor.u32 %v10122_v53, %v7079_v6  ;;  %v5614_v11 = vadd.f32 %v5613_v37, %v5601_v31  ;;  %v10272_v37 = vld [vmem:[#allocation2 + $0x6d0] sm:$0xf0]  ;;  %v10835_v31 = vld [vmem:[#allocation2 + $0x186c] sm:$0xf]  ;;  %v8384_v53 = vor.u32 %v10435_v46, %v8381_v51 }
 0x199   :  { %5917 = vmatpush.bf16.msrb.mxu1 %v8280_v15  ;;  %v5549_v15 = vadd.f32 %v11129_v33, %v5536_v43  ;;  %v5589_v56 = vpop.f32.mrf.mxu3  ;;  %v8680_v5 = vor.u32 %v10522_v9, %v8679_v58  ;;  %v8579_v33 = vld [vmem:[#allocation2 + $0xd78] sm:$0xf]  ;;  %v10610_v58 = vld [vmem:[#allocation2 + $0x1164] sm:$0xf]  ;;  %v9081_v9 = vld [vmem:[#allocation2 + $0x11c4] sm:$0xf0] }
 0x19a   :  { %5930 = vmatpush.bf16.msrb.mxu2 %v9080_v16  ;;  %v9479_v16 = vld [vmem:[#allocation2 + $0x1480] sm:$0xf]  ;;  %v5627_v34 = vadd.f32 %v5626_v2, %v5614_v11  ;;  %v10760_v46 = vld [vmem:[#allocation2 + $0x1614] sm:$0xf] }
 0x19b   :  { %5943 = vmatpush.bf16.msrb.mxu3 %v9880_v20  ;;  %v6979_v20 = vld [vmem:[#allocation2 + $0xf8] sm:$0xf]  ;;  %v9480_v40 = vor.u32 %v10722_v17, %v9479_v16  ;;  %v10810_v16 = vld [vmem:[#allocation2 + $0x17a4] sm:$0xf]  ;;  %v7381_v11 = vld [vmem:[#allocation2 + $0x47c] sm:$0xf0] }
 0x19c   :  { %5905 = vmatpush.bf16.msrb.mxu0 %v7380_v25  ;;  %v10497_v25 = vld [vmem:[#allocation2 + $0xdd8] sm:$0xf0]  ;;  %v6980_v8 = vor.u32 %v10097_v54, %v6979_v20  ;;  %v11164_v17 = vld [vmem:[%s11427_s2 + $0x8] sm:$0xff] }
 0x19d   :  { %5918 = vmatpush.bf16.msrb.mxu1 %v8180_v27  ;;  %v9379_v27 = vld [vmem:[#allocation2 + $0x13b8] sm:$0xf]  ;;  %v5628_v60 = vpop.f32.mrf.mxu2  ;;  %v8580_v26 = vor.u32 %v10497_v25, %v8579_v33 }
 0x19e   :  { %5931 = vmatpush.bf16.msrb.mxu2 %v8980_v24  ;;  %v10697_v24 = vld [vmem:[#allocation2 + $0x1418] sm:$0xf0] }
 0x19f   :  { %5944 = vmatpush.bf16.msrb.mxu3 %v9780_v57  ;;  %v7780_v57 = vor.u32 %v10297_v23, %v7779_v21  ;;  %v9380_v38 = vor.u32 %v10697_v24, %v9379_v27  ;;  %v9084_v21 = vor.u32 %v10610_v58, %v9081_v9  ;;  %v10385_v23 = vld [vmem:[#allocation2 + $0xa5c] sm:$0xf]  ;;  %v8981_v24 = vld [vmem:[#allocation2 + $0x10fc] sm:$0xf0]  ;;  %v10110_v58 = vld [vmem:[#allocation2 + $0x1c4] sm:$0xf] }
 0x1a0   :  { %5906 = vmatpush.bf16.msrb.mxu0 %v7280_v41  ;;  %v10672_v41 = vld [vmem:[#allocation2 + $0x1350] sm:$0xf0]  ;;  %v11171_v33 = vld [vmem:[#allocation1] sm:$0xff]  ;;  %v7081_v9 = vld [vmem:[#allocation2 + $0x224] sm:$0xf0] }
 0x1a1   :  { %5919 = vmatpush.bf16.msrb.mxu1 %v8080_v36  ;;  %v10235_v36 = vld [vmem:[#allocation2 + $0x5ac] sm:$0xf]  ;;  %v5639_v48 = vpop.f32.mrf.mxu3  ;;  %v10585_v27 = vld [vmem:[#allocation2 + $0x109c] sm:$0xf] }
 0x1a2   :  { %5932 = vmatpush.bf16.msrb.mxu2 %v8880_v22  ;;  %10040 = vmatmul.msk.bf16.vlgmr.msra.gmra.mxu3 %vm5041_vm2, %v11102_v13  ;;  %v5562_v13 = vadd.f32 %v11131_v35, %v5549_v15  ;;  %v10472_v35 = vld [vmem:[#allocation2 + $0xd10] sm:$0xf0]  ;;  %v7581_v22 = vld [vmem:[#allocation2 + $0x60c] sm:$0xf0]  ;;  %v5640_v43 = vadd.f32 %v5639_v48, %v5627_v34  ;;  %v5085_v15 = vand.u32 %v10953_v45, %v4228_v63  ;;  %v10785_v60 = vld [vmem:[#allocation2 + $0x16dc] sm:$0xf] }
 0x1a3   :  { %5945 = vmatpush.bf16.msrb.mxu3 %v9680_v50  ;;  %v7680_v50 = vor.u32 %v10272_v37, %v7679_v14  ;;  %v8480_v59 = vor.u32 %v10472_v35, %v8479_v30  ;;  %v7584_v2 = vor.u32 %v10235_v36, %v7581_v22  ;;  %v8984_v14 = vor.u32 %v10585_v27, %v8981_v24  ;;  %v10160_v37 = vld [vmem:[#allocation2 + $0x354] sm:$0xf]  ;;  %v7281_v30 = vld [vmem:[#allocation2 + $0x3b4] sm:$0xf0]  ;;  %v7981_v63 = vld [vmem:[#allocation2 + $0x92c] sm:$0xf0] }
 0x1a4   :  { %5907 = vmatpush.bf16.msrb.mxu0 %v7180_v1  ;;  %v5575_v42 = vadd.f32 %v11141_v39, %v5562_v13  ;;  %v9280_v1 = vor.u32 %v10672_v41, %v9279_v12  ;;  %v9981_v39 = vld [vmem:[#allocation2 + $0x18cc] sm:$0xf0]  ;;  %v6777_v6 = vrot.slane %v5640_v43, 2  ;;  %v893_v13 = vperm.slane %v11164_v17, 0  ;;  %v8081_v12 = vld [vmem:[#allocation2 + $0x9f4] sm:$0xf0] }
 0x1a5   :  { %5920 = vmatpush.bf16.msrb.mxu1 %v7980_v3  ;;  %v10210_v3 = vld [vmem:[#allocation2 + $0x4e4] sm:$0xf]  ;;  %v10560_v41 = vld [vmem:[#allocation2 + $0xfd4] sm:$0xf]  ;;  %v7284_v22 = vor.u32 %v10160_v37, %v7281_v30  ;;  %v9681_v48 = vld [vmem:[#allocation2 + $0x1674] sm:$0xf0]  ;;  %v3404_v30 = vunpack.c.h.b16 %v11154_v62 }
 0x1a6   :  { %5933 = vmatpush.bf16.msrb.mxu2 %v8780_v4  ;;  %v6776_v4 = vrot.slane %v5575_v42, 4  ;;  %v7484_v20 = vor.u32 %v10210_v3, %v7481_v7  ;;  %v8881_v42 = vld [vmem:[#allocation2 + $0x1034] sm:$0xf0]  ;;  %v10335_v43 = vld [vmem:[#allocation2 + $0x8cc] sm:$0xf]  ;;  %v9684_v3 = vor.u32 %v10760_v46, %v9681_v48  ;;  %v11184_v27 = vld [vmem:[#allocation1 + $0x24] sm:$0xff] }
 0x1a7   :  { %5946 = vmatpush.bf16.msrb.mxu3 %v9580_v10  ;;  %v10410_v10 = vld [vmem:[#allocation2 + $0xb24] sm:$0xf]  ;;  %v8884_v51 = vor.u32 %v10560_v41, %v8881_v42  ;;  %v7781_v24 = vld [vmem:[#allocation2 + $0x79c] sm:$0xf0]  ;;  %v10060_v37 = vld [vmem:[#allocation2 + $0x34] sm:$0xf] }
 0x1a8   :  { %5908 = vmatpush.bf16.msrb.mxu0 %v7080_v19  ;;  %v6796_v0 = vsel %vm6792_vm4, %v6776_v4, %v6777_v6  ;;  %v9984_v19 = vor.u32 %v10835_v31, %v9981_v39  ;;  %v8284_v54 = vor.u32 %v10410_v10, %v8281_v18  ;;  %v7184_v6 = vor.u32 %v10135_v52, %v7181_v55  ;;  %v6881_v42 = vld [vmem:[#allocation2 + $0x94] sm:$0xf0]  ;;  %v10460_v48 = vld [vmem:[#allocation2 + $0xcb4] sm:$0xf]  ;;  %v8387_v52 = vld [vmem:[#allocation2 + $0xbf0] sm:$0xf] }
 0x1a9   :  { %5921 = vmatpush.bf16.msrb.mxu1 %v7880_v61  ;;  %v6797_v56 = vsel %vm5045_vm1, %v11122_v44, %v6796_v0  ;;  %v9881_v61 = vld [vmem:[#allocation2 + $0x1804] sm:$0xf0]  ;;  %v5641_v25 = vpop.f32.mrf.mxu3  ;;  %v7984_v10 = vor.u32 %v10335_v43, %v7981_v63  ;;  %v10310_v0 = vld [vmem:[#allocation2 + $0x804] sm:$0xf]  ;;  %v10448_v55 = vld [vmem:[#allocation2 + $0xc50] sm:$0xf0]  ;;  %v6884_v43 = vor.u32 %v10060_v37, %v6881_v42  ;;  %v4229_v63 = vpack.c.b16 %v3404_v30, %v3404_v30 }
 0x1aa   :  { %5934 = vmatpush.bf16.msrb.mxu2 %v8680_v5  ;;  %v10185_v5 = vld [vmem:[#allocation2 + $0x41c] sm:$0xf]  ;;  %6817 = vst [vmem:[%s11428_s3 + $0x8] sm:$0xff] %v6797_v56  ;;  %v11174_v44 = vld [vmem:[#allocation1 + $0x12] sm:$0xff]  ;;  %v9884_v28 = vor.u32 %v10810_v16, %v9881_v61  ;;  %v10510_v56 = vld [vmem:[#allocation2 + $0xe44] sm:$0xf]  ;;  %v7084_v61 = vor.u32 %v10110_v58, %v7081_v9 }
 0x1ab   :  { %5947 = vmatpush.bf16.msrb.mxu3 %v9480_v40  ;;  %v8181_v40 = vld [vmem:[#allocation2 + $0xabc] sm:$0xf0]  ;;  %v7384_v32 = vor.u32 %v10185_v5, %v7381_v11  ;;  %v7881_v16 = vld [vmem:[#allocation2 + $0x864] sm:$0xf0]  ;;  %v10710_v5 = vld [vmem:[#allocation2 + $0x1484] sm:$0xf] }
 0x1ac   :  { %5909 = vmatpush.bf16.msrb.mxu0 %v6980_v8  ;;  %v11178_v8 = vld [vmem:[#allocation1 + $0x1b] sm:$0xff]  ;;  %v8184_v34 = vor.u32 %v10385_v23, %v8181_v40  ;;  %v9481_v11 = vld [vmem:[#allocation2 + $0x14e4] sm:$0xf0]  ;;  %v10085_v23 = vld [vmem:[#allocation2 + $0xfc] sm:$0xf] }
 0x1ad   :  { %5922 = vmatpush.bf16.msrb.mxu1 %v7780_v57  ;;  %v9781_v57 = vld [vmem:[#allocation2 + $0x173c] sm:$0xf0]  ;;  %v10285_v25 = vld [vmem:[#allocation2 + $0x73c] sm:$0xf]  ;;  %v10423_v58 = vld [vmem:[#allocation2 + $0xb88] sm:$0xf0] }
 0x1ae   :  { %5935 = vmatpush.bf16.msrb.mxu2 %v8580_v26  ;;  %v5652_v26 = vpop.f32.mrf.mxu0  ;;  %v9784_v36 = vor.u32 %v10785_v60, %v9781_v57  ;;  %v6981_v40 = vld [vmem:[#allocation2 + $0x15c] sm:$0xf0]  ;;  %v9484_v57 = vor.u32 %v10710_v5, %v9481_v11  ;;  %v9887_v11 = vld [vmem:[#allocation2 + $0x17a8] sm:$0xf]  ;;  %v7287_v37 = vld [vmem:[#allocation2 + $0x358] sm:$0xf] }
 0x1af   :  { %5948 = vmatpush.bf16.msrb.mxu3 %v9380_v38  ;;  %v11181_v38 = vld [vmem:[#allocation1 + $0x9] sm:$0xff]  ;;  %v5653_v35 = vadd.f32 %v5652_v26, %v893_v13  ;;  %v6984_v26 = vor.u32 %v10085_v23, %v6981_v40  ;;  %v10173_v30 = vld [vmem:[#allocation2 + $0x3b8] sm:$0xf0] }
 0x1b0   :  { %5910 = vmatpush.bf16.msrb.mxu0 %v6880_v49  ;;  %v5665_v49 = vpop.f32.mrf.mxu1  ;;  %v10198_v23 = vld [vmem:[#allocation2 + $0x480] sm:$0xf0]  ;;  %v8187_v40 = vld [vmem:[#allocation2 + $0xa60] sm:$0xf] }
 0x1b1   :  { %5923 = vmatpush.bf16.msrb.mxu1 %v7680_v50  ;;  %v8084_v50 = vor.u32 %v10360_v29, %v8081_v12  ;;  %v7784_v12 = vor.u32 %v10285_v25, %v7781_v24  ;;  %v10398_v25 = vld [vmem:[#allocation2 + $0xac0] sm:$0xf0] }
 0x1b2   :  { %5936 = vmatpush.bf16.msrb.mxu2 %v8480_v59  ;;  %v5666_v59 = vadd.f32 %v5665_v49, %v5653_v35  ;;  %v8481_v49 = vld [vmem:[#allocation2 + $0xd14] sm:$0xf0] }
 0x1b3   :  { %5949 = vmatpush.bf16.msrb.mxu3 %v9280_v1  ;;  %5911 = vmatmul.bf16.vlgmr.msrb.gmra.mxu0 %v11171_v33  ;;  %v10535_v1 = vld [vmem:[#allocation2 + $0xf0c] sm:$0xf] }
 0x1b4   :  { %5962 = vmatpush.bf16.msra.mxu0 %v5085_v15  ;;  %5924 = vmatmul.bf16.vlgmr.msrb.gmra.mxu1 %v11181_v38  ;;  %v5678_v31 = vpop.f32.mrf.mxu2 }
 0x1b5   :  { %5968 = vmatpush.bf16.msra.mxu1 %v7584_v2  ;;  %5937 = vmatmul.bf16.vlgmr.msrb.gmra.mxu2 %v11174_v44  ;;  %v8781_v2 = vld [vmem:[#allocation2 + $0xf6c] sm:$0xf0]  ;;  %v5679_v39 = vadd.f32 %v5678_v31, %v5666_v59  ;;  %v5691_v4 = vpop.f32.mrf.mxu3  ;;  %v10660_v59 = vld [vmem:[#allocation2 + $0x12f4] sm:$0xf]  ;;  %v9281_v31 = vld [vmem:[#allocation2 + $0x1354] sm:$0xf0] }
 0x1b6   :  { %5981 = vmatpush.bf16.msra.mxu2 %v8384_v53  ;;  %5950 = vmatmul.bf16.vlgmr.msrb.gmra.mxu3 %v11178_v8  ;;  %v10735_v53 = vld [vmem:[#allocation2 + $0x154c] sm:$0xf]  ;;  %v5654_v7 = vpop.f32.mrf.mxu0  ;;  %v8784_v18 = vor.u32 %v10535_v1, %v8781_v2  ;;  %v8484_v2 = vor.u32 %v10460_v48, %v8481_v49  ;;  %v9284_v9 = vor.u32 %v10660_v59, %v9281_v31  ;;  %v8787_v31 = vld [vmem:[#allocation2 + $0xf10] sm:$0xf] }
 0x1b7   :  { %5994 = vmatpush.bf16.msra.mxu3 %v9184_v47  ;;  %v9581_v47 = vld [vmem:[#allocation2 + $0x15ac] sm:$0xf0]  ;;  %v5692_v15 = vadd.f32 %v5691_v4, %v5679_v39  ;;  %v7487_v7 = vld [vmem:[#allocation2 + $0x4e8] sm:$0xf]  ;;  %v7288_v48 = vor.u32 %v10173_v30, %v7287_v37 }
 0x1b8   :  { %6007 = vmatpush.bf16.msrb.mxu0 %v9984_v19  ;;  %v8681_v19 = vld [vmem:[#allocation2 + $0xea4] sm:$0xf0]  ;;  %v5667_v13 = vpop.f32.mrf.mxu1  ;;  %v9187_v39 = vld [vmem:[#allocation2 + $0x1230] sm:$0xf] }
 0x1b9   :  { %5969 = vmatpush.bf16.msra.mxu1 %v7484_v20  ;;  %v9584_v20 = vor.u32 %v10735_v53, %v9581_v47  ;;  %v9987_v53 = vld [vmem:[#allocation2 + $0x1870] sm:$0xf]  ;;  %v10848_v47 = vld [vmem:[#allocation2 + $0x18d0] sm:$0xf0] }
 0x1ba   :  { %5982 = vmatpush.bf16.msra.mxu2 %v8284_v54  ;;  %v7884_v54 = vor.u32 %v10310_v0, %v7881_v16  ;;  %v5088_v0 = vand.u32 %v10953_v45, %v4229_v63  ;;  %v9988_v16 = vor.u32 %v10848_v47, %v9987_v53  ;;  %v9587_v53 = vld [vmem:[#allocation2 + $0x1550] sm:$0xf]  ;;  %v10748_v47 = vld [vmem:[#allocation2 + $0x15b0] sm:$0xf0] }
 0x1bb   :  { %5995 = vmatpush.bf16.msra.mxu3 %v9084_v21  ;;  %v8684_v21 = vor.u32 %v10510_v56, %v8681_v19  ;;  %v9087_v56 = vld [vmem:[#allocation2 + $0x1168] sm:$0xf]  ;;  %v10623_v19 = vld [vmem:[#allocation2 + $0x11c8] sm:$0xf0] }
 0x1bc   :  { %6008 = vmatpush.bf16.msrb.mxu0 %v9884_v28  ;;  %v10485_v28 = vld [vmem:[#allocation2 + $0xd7c] sm:$0xf]  ;;  %v5680_v60 = vpop.f32.mrf.mxu2  ;;  %v9088_v13 = vor.u32 %v10623_v19, %v9087_v56  ;;  %v9588_v19 = vor.u32 %v10748_v47, %v9587_v53  ;;  %v10436_v47 = vld [vmem:[#allocation2 + $0xbf4] sm:$0xf] }
 0x1bd   :  { %5970 = vmatpush.bf16.msra.mxu1 %v7384_v32  ;;  %v8581_v32 = vld [vmem:[#allocation2 + $0xddc] sm:$0xf0]  ;;  %v5693_v29 = vpop.f32.mrf.mxu3 }
 0x1be   :  { %5983 = vmatpush.bf16.msra.mxu2 %v8184_v34  ;;  %v10685_v34 = vld [vmem:[#allocation2 + $0x13bc] sm:$0xf]  ;;  %v5704_v35 = vpop.f32.mrf.mxu0  ;;  %v8584_v41 = vor.u32 %v10485_v28, %v8581_v32  ;;  %v8987_v28 = vld [vmem:[#allocation2 + $0x10a0] sm:$0xf]  ;;  %v10598_v32 = vld [vmem:[#allocation2 + $0x1100] sm:$0xf0] }
 0x1bf   :  { %5996 = vmatpush.bf16.msra.mxu3 %v8984_v14  ;;  %v9381_v14 = vld [vmem:[#allocation2 + $0x141c] sm:$0xf0]  ;;  %v11189_v46 = vadd.f32 %v5704_v35, %v5692_v15  ;;  %v8087_v29 = vld [vmem:[#allocation2 + $0x998] sm:$0xf]  ;;  %v10373_v35 = vld [vmem:[#allocation2 + $0x9f8] sm:$0xf0] }
 0x1c0   :  { %6009 = vmatpush.bf16.msrb.mxu0 %v9784_v36  ;;  %v10260_v36 = vld [vmem:[#allocation2 + $0x674] sm:$0xf]  ;;  %v9384_v62 = vor.u32 %v10685_v34, %v9381_v14  ;;  %v9787_v34 = vld [vmem:[#allocation2 + $0x16e0] sm:$0xf]  ;;  %v10798_v14 = vld [vmem:[#allocation2 + $0x1740] sm:$0xf0]  ;;  %v8088_v49 = vor.u32 %v10373_v35, %v8087_v29 }
 0x1c1   :  { %5971 = vmatpush.bf16.msra.mxu1 %v7284_v22  ;;  %v7681_v22 = vld [vmem:[#allocation2 + $0x6d4] sm:$0xf0]  ;;  %v9788_v42 = vor.u32 %v10798_v14, %v9787_v34  ;;  %v8587_v34 = vld [vmem:[#allocation2 + $0xd80] sm:$0xf]  ;;  %v10498_v14 = vld [vmem:[#allocation2 + $0xde0] sm:$0xf0] }
 0x1c2   :  { %5984 = vmatpush.bf16.msra.mxu2 %v8084_v50  ;;  %v7587_v50 = vld [vmem:[#allocation2 + $0x5b0] sm:$0xf]  ;;  %v7684_v1 = vor.u32 %v10260_v36, %v7681_v22  ;;  %v8887_v36 = vld [vmem:[#allocation2 + $0xfd8] sm:$0xf]  ;;  %v10573_v22 = vld [vmem:[#allocation2 + $0x1038] sm:$0xf0] }
 0x1c3   :  { %5997 = vmatpush.bf16.msra.mxu3 %v8884_v51  ;;  %10041 = vmatmul.msk.bf16.vlgmr.msra.gmra.mxu0 %vm5041_vm2, %v11184_v27  ;;  %v10248_v51 = vld [vmem:[#allocation2 + $0x610] sm:$0xf0]  ;;  %v9387_v35 = vld [vmem:[#allocation2 + $0x13c0] sm:$0xf] }
 0x1c4   :  { %6010 = vmatpush.bf16.msrb.mxu0 %v9684_v3  ;;  %v10648_v3 = vld [vmem:[#allocation2 + $0x1290] sm:$0xf0]  ;;  %v7588_v4 = vor.u32 %v10248_v51, %v7587_v50  ;;  %v9687_v50 = vld [vmem:[#allocation2 + $0x1618] sm:$0xf]  ;;  %v10773_v51 = vld [vmem:[#allocation2 + $0x1678] sm:$0xf0] }
 0x1c5   :  { %5972 = vmatpush.bf16.msra.mxu1 %v7184_v6  ;;  %v8388_v6 = vor.u32 %v10448_v55, %v8387_v52  ;;  %v9188_v15 = vor.u32 %v10648_v3, %v9187_v39  ;;  %v7187_v52 = vld [vmem:[#allocation2 + $0x290] sm:$0xf]  ;;  %v10148_v55 = vld [vmem:[#allocation2 + $0x2f0] sm:$0xf0] }
 0x1c6   :  { %5985 = vmatpush.bf16.msra.mxu2 %v7984_v10  ;;  %v10223_v10 = vld [vmem:[#allocation2 + $0x548] sm:$0xf0]  ;;  %v10548_v39 = vld [vmem:[#allocation2 + $0xf70] sm:$0xf0] }
 0x1c7   :  { %5998 = vmatpush.bf16.msra.mxu3 %v8784_v18  ;;  %v8287_v18 = vld [vmem:[#allocation2 + $0xb28] sm:$0xf]  ;;  %v8788_v56 = vor.u32 %v10548_v39, %v8787_v31  ;;  %v10473_v31 = vld [vmem:[#allocation2 + $0xd18] sm:$0xf0]  ;;  %v9287_v39 = vld [vmem:[#allocation2 + $0x12f8] sm:$0xf] }
 0x1c8   :  { %6011 = vmatpush.bf16.msrb.mxu0 %v9584_v20  ;;  %v5706_v20 = vpop.f32.mrf.mxu0  ;;  %v8288_v5 = vor.u32 %v10423_v58, %v8287_v18  ;;  %v7887_v18 = vld [vmem:[#allocation2 + $0x808] sm:$0xf]  ;;  %v10323_v58 = vld [vmem:[#allocation2 + $0x868] sm:$0xf0] }
 0x1c9   :  { %5973 = vmatpush.bf16.msra.mxu1 %v7084_v61  ;;  %v7488_v61 = vor.u32 %v10223_v10, %v7487_v7  ;;  %v7087_v7 = vld [vmem:[#allocation2 + $0x1c8] sm:$0xf]  ;;  %v10123_v10 = vld [vmem:[#allocation2 + $0x228] sm:$0xf0] }
 0x1ca   :  { %5986 = vmatpush.bf16.msra.mxu2 %v7884_v54  ;;  %v10823_v54 = vld [vmem:[#allocation2 + $0x1808] sm:$0xf0]  ;;  %v8687_v20 = vld [vmem:[#allocation2 + $0xe48] sm:$0xf] }
 0x1cb   :  { %5999 = vmatpush.bf16.msra.mxu3 %v8684_v21  ;;  %v7387_v21 = vld [vmem:[#allocation2 + $0x420] sm:$0xf]  ;;  %v9888_v24 = vor.u32 %v10823_v54, %v9887_v11  ;;  %v7888_v11 = vor.u32 %v10323_v58, %v7887_v18  ;;  %v9487_v54 = vld [vmem:[#allocation2 + $0x1488] sm:$0xf]  ;;  %v9189_v18 = vld [vmem:[#allocation2 + $0x1294] sm:$0xf0] }
 0x1cc   :  { %6012 = vmatpush.bf16.msrb.mxu0 %v9484_v57  ;;  %v7388_v57 = vor.u32 %v10198_v23, %v7387_v21  ;;  %v10723_v21 = vld [vmem:[#allocation2 + $0x14e8] sm:$0xf0]  ;;  %v6987_v23 = vld [vmem:[#allocation2 + $0x100] sm:$0xf]  ;;  %v10836_v58 = vld [vmem:[#allocation2 + $0x1874] sm:$0xf] }
 0x1cd   :  { %5974 = vmatpush.bf16.msra.mxu1 %v6984_v26  ;;  %v5717_v60 = vpop.f32.mrf.mxu1  ;;  %v8188_v26 = vor.u32 %v10398_v25, %v8187_v40  ;;  %v10098_v25 = vld [vmem:[#allocation2 + $0x160] sm:$0xf0] }
 0x1ce   :  { %5987 = vmatpush.bf16.msra.mxu2 %v7784_v12  ;;  %v894_v12 = vperm.slane %v11164_v17, 1  ;;  %v6988_v30 = vor.u32 %v10098_v25, %v6987_v23  ;;  %v10811_v25 = vld [vmem:[#allocation2 + $0x17ac] sm:$0xf] }
 0x1cf   :  { %6000 = vmatpush.bf16.msra.mxu3 %v8584_v41  ;;  %v8988_v41 = vor.u32 %v10598_v32, %v8987_v28 }
 0x1d0   :  { %6013 = vmatpush.bf16.msrb.mxu0 %v9384_v62  ;;  %v7987_v62 = vld [vmem:[#allocation2 + $0x8d0] sm:$0xf]  ;;  %v5756_v59 = vpop.f32.mrf.mxu0  ;;  %v5718_v63 = vadd.f32 %v5717_v60, %v894_v12  ;;  %v10698_v12 = vld [vmem:[#allocation2 + $0x1420] sm:$0xf0] }
 0x1d1   :  { %5975 = vmatpush.bf16.msra.mxu1 %v6884_v43  ;;  %v10348_v43 = vld [vmem:[#allocation2 + $0x930] sm:$0xf0] }
 0x1d2   :  { %5988 = vmatpush.bf16.msra.mxu2 %v7684_v1  ;;  %v8888_v1 = vor.u32 %v10573_v22, %v8887_v36  ;;  %v10073_v36 = vld [vmem:[#allocation2 + $0x98] sm:$0xf0]  ;;  %v7687_v22 = vld [vmem:[#allocation2 + $0x678] sm:$0xf] }
 0x1d3   :  { %6001 = vmatpush.bf16.msra.mxu3 %v8484_v2  ;;  %v9688_v2 = vor.u32 %v10773_v51, %v9687_v50  ;;  %v10236_v50 = vld [vmem:[#allocation2 + $0x5b4] sm:$0xf]  ;;  %v7589_v51 = vld [vmem:[#allocation2 + $0x614] sm:$0xf0] }
 0x1d4   :  { %5976 = vmatmul.bf16.vlgmr.msra.gmra.mxu1 %v11171_v33  ;;  %6014 = vmatpush.bf16.msrb.mxu0 %v9284_v9  ;;  %v5730_v9 = vpop.f32.mrf.mxu2 }
 0x1d5   :  { %6027 = vmatpush.bf16.msrb.mxu1 %v5088_v0  ;;  %5989 = vmatmul.bf16.vlgmr.msra.gmra.mxu2 %v11181_v38  ;;  %v5719_v3 = vpop.f32.mrf.mxu1  ;;  %v5743_v0 = vpop.f32.mrf.mxu3 }
 0x1d6   :  { %6033 = vmatpush.bf16.msrb.mxu2 %v7588_v4  ;;  %6002 = vmatmul.bf16.vlgmr.msra.gmra.mxu3 %v11174_v44  ;;  %v7188_v4 = vor.u32 %v10148_v55, %v7187_v52  ;;  %v10673_v3 = vld [vmem:[#allocation2 + $0x1358] sm:$0xf0] }
 0x1d7   :  { %6046 = vmatpush.bf16.msrb.mxu3 %v8388_v6  ;;  %6015 = vmatmul.bf16.vlgmr.msrb.gmra.mxu0 %v11178_v8  ;;  %v7988_v6 = vor.u32 %v10348_v43, %v7987_v62  ;;  %v8588_v43 = vor.u32 %v10498_v14, %v8587_v34  ;;  %v8189_v34 = vld [vmem:[#allocation2 + $0xac4] sm:$0xf0]  ;;  %v10586_v14 = vld [vmem:[#allocation2 + $0x10a4] sm:$0xf] }
 0x1d8   :  { %6059 = vmatpush.bf16.msra.mxu0 %v9188_v15  ;;  %v11197_v15 = vld [vmem:[#allocation2 + $0x1938] sm:$0xff]  ;;  %v5758_v32 = vpop.f32.mrf.mxu0 }
 0x1d9   :  { %6072 = vmatpush.bf16.msra.mxu1 %v9988_v16  ;;  %v5731_v16 = vadd.f32 %v5730_v9, %v5718_v63  ;;  %v3405_v28 = vunpack.c.l.b16 %v11197_v15  ;;  %v8487_v63 = vld [vmem:[#allocation2 + $0xcb8] sm:$0xf] }
 0x1da   :  { %6034 = vmatpush.bf16.msrb.mxu2 %v7488_v61  ;;  %v10523_v61 = vld [vmem:[#allocation2 + $0xea8] sm:$0xf0]  ;;  %v9989_v9 = vld [vmem:[#allocation2 + $0x18d4] sm:$0xf0] }
 0x1db   :  { %6047 = vmatpush.bf16.msrb.mxu3 %v8288_v5  ;;  %v7088_v5 = vor.u32 %v10123_v10, %v7087_v7  ;;  %v5744_v40 = vadd.f32 %v5743_v0, %v5731_v16  ;;  %v8389_v7 = vld [vmem:[#allocation2 + $0xc54] sm:$0xf0]  ;;  %v10636_v10 = vld [vmem:[#allocation2 + $0x1234] sm:$0xf]  ;;  %v8488_v0 = vor.u32 %v10473_v31, %v8487_v63  ;;  %v9288_v16 = vor.u32 %v10673_v3, %v9287_v39 }
 0x1dc   :  { %6060 = vmatpush.bf16.msra.mxu0 %v9088_v13  ;;  %v7787_v13 = vld [vmem:[#allocation2 + $0x740] sm:$0xf]  ;;  %v5732_v52 = vpop.f32.mrf.mxu2  ;;  %v10136_v63 = vld [vmem:[#allocation2 + $0x294] sm:$0xf] }
 0x1dd   :  { %6073 = vmatpush.bf16.msra.mxu1 %v9888_v24  ;;  %v10298_v24 = vld [vmem:[#allocation2 + $0x7a0] sm:$0xf0]  ;;  %v5757_v60 = vadd.f32 %v5756_v59, %v5744_v40  ;;  %v5769_v37 = vpop.f32.mrf.mxu1  ;;  %v5745_v55 = vpop.f32.mrf.mxu3  ;;  %v9388_v59 = vor.u32 %v10698_v12, %v9387_v35  ;;  %v9089_v40 = vld [vmem:[#allocation2 + $0x11cc] sm:$0xf0]  ;;  %v9789_v35 = vld [vmem:[#allocation2 + $0x1744] sm:$0xf0] }
 0x1de   :  { %6035 = vmatpush.bf16.msrb.mxu2 %v7388_v57  ;;  %v8688_v57 = vor.u32 %v10523_v61, %v8687_v20  ;;  %v7788_v29 = vor.u32 %v10298_v24, %v7787_v13  ;;  %v8392_v20 = vor.u32 %v10436_v47, %v8389_v7  ;;  %v9192_v61 = vor.u32 %v10636_v10, %v9189_v18  ;;  %v9889_v13 = vld [vmem:[#allocation2 + $0x180c] sm:$0xf0]  ;;  %v10186_v24 = vld [vmem:[#allocation2 + $0x424] sm:$0xf]  ;;  %v10161_v12 = vld [vmem:[#allocation2 + $0x35c] sm:$0xf] }
 0x1df   :  { %6048 = vmatpush.bf16.msrb.mxu3 %v8188_v26  ;;  %v9488_v26 = vor.u32 %v10723_v21, %v9487_v54  ;;  %v8289_v54 = vld [vmem:[#allocation2 + $0xb8c] sm:$0xf0]  ;;  %v10611_v21 = vld [vmem:[#allocation2 + $0x116c] sm:$0xf]  ;;  %v8889_v55 = vld [vmem:[#allocation2 + $0x103c] sm:$0xf0] }
 0x1e0   :  { %6061 = vmatpush.bf16.msra.mxu0 %v8988_v41  ;;  %v6887_v41 = vld [vmem:[#allocation2 + $0x38] sm:$0xf]  ;;  %v10536_v47 = vld [vmem:[#allocation2 + $0xf14] sm:$0xf] }
 0x1e1   :  { %6074 = vmatpush.bf16.msra.mxu1 %v9788_v42  ;;  %v5770_v42 = vadd.f32 %v5769_v37, %v5757_v60  ;;  %v9092_v60 = vor.u32 %v10611_v21, %v9089_v40  ;;  %v8789_v10 = vld [vmem:[#allocation2 + $0xf74] sm:$0xf0]  ;;  %v10736_v18 = vld [vmem:[#allocation2 + $0x1554] sm:$0xf]  ;;  %v8689_v21 = vld [vmem:[#allocation2 + $0xeac] sm:$0xf0] }
 0x1e2   :  { %6036 = vmatpush.bf16.msrb.mxu2 %v7288_v48  ;;  %v10273_v48 = vld [vmem:[#allocation2 + $0x6d8] sm:$0xf0]  ;;  %v9489_v40 = vld [vmem:[#allocation2 + $0x14ec] sm:$0xf0] }
 0x1e3   :  { %6049 = vmatpush.bf16.msrb.mxu3 %v8088_v49  ;;  %v4230_v49 = vpack.c.b16 %v3405_v28, %v3405_v28  ;;  %v6778_v62 = vrot.slane %v5770_v42, 6  ;;  %v7389_v28 = vld [vmem:[#allocation2 + $0x484] sm:$0xf0] }
 0x1e4   :  { %6062 = vmatpush.bf16.msra.mxu0 %v8888_v1  ;;  %10042 = vmatmul.msk.bf16.vlgmr.msrb.gmra.mxu1 %vm5041_vm2, %v11184_v27  ;;  %v6888_v1 = vor.u32 %v10073_v36, %v6887_v41  ;;  %v7392_v37 = vor.u32 %v10186_v24, %v7389_v28  ;;  %v7289_v41 = vld [vmem:[#allocation2 + $0x3bc] sm:$0xf0]  ;;  %v6989_v24 = vld [vmem:[#allocation2 + $0x164] sm:$0xf0]  ;;  %v3406_v28 = vunpack.c.h.b16 %v11197_v15 }
 0x1e5   :  { %6075 = vmatpush.bf16.msra.mxu1 %v9688_v2  ;;  %v7688_v2 = vor.u32 %v10273_v48, %v7687_v22  ;;  %v5091_v53 = vand.u32 %v10953_v45, %v4230_v49  ;;  %v10361_v48 = vld [vmem:[#allocation2 + $0x99c] sm:$0xf]  ;;  %v8089_v49 = vld [vmem:[#allocation2 + $0x9fc] sm:$0xf0]  ;;  %v7292_v52 = vor.u32 %v10161_v12, %v7289_v41  ;;  %v9389_v12 = vld [vmem:[#allocation2 + $0x1424] sm:$0xf0] }
 0x1e6   :  { %6037 = vmatpush.bf16.msrb.mxu2 %v7188_v4  ;;  %v11204_v4 = vsel %vm6790_vm3, %v11189_v46, %v6778_v62  ;;  %v5771_v46 = vpop.f32.mrf.mxu1  ;;  %v10761_v62 = vld [vmem:[#allocation2 + $0x161c] sm:$0xf]  ;;  %v6889_v15 = vld [vmem:[#allocation2 + $0x9c] sm:$0xf0] }
 0x1e7   :  { %6050 = vmatpush.bf16.msrb.mxu3 %v7988_v6  ;;  %v7592_v6 = vor.u32 %v10236_v50, %v7589_v51  ;;  %v10561_v50 = vld [vmem:[#allocation2 + $0xfdc] sm:$0xf]  ;;  %v10311_v46 = vld [vmem:[#allocation2 + $0x80c] sm:$0xf] }
 0x1e8   :  { %6063 = vmatpush.bf16.msra.mxu0 %v8788_v56  ;;  %v10211_v56 = vld [vmem:[#allocation2 + $0x4ec] sm:$0xf]  ;;  %v8892_v31 = vor.u32 %v10561_v50, %v8889_v55  ;;  %v10061_v41 = vld [vmem:[#allocation2 + $0x3c] sm:$0xf] }
 0x1e9   :  { %6076 = vmatpush.bf16.msra.mxu1 %v9588_v19  ;;  %v7489_v19 = vld [vmem:[#allocation2 + $0x54c] sm:$0xf0]  ;;  %v10261_v50 = vld [vmem:[#allocation2 + $0x67c] sm:$0xf] }
 0x1ea   :  { %6038 = vmatpush.bf16.msrb.mxu2 %v7088_v5  ;;  %v9992_v5 = vor.u32 %v10836_v58, %v9989_v9  ;;  %v7492_v23 = vor.u32 %v10211_v56, %v7489_v19  ;;  %v9589_v58 = vld [vmem:[#allocation2 + $0x15b4] sm:$0xf0]  ;;  %v10111_v9 = vld [vmem:[#allocation2 + $0x1cc] sm:$0xf]  ;;  %v8792_v19 = vor.u32 %v10536_v47, %v8789_v10  ;;  %v10461_v55 = vld [vmem:[#allocation2 + $0xcbc] sm:$0xf] }
 0x1eb   :  { %6051 = vmatpush.bf16.msrb.mxu3 %v7888_v11  ;;  %v10411_v11 = vld [vmem:[#allocation2 + $0xb2c] sm:$0xf]  ;;  %v10449_v47 = vld [vmem:[#allocation2 + $0xc58] sm:$0xf0] }
 0x1ec   :  { %6064 = vmatpush.bf16.msra.mxu0 %v8688_v57  ;;  %v8292_v32 = vor.u32 %v10411_v11, %v8289_v54  ;;  %v9892_v57 = vor.u32 %v10811_v25, %v9889_v13  ;;  %v10086_v13 = vld [vmem:[#allocation2 + $0x104] sm:$0xf]  ;;  %v10649_v10 = vld [vmem:[#allocation2 + $0x1298] sm:$0xf0] }
 0x1ed   :  { %6077 = vmatpush.bf16.msra.mxu1 %v9488_v26  ;;  %v10386_v26 = vld [vmem:[#allocation2 + $0xa64] sm:$0xf] }
 0x1ee   :  { %6039 = vmatpush.bf16.msrb.mxu2 %v6988_v30  ;;  %v8989_v30 = vld [vmem:[#allocation2 + $0x1104] sm:$0xf0]  ;;  %v8192_v42 = vor.u32 %v10386_v26, %v8189_v34  ;;  %v10286_v34 = vld [vmem:[#allocation2 + $0x744] sm:$0xf] }
 0x1ef   :  { %6052 = vmatpush.bf16.msrb.mxu3 %v7788_v29  ;;  %v10786_v29 = vld [vmem:[#allocation2 + $0x16e4] sm:$0xf]  ;;  %v8992_v36 = vor.u32 %v10586_v14, %v8989_v30  ;;  %v7789_v14 = vld [vmem:[#allocation2 + $0x7a4] sm:$0xf0]  ;;  %v6992_v30 = vor.u32 %v10086_v13, %v6989_v24  ;;  %v10824_v13 = vld [vmem:[#allocation2 + $0x1810] sm:$0xf0] }
 0x1f0   :  { %6065 = vmatpush.bf16.msra.mxu0 %v8588_v43  ;;  %v9792_v22 = vor.u32 %v10786_v29, %v9789_v35  ;;  %v11211_v51 = vpop.f32.mrf.mxu0  ;;  %v9689_v43 = vld [vmem:[#allocation2 + $0x167c] sm:$0xf0]  ;;  %v8589_v29 = vld [vmem:[#allocation2 + $0xde4] sm:$0xf0]  ;;  %v10686_v35 = vld [vmem:[#allocation2 + $0x13c4] sm:$0xf] }
 0x1f1   :  { %6078 = vmatpush.bf16.msra.mxu1 %v9388_v59  ;;  %v11213_v59 = vpop.f32.mrf.mxu1  ;;  %v9692_v39 = vor.u32 %v10761_v62, %v9689_v43  ;;  %v6892_v62 = vor.u32 %v10061_v41, %v6889_v15  ;;  %v8489_v43 = vld [vmem:[#allocation2 + $0xd1c] sm:$0xf0]  ;;  %v896_v15 = vperm.slane %v11164_v17, 3 }
 0x1f2   :  { %6040 = vmatpush.bf16.msrb.mxu2 %v6888_v1  ;;  %v7189_v1 = vld [vmem:[#allocation2 + $0x2f4] sm:$0xf0] }
 0x1f3   :  { %6053 = vmatpush.bf16.msrb.mxu3 %v7688_v2  ;;  %v8092_v2 = vor.u32 %v10361_v48, %v8089_v49  ;;  %v7192_v7 = vor.u32 %v10136_v63, %v7189_v1  ;;  %v9392_v49 = vor.u32 %v10686_v35, %v9389_v12  ;;  %v10661_v63 = vld [vmem:[#allocation2 + $0x12fc] sm:$0xf]  ;;  %v9289_v1 = vld [vmem:[#allocation2 + $0x135c] sm:$0xf0]  ;;  %v10799_v35 = vld [vmem:[#allocation2 + $0x1748] sm:$0xf0] }
 0x1f4   :  { %6066 = vmatpush.bf16.msra.mxu0 %v8488_v0  ;;  %v11215_v3 = vpop.f32.mrf.mxu2  ;;  %v7089_v0 = vld [vmem:[#allocation2 + $0x22c] sm:$0xf0] }
 0x1f5   :  { %6079 = vmatpush.bf16.msra.mxu1 %v9288_v16  ;;  %6041 = vmatmul.bf16.vlgmr.msrb.gmra.mxu2 %v11171_v33  ;;  %v11217_v56 = vpop.f32.mrf.mxu3  ;;  %v7092_v54 = vor.u32 %v10111_v9, %v7089_v0  ;;  %v10849_v9 = vld [vmem:[#allocation2 + $0x18d8] sm:$0xf0] }
 0x1f6   :  { %6092 = vmatpush.bf16.msra.mxu2 %v5091_v53  ;;  %6054 = vmatmul.bf16.vlgmr.msrb.gmra.mxu3 %v11181_v38  ;;  %v7989_v53 = vld [vmem:[#allocation2 + $0x934] sm:$0xf0] }
 0x1f7   :  { %6098 = vmatpush.bf16.msra.mxu3 %v7592_v6  ;;  %6067 = vmatmul.bf16.vlgmr.msra.gmra.mxu0 %v11174_v44  ;;  %v10336_v6 = vld [vmem:[#allocation2 + $0x8d4] sm:$0xf] }
 0x1f8   :  { %6111 = vmatpush.bf16.msrb.mxu0 %v8392_v20  ;;  %6080 = vmatmul.bf16.vlgmr.msra.gmra.mxu1 %v11178_v8  ;;  %v7992_v16 = vor.u32 %v10336_v6, %v7989_v53  ;;  %v9592_v20 = vor.u32 %v10736_v18, %v9589_v58  ;;  %v5810_v11 = vpop.f32.mrf.mxu0  ;;  %v8395_v6 = vld [vmem:[#allocation2 + $0xbf8] sm:$0xf]  ;;  %v8492_v18 = vor.u32 %v10461_v55, %v8489_v43  ;;  %v8895_v55 = vld [vmem:[#allocation2 + $0xfe0] sm:$0xf] }
 0x1f9   :  { %6124 = vmatpush.bf16.msrb.mxu1 %v9192_v61  ;;  %v7889_v61 = vld [vmem:[#allocation2 + $0x86c] sm:$0xf0]  ;;  %v5823_v25 = vpop.f32.mrf.mxu1  ;;  %v9995_v58 = vld [vmem:[#allocation2 + $0x1878] sm:$0xf]  ;;  %v9695_v43 = vld [vmem:[#allocation2 + $0x1620] sm:$0xf] }
 0x1fa   :  { %6137 = vmatpush.bf16.msrb.mxu2 %v9992_v5  ;;  %v10511_v5 = vld [vmem:[#allocation2 + $0xe4c] sm:$0xf]  ;;  %v8295_v11 = vld [vmem:[#allocation2 + $0xb30] sm:$0xf] }
 0x1fb   :  { %6099 = vmatpush.bf16.msra.mxu3 %v7492_v23  ;;  %v10711_v23 = vld [vmem:[#allocation2 + $0x148c] sm:$0xf]  ;;  %v9895_v25 = vld [vmem:[#allocation2 + $0x17b0] sm:$0xf] }
 0x1fc   :  { %6112 = vmatpush.bf16.msrb.mxu0 %v8292_v32  ;;  %v7892_v32 = vor.u32 %v10311_v46, %v7889_v61  ;;  %v5784_v26 = vpop.f32.mrf.mxu2  ;;  %v7495_v61 = vld [vmem:[#allocation2 + $0x4f0] sm:$0xf] }
 0x1fd   :  { %6125 = vmatpush.bf16.msrb.mxu1 %v9092_v60  ;;  %v8692_v60 = vor.u32 %v10511_v5, %v8689_v21  ;;  %v10224_v5 = vld [vmem:[#allocation2 + $0x550] sm:$0xf0]  ;;  %v8195_v26 = vld [vmem:[#allocation2 + $0xa68] sm:$0xf] }
 0x1fe   :  { %6138 = vmatpush.bf16.msrb.mxu2 %v9892_v57  ;;  %v9492_v57 = vor.u32 %v10711_v23, %v9489_v40  ;;  %v10424_v21 = vld [vmem:[#allocation2 + $0xb90] sm:$0xf0]  ;;  %v9095_v23 = vld [vmem:[#allocation2 + $0x1170] sm:$0xf]  ;;  %v7496_v24 = vor.u32 %v10224_v5, %v7495_v61 }
 0x1ff   :  { %6100 = vmatpush.bf16.msra.mxu3 %v7392_v37  ;;  %v10486_v37 = vld [vmem:[#allocation2 + $0xd84] sm:$0xf]  ;;  %v10624_v40 = vld [vmem:[#allocation2 + $0x11d0] sm:$0xf0] }
 0x200   :  { %6113 = vmatpush.bf16.msrb.mxu0 %v8192_v42  ;;  %v4231_v42 = vpack.c.b16 %v3406_v28, %v3406_v28  ;;  %v8592_v48 = vor.u32 %v10486_v37, %v8589_v29  ;;  %v8296_v28 = vor.u32 %v10424_v21, %v8295_v11  ;;  %v8995_v37 = vld [vmem:[#allocation2 + $0x10a8] sm:$0xf]  ;;  %v7095_v11 = vld [vmem:[#allocation2 + $0x1d0] sm:$0xf] }
 0x201   :  { %6126 = vmatpush.bf16.msrb.mxu1 %v8992_v36  ;;  %v7792_v36 = vor.u32 %v10286_v34, %v7789_v14  ;;  %v9896_v34 = vor.u32 %v10824_v13, %v9895_v25  ;;  %v10399_v14 = vld [vmem:[#allocation2 + $0xac8] sm:$0xf0]  ;;  %v9795_v29 = vld [vmem:[#allocation2 + $0x16e8] sm:$0xf]  ;;  %v7895_v21 = vld [vmem:[#allocation2 + $0x810] sm:$0xf] }
 0x202   :  { %6139 = vmatpush.bf16.msrb.mxu2 %v9792_v22  ;;  %v5797_v22 = vpop.f32.mrf.mxu3  ;;  %v10324_v25 = vld [vmem:[#allocation2 + $0x870] sm:$0xf0]  ;;  %v8695_v13 = vld [vmem:[#allocation2 + $0xe50] sm:$0xf] }
 0x203   :  { %6101 = vmatpush.bf16.msra.mxu3 %v7292_v52  ;;  %v7689_v52 = vld [vmem:[#allocation2 + $0x6dc] sm:$0xf0]  ;;  %v10174_v22 = vld [vmem:[#allocation2 + $0x3c0] sm:$0xf0] }
 0x204   :  { %6114 = vmatpush.bf16.msrb.mxu0 %v8092_v2  ;;  %v5094_v2 = vand.u32 %v10953_v45, %v4231_v42  ;;  %v7692_v53 = vor.u32 %v10261_v50, %v7689_v52  ;;  %v11223_v0 = vpop.f32.mrf.mxu2  ;;  %v8196_v42 = vor.u32 %v10399_v14, %v8195_v26  ;;  %v9796_v50 = vor.u32 %v10799_v35, %v9795_v29  ;;  %v10374_v52 = vld [vmem:[#allocation2 + $0xa00] sm:$0xf0]  ;;  %v7795_v29 = vld [vmem:[#allocation2 + $0x748] sm:$0xf]  ;;  %v10299_v35 = vld [vmem:[#allocation2 + $0x7a8] sm:$0xf0] }
 0x205   :  { %6127 = vmatpush.bf16.msrb.mxu1 %v8892_v31  ;;  %10043 = vmatmul.msk.bf16.vlgmr.msra.gmra.mxu2 %vm5041_vm2, %v11184_v27  ;;  %v7595_v31 = vld [vmem:[#allocation2 + $0x5b8] sm:$0xf]  ;;  %v7896_v14 = vor.u32 %v10324_v25, %v7895_v21 }
 0x206   :  { %6140 = vmatpush.bf16.msrb.mxu2 %v9692_v39  ;;  %v10249_v39 = vld [vmem:[#allocation2 + $0x618] sm:$0xf0]  ;;  %v8297_v25 = vld [vmem:[#allocation2 + $0xb94] sm:$0xf0] }
 0x207   :  { %6102 = vmatpush.bf16.msra.mxu3 %v7192_v7  ;;  %v9195_v7 = vld [vmem:[#allocation2 + $0x1238] sm:$0xf] }
 0x208   :  { %6115 = vmatpush.bf16.msrb.mxu0 %v7992_v16  ;;  %v9292_v16 = vor.u32 %v10661_v63, %v9289_v1  ;;  %v9196_v46 = vor.u32 %v10649_v10, %v9195_v7  ;;  %v10774_v63 = vld [vmem:[#allocation2 + $0x1680] sm:$0xf0]  ;;  %v10349_v10 = vld [vmem:[#allocation2 + $0x938] sm:$0xf0] }
 0x209   :  { %6128 = vmatpush.bf16.msrb.mxu1 %v8792_v19  ;;  %v7596_v19 = vor.u32 %v10249_v39, %v7595_v31  ;;  %v9696_v7 = vor.u32 %v10774_v63, %v9695_v43 }
 0x20a   :  { %6141 = vmatpush.bf16.msrb.mxu2 %v9592_v20  ;;  %v8396_v20 = vor.u32 %v10449_v47, %v8395_v6  ;;  %v7195_v6 = vld [vmem:[#allocation2 + $0x298] sm:$0xf] }
 0x20b   :  { %6103 = vmatpush.bf16.msra.mxu3 %v7092_v54  ;;  %v9996_v54 = vor.u32 %v10849_v9, %v9995_v58  ;;  %v7995_v47 = vld [vmem:[#allocation2 + $0x8d8] sm:$0xf]  ;;  %v10549_v58 = vld [vmem:[#allocation2 + $0xf78] sm:$0xf0] }
 0x20c   :  { %6116 = vmatpush.bf16.msrb.mxu0 %v7892_v32  ;;  %v9096_v32 = vor.u32 %v10624_v40, %v9095_v23  ;;  %v5836_v12 = vpop.f32.mrf.mxu2  ;;  %v9595_v9 = vld [vmem:[#allocation2 + $0x1558] sm:$0xf]  ;;  %v7996_v61 = vor.u32 %v10349_v10, %v7995_v47  ;;  %v8397_v10 = vld [vmem:[#allocation2 + $0xc5c] sm:$0xf0] }
 0x20d   :  { %6129 = vmatpush.bf16.msrb.mxu1 %v8692_v60  ;;  %v7395_v60 = vld [vmem:[#allocation2 + $0x428] sm:$0xf] }
 0x20e   :  { %6142 = vmatpush.bf16.msrb.mxu2 %v9492_v57  ;;  %v10199_v57 = vld [vmem:[#allocation2 + $0x488] sm:$0xf0] }
 0x20f   :  { %6104 = vmatpush.bf16.msra.mxu3 %v6992_v30  ;;  %v895_v30 = vperm.slane %v11164_v17, 2  ;;  %v7396_v41 = vor.u32 %v10199_v57, %v7395_v60  ;;  %v10724_v60 = vld [vmem:[#allocation2 + $0x14f0] sm:$0xf0] }
 0x210   :  { %6117 = vmatpush.bf16.msrb.mxu0 %v7792_v36  ;;  %v7295_v36 = vld [vmem:[#allocation2 + $0x360] sm:$0xf] }
 0x211   :  { %6130 = vmatpush.bf16.msrb.mxu1 %v8592_v48  ;;  %v8095_v48 = vld [vmem:[#allocation2 + $0x9a0] sm:$0xf]  ;;  %v7296_v1 = vor.u32 %v10174_v22, %v7295_v36 }
 0x212   :  { %6143 = vmatpush.bf16.msrb.mxu2 %v9392_v49  ;;  %v5860_v49 = vpop.f32.mrf.mxu0  ;;  %v8096_v31 = vor.u32 %v10374_v52, %v8095_v48  ;;  %v6895_v22 = vld [vmem:[#allocation2 + $0x40] sm:$0xf]  ;;  %v10074_v48 = vld [vmem:[#allocation2 + $0xa0] sm:$0xf0] }
 0x213   :  { %6105 = vmatpush.bf16.msra.mxu3 %v6892_v62  ;;  %v5873_v62 = vpop.f32.mrf.mxu1  ;;  %v6896_v47 = vor.u32 %v10074_v48, %v6895_v22 }
 0x214   :  { %6118 = vmatpush.bf16.msrb.mxu0 %v7692_v53  ;;  %v10149_v53 = vld [vmem:[#allocation2 + $0x2f8] sm:$0xf0] }
 0x215   :  { %6131 = vmatpush.bf16.msrb.mxu1 %v8492_v18  ;;  %v5847_v17 = vpop.f32.mrf.mxu3  ;;  %v8795_v18 = vld [vmem:[#allocation2 + $0xf18] sm:$0xf] }
 0x216   :  { %6106 = vmatmul.bf16.vlgmr.msra.gmra.mxu3 %v11171_v33  ;;  %6144 = vmatpush.bf16.msrb.mxu2 %v9292_v16  ;;  %v10599_v33 = vld [vmem:[#allocation2 + $0x1108] sm:$0xf0]  ;;  %v10749_v16 = vld [vmem:[#allocation2 + $0x15b8] sm:$0xf0]  ;;  %v8796_v5 = vor.u32 %v10549_v58, %v8795_v18  ;;  %v9197_v58 = vld [vmem:[#allocation2 + $0x129c] sm:$0xf0] }
 0x217   :  { %6157 = vmatpush.bf16.msrb.mxu3 %v5094_v2  ;;  %6119 = vmatmul.bf16.vlgmr.msrb.gmra.mxu0 %v11181_v38  ;;  %v8996_v38 = vor.u32 %v10599_v33, %v8995_v37  ;;  %v5848_v2 = vadd.f32 %v5847_v17, %v896_v15  ;;  %v9596_v40 = vor.u32 %v10749_v16, %v9595_v9  ;;  %v11236_v15 = vld [vmem:[#allocation2 + $0x1940] sm:$0xff]  ;;  %v10637_v18 = vld [vmem:[#allocation2 + $0x123c] sm:$0xf] }
 0x218   :  { %6163 = vmatpush.bf16.msra.mxu0 %v7596_v19  ;;  %6132 = vmatmul.bf16.vlgmr.msrb.gmra.mxu1 %v11174_v44  ;;  %v5783_v44 = vadd.f32 %v11215_v3, %v895_v30  ;;  %v7196_v19 = vor.u32 %v10149_v53, %v7195_v6  ;;  %v10099_v30 = vld [vmem:[#allocation2 + $0x168] sm:$0xf0]  ;;  %v3407_v43 = vunpack.c.l.b16 %v11236_v15  ;;  %v9295_v17 = vld [vmem:[#allocation2 + $0x1300] sm:$0xf]  ;;  %v10437_v6 = vld [vmem:[#allocation2 + $0xbfc] sm:$0xf]  ;;  %v9200_v21 = vor.u32 %v10637_v18, %v9197_v58 }
 0x219   :  { %6176 = vmatpush.bf16.msra.mxu1 %v8396_v20  ;;  %6145 = vmatmul.bf16.vlgmr.msrb.gmra.mxu2 %v11178_v8  ;;  %v10574_v8 = vld [vmem:[#allocation2 + $0x1040] sm:$0xf0]  ;;  %v5886_v20 = vpop.f32.mrf.mxu2  ;;  %v10137_v18 = vld [vmem:[#allocation2 + $0x29c] sm:$0xf]  ;;  %v7197_v58 = vld [vmem:[#allocation2 + $0x2fc] sm:$0xf0] }
 0x21a   :  { %6189 = vmatpush.bf16.msra.mxu2 %v9196_v46  ;;  %v8896_v39 = vor.u32 %v10574_v8, %v8895_v55  ;;  %v5796_v3 = vadd.f32 %v11217_v56, %v5783_v44  ;;  %v5861_v46 = vadd.f32 %v5860_v49, %v5848_v2  ;;  %v5862_v23 = vpop.f32.mrf.mxu0  ;;  %v7695_v8 = vld [vmem:[#allocation2 + $0x680] sm:$0xf]  ;;  %v4232_v16 = vpack.c.b16 %v3407_v43, %v3407_v43  ;;  %v10362_v43 = vld [vmem:[#allocation2 + $0x9a4] sm:$0xf] }
 0x21b   :  { %6202 = vmatpush.bf16.msra.mxu3 %v9996_v54  ;;  %v10124_v54 = vld [vmem:[#allocation2 + $0x230] sm:$0xf0]  ;;  %v5875_v56 = vpop.f32.mrf.mxu1  ;;  %v8495_v44 = vld [vmem:[#allocation2 + $0xcc0] sm:$0xf]  ;;  %v7497_v23 = vld [vmem:[#allocation2 + $0x554] sm:$0xf0] }
 0x21c   :  { %6164 = vmatpush.bf16.msra.mxu0 %v7496_v24  ;;  %v10524_v24 = vld [vmem:[#allocation2 + $0xeb0] sm:$0xf0]  ;;  %v7096_v26 = vor.u32 %v10124_v54, %v7095_v11  ;;  %v5874_v33 = vadd.f32 %v5873_v62, %v5861_v46  ;;  %v10274_v62 = vld [vmem:[#allocation2 + $0x6e0] sm:$0xf0]  ;;  %v10837_v46 = vld [vmem:[#allocation2 + $0x187c] sm:$0xf]  ;;  %v8400_v54 = vor.u32 %v10437_v6, %v8397_v10 }
 0x21d   :  { %6177 = vmatpush.bf16.msra.mxu1 %v8296_v28  ;;  %v5809_v28 = vadd.f32 %v11211_v51, %v5796_v3  ;;  %v5849_v57 = vpop.f32.mrf.mxu3  ;;  %v8696_v37 = vor.u32 %v10524_v24, %v8695_v13  ;;  %v8595_v51 = vld [vmem:[#allocation2 + $0xd88] sm:$0xf]  ;;  %v10612_v13 = vld [vmem:[#allocation2 + $0x1174] sm:$0xf]  ;;  %v9097_v24 = vld [vmem:[#allocation2 + $0x11d4] sm:$0xf0] }
 0x21e   :  { %6190 = vmatpush.bf16.msra.mxu2 %v9096_v32  ;;  %v9495_v32 = vld [vmem:[#allocation2 + $0x1490] sm:$0xf]  ;;  %v5887_v55 = vadd.f32 %v5886_v20, %v5874_v33  ;;  %v10762_v6 = vld [vmem:[#allocation2 + $0x1624] sm:$0xf] }
 0x21f   :  { %6203 = vmatpush.bf16.msra.mxu3 %v9896_v34  ;;  %v6995_v34 = vld [vmem:[#allocation2 + $0x108] sm:$0xf]  ;;  %v9496_v12 = vor.u32 %v10724_v60, %v9495_v32  ;;  %v10812_v32 = vld [vmem:[#allocation2 + $0x17b4] sm:$0xf] }
 0x220   :  { %6165 = vmatpush.bf16.msra.mxu0 %v7396_v41  ;;  %v10499_v41 = vld [vmem:[#allocation2 + $0xde8] sm:$0xf0]  ;;  %v6996_v36 = vor.u32 %v10099_v30, %v6995_v34  ;;  %v9897_v34 = vld [vmem:[#allocation2 + $0x1814] sm:$0xf0]  ;;  %v9100_v30 = vor.u32 %v10612_v13, %v9097_v24  ;;  %v10112_v13 = vld [vmem:[#allocation2 + $0x1d4] sm:$0xf] }
 0x221   :  { %6178 = vmatpush.bf16.msra.mxu1 %v8196_v42  ;;  %v9395_v42 = vld [vmem:[#allocation2 + $0x13c8] sm:$0xf]  ;;  %v5888_v49 = vpop.f32.mrf.mxu2  ;;  %v8596_v52 = vor.u32 %v10499_v41, %v8595_v51  ;;  %v11257_v41 = vld [vmem:[%s11427_s2 + $0x8] sm:$0xff]  ;;  %v9900_v22 = vor.u32 %v10812_v32, %v9897_v34  ;;  %v7097_v24 = vld [vmem:[#allocation2 + $0x234] sm:$0xf0] }
 0x222   :  { %6191 = vmatpush.bf16.msra.mxu2 %v8996_v38  ;;  %v10699_v38 = vld [vmem:[#allocation2 + $0x1428] sm:$0xf0]  ;;  %v7897_v32 = vld [vmem:[#allocation2 + $0x874] sm:$0xf0]  ;;  %v7100_v34 = vor.u32 %v10112_v13, %v7097_v24  ;;  %v10425_v13 = vld [vmem:[#allocation2 + $0xb98] sm:$0xf0] }
 0x223   :  { %6204 = vmatpush.bf16.msra.mxu3 %v9796_v50  ;;  %v7796_v50 = vor.u32 %v10299_v35, %v7795_v29  ;;  %v9396_v63 = vor.u32 %v10699_v38, %v9395_v42  ;;  %v10387_v29 = vld [vmem:[#allocation2 + $0xa6c] sm:$0xf]  ;;  %v8197_v35 = vld [vmem:[#allocation2 + $0xacc] sm:$0xf0] }
 0x224   :  { %6166 = vmatpush.bf16.msra.mxu0 %v7296_v1  ;;  %v10674_v1 = vld [vmem:[#allocation2 + $0x1360] sm:$0xf0]  ;;  %v10587_v42 = vld [vmem:[#allocation2 + $0x10ac] sm:$0xf]  ;;  %v8997_v38 = vld [vmem:[#allocation2 + $0x110c] sm:$0xf0] }
 0x225   :  { %6179 = vmatpush.bf16.msra.mxu1 %v8096_v31  ;;  %v10237_v31 = vld [vmem:[#allocation2 + $0x5bc] sm:$0xf]  ;;  %v5899_v53 = vpop.f32.mrf.mxu3  ;;  %v10787_v49 = vld [vmem:[#allocation2 + $0x16ec] sm:$0xf] }
 0x226   :  { %6192 = vmatpush.bf16.msra.mxu2 %v8896_v39  ;;  %10044 = vmatmul.msk.bf16.vlgmr.msrb.gmra.mxu3 %vm5041_vm2, %v11184_v27  ;;  %v5822_v27 = vadd.f32 %v11213_v59, %v5809_v28  ;;  %v10474_v59 = vld [vmem:[#allocation2 + $0xd20] sm:$0xf0]  ;;  %v7597_v39 = vld [vmem:[#allocation2 + $0x61c] sm:$0xf0]  ;;  %v5900_v3 = vadd.f32 %v5899_v53, %v5887_v55  ;;  %v5097_v28 = vand.u32 %v10953_v45, %v4232_v16  ;;  %v9697_v53 = vld [vmem:[#allocation2 + $0x1684] sm:$0xf0] }
 0x227   :  { %6205 = vmatpush.bf16.msra.mxu3 %v9696_v7  ;;  %v7696_v7 = vor.u32 %v10274_v62, %v7695_v8  ;;  %v8496_v9 = vor.u32 %v10474_v59, %v8495_v44  ;;  %v7600_v20 = vor.u32 %v10237_v31, %v7597_v39  ;;  %v8200_v55 = vor.u32 %v10387_v29, %v8197_v35  ;;  %v10162_v62 = vld [vmem:[#allocation2 + $0x364] sm:$0xf]  ;;  %v7297_v44 = vld [vmem:[#allocation2 + $0x3c4] sm:$0xf0]  ;;  %v7997_v16 = vld [vmem:[#allocation2 + $0x93c] sm:$0xf0] }
 0x228   :  { %6167 = vmatpush.bf16.msra.mxu0 %v7196_v19  ;;  %v5835_v2 = vadd.f32 %v11223_v0, %v5822_v27  ;;  %v9296_v19 = vor.u32 %v10674_v1, %v9295_v17  ;;  %v9997_v0 = vld [vmem:[#allocation2 + $0x18dc] sm:$0xf0]  ;;  %v6780_v11 = vrot.slane %v5900_v3, 2  ;;  %v897_v27 = vperm.slane %v11257_v41, 4  ;;  %v8097_v17 = vld [vmem:[#allocation2 + $0xa04] sm:$0xf0] }
 0x229   :  { %6180 = vmatpush.bf16.msra.mxu1 %v7996_v61  ;;  %v10212_v61 = vld [vmem:[#allocation2 + $0x4f4] sm:$0xf]  ;;  %v10000_v57 = vor.u32 %v10837_v46, %v9997_v0  ;;  %v9000_v8 = vor.u32 %v10587_v42, %v8997_v38  ;;  %v10562_v1 = vld [vmem:[#allocation2 + $0xfe4] sm:$0xf]  ;;  %v7300_v39 = vor.u32 %v10162_v62, %v7297_v44  ;;  %v10337_v3 = vld [vmem:[#allocation2 + $0x8dc] sm:$0xf]  ;;  %v3408_v44 = vunpack.c.h.b16 %v11236_v15 }
 0x22a   :  { %6193 = vmatpush.bf16.msra.mxu2 %v8796_v5  ;;  %v6779_v5 = vrot.slane %v5835_v2, 4  ;;  %v8897_v2 = vld [vmem:[#allocation2 + $0x1044] sm:$0xf0]  ;;  %v10087_v29 = vld [vmem:[#allocation2 + $0x10c] sm:$0xf]  ;;  %v11266_v42 = vld [vmem:[#allocation1 + $0x24] sm:$0xff] }
 0x22b   :  { %6206 = vmatpush.bf16.msra.mxu3 %v9596_v40  ;;  %v10412_v40 = vld [vmem:[#allocation2 + $0xb34] sm:$0xf]  ;;  %v8900_v10 = vor.u32 %v10562_v1, %v8897_v2  ;;  %v6997_v35 = vld [vmem:[#allocation2 + $0x16c] sm:$0xf0]  ;;  %v10062_v62 = vld [vmem:[#allocation2 + $0x44] sm:$0xf] }
 0x22c   :  { %6168 = vmatpush.bf16.msra.mxu0 %v7096_v26  ;;  %v6799_v56 = vsel %vm6792_vm4, %v6779_v5, %v6780_v11  ;;  %v7500_v26 = vor.u32 %v10212_v61, %v7497_v23  ;;  %v8300_v33 = vor.u32 %v10412_v40, %v8297_v25  ;;  %v9700_v61 = vor.u32 %v10762_v6, %v9697_v53  ;;  %v7797_v38 = vld [vmem:[#allocation2 + $0x7ac] sm:$0xf0]  ;;  %v6897_v2 = vld [vmem:[#allocation2 + $0xa4] sm:$0xf0]  ;;  %v10462_v53 = vld [vmem:[#allocation2 + $0xcc4] sm:$0xf] }
 0x22d   :  { %6181 = vmatpush.bf16.msra.mxu1 %v7896_v14  ;;  %v6800_v60 = vsel %vm5045_vm1, %v11204_v4, %v6799_v56  ;;  %v10187_v14 = vld [vmem:[#allocation2 + $0x42c] sm:$0xf]  ;;  %v5901_v51 = vpop.f32.mrf.mxu3  ;;  %v7200_v11 = vor.u32 %v10137_v18, %v7197_v58  ;;  %v8000_v40 = vor.u32 %v10337_v3, %v7997_v16  ;;  %v10312_v56 = vld [vmem:[#allocation2 + $0x814] sm:$0xf]  ;;  %v8403_v18 = vld [vmem:[#allocation2 + $0xc00] sm:$0xf]  ;;  %v6900_v3 = vor.u32 %v10062_v62, %v6897_v2 }
 0x22e   :  { %6194 = vmatpush.bf16.msra.mxu2 %v8696_v37  ;;  %v7397_v37 = vld [vmem:[#allocation2 + $0x48c] sm:$0xf0]  ;;  %6818 = vst [vmem:[%s11428_s3 + $0x10] sm:$0xff] %v6800_v60  ;;  %v10512_v60 = vld [vmem:[#allocation2 + $0xe54] sm:$0xf]  ;;  %v4233_v16 = vpack.c.b16 %v3408_v44, %v3408_v44 }
 0x22f   :  { %6207 = vmatpush.bf16.msra.mxu3 %v9496_v12  ;;  %v11248_v12 = vld [vmem:[#allocation1] sm:$0xff]  ;;  %v11251_v4 = vld [vmem:[#allocation1 + $0x12] sm:$0xff]  ;;  %v7400_v48 = vor.u32 %v10187_v14, %v7397_v37  ;;  %v10712_v14 = vld [vmem:[#allocation2 + $0x1494] sm:$0xf] }
 0x230   :  { %6169 = vmatpush.bf16.msra.mxu0 %v6996_v36  ;;  %v11260_v36 = vld [vmem:[#allocation1 + $0x1b] sm:$0xff]  ;;  %v10287_v51 = vld [vmem:[#allocation2 + $0x74c] sm:$0xf]  ;;  %v10450_v58 = vld [vmem:[#allocation2 + $0xc60] sm:$0xf0] }
 0x231   :  { %6182 = vmatpush.bf16.msra.mxu1 %v7796_v50  ;;  %v9797_v50 = vld [vmem:[#allocation2 + $0x174c] sm:$0xf0]  ;;  %v9497_v37 = vld [vmem:[#allocation2 + $0x14f4] sm:$0xf0]  ;;  %v7303_v62 = vld [vmem:[#allocation2 + $0x368] sm:$0xf] }
 0x232   :  { %6195 = vmatpush.bf16.msra.mxu2 %v8596_v52  ;;  %v5912_v52 = vpop.f32.mrf.mxu0  ;;  %v9800_v31 = vor.u32 %v10787_v49, %v9797_v50  ;;  %v9500_v50 = vor.u32 %v10712_v14, %v9497_v37  ;;  %v9903_v37 = vld [vmem:[#allocation2 + $0x17b8] sm:$0xf]  ;;  %v10175_v44 = vld [vmem:[#allocation2 + $0x3c8] sm:$0xf0] }
 0x233   :  { %6208 = vmatpush.bf16.msra.mxu3 %v9396_v63  ;;  %v11263_v63 = vld [vmem:[#allocation1 + $0x9] sm:$0xff]  ;;  %v5913_v59 = vadd.f32 %v5912_v52, %v897_v27  ;;  %v7000_v52 = vor.u32 %v10087_v29, %v6997_v35  ;;  %v10200_v29 = vld [vmem:[#allocation2 + $0x490] sm:$0xf0]  ;;  %v8203_v35 = vld [vmem:[#allocation2 + $0xa70] sm:$0xf] }
 0x234   :  { %6170 = vmatpush.bf16.msra.mxu0 %v6896_v47  ;;  %v5925_v47 = vpop.f32.mrf.mxu1 }
 0x235   :  { %6183 = vmatpush.bf16.msra.mxu1 %v7696_v7  ;;  %v8100_v7 = vor.u32 %v10362_v43, %v8097_v17  ;;  %v7800_v17 = vor.u32 %v10287_v51, %v7797_v38  ;;  %v10400_v51 = vld [vmem:[#allocation2 + $0xad0] sm:$0xf0] }
 0x236   :  { %6196 = vmatpush.bf16.msra.mxu2 %v8496_v9  ;;  %v5926_v9 = vadd.f32 %v5925_v47, %v5913_v59  ;;  %v8497_v47 = vld [vmem:[#allocation2 + $0xd24] sm:$0xf0] }
 0x237   :  { %6209 = vmatpush.bf16.msra.mxu3 %v9296_v19  ;;  %6171 = vmatmul.bf16.vlgmr.msra.gmra.mxu0 %v11248_v12  ;;  %v10537_v19 = vld [vmem:[#allocation2 + $0xf1c] sm:$0xf] }
 0x238   :  { %6222 = vmatpush.bf16.msrb.mxu0 %v5097_v28  ;;  %6184 = vmatmul.bf16.vlgmr.msra.gmra.mxu1 %v11263_v63  ;;  %v5938_v46 = vpop.f32.mrf.mxu2 }
 0x239   :  { %6228 = vmatpush.bf16.msrb.mxu1 %v7600_v20  ;;  %6197 = vmatmul.bf16.vlgmr.msra.gmra.mxu2 %v11251_v4  ;;  %v8797_v20 = vld [vmem:[#allocation2 + $0xf7c] sm:$0xf0]  ;;  %v5939_v0 = vadd.f32 %v5938_v46, %v5926_v9  ;;  %v5951_v5 = vpop.f32.mrf.mxu3  ;;  %v10662_v9 = vld [vmem:[#allocation2 + $0x1304] sm:$0xf]  ;;  %v9297_v46 = vld [vmem:[#allocation2 + $0x1364] sm:$0xf0] }
 0x23a   :  { %6241 = vmatpush.bf16.msrb.mxu2 %v8400_v54  ;;  %6210 = vmatmul.bf16.vlgmr.msra.gmra.mxu3 %v11260_v36  ;;  %v10737_v54 = vld [vmem:[#allocation2 + $0x155c] sm:$0xf]  ;;  %v5914_v23 = vpop.f32.mrf.mxu0  ;;  %v8800_v25 = vor.u32 %v10537_v19, %v8797_v20  ;;  %v8500_v20 = vor.u32 %v10462_v53, %v8497_v47  ;;  %v9300_v24 = vor.u32 %v10662_v9, %v9297_v46  ;;  %v8803_v46 = vld [vmem:[#allocation2 + $0xf20] sm:$0xf] }
 0x23b   :  { %6254 = vmatpush.bf16.msrb.mxu3 %v9200_v21  ;;  %v9597_v21 = vld [vmem:[#allocation2 + $0x15bc] sm:$0xf0]  ;;  %v5952_v28 = vadd.f32 %v5951_v5, %v5939_v0  ;;  %v7503_v23 = vld [vmem:[#allocation2 + $0x4f8] sm:$0xf]  ;;  %v7304_v53 = vor.u32 %v10175_v44, %v7303_v62 }
 0x23c   :  { %6267 = vmatpush.bf16.msra.mxu0 %v10000_v57  ;;  %v8697_v57 = vld [vmem:[#allocation2 + $0xeb4] sm:$0xf0]  ;;  %v5927_v27 = vpop.f32.mrf.mxu1  ;;  %v9203_v0 = vld [vmem:[#allocation2 + $0x1240] sm:$0xf] }
 0x23d   :  { %6229 = vmatpush.bf16.msrb.mxu1 %v7500_v26  ;;  %v9600_v26 = vor.u32 %v10737_v54, %v9597_v21  ;;  %v10003_v54 = vld [vmem:[#allocation2 + $0x1880] sm:$0xf]  ;;  %v10850_v21 = vld [vmem:[#allocation2 + $0x18e0] sm:$0xf0] }
 0x23e   :  { %6242 = vmatpush.bf16.msrb.mxu2 %v8300_v33  ;;  %v7900_v33 = vor.u32 %v10312_v56, %v7897_v32  ;;  %v5100_v56 = vand.u32 %v10953_v45, %v4233_v16  ;;  %v10004_v32 = vor.u32 %v10850_v21, %v10003_v54  ;;  %v9603_v54 = vld [vmem:[#allocation2 + $0x1560] sm:$0xf]  ;;  %v10750_v21 = vld [vmem:[#allocation2 + $0x15c0] sm:$0xf0] }
 0x23f   :  { %6255 = vmatpush.bf16.msrb.mxu3 %v9100_v30  ;;  %v8700_v30 = vor.u32 %v10512_v60, %v8697_v57  ;;  %v9103_v60 = vld [vmem:[#allocation2 + $0x1178] sm:$0xf]  ;;  %v10625_v57 = vld [vmem:[#allocation2 + $0x11d8] sm:$0xf0] }
 0x240   :  { %6268 = vmatpush.bf16.msra.mxu0 %v9900_v22  ;;  %v10487_v22 = vld [vmem:[#allocation2 + $0xd8c] sm:$0xf]  ;;  %v5940_v49 = vpop.f32.mrf.mxu2  ;;  %v9104_v27 = vor.u32 %v10625_v57, %v9103_v60  ;;  %v9604_v57 = vor.u32 %v10750_v21, %v9603_v54  ;;  %v10438_v21 = vld [vmem:[#allocation2 + $0xc04] sm:$0xf] }
 0x241   :  { %6230 = vmatpush.bf16.msrb.mxu1 %v7400_v48  ;;  %v8597_v48 = vld [vmem:[#allocation2 + $0xdec] sm:$0xf0]  ;;  %v5953_v43 = vpop.f32.mrf.mxu3 }
 0x242   :  { %6243 = vmatpush.bf16.msrb.mxu2 %v8200_v55  ;;  %v10687_v55 = vld [vmem:[#allocation2 + $0x13cc] sm:$0xf]  ;;  %v5964_v59 = vpop.f32.mrf.mxu0  ;;  %v8600_v1 = vor.u32 %v10487_v22, %v8597_v48  ;;  %v9003_v22 = vld [vmem:[#allocation2 + $0x10b0] sm:$0xf]  ;;  %v10600_v48 = vld [vmem:[#allocation2 + $0x1110] sm:$0xf0] }
 0x243   :  { %6256 = vmatpush.bf16.msrb.mxu3 %v9000_v8  ;;  %v9397_v8 = vld [vmem:[#allocation2 + $0x142c] sm:$0xf0]  ;;  %v11271_v6 = vadd.f32 %v5964_v59, %v5952_v28  ;;  %v8103_v43 = vld [vmem:[#allocation2 + $0x9a8] sm:$0xf]  ;;  %v10375_v59 = vld [vmem:[#allocation2 + $0xa08] sm:$0xf0] }
 0x244   :  { %6269 = vmatpush.bf16.msra.mxu0 %v9800_v31  ;;  %v10262_v31 = vld [vmem:[#allocation2 + $0x684] sm:$0xf]  ;;  %v9400_v15 = vor.u32 %v10687_v55, %v9397_v8  ;;  %v9803_v55 = vld [vmem:[#allocation2 + $0x16f0] sm:$0xf]  ;;  %v10800_v8 = vld [vmem:[#allocation2 + $0x1750] sm:$0xf0]  ;;  %v8104_v47 = vor.u32 %v10375_v59, %v8103_v43 }
 0x245   :  { %6231 = vmatpush.bf16.msrb.mxu1 %v7300_v39  ;;  %v7697_v39 = vld [vmem:[#allocation2 + $0x6e4] sm:$0xf0]  ;;  %v9804_v2 = vor.u32 %v10800_v8, %v9803_v55  ;;  %v8603_v55 = vld [vmem:[#allocation2 + $0xd90] sm:$0xf]  ;;  %v10500_v8 = vld [vmem:[#allocation2 + $0xdf0] sm:$0xf0] }
 0x246   :  { %6244 = vmatpush.bf16.msrb.mxu2 %v8100_v7  ;;  %v7603_v7 = vld [vmem:[#allocation2 + $0x5c0] sm:$0xf]  ;;  %v7700_v19 = vor.u32 %v10262_v31, %v7697_v39  ;;  %v8903_v31 = vld [vmem:[#allocation2 + $0xfe8] sm:$0xf]  ;;  %v10575_v39 = vld [vmem:[#allocation2 + $0x1048] sm:$0xf0] }
 0x247   :  { %6257 = vmatpush.bf16.msrb.mxu3 %v8900_v10  ;;  %10045 = vmatmul.msk.bf16.vlgmr.msrb.gmra.mxu0 %vm5041_vm2, %v11266_v42  ;;  %v10250_v10 = vld [vmem:[#allocation2 + $0x620] sm:$0xf0]  ;;  %v9403_v59 = vld [vmem:[#allocation2 + $0x13d0] sm:$0xf] }
 0x248   :  { %6270 = vmatpush.bf16.msra.mxu0 %v9700_v61  ;;  %v10650_v61 = vld [vmem:[#allocation2 + $0x12a0] sm:$0xf0]  ;;  %v7604_v5 = vor.u32 %v10250_v10, %v7603_v7  ;;  %v9703_v7 = vld [vmem:[#allocation2 + $0x1628] sm:$0xf]  ;;  %v10775_v10 = vld [vmem:[#allocation2 + $0x1688] sm:$0xf0] }
 0x249   :  { %6232 = vmatpush.bf16.msrb.mxu1 %v7200_v11  ;;  %v8404_v11 = vor.u32 %v10450_v58, %v8403_v18  ;;  %v9204_v28 = vor.u32 %v10650_v61, %v9203_v0  ;;  %v7203_v18 = vld [vmem:[#allocation2 + $0x2a0] sm:$0xf]  ;;  %v10150_v58 = vld [vmem:[#allocation2 + $0x300] sm:$0xf0] }
 0x24a   :  { %6245 = vmatpush.bf16.msrb.mxu2 %v8000_v40  ;;  %v10225_v40 = vld [vmem:[#allocation2 + $0x558] sm:$0xf0]  ;;  %v10550_v0 = vld [vmem:[#allocation2 + $0xf80] sm:$0xf0] }
 0x24b   :  { %6258 = vmatpush.bf16.msrb.mxu3 %v8800_v25  ;;  %v8303_v25 = vld [vmem:[#allocation2 + $0xb38] sm:$0xf]  ;;  %v8804_v60 = vor.u32 %v10550_v0, %v8803_v46  ;;  %v10475_v46 = vld [vmem:[#allocation2 + $0xd28] sm:$0xf0]  ;;  %v9303_v0 = vld [vmem:[#allocation2 + $0x1308] sm:$0xf] }
 0x24c   :  { %6271 = vmatpush.bf16.msra.mxu0 %v9600_v26  ;;  %v5966_v26 = vpop.f32.mrf.mxu0  ;;  %v8304_v14 = vor.u32 %v10425_v13, %v8303_v25  ;;  %v7903_v25 = vld [vmem:[#allocation2 + $0x818] sm:$0xf]  ;;  %v10325_v13 = vld [vmem:[#allocation2 + $0x878] sm:$0xf0] }
 0x24d   :  { %6233 = vmatpush.bf16.msrb.mxu1 %v7100_v34  ;;  %v7504_v34 = vor.u32 %v10225_v40, %v7503_v23  ;;  %v7103_v23 = vld [vmem:[#allocation2 + $0x1d8] sm:$0xf]  ;;  %v10125_v40 = vld [vmem:[#allocation2 + $0x238] sm:$0xf0] }
 0x24e   :  { %6246 = vmatpush.bf16.msrb.mxu2 %v7900_v33  ;;  %v10825_v33 = vld [vmem:[#allocation2 + $0x1818] sm:$0xf0]  ;;  %v8703_v26 = vld [vmem:[#allocation2 + $0xe58] sm:$0xf] }
 0x24f   :  { %6259 = vmatpush.bf16.msrb.mxu3 %v8700_v30  ;;  %v7403_v30 = vld [vmem:[#allocation2 + $0x430] sm:$0xf]  ;;  %v9904_v38 = vor.u32 %v10825_v33, %v9903_v37  ;;  %v7904_v37 = vor.u32 %v10325_v13, %v7903_v25  ;;  %v9503_v33 = vld [vmem:[#allocation2 + $0x1498] sm:$0xf]  ;;  %v9205_v25 = vld [vmem:[#allocation2 + $0x12a4] sm:$0xf0] }
 0x250   :  { %6272 = vmatpush.bf16.msra.mxu0 %v9500_v50  ;;  %v7404_v50 = vor.u32 %v10200_v29, %v7403_v30  ;;  %v10725_v30 = vld [vmem:[#allocation2 + $0x14f8] sm:$0xf0]  ;;  %v7003_v29 = vld [vmem:[#allocation2 + $0x110] sm:$0xf]  ;;  %v10838_v13 = vld [vmem:[#allocation2 + $0x1884] sm:$0xf] }
 0x251   :  { %6234 = vmatpush.bf16.msrb.mxu1 %v7000_v52  ;;  %v5977_v49 = vpop.f32.mrf.mxu1  ;;  %v8204_v52 = vor.u32 %v10400_v51, %v8203_v35  ;;  %v10100_v51 = vld [vmem:[#allocation2 + $0x170] sm:$0xf0] }
 0x252   :  { %6247 = vmatpush.bf16.msrb.mxu2 %v7800_v17  ;;  %v898_v17 = vperm.slane %v11257_v41, 5  ;;  %v7004_v44 = vor.u32 %v10100_v51, %v7003_v29  ;;  %v10813_v51 = vld [vmem:[#allocation2 + $0x17bc] sm:$0xf] }
 0x253   :  { %6260 = vmatpush.bf16.msrb.mxu3 %v8600_v1  ;;  %v9004_v1 = vor.u32 %v10600_v48, %v9003_v22 }
 0x254   :  { %6273 = vmatpush.bf16.msra.mxu0 %v9400_v15  ;;  %v8003_v15 = vld [vmem:[#allocation2 + $0x8e0] sm:$0xf]  ;;  %v6016_v9 = vpop.f32.mrf.mxu0  ;;  %v5978_v16 = vadd.f32 %v5977_v49, %v898_v17  ;;  %v10700_v17 = vld [vmem:[#allocation2 + $0x1430] sm:$0xf0] }
 0x255   :  { %6235 = vmatpush.bf16.msrb.mxu1 %v6900_v3  ;;  %v10350_v3 = vld [vmem:[#allocation2 + $0x940] sm:$0xf0] }
 0x256   :  { %6248 = vmatpush.bf16.msrb.mxu2 %v7700_v19  ;;  %v8904_v19 = vor.u32 %v10575_v39, %v8903_v31  ;;  %v10075_v31 = vld [vmem:[#allocation2 + $0xa8] sm:$0xf0]  ;;  %v7703_v39 = vld [vmem:[#allocation2 + $0x688] sm:$0xf] }
 0x257   :  { %6261 = vmatpush.bf16.msrb.mxu3 %v8500_v20  ;;  %v9704_v20 = vor.u32 %v10775_v10, %v9703_v7  ;;  %v10238_v7 = vld [vmem:[#allocation2 + $0x5c4] sm:$0xf]  ;;  %v7605_v10 = vld [vmem:[#allocation2 + $0x624] sm:$0xf0] }
 0x258   :  { %6236 = vmatmul.bf16.vlgmr.msrb.gmra.mxu1 %v11248_v12  ;;  %6274 = vmatpush.bf16.msra.mxu0 %v9300_v24  ;;  %v5990_v24 = vpop.f32.mrf.mxu2 }
 0x259   :  { %6287 = vmatpush.bf16.msra.mxu1 %v5100_v56  ;;  %6249 = vmatmul.bf16.vlgmr.msrb.gmra.mxu2 %v11263_v63  ;;  %v5979_v61 = vpop.f32.mrf.mxu1  ;;  %v6003_v56 = vpop.f32.mrf.mxu3 }
 0x25a   :  { %6293 = vmatpush.bf16.msra.mxu2 %v7604_v5  ;;  %6262 = vmatmul.bf16.vlgmr.msrb.gmra.mxu3 %v11251_v4  ;;  %v7204_v5 = vor.u32 %v10150_v58, %v7203_v18  ;;  %v10675_v61 = vld [vmem:[#allocation2 + $0x1368] sm:$0xf0] }
 0x25b   :  { %6306 = vmatpush.bf16.msra.mxu3 %v8404_v11  ;;  %6275 = vmatmul.bf16.vlgmr.msra.gmra.mxu0 %v11260_v36  ;;  %v8004_v11 = vor.u32 %v10350_v3, %v8003_v15  ;;  %v8604_v3 = vor.u32 %v10500_v8, %v8603_v55  ;;  %v8205_v55 = vld [vmem:[#allocation2 + $0xad4] sm:$0xf0]  ;;  %v10588_v8 = vld [vmem:[#allocation2 + $0x10b4] sm:$0xf] }
 0x25c   :  { %6319 = vmatpush.bf16.msrb.mxu0 %v9204_v28  ;;  %v11279_v28 = vld [vmem:[#allocation2 + $0x1948] sm:$0xff]  ;;  %v6018_v48 = vpop.f32.mrf.mxu0 }
 0x25d   :  { %6332 = vmatpush.bf16.msrb.mxu1 %v10004_v32  ;;  %v5991_v32 = vadd.f32 %v5990_v24, %v5978_v16  ;;  %v3409_v22 = vunpack.c.l.b16 %v11279_v28  ;;  %v8503_v16 = vld [vmem:[#allocation2 + $0xcc8] sm:$0xf] }
 0x25e   :  { %6294 = vmatpush.bf16.msra.mxu2 %v7504_v34  ;;  %v10525_v34 = vld [vmem:[#allocation2 + $0xeb8] sm:$0xf0]  ;;  %v10005_v24 = vld [vmem:[#allocation2 + $0x18e4] sm:$0xf0] }
 0x25f   :  { %6307 = vmatpush.bf16.msra.mxu3 %v8304_v14  ;;  %v7104_v14 = vor.u32 %v10125_v40, %v7103_v23  ;;  %v6004_v35 = vadd.f32 %v6003_v56, %v5991_v32  ;;  %v8405_v23 = vld [vmem:[#allocation2 + $0xc64] sm:$0xf0]  ;;  %v10638_v40 = vld [vmem:[#allocation2 + $0x1244] sm:$0xf]  ;;  %v8504_v56 = vor.u32 %v10475_v46, %v8503_v16  ;;  %v9304_v32 = vor.u32 %v10675_v61, %v9303_v0 }
 0x260   :  { %6320 = vmatpush.bf16.msrb.mxu0 %v9104_v27  ;;  %v7803_v27 = vld [vmem:[#allocation2 + $0x750] sm:$0xf]  ;;  %v5992_v18 = vpop.f32.mrf.mxu2  ;;  %v10138_v16 = vld [vmem:[#allocation2 + $0x2a4] sm:$0xf] }
 0x261   :  { %6333 = vmatpush.bf16.msrb.mxu1 %v9904_v38  ;;  %v10300_v38 = vld [vmem:[#allocation2 + $0x7b0] sm:$0xf0]  ;;  %v6017_v49 = vadd.f32 %v6016_v9, %v6004_v35  ;;  %v6029_v62 = vpop.f32.mrf.mxu1  ;;  %v6005_v58 = vpop.f32.mrf.mxu3  ;;  %v9404_v9 = vor.u32 %v10700_v17, %v9403_v59  ;;  %v9105_v35 = vld [vmem:[#allocation2 + $0x11dc] sm:$0xf0]  ;;  %v9805_v59 = vld [vmem:[#allocation2 + $0x1754] sm:$0xf0] }
 0x262   :  { %6295 = vmatpush.bf16.msra.mxu2 %v7404_v50  ;;  %v8704_v50 = vor.u32 %v10525_v34, %v8703_v26  ;;  %v7804_v43 = vor.u32 %v10300_v38, %v7803_v27  ;;  %v8408_v26 = vor.u32 %v10438_v21, %v8405_v23  ;;  %v9208_v34 = vor.u32 %v10638_v40, %v9205_v25  ;;  %v9905_v27 = vld [vmem:[#allocation2 + $0x181c] sm:$0xf0]  ;;  %v10188_v38 = vld [vmem:[#allocation2 + $0x434] sm:$0xf]  ;;  %v10163_v17 = vld [vmem:[#allocation2 + $0x36c] sm:$0xf] }
 0x263   :  { %6308 = vmatpush.bf16.msra.mxu3 %v8204_v52  ;;  %v9504_v52 = vor.u32 %v10725_v30, %v9503_v33  ;;  %v8305_v33 = vld [vmem:[#allocation2 + $0xb9c] sm:$0xf0]  ;;  %v10613_v30 = vld [vmem:[#allocation2 + $0x117c] sm:$0xf]  ;;  %v8905_v58 = vld [vmem:[#allocation2 + $0x104c] sm:$0xf0] }
 0x264   :  { %6321 = vmatpush.bf16.msrb.mxu0 %v9004_v1  ;;  %v6903_v1 = vld [vmem:[#allocation2 + $0x48] sm:$0xf]  ;;  %v10538_v21 = vld [vmem:[#allocation2 + $0xf24] sm:$0xf] }
 0x265   :  { %6334 = vmatpush.bf16.msrb.mxu1 %v9804_v2  ;;  %v6030_v2 = vadd.f32 %v6029_v62, %v6017_v49  ;;  %v9108_v49 = vor.u32 %v10613_v30, %v9105_v35  ;;  %v8805_v40 = vld [vmem:[#allocation2 + $0xf84] sm:$0xf0]  ;;  %v10738_v25 = vld [vmem:[#allocation2 + $0x1564] sm:$0xf]  ;;  %v8705_v30 = vld [vmem:[#allocation2 + $0xebc] sm:$0xf0] }
 0x266   :  { %6296 = vmatpush.bf16.msra.mxu2 %v7304_v53  ;;  %v10275_v53 = vld [vmem:[#allocation2 + $0x6e8] sm:$0xf0]  ;;  %v9505_v35 = vld [vmem:[#allocation2 + $0x14fc] sm:$0xf0] }
 0x267   :  { %6309 = vmatpush.bf16.msra.mxu3 %v8104_v47  ;;  %v4234_v47 = vpack.c.b16 %v3409_v22, %v3409_v22  ;;  %v6781_v15 = vrot.slane %v6030_v2, 6  ;;  %v7405_v22 = vld [vmem:[#allocation2 + $0x494] sm:$0xf0] }
 0x268   :  { %6322 = vmatpush.bf16.msrb.mxu0 %v8904_v19  ;;  %10046 = vmatmul.msk.bf16.vlgmr.msra.gmra.mxu1 %vm5041_vm2, %v11266_v42  ;;  %v6904_v19 = vor.u32 %v10075_v31, %v6903_v1  ;;  %v7408_v62 = vor.u32 %v10188_v38, %v7405_v22  ;;  %v7305_v1 = vld [vmem:[#allocation2 + $0x3cc] sm:$0xf0]  ;;  %v7005_v38 = vld [vmem:[#allocation2 + $0x174] sm:$0xf0]  ;;  %v3410_v22 = vunpack.c.h.b16 %v11279_v28 }
 0x269   :  { %6335 = vmatpush.bf16.msrb.mxu1 %v9704_v20  ;;  %v7704_v20 = vor.u32 %v10275_v53, %v7703_v39  ;;  %v5103_v54 = vand.u32 %v10953_v45, %v4234_v47  ;;  %v10363_v53 = vld [vmem:[#allocation2 + $0x9ac] sm:$0xf]  ;;  %v8105_v47 = vld [vmem:[#allocation2 + $0xa0c] sm:$0xf0]  ;;  %v7308_v18 = vor.u32 %v10163_v17, %v7305_v1  ;;  %v9405_v17 = vld [vmem:[#allocation2 + $0x1434] sm:$0xf0] }
 0x26a   :  { %6297 = vmatpush.bf16.msra.mxu2 %v7204_v5  ;;  %v11286_v5 = vsel %vm6790_vm3, %v11271_v6, %v6781_v15  ;;  %v6031_v6 = vpop.f32.mrf.mxu1  ;;  %v10763_v15 = vld [vmem:[#allocation2 + $0x162c] sm:$0xf]  ;;  %v6905_v28 = vld [vmem:[#allocation2 + $0xac] sm:$0xf0] }
 0x26b   :  { %6310 = vmatpush.bf16.msra.mxu3 %v8004_v11  ;;  %v7608_v11 = vor.u32 %v10238_v7, %v7605_v10  ;;  %v10563_v7 = vld [vmem:[#allocation2 + $0xfec] sm:$0xf]  ;;  %v10313_v6 = vld [vmem:[#allocation2 + $0x81c] sm:$0xf] }
 0x26c   :  { %6323 = vmatpush.bf16.msrb.mxu0 %v8804_v60  ;;  %v10213_v60 = vld [vmem:[#allocation2 + $0x4fc] sm:$0xf]  ;;  %v8908_v46 = vor.u32 %v10563_v7, %v8905_v58  ;;  %v10063_v1 = vld [vmem:[#allocation2 + $0x4c] sm:$0xf] }
 0x26d   :  { %6336 = vmatpush.bf16.msrb.mxu1 %v9604_v57  ;;  %v7505_v57 = vld [vmem:[#allocation2 + $0x55c] sm:$0xf0]  ;;  %v10263_v7 = vld [vmem:[#allocation2 + $0x68c] sm:$0xf] }
 0x26e   :  { %6298 = vmatpush.bf16.msra.mxu2 %v7104_v14  ;;  %v10008_v14 = vor.u32 %v10838_v13, %v10005_v24  ;;  %v7508_v29 = vor.u32 %v10213_v60, %v7505_v57  ;;  %v9605_v13 = vld [vmem:[#allocation2 + $0x15c4] sm:$0xf0]  ;;  %v10113_v24 = vld [vmem:[#allocation2 + $0x1dc] sm:$0xf]  ;;  %v8808_v57 = vor.u32 %v10538_v21, %v8805_v40  ;;  %v10463_v58 = vld [vmem:[#allocation2 + $0xccc] sm:$0xf] }
 0x26f   :  { %6311 = vmatpush.bf16.msra.mxu3 %v7904_v37  ;;  %v10413_v37 = vld [vmem:[#allocation2 + $0xb3c] sm:$0xf]  ;;  %v10451_v21 = vld [vmem:[#allocation2 + $0xc68] sm:$0xf0] }
 0x270   :  { %6324 = vmatpush.bf16.msrb.mxu0 %v8704_v50  ;;  %v8308_v48 = vor.u32 %v10413_v37, %v8305_v33  ;;  %v9908_v50 = vor.u32 %v10813_v51, %v9905_v27  ;;  %v10088_v27 = vld [vmem:[#allocation2 + $0x114] sm:$0xf]  ;;  %v10651_v40 = vld [vmem:[#allocation2 + $0x12a8] sm:$0xf0] }
 0x271   :  { %6337 = vmatpush.bf16.msrb.mxu1 %v9504_v52  ;;  %v10388_v52 = vld [vmem:[#allocation2 + $0xa74] sm:$0xf] }
 0x272   :  { %6299 = vmatpush.bf16.msra.mxu2 %v7004_v44  ;;  %v9005_v44 = vld [vmem:[#allocation2 + $0x1114] sm:$0xf0]  ;;  %v8208_v2 = vor.u32 %v10388_v52, %v8205_v55  ;;  %v10288_v55 = vld [vmem:[#allocation2 + $0x754] sm:$0xf] }
 0x273   :  { %6312 = vmatpush.bf16.msra.mxu3 %v7804_v43  ;;  %v10788_v43 = vld [vmem:[#allocation2 + $0x16f4] sm:$0xf]  ;;  %v9008_v31 = vor.u32 %v10588_v8, %v9005_v44  ;;  %v7805_v8 = vld [vmem:[#allocation2 + $0x7b4] sm:$0xf0]  ;;  %v7008_v44 = vor.u32 %v10088_v27, %v7005_v38  ;;  %v10826_v27 = vld [vmem:[#allocation2 + $0x1820] sm:$0xf0] }
 0x274   :  { %6325 = vmatpush.bf16.msrb.mxu0 %v8604_v3  ;;  %v9808_v39 = vor.u32 %v10788_v43, %v9805_v59  ;;  %v11293_v10 = vpop.f32.mrf.mxu0  ;;  %v9705_v3 = vld [vmem:[#allocation2 + $0x168c] sm:$0xf0]  ;;  %v8605_v43 = vld [vmem:[#allocation2 + $0xdf4] sm:$0xf0]  ;;  %v10688_v59 = vld [vmem:[#allocation2 + $0x13d4] sm:$0xf] }
 0x275   :  { %6338 = vmatpush.bf16.msrb.mxu1 %v9404_v9  ;;  %v11295_v9 = vpop.f32.mrf.mxu1  ;;  %v9708_v0 = vor.u32 %v10763_v15, %v9705_v3  ;;  %v6908_v15 = vor.u32 %v10063_v1, %v6905_v28  ;;  %v8505_v3 = vld [vmem:[#allocation2 + $0xd2c] sm:$0xf0]  ;;  %v900_v28 = vperm.slane %v11257_v41, 7 }
 0x276   :  { %6300 = vmatpush.bf16.msra.mxu2 %v6904_v19  ;;  %v7205_v19 = vld [vmem:[#allocation2 + $0x304] sm:$0xf0] }
 0x277   :  { %6313 = vmatpush.bf16.msra.mxu3 %v7704_v20  ;;  %v8108_v20 = vor.u32 %v10363_v53, %v8105_v47  ;;  %v7208_v23 = vor.u32 %v10138_v16, %v7205_v19  ;;  %v9408_v47 = vor.u32 %v10688_v59, %v9405_v17  ;;  %v10663_v16 = vld [vmem:[#allocation2 + $0x130c] sm:$0xf]  ;;  %v9305_v19 = vld [vmem:[#allocation2 + $0x136c] sm:$0xf0]  ;;  %v10801_v59 = vld [vmem:[#allocation2 + $0x1758] sm:$0xf0] }
 0x278   :  { %6326 = vmatpush.bf16.msrb.mxu0 %v8504_v56  ;;  %v11297_v61 = vpop.f32.mrf.mxu2  ;;  %v7105_v56 = vld [vmem:[#allocation2 + $0x23c] sm:$0xf0] }
 0x279   :  { %6339 = vmatpush.bf16.msrb.mxu1 %v9304_v32  ;;  %6301 = vmatmul.bf16.vlgmr.msra.gmra.mxu2 %v11248_v12  ;;  %v11299_v60 = vpop.f32.mrf.mxu3  ;;  %v7108_v33 = vor.u32 %v10113_v24, %v7105_v56  ;;  %v10851_v24 = vld [vmem:[#allocation2 + $0x18e8] sm:$0xf0] }
 0x27a   :  { %6352 = vmatpush.bf16.msrb.mxu2 %v5103_v54  ;;  %6314 = vmatmul.bf16.vlgmr.msra.gmra.mxu3 %v11263_v63  ;;  %v8005_v54 = vld [vmem:[#allocation2 + $0x944] sm:$0xf0] }
 0x27b   :  { %6358 = vmatpush.bf16.msrb.mxu3 %v7608_v11  ;;  %6327 = vmatmul.bf16.vlgmr.msrb.gmra.mxu0 %v11251_v4  ;;  %v10338_v11 = vld [vmem:[#allocation2 + $0x8e4] sm:$0xf] }
 0x27c   :  { %6371 = vmatpush.bf16.msra.mxu0 %v8408_v26  ;;  %6340 = vmatmul.bf16.vlgmr.msrb.gmra.mxu1 %v11260_v36  ;;  %v8008_v32 = vor.u32 %v10338_v11, %v8005_v54  ;;  %v9608_v26 = vor.u32 %v10738_v25, %v9605_v13  ;;  %v6070_v37 = vpop.f32.mrf.mxu0  ;;  %v8411_v11 = vld [vmem:[#allocation2 + $0xc08] sm:$0xf]  ;;  %v8508_v25 = vor.u32 %v10463_v58, %v8505_v3  ;;  %v8911_v58 = vld [vmem:[#allocation2 + $0xff0] sm:$0xf] }
 0x27d   :  { %6384 = vmatpush.bf16.msra.mxu1 %v9208_v34  ;;  %v7905_v34 = vld [vmem:[#allocation2 + $0x87c] sm:$0xf0]  ;;  %v6083_v51 = vpop.f32.mrf.mxu1  ;;  %v10011_v13 = vld [vmem:[#allocation2 + $0x1888] sm:$0xf]  ;;  %v9711_v3 = vld [vmem:[#allocation2 + $0x1630] sm:$0xf] }
 0x27e   :  { %6397 = vmatpush.bf16.msra.mxu2 %v10008_v14  ;;  %v10513_v14 = vld [vmem:[#allocation2 + $0xe5c] sm:$0xf]  ;;  %v8311_v37 = vld [vmem:[#allocation2 + $0xb40] sm:$0xf] }
 0x27f   :  { %6359 = vmatpush.bf16.msrb.mxu3 %v7508_v29  ;;  %v10713_v29 = vld [vmem:[#allocation2 + $0x149c] sm:$0xf]  ;;  %v9911_v51 = vld [vmem:[#allocation2 + $0x17c0] sm:$0xf] }
 0x280   :  { %6372 = vmatpush.bf16.msra.mxu0 %v8308_v48  ;;  %v7908_v48 = vor.u32 %v10313_v6, %v7905_v34  ;;  %v6044_v52 = vpop.f32.mrf.mxu2  ;;  %v7511_v34 = vld [vmem:[#allocation2 + $0x500] sm:$0xf] }
 0x281   :  { %6385 = vmatpush.bf16.msra.mxu1 %v9108_v49  ;;  %v8708_v49 = vor.u32 %v10513_v14, %v8705_v30  ;;  %v10226_v14 = vld [vmem:[#allocation2 + $0x560] sm:$0xf0]  ;;  %v8211_v52 = vld [vmem:[#allocation2 + $0xa78] sm:$0xf] }
 0x282   :  { %6398 = vmatpush.bf16.msra.mxu2 %v9908_v50  ;;  %v9508_v50 = vor.u32 %v10713_v29, %v9505_v35  ;;  %v10426_v30 = vld [vmem:[#allocation2 + $0xba0] sm:$0xf0]  ;;  %v9111_v29 = vld [vmem:[#allocation2 + $0x1180] sm:$0xf]  ;;  %v7512_v38 = vor.u32 %v10226_v14, %v7511_v34 }
 0x283   :  { %6360 = vmatpush.bf16.msrb.mxu3 %v7408_v62  ;;  %v10488_v62 = vld [vmem:[#allocation2 + $0xd94] sm:$0xf]  ;;  %v10626_v35 = vld [vmem:[#allocation2 + $0x11e0] sm:$0xf0] }
 0x284   :  { %6373 = vmatpush.bf16.msra.mxu0 %v8208_v2  ;;  %v4235_v2 = vpack.c.b16 %v3410_v22, %v3410_v22  ;;  %v8608_v53 = vor.u32 %v10488_v62, %v8605_v43  ;;  %v8312_v22 = vor.u32 %v10426_v30, %v8311_v37  ;;  %v9011_v62 = vld [vmem:[#allocation2 + $0x10b8] sm:$0xf]  ;;  %v7111_v37 = vld [vmem:[#allocation2 + $0x1e0] sm:$0xf] }
 0x285   :  { %6386 = vmatpush.bf16.msra.mxu1 %v9008_v31  ;;  %v7808_v31 = vor.u32 %v10288_v55, %v7805_v8  ;;  %v9912_v55 = vor.u32 %v10826_v27, %v9911_v51  ;;  %v10401_v8 = vld [vmem:[#allocation2 + $0xad8] sm:$0xf0]  ;;  %v9811_v43 = vld [vmem:[#allocation2 + $0x16f8] sm:$0xf]  ;;  %v7911_v30 = vld [vmem:[#allocation2 + $0x820] sm:$0xf] }
 0x286   :  { %6399 = vmatpush.bf16.msra.mxu2 %v9808_v39  ;;  %v6057_v39 = vpop.f32.mrf.mxu3  ;;  %v10326_v51 = vld [vmem:[#allocation2 + $0x880] sm:$0xf0]  ;;  %v8711_v27 = vld [vmem:[#allocation2 + $0xe60] sm:$0xf] }
 0x287   :  { %6361 = vmatpush.bf16.msrb.mxu3 %v7308_v18  ;;  %v7705_v18 = vld [vmem:[#allocation2 + $0x6ec] sm:$0xf0]  ;;  %v10176_v39 = vld [vmem:[#allocation2 + $0x3d0] sm:$0xf0] }
 0x288   :  { %6374 = vmatpush.bf16.msra.mxu0 %v8108_v20  ;;  %v5106_v20 = vand.u32 %v10953_v45, %v4235_v2  ;;  %v7708_v54 = vor.u32 %v10263_v7, %v7705_v18  ;;  %v11305_v56 = vpop.f32.mrf.mxu2  ;;  %v8212_v2 = vor.u32 %v10401_v8, %v8211_v52  ;;  %v9812_v7 = vor.u32 %v10801_v59, %v9811_v43  ;;  %v10376_v18 = vld [vmem:[#allocation2 + $0xa10] sm:$0xf0]  ;;  %v7811_v43 = vld [vmem:[#allocation2 + $0x758] sm:$0xf]  ;;  %v10301_v59 = vld [vmem:[#allocation2 + $0x7b8] sm:$0xf0] }
 0x289   :  { %6387 = vmatpush.bf16.msra.mxu1 %v8908_v46  ;;  %10047 = vmatmul.msk.bf16.vlgmr.msrb.gmra.mxu2 %vm5041_vm2, %v11266_v42  ;;  %v7611_v46 = vld [vmem:[#allocation2 + $0x5c8] sm:$0xf]  ;;  %v7912_v8 = vor.u32 %v10326_v51, %v7911_v30 }
 0x28a   :  { %6400 = vmatpush.bf16.msra.mxu2 %v9708_v0  ;;  %v10251_v0 = vld [vmem:[#allocation2 + $0x628] sm:$0xf0]  ;;  %v8313_v51 = vld [vmem:[#allocation2 + $0xba4] sm:$0xf0] }
 0x28b   :  { %6362 = vmatpush.bf16.msrb.mxu3 %v7208_v23  ;;  %v9211_v23 = vld [vmem:[#allocation2 + $0x1248] sm:$0xf] }
 0x28c   :  { %6375 = vmatpush.bf16.msra.mxu0 %v8008_v32  ;;  %v9308_v32 = vor.u32 %v10663_v16, %v9305_v19  ;;  %v9212_v6 = vor.u32 %v10651_v40, %v9211_v23  ;;  %v10776_v16 = vld [vmem:[#allocation2 + $0x1690] sm:$0xf0]  ;;  %v10351_v40 = vld [vmem:[#allocation2 + $0x948] sm:$0xf0] }
 0x28d   :  { %6388 = vmatpush.bf16.msra.mxu1 %v8808_v57  ;;  %v7612_v57 = vor.u32 %v10251_v0, %v7611_v46  ;;  %v9712_v23 = vor.u32 %v10776_v16, %v9711_v3 }
 0x28e   :  { %6401 = vmatpush.bf16.msra.mxu2 %v9608_v26  ;;  %v8412_v26 = vor.u32 %v10451_v21, %v8411_v11  ;;  %v7211_v11 = vld [vmem:[#allocation2 + $0x2a8] sm:$0xf] }
 0x28f   :  { %6363 = vmatpush.bf16.msrb.mxu3 %v7108_v33  ;;  %v10012_v33 = vor.u32 %v10851_v24, %v10011_v13  ;;  %v8011_v21 = vld [vmem:[#allocation2 + $0x8e8] sm:$0xf]  ;;  %v10551_v13 = vld [vmem:[#allocation2 + $0xf88] sm:$0xf0] }
 0x290   :  { %6376 = vmatpush.bf16.msra.mxu0 %v7908_v48  ;;  %v9112_v48 = vor.u32 %v10626_v35, %v9111_v29  ;;  %v6096_v17 = vpop.f32.mrf.mxu2  ;;  %v9611_v24 = vld [vmem:[#allocation2 + $0x1568] sm:$0xf]  ;;  %v8012_v34 = vor.u32 %v10351_v40, %v8011_v21  ;;  %v8413_v40 = vld [vmem:[#allocation2 + $0xc6c] sm:$0xf0] }
 0x291   :  { %6389 = vmatpush.bf16.msra.mxu1 %v8708_v49  ;;  %v7411_v49 = vld [vmem:[#allocation2 + $0x438] sm:$0xf] }
 0x292   :  { %6402 = vmatpush.bf16.msra.mxu2 %v9508_v50  ;;  %v10201_v50 = vld [vmem:[#allocation2 + $0x498] sm:$0xf0] }
 0x293   :  { %6364 = vmatpush.bf16.msrb.mxu3 %v7008_v44  ;;  %v899_v44 = vperm.slane %v11257_v41, 6  ;;  %v7412_v1 = vor.u32 %v10201_v50, %v7411_v49  ;;  %v10726_v49 = vld [vmem:[#allocation2 + $0x1500] sm:$0xf0] }
 0x294   :  { %6377 = vmatpush.bf16.msra.mxu0 %v7808_v31  ;;  %v7311_v31 = vld [vmem:[#allocation2 + $0x370] sm:$0xf] }
 0x295   :  { %6390 = vmatpush.bf16.msra.mxu1 %v8608_v53  ;;  %v8111_v53 = vld [vmem:[#allocation2 + $0x9b0] sm:$0xf]  ;;  %v7312_v19 = vor.u32 %v10176_v39, %v7311_v31 }
 0x296   :  { %6403 = vmatpush.bf16.msra.mxu2 %v9408_v47  ;;  %v6120_v47 = vpop.f32.mrf.mxu0  ;;  %v8112_v46 = vor.u32 %v10376_v18, %v8111_v53  ;;  %v6911_v39 = vld [vmem:[#allocation2 + $0x50] sm:$0xf]  ;;  %v10076_v53 = vld [vmem:[#allocation2 + $0xb0] sm:$0xf0] }
 0x297   :  { %6365 = vmatpush.bf16.msrb.mxu3 %v6908_v15  ;;  %v6133_v15 = vpop.f32.mrf.mxu1  ;;  %v6912_v21 = vor.u32 %v10076_v53, %v6911_v39 }
 0x298   :  { %6378 = vmatpush.bf16.msra.mxu0 %v7708_v54  ;;  %v10151_v54 = vld [vmem:[#allocation2 + $0x308] sm:$0xf0] }
 0x299   :  { %6391 = vmatpush.bf16.msra.mxu1 %v8508_v25  ;;  %v6107_v41 = vpop.f32.mrf.mxu3  ;;  %v8811_v25 = vld [vmem:[#allocation2 + $0xf28] sm:$0xf] }
 0x29a   :  { %6366 = vmatmul.bf16.vlgmr.msrb.gmra.mxu3 %v11248_v12  ;;  %6404 = vmatpush.bf16.msra.mxu2 %v9308_v32  ;;  %v10601_v12 = vld [vmem:[#allocation2 + $0x1118] sm:$0xf0]  ;;  %v10751_v32 = vld [vmem:[#allocation2 + $0x15c8] sm:$0xf0]  ;;  %v8812_v14 = vor.u32 %v10551_v13, %v8811_v25  ;;  %v9213_v13 = vld [vmem:[#allocation2 + $0x12ac] sm:$0xf0] }
 0x29b   :  { %6417 = vmatpush.bf16.msra.mxu3 %v5106_v20  ;;  %6379 = vmatmul.bf16.vlgmr.msra.gmra.mxu0 %v11263_v63  ;;  %v9012_v63 = vor.u32 %v10601_v12, %v9011_v62  ;;  %v6108_v20 = vadd.f32 %v6107_v41, %v900_v28  ;;  %v9612_v35 = vor.u32 %v10751_v32, %v9611_v24  ;;  %v11318_v28 = vld [vmem:[#allocation2 + $0x1950] sm:$0xff]  ;;  %v10639_v25 = vld [vmem:[#allocation2 + $0x124c] sm:$0xf] }
 0x29c   :  { %6423 = vmatpush.bf16.msrb.mxu0 %v7612_v57  ;;  %6392 = vmatmul.bf16.vlgmr.msra.gmra.mxu1 %v11251_v4  ;;  %v6043_v4 = vadd.f32 %v11297_v61, %v899_v44  ;;  %v7212_v57 = vor.u32 %v10151_v54, %v7211_v11  ;;  %v10101_v44 = vld [vmem:[#allocation2 + $0x178] sm:$0xf0]  ;;  %v3411_v3 = vunpack.c.l.b16 %v11318_v28  ;;  %v9311_v41 = vld [vmem:[#allocation2 + $0x1310] sm:$0xf]  ;;  %v10439_v11 = vld [vmem:[#allocation2 + $0xc0c] sm:$0xf]  ;;  %v9216_v30 = vor.u32 %v10639_v25, %v9213_v13 }
 0x29d   :  { %6436 = vmatpush.bf16.msrb.mxu1 %v8412_v26  ;;  %6405 = vmatmul.bf16.vlgmr.msra.gmra.mxu2 %v11260_v36  ;;  %v10576_v36 = vld [vmem:[#allocation2 + $0x1050] sm:$0xf0]  ;;  %v6146_v26 = vpop.f32.mrf.mxu2  ;;  %v10139_v25 = vld [vmem:[#allocation2 + $0x2ac] sm:$0xf]  ;;  %v7213_v13 = vld [vmem:[#allocation2 + $0x30c] sm:$0xf0] }
 0x29e   :  { %6449 = vmatpush.bf16.msrb.mxu2 %v9212_v6  ;;  %v8912_v0 = vor.u32 %v10576_v36, %v8911_v58  ;;  %v6056_v61 = vadd.f32 %v11299_v60, %v6043_v4  ;;  %v6121_v6 = vadd.f32 %v6120_v47, %v6108_v20  ;;  %v6122_v29 = vpop.f32.mrf.mxu0  ;;  %v7711_v36 = vld [vmem:[#allocation2 + $0x690] sm:$0xf]  ;;  %v4236_v32 = vpack.c.b16 %v3411_v3, %v3411_v3  ;;  %v10364_v3 = vld [vmem:[#allocation2 + $0x9b4] sm:$0xf] }
 0x29f   :  { %6462 = vmatpush.bf16.msrb.mxu3 %v10012_v33  ;;  %v10126_v33 = vld [vmem:[#allocation2 + $0x240] sm:$0xf0]  ;;  %v6135_v60 = vpop.f32.mrf.mxu1  ;;  %v8511_v4 = vld [vmem:[#allocation2 + $0xcd0] sm:$0xf]  ;;  %v7513_v29 = vld [vmem:[#allocation2 + $0x564] sm:$0xf0] }
 0x2a0   :  { %6424 = vmatpush.bf16.msrb.mxu0 %v7512_v38  ;;  %v10526_v38 = vld [vmem:[#allocation2 + $0xec0] sm:$0xf0]  ;;  %v7112_v52 = vor.u32 %v10126_v33, %v7111_v37  ;;  %v6134_v12 = vadd.f32 %v6133_v15, %v6121_v6  ;;  %v10276_v15 = vld [vmem:[#allocation2 + $0x6f0] sm:$0xf0]  ;;  %v10839_v6 = vld [vmem:[#allocation2 + $0x188c] sm:$0xf]  ;;  %v8416_v33 = vor.u32 %v10439_v11, %v8413_v40 }
 0x2a1   :  { %6437 = vmatpush.bf16.msrb.mxu1 %v8312_v22  ;;  %v6069_v22 = vadd.f32 %v11293_v10, %v6056_v61  ;;  %v6109_v50 = vpop.f32.mrf.mxu3  ;;  %v8712_v62 = vor.u32 %v10526_v38, %v8711_v27  ;;  %v8611_v10 = vld [vmem:[#allocation2 + $0xd98] sm:$0xf]  ;;  %v10614_v27 = vld [vmem:[#allocation2 + $0x1184] sm:$0xf]  ;;  %v9113_v38 = vld [vmem:[#allocation2 + $0x11e4] sm:$0xf0] }
 0x2a2   :  { %6450 = vmatpush.bf16.msrb.mxu2 %v9112_v48  ;;  %v9511_v48 = vld [vmem:[#allocation2 + $0x14a0] sm:$0xf]  ;;  %v6147_v58 = vadd.f32 %v6146_v26, %v6134_v12  ;;  %v10764_v11 = vld [vmem:[#allocation2 + $0x1634] sm:$0xf] }
 0x2a3   :  { %6463 = vmatpush.bf16.msrb.mxu3 %v9912_v55  ;;  %v7011_v55 = vld [vmem:[#allocation2 + $0x118] sm:$0xf]  ;;  %v9512_v17 = vor.u32 %v10726_v49, %v9511_v48  ;;  %v10814_v48 = vld [vmem:[#allocation2 + $0x17c4] sm:$0xf]  ;;  %v11328_v49 = vld [vmem:[%s11427_s2 + $0x10] sm:$0xff] }
 0x2a4   :  { %6425 = vmatpush.bf16.msrb.mxu0 %v7412_v1  ;;  %v10501_v1 = vld [vmem:[#allocation2 + $0xdf8] sm:$0xf0]  ;;  %v7012_v31 = vor.u32 %v10101_v44, %v7011_v55  ;;  %v7413_v12 = vld [vmem:[#allocation2 + $0x49c] sm:$0xf0] }
 0x2a5   :  { %6438 = vmatpush.bf16.msrb.mxu1 %v8212_v2  ;;  %v9411_v2 = vld [vmem:[#allocation2 + $0x13d8] sm:$0xf]  ;;  %v6148_v47 = vpop.f32.mrf.mxu2  ;;  %v8612_v18 = vor.u32 %v10501_v1, %v8611_v10 }
 0x2a6   :  { %6451 = vmatpush.bf16.msrb.mxu2 %v9012_v63  ;;  %v10701_v63 = vld [vmem:[#allocation2 + $0x1438] sm:$0xf0] }
 0x2a7   :  { %6464 = vmatpush.bf16.msrb.mxu3 %v9812_v7  ;;  %v7812_v7 = vor.u32 %v10301_v59, %v7811_v43  ;;  %v9412_v16 = vor.u32 %v10701_v63, %v9411_v2  ;;  %v9116_v43 = vor.u32 %v10614_v27, %v9113_v38  ;;  %v10389_v59 = vld [vmem:[#allocation2 + $0xa7c] sm:$0xf]  ;;  %v9013_v63 = vld [vmem:[#allocation2 + $0x111c] sm:$0xf0]  ;;  %v10114_v27 = vld [vmem:[#allocation2 + $0x1e4] sm:$0xf] }
 0x2a8   :  { %6426 = vmatpush.bf16.msrb.mxu0 %v7312_v19  ;;  %v10676_v19 = vld [vmem:[#allocation2 + $0x1370] sm:$0xf0]  ;;  %v11335_v10 = vld [vmem:[#allocation1] sm:$0xff]  ;;  %v7113_v38 = vld [vmem:[#allocation2 + $0x244] sm:$0xf0] }
 0x2a9   :  { %6439 = vmatpush.bf16.msrb.mxu1 %v8112_v46  ;;  %v10239_v46 = vld [vmem:[#allocation2 + $0x5cc] sm:$0xf]  ;;  %v6159_v54 = vpop.f32.mrf.mxu3  ;;  %v10589_v2 = vld [vmem:[#allocation2 + $0x10bc] sm:$0xf] }
 0x2aa   :  { %6452 = vmatpush.bf16.msrb.mxu2 %v8912_v0  ;;  %10048 = vmatmul.msk.bf16.vlgmr.msra.gmra.mxu3 %vm5041_vm2, %v11266_v42  ;;  %v6082_v42 = vadd.f32 %v11295_v9, %v6069_v22  ;;  %v10476_v9 = vld [vmem:[#allocation2 + $0xd30] sm:$0xf0]  ;;  %v7613_v0 = vld [vmem:[#allocation2 + $0x62c] sm:$0xf0]  ;;  %v6160_v61 = vadd.f32 %v6159_v54, %v6147_v58  ;;  %v5109_v22 = vand.u32 %v10953_v45, %v4236_v32  ;;  %v10789_v47 = vld [vmem:[#allocation2 + $0x16fc] sm:$0xf] }
 0x2ab   :  { %6465 = vmatpush.bf16.msrb.mxu3 %v9712_v23  ;;  %v7712_v23 = vor.u32 %v10276_v15, %v7711_v36  ;;  %v8512_v24 = vor.u32 %v10476_v9, %v8511_v4  ;;  %v7616_v26 = vor.u32 %v10239_v46, %v7613_v0  ;;  %v9016_v36 = vor.u32 %v10589_v2, %v9013_v63  ;;  %v10164_v15 = vld [vmem:[#allocation2 + $0x374] sm:$0xf]  ;;  %v7313_v4 = vld [vmem:[#allocation2 + $0x3d4] sm:$0xf0]  ;;  %v8013_v32 = vld [vmem:[#allocation2 + $0x94c] sm:$0xf0] }
 0x2ac   :  { %6427 = vmatpush.bf16.msrb.mxu0 %v7212_v57  ;;  %v6095_v20 = vadd.f32 %v11305_v56, %v6082_v42  ;;  %v9312_v57 = vor.u32 %v10676_v19, %v9311_v41  ;;  %v10013_v56 = vld [vmem:[#allocation2 + $0x18ec] sm:$0xf0]  ;;  %v6783_v37 = vrot.slane %v6160_v61, 2  ;;  %v901_v42 = vperm.slane %v11328_v49, 0  ;;  %v8113_v41 = vld [vmem:[#allocation2 + $0xa14] sm:$0xf0] }
 0x2ad   :  { %6440 = vmatpush.bf16.msrb.mxu1 %v8012_v34  ;;  %v10214_v34 = vld [vmem:[#allocation2 + $0x504] sm:$0xf]  ;;  %v10564_v19 = vld [vmem:[#allocation2 + $0xff4] sm:$0xf]  ;;  %v7316_v0 = vor.u32 %v10164_v15, %v7313_v4  ;;  %v9713_v54 = vld [vmem:[#allocation2 + $0x1694] sm:$0xf0]  ;;  %v3412_v4 = vunpack.c.h.b16 %v11318_v28 }
 0x2ae   :  { %6453 = vmatpush.bf16.msrb.mxu2 %v8812_v14  ;;  %v6782_v14 = vrot.slane %v6095_v20, 4  ;;  %v7516_v55 = vor.u32 %v10214_v34, %v7513_v29  ;;  %v8913_v20 = vld [vmem:[#allocation2 + $0x1054] sm:$0xf0]  ;;  %v10339_v61 = vld [vmem:[#allocation2 + $0x8ec] sm:$0xf]  ;;  %v9716_v34 = vor.u32 %v10764_v11, %v9713_v54  ;;  %v11348_v2 = vld [vmem:[#allocation1 + $0x24] sm:$0xff] }
 0x2af   :  { %6466 = vmatpush.bf16.msrb.mxu3 %v9612_v35  ;;  %v10414_v35 = vld [vmem:[#allocation2 + $0xb44] sm:$0xf]  ;;  %v8916_v40 = vor.u32 %v10564_v19, %v8913_v20  ;;  %v7813_v63 = vld [vmem:[#allocation2 + $0x7bc] sm:$0xf0]  ;;  %v10064_v15 = vld [vmem:[#allocation2 + $0x54] sm:$0xf] }
 0x2b0   :  { %6428 = vmatpush.bf16.msrb.mxu0 %v7112_v52  ;;  %v6802_v60 = vsel %vm6792_vm4, %v6782_v14, %v6783_v37  ;;  %v10016_v52 = vor.u32 %v10839_v6, %v10013_v56  ;;  %v8316_v44 = vor.u32 %v10414_v35, %v8313_v51  ;;  %v7216_v37 = vor.u32 %v10139_v25, %v7213_v13  ;;  %v6913_v20 = vld [vmem:[#allocation2 + $0xb4] sm:$0xf0]  ;;  %v10464_v54 = vld [vmem:[#allocation2 + $0xcd4] sm:$0xf]  ;;  %v8419_v25 = vld [vmem:[#allocation2 + $0xc10] sm:$0xf] }
 0x2b1   :  { %6441 = vmatpush.bf16.msrb.mxu1 %v7912_v8  ;;  %v6803_v50 = vsel %vm5045_vm1, %v11286_v5, %v6802_v60  ;;  %v9913_v8 = vld [vmem:[#allocation2 + $0x1824] sm:$0xf0]  ;;  %v6161_v1 = vpop.f32.mrf.mxu3  ;;  %v8016_v35 = vor.u32 %v10339_v61, %v8013_v32  ;;  %v10314_v60 = vld [vmem:[#allocation2 + $0x824] sm:$0xf]  ;;  %v10452_v13 = vld [vmem:[#allocation2 + $0xc70] sm:$0xf0]  ;;  %v6916_v61 = vor.u32 %v10064_v15, %v6913_v20  ;;  %v4237_v32 = vpack.c.b16 %v3412_v4, %v3412_v4 }
 0x2b2   :  { %6454 = vmatpush.bf16.msrb.mxu2 %v8712_v62  ;;  %v10189_v62 = vld [vmem:[#allocation2 + $0x43c] sm:$0xf]  ;;  %6819 = vst [vmem:[%s11428_s3 + $0x18] sm:$0xff] %v6803_v50  ;;  %v11338_v5 = vld [vmem:[#allocation1 + $0x12] sm:$0xff]  ;;  %v9916_v39 = vor.u32 %v10814_v48, %v9913_v8  ;;  %v10514_v50 = vld [vmem:[#allocation2 + $0xe64] sm:$0xf]  ;;  %v7116_v8 = vor.u32 %v10114_v27, %v7113_v38 }
 0x2b3   :  { %6467 = vmatpush.bf16.msrb.mxu3 %v9512_v17  ;;  %v8213_v17 = vld [vmem:[#allocation2 + $0xadc] sm:$0xf0]  ;;  %v7416_v53 = vor.u32 %v10189_v62, %v7413_v12  ;;  %v7913_v48 = vld [vmem:[#allocation2 + $0x884] sm:$0xf0]  ;;  %v10714_v62 = vld [vmem:[#allocation2 + $0x14a4] sm:$0xf] }
 0x2b4   :  { %6429 = vmatpush.bf16.msrb.mxu0 %v7012_v31  ;;  %v11342_v31 = vld [vmem:[#allocation1 + $0x1b] sm:$0xff]  ;;  %v8216_v58 = vor.u32 %v10389_v59, %v8213_v17  ;;  %v9513_v12 = vld [vmem:[#allocation2 + $0x1504] sm:$0xf0]  ;;  %v10089_v59 = vld [vmem:[#allocation2 + $0x11c] sm:$0xf] }
 0x2b5   :  { %6442 = vmatpush.bf16.msrb.mxu1 %v7812_v7  ;;  %v9813_v7 = vld [vmem:[#allocation2 + $0x175c] sm:$0xf0]  ;;  %v10289_v1 = vld [vmem:[#allocation2 + $0x75c] sm:$0xf]  ;;  %v10427_v27 = vld [vmem:[#allocation2 + $0xba8] sm:$0xf0] }
 0x2b6   :  { %6455 = vmatpush.bf16.msrb.mxu2 %v8612_v18  ;;  %v6172_v18 = vpop.f32.mrf.mxu0  ;;  %v9816_v46 = vor.u32 %v10789_v47, %v9813_v7  ;;  %v7013_v17 = vld [vmem:[#allocation2 + $0x17c] sm:$0xf0]  ;;  %v9516_v7 = vor.u32 %v10714_v62, %v9513_v12  ;;  %v10802_v15 = vld [vmem:[#allocation2 + $0x1760] sm:$0xf0]  ;;  %v10177_v4 = vld [vmem:[#allocation2 + $0x3d8] sm:$0xf0] }
 0x2b7   :  { %6468 = vmatpush.bf16.msrb.mxu3 %v9412_v16  ;;  %v11345_v16 = vld [vmem:[#allocation1 + $0x9] sm:$0xff]  ;;  %v6173_v9 = vadd.f32 %v6172_v18, %v901_v42  ;;  %v7016_v18 = vor.u32 %v10089_v59, %v7013_v17 }
 0x2b8   :  { %6430 = vmatpush.bf16.msrb.mxu0 %v6912_v21  ;;  %v6185_v21 = vpop.f32.mrf.mxu1  ;;  %v7419_v12 = vld [vmem:[#allocation2 + $0x440] sm:$0xf]  ;;  %v10202_v59 = vld [vmem:[#allocation2 + $0x4a0] sm:$0xf0] }
 0x2b9   :  { %6443 = vmatpush.bf16.msrb.mxu1 %v7712_v23  ;;  %v8116_v23 = vor.u32 %v10364_v3, %v8113_v41  ;;  %v7816_v41 = vor.u32 %v10289_v1, %v7813_v63  ;;  %v8219_v17 = vld [vmem:[#allocation2 + $0xa80] sm:$0xf]  ;;  %v10402_v1 = vld [vmem:[#allocation2 + $0xae0] sm:$0xf0] }
 0x2ba   :  { %6456 = vmatpush.bf16.msrb.mxu2 %v8512_v24  ;;  %v6186_v24 = vadd.f32 %v6185_v21, %v6173_v9  ;;  %v8513_v21 = vld [vmem:[#allocation2 + $0xd34] sm:$0xf0] }
 0x2bb   :  { %6469 = vmatpush.bf16.msrb.mxu3 %v9312_v57  ;;  %6431 = vmatmul.bf16.vlgmr.msrb.gmra.mxu0 %v11335_v10  ;;  %v10539_v57 = vld [vmem:[#allocation2 + $0xf2c] sm:$0xf] }
 0x2bc   :  { %6482 = vmatpush.bf16.msra.mxu0 %v5109_v22  ;;  %6444 = vmatmul.bf16.vlgmr.msrb.gmra.mxu1 %v11345_v16  ;;  %v6198_v6 = vpop.f32.mrf.mxu2 }
 0x2bd   :  { %6488 = vmatpush.bf16.msra.mxu1 %v7616_v26  ;;  %6457 = vmatmul.bf16.vlgmr.msrb.gmra.mxu2 %v11338_v5  ;;  %v8813_v26 = vld [vmem:[#allocation2 + $0xf8c] sm:$0xf0]  ;;  %v6199_v56 = vadd.f32 %v6198_v6, %v6186_v24  ;;  %v6211_v14 = vpop.f32.mrf.mxu3  ;;  %v10664_v24 = vld [vmem:[#allocation2 + $0x1314] sm:$0xf]  ;;  %v9313_v6 = vld [vmem:[#allocation2 + $0x1374] sm:$0xf0] }
 0x2be   :  { %6501 = vmatpush.bf16.msra.mxu2 %v8416_v33  ;;  %6470 = vmatmul.bf16.vlgmr.msrb.gmra.mxu3 %v11342_v31  ;;  %v10739_v33 = vld [vmem:[#allocation2 + $0x156c] sm:$0xf]  ;;  %v6174_v29 = vpop.f32.mrf.mxu0  ;;  %v8816_v51 = vor.u32 %v10539_v57, %v8813_v26  ;;  %v8516_v26 = vor.u32 %v10464_v54, %v8513_v21  ;;  %v9316_v38 = vor.u32 %v10664_v24, %v9313_v6  ;;  %v8819_v6 = vld [vmem:[#allocation2 + $0xf30] sm:$0xf] }
 0x2bf   :  { %6514 = vmatpush.bf16.msra.mxu3 %v9216_v30  ;;  %v9613_v30 = vld [vmem:[#allocation2 + $0x15cc] sm:$0xf0]  ;;  %v6212_v22 = vadd.f32 %v6211_v14, %v6199_v56  ;;  %v10852_v29 = vld [vmem:[#allocation2 + $0x18f0] sm:$0xf0] }
 0x2c0   :  { %6527 = vmatpush.bf16.msrb.mxu0 %v10016_v52  ;;  %v8713_v52 = vld [vmem:[#allocation2 + $0xec4] sm:$0xf0]  ;;  %v6187_v42 = vpop.f32.mrf.mxu1  ;;  %v9219_v56 = vld [vmem:[#allocation2 + $0x1250] sm:$0xf] }
 0x2c1   :  { %6489 = vmatpush.bf16.msra.mxu1 %v7516_v55  ;;  %v9616_v55 = vor.u32 %v10739_v33, %v9613_v30  ;;  %v7519_v33 = vld [vmem:[#allocation2 + $0x508] sm:$0xf]  ;;  %v10019_v30 = vld [vmem:[#allocation2 + $0x1890] sm:$0xf] }
 0x2c2   :  { %6502 = vmatpush.bf16.msra.mxu2 %v8316_v44  ;;  %v7916_v44 = vor.u32 %v10314_v60, %v7913_v48  ;;  %v5112_v60 = vand.u32 %v10953_v45, %v4237_v32  ;;  %v10020_v48 = vor.u32 %v10852_v29, %v10019_v30  ;;  %v9619_v30 = vld [vmem:[#allocation2 + $0x1570] sm:$0xf]  ;;  %v10752_v29 = vld [vmem:[#allocation2 + $0x15d0] sm:$0xf0] }
 0x2c3   :  { %6515 = vmatpush.bf16.msra.mxu3 %v9116_v43  ;;  %v8716_v43 = vor.u32 %v10514_v50, %v8713_v52  ;;  %v9119_v50 = vld [vmem:[#allocation2 + $0x1188] sm:$0xf]  ;;  %v10627_v52 = vld [vmem:[#allocation2 + $0x11e8] sm:$0xf0] }
 0x2c4   :  { %6528 = vmatpush.bf16.msrb.mxu0 %v9916_v39  ;;  %v10489_v39 = vld [vmem:[#allocation2 + $0xd9c] sm:$0xf]  ;;  %v6200_v47 = vpop.f32.mrf.mxu2  ;;  %v9120_v42 = vor.u32 %v10627_v52, %v9119_v50  ;;  %v9620_v52 = vor.u32 %v10752_v29, %v9619_v30  ;;  %v10840_v30 = vld [vmem:[#allocation2 + $0x1894] sm:$0xf]  ;;  %v10021_v29 = vld [vmem:[#allocation2 + $0x18f4] sm:$0xf0] }
 0x2c5   :  { %6490 = vmatpush.bf16.msra.mxu1 %v7416_v53  ;;  %v8613_v53 = vld [vmem:[#allocation2 + $0xdfc] sm:$0xf0]  ;;  %v6213_v3 = vpop.f32.mrf.mxu3 }
 0x2c6   :  { %6503 = vmatpush.bf16.msra.mxu2 %v8216_v58  ;;  %v10689_v58 = vld [vmem:[#allocation2 + $0x13dc] sm:$0xf]  ;;  %v6224_v9 = vpop.f32.mrf.mxu0  ;;  %v8616_v19 = vor.u32 %v10489_v39, %v8613_v53  ;;  %v9019_v39 = vld [vmem:[#allocation2 + $0x10c0] sm:$0xf]  ;;  %v10602_v53 = vld [vmem:[#allocation2 + $0x1120] sm:$0xf0] }
 0x2c7   :  { %6516 = vmatpush.bf16.msra.mxu3 %v9016_v36  ;;  %v9413_v36 = vld [vmem:[#allocation2 + $0x143c] sm:$0xf0]  ;;  %v11353_v11 = vadd.f32 %v6224_v9, %v6212_v22  ;;  %v8119_v3 = vld [vmem:[#allocation2 + $0x9b8] sm:$0xf]  ;;  %v10377_v9 = vld [vmem:[#allocation2 + $0xa18] sm:$0xf0] }
 0x2c8   :  { %6529 = vmatpush.bf16.msrb.mxu0 %v9816_v46  ;;  %v10264_v46 = vld [vmem:[#allocation2 + $0x694] sm:$0xf]  ;;  %v9416_v28 = vor.u32 %v10689_v58, %v9413_v36  ;;  %v7319_v58 = vld [vmem:[#allocation2 + $0x378] sm:$0xf]  ;;  %v9819_v36 = vld [vmem:[#allocation2 + $0x1700] sm:$0xf]  ;;  %v8120_v21 = vor.u32 %v10377_v9, %v8119_v3 }
 0x2c9   :  { %6491 = vmatpush.bf16.msra.mxu1 %v7316_v0  ;;  %v7713_v0 = vld [vmem:[#allocation2 + $0x6f4] sm:$0xf0]  ;;  %v9820_v20 = vor.u32 %v10802_v15, %v9819_v36  ;;  %v7320_v54 = vor.u32 %v10177_v4, %v7319_v58  ;;  %v8619_v58 = vld [vmem:[#allocation2 + $0xda0] sm:$0xf]  ;;  %v10502_v36 = vld [vmem:[#allocation2 + $0xe00] sm:$0xf0] }
 0x2ca   :  { %6504 = vmatpush.bf16.msra.mxu2 %v8116_v23  ;;  %v7619_v23 = vld [vmem:[#allocation2 + $0x5d0] sm:$0xf]  ;;  %v7716_v57 = vor.u32 %v10264_v46, %v7713_v0  ;;  %v8919_v46 = vld [vmem:[#allocation2 + $0xff8] sm:$0xf]  ;;  %v10577_v0 = vld [vmem:[#allocation2 + $0x1058] sm:$0xf0] }
 0x2cb   :  { %6517 = vmatpush.bf16.msra.mxu3 %v8916_v40  ;;  %10049 = vmatmul.msk.bf16.vlgmr.msra.gmra.mxu0 %vm5041_vm2, %v11348_v2  ;;  %v10252_v40 = vld [vmem:[#allocation2 + $0x630] sm:$0xf0]  ;;  %v6919_v9 = vld [vmem:[#allocation2 + $0x58] sm:$0xf] }
 0x2cc   :  { %6530 = vmatpush.bf16.msrb.mxu0 %v9716_v34  ;;  %v10652_v34 = vld [vmem:[#allocation2 + $0x12b0] sm:$0xf0]  ;;  %v7620_v14 = vor.u32 %v10252_v40, %v7619_v23  ;;  %v7219_v23 = vld [vmem:[#allocation2 + $0x2b0] sm:$0xf]  ;;  %v9719_v40 = vld [vmem:[#allocation2 + $0x1638] sm:$0xf] }
 0x2cd   :  { %6492 = vmatpush.bf16.msra.mxu1 %v7216_v37  ;;  %v8420_v37 = vor.u32 %v10452_v13, %v8419_v25  ;;  %v9220_v22 = vor.u32 %v10652_v34, %v9219_v56  ;;  %v10777_v25 = vld [vmem:[#allocation2 + $0x1698] sm:$0xf0]  ;;  %v10152_v13 = vld [vmem:[#allocation2 + $0x310] sm:$0xf0] }
 0x2ce   :  { %6505 = vmatpush.bf16.msra.mxu2 %v8016_v35  ;;  %v10227_v35 = vld [vmem:[#allocation2 + $0x568] sm:$0xf0]  ;;  %v10552_v56 = vld [vmem:[#allocation2 + $0xf90] sm:$0xf0] }
 0x2cf   :  { %6518 = vmatpush.bf16.msra.mxu3 %v8816_v51  ;;  %v8319_v51 = vld [vmem:[#allocation2 + $0xb48] sm:$0xf]  ;;  %v8820_v50 = vor.u32 %v10552_v56, %v8819_v6  ;;  %v10477_v6 = vld [vmem:[#allocation2 + $0xd38] sm:$0xf0]  ;;  %v10440_v56 = vld [vmem:[#allocation2 + $0xc14] sm:$0xf] }
 0x2d0   :  { %6531 = vmatpush.bf16.msrb.mxu0 %v9616_v55  ;;  %v6226_v55 = vpop.f32.mrf.mxu0  ;;  %v8320_v62 = vor.u32 %v10427_v27, %v8319_v51  ;;  %v7919_v51 = vld [vmem:[#allocation2 + $0x828] sm:$0xf]  ;;  %v10327_v27 = vld [vmem:[#allocation2 + $0x888] sm:$0xf0] }
 0x2d1   :  { %6493 = vmatpush.bf16.msra.mxu1 %v7116_v8  ;;  %v7520_v8 = vor.u32 %v10227_v35, %v7519_v33  ;;  %v7119_v33 = vld [vmem:[#allocation2 + $0x1e8] sm:$0xf]  ;;  %v10127_v35 = vld [vmem:[#allocation2 + $0x248] sm:$0xf0] }
 0x2d2   :  { %6506 = vmatpush.bf16.msra.mxu2 %v7916_v44  ;;  %v9919_v44 = vld [vmem:[#allocation2 + $0x17c8] sm:$0xf] }
 0x2d3   :  { %6519 = vmatpush.bf16.msra.mxu3 %v8716_v43  ;;  %v10827_v43 = vld [vmem:[#allocation2 + $0x1828] sm:$0xf0]  ;;  %v8719_v55 = vld [vmem:[#allocation2 + $0xe68] sm:$0xf] }
 0x2d4   :  { %6532 = vmatpush.bf16.msrb.mxu0 %v9516_v7  ;;  %v9920_v63 = vor.u32 %v10827_v43, %v9919_v44  ;;  %v7420_v7 = vor.u32 %v10202_v59, %v7419_v12  ;;  %v7920_v12 = vor.u32 %v10327_v27, %v7919_v51  ;;  %v7019_v44 = vld [vmem:[#allocation2 + $0x120] sm:$0xf]  ;;  %v9519_v43 = vld [vmem:[#allocation2 + $0x14a8] sm:$0xf]  ;;  %v10727_v59 = vld [vmem:[#allocation2 + $0x1508] sm:$0xf0] }
 0x2d5   :  { %6494 = vmatpush.bf16.msra.mxu1 %v7016_v18  ;;  %v6237_v47 = vpop.f32.mrf.mxu1  ;;  %v8220_v18 = vor.u32 %v10402_v1, %v8219_v17  ;;  %v10102_v1 = vld [vmem:[#allocation2 + $0x180] sm:$0xf0]  ;;  %v10677_v51 = vld [vmem:[#allocation2 + $0x1378] sm:$0xf0]  ;;  %v10215_v27 = vld [vmem:[#allocation2 + $0x50c] sm:$0xf] }
 0x2d6   :  { %6507 = vmatpush.bf16.msra.mxu2 %v7816_v41  ;;  %v902_v41 = vperm.slane %v11328_v49, 1  ;;  %v7020_v4 = vor.u32 %v10102_v1, %v7019_v44  ;;  %v8321_v44 = vld [vmem:[#allocation2 + $0xbac] sm:$0xf0]  ;;  %v10190_v1 = vld [vmem:[#allocation2 + $0x444] sm:$0xf] }
 0x2d7   :  { %6520 = vmatpush.bf16.msra.mxu3 %v8616_v19  ;;  %v9020_v19 = vor.u32 %v10602_v53, %v9019_v39 }
 0x2d8   :  { %6533 = vmatpush.bf16.msrb.mxu0 %v9416_v28  ;;  %v8019_v28 = vld [vmem:[#allocation2 + $0x8f0] sm:$0xf]  ;;  %v6276_v24 = vpop.f32.mrf.mxu0  ;;  %v6238_v32 = vadd.f32 %v6237_v47, %v902_v41  ;;  %v9419_v41 = vld [vmem:[#allocation2 + $0x13e0] sm:$0xf] }
 0x2d9   :  { %6495 = vmatpush.bf16.msra.mxu1 %v6916_v61  ;;  %v10352_v61 = vld [vmem:[#allocation2 + $0x950] sm:$0xf0] }
 0x2da   :  { %6508 = vmatpush.bf16.msra.mxu2 %v7716_v57  ;;  %v8920_v57 = vor.u32 %v10577_v0, %v8919_v46  ;;  %v10077_v46 = vld [vmem:[#allocation2 + $0xb8] sm:$0xf0]  ;;  %v7719_v0 = vld [vmem:[#allocation2 + $0x698] sm:$0xf] }
 0x2db   :  { %6521 = vmatpush.bf16.msra.mxu3 %v8516_v26  ;;  %v9720_v26 = vor.u32 %v10777_v25, %v9719_v40  ;;  %v7621_v40 = vld [vmem:[#allocation2 + $0x634] sm:$0xf0] }
 0x2dc   :  { %6496 = vmatmul.bf16.vlgmr.msra.gmra.mxu1 %v11335_v10  ;;  %6534 = vmatpush.bf16.msrb.mxu0 %v9316_v38  ;;  %v6250_v38 = vpop.f32.mrf.mxu2 }
 0x2dd   :  { %6547 = vmatpush.bf16.msrb.mxu1 %v5112_v60  ;;  %6509 = vmatmul.bf16.vlgmr.msra.gmra.mxu2 %v11345_v16  ;;  %v6239_v34 = vpop.f32.mrf.mxu1  ;;  %v6263_v60 = vpop.f32.mrf.mxu3 }
 0x2de   :  { %6553 = vmatpush.bf16.msrb.mxu2 %v7620_v14  ;;  %6522 = vmatmul.bf16.vlgmr.msra.gmra.mxu3 %v11338_v5  ;;  %v7220_v14 = vor.u32 %v10152_v13, %v7219_v23  ;;  %v10240_v23 = vld [vmem:[#allocation2 + $0x5d4] sm:$0xf]  ;;  %v8421_v34 = vld [vmem:[#allocation2 + $0xc74] sm:$0xf0] }
 0x2df   :  { %6566 = vmatpush.bf16.msrb.mxu3 %v8420_v37  ;;  %6535 = vmatmul.bf16.vlgmr.msrb.gmra.mxu0 %v11342_v31  ;;  %v8020_v37 = vor.u32 %v10352_v61, %v8019_v28  ;;  %v8620_v61 = vor.u32 %v10502_v36, %v8619_v58  ;;  %v8221_v58 = vld [vmem:[#allocation2 + $0xae4] sm:$0xf0]  ;;  %v10790_v36 = vld [vmem:[#allocation2 + $0x1704] sm:$0xf] }
 0x2e0   :  { %6579 = vmatpush.bf16.msra.mxu0 %v9220_v22  ;;  %v11361_v22 = vld [vmem:[#allocation2 + $0x1958] sm:$0xff]  ;;  %v6278_v53 = vpop.f32.mrf.mxu0 }
 0x2e1   :  { %6592 = vmatpush.bf16.msra.mxu1 %v10020_v48  ;;  %v6251_v48 = vadd.f32 %v6250_v38, %v6238_v32  ;;  %v3413_v39 = vunpack.c.l.b16 %v11361_v22  ;;  %v8519_v32 = vld [vmem:[#allocation2 + $0xcd8] sm:$0xf]  ;;  %v7521_v38 = vld [vmem:[#allocation2 + $0x56c] sm:$0xf0] }
 0x2e2   :  { %6554 = vmatpush.bf16.msrb.mxu2 %v7520_v8  ;;  %v10527_v8 = vld [vmem:[#allocation2 + $0xec8] sm:$0xf0] }
 0x2e3   :  { %6567 = vmatpush.bf16.msrb.mxu3 %v8320_v62  ;;  %v7120_v62 = vor.u32 %v10127_v35, %v7119_v33  ;;  %v6264_v17 = vadd.f32 %v6263_v60, %v6251_v48  ;;  %v9319_v35 = vld [vmem:[#allocation2 + $0x1318] sm:$0xf]  ;;  %v8520_v60 = vor.u32 %v10477_v6, %v8519_v32  ;;  %v10640_v48 = vld [vmem:[#allocation2 + $0x1254] sm:$0xf]  ;;  %v10565_v32 = vld [vmem:[#allocation2 + $0xffc] sm:$0xf] }
 0x2e4   :  { %6580 = vmatpush.bf16.msra.mxu0 %v9120_v42  ;;  %v7819_v42 = vld [vmem:[#allocation2 + $0x760] sm:$0xf]  ;;  %v6252_v25 = vpop.f32.mrf.mxu2 }
 0x2e5   :  { %6593 = vmatpush.bf16.msra.mxu1 %v9920_v63  ;;  %v10302_v63 = vld [vmem:[#allocation2 + $0x7c0] sm:$0xf0]  ;;  %v6277_v47 = vadd.f32 %v6276_v24, %v6264_v17  ;;  %v6289_v15 = vpop.f32.mrf.mxu1  ;;  %v6265_v13 = vpop.f32.mrf.mxu3 }
 0x2e6   :  { %6555 = vmatpush.bf16.msrb.mxu2 %v7420_v7  ;;  %v8720_v7 = vor.u32 %v10527_v8, %v8719_v55  ;;  %v7820_v3 = vor.u32 %v10302_v63, %v7819_v42  ;;  %v10024_v55 = vor.u32 %v10840_v30, %v10021_v29  ;;  %v7421_v42 = vld [vmem:[#allocation2 + $0x4a4] sm:$0xf0]  ;;  %v10615_v63 = vld [vmem:[#allocation2 + $0x118c] sm:$0xf]  ;;  %v10740_v30 = vld [vmem:[#allocation2 + $0x1574] sm:$0xf] }
 0x2e7   :  { %6568 = vmatpush.bf16.msrb.mxu3 %v8220_v18  ;;  %v9520_v18 = vor.u32 %v10727_v59, %v9519_v43  ;;  %v10815_v43 = vld [vmem:[#allocation2 + $0x17cc] sm:$0xf]  ;;  %v9921_v59 = vld [vmem:[#allocation2 + $0x182c] sm:$0xf0]  ;;  %v9621_v29 = vld [vmem:[#allocation2 + $0x15d4] sm:$0xf0] }
 0x2e8   :  { %6581 = vmatpush.bf16.msra.mxu0 %v9020_v19  ;;  %v10702_v19 = vld [vmem:[#allocation2 + $0x1440] sm:$0xf0] }
 0x2e9   :  { %6594 = vmatpush.bf16.msra.mxu1 %v9820_v20  ;;  %v6290_v20 = vadd.f32 %v6289_v15, %v6277_v47  ;;  %v9420_v24 = vor.u32 %v10702_v19, %v9419_v41  ;;  %v9924_v47 = vor.u32 %v10815_v43, %v9921_v59  ;;  %v9821_v15 = vld [vmem:[#allocation2 + $0x1764] sm:$0xf0]  ;;  %v10590_v41 = vld [vmem:[#allocation2 + $0x10c4] sm:$0xf] }
 0x2ea   :  { %6556 = vmatpush.bf16.msrb.mxu2 %v7320_v54  ;;  %v10277_v54 = vld [vmem:[#allocation2 + $0x6f8] sm:$0xf0]  ;;  %v9021_v19 = vld [vmem:[#allocation2 + $0x1124] sm:$0xf0]  ;;  %v10090_v59 = vld [vmem:[#allocation2 + $0x124] sm:$0xf] }
 0x2eb   :  { %6569 = vmatpush.bf16.msrb.mxu3 %v8120_v21  ;;  %v4238_v21 = vpack.c.b16 %v3413_v39, %v3413_v39  ;;  %v6784_v28 = vrot.slane %v6290_v20, 6  ;;  %v9121_v39 = vld [vmem:[#allocation2 + $0x11ec] sm:$0xf0]  ;;  %v9024_v13 = vor.u32 %v10590_v41, %v9021_v19  ;;  %v10490_v19 = vld [vmem:[#allocation2 + $0xda4] sm:$0xf] }
 0x2ec   :  { %6582 = vmatpush.bf16.msra.mxu0 %v8920_v57  ;;  %10050 = vmatmul.msk.bf16.vlgmr.msrb.gmra.mxu1 %vm5041_vm2, %v11348_v2  ;;  %v6920_v57 = vor.u32 %v10077_v46, %v6919_v9  ;;  %v7321_v9 = vld [vmem:[#allocation2 + $0x3dc] sm:$0xf0]  ;;  %v9824_v46 = vor.u32 %v10790_v36, %v9821_v15  ;;  %v7821_v36 = vld [vmem:[#allocation2 + $0x7c4] sm:$0xf0]  ;;  %v10690_v15 = vld [vmem:[#allocation2 + $0x13e4] sm:$0xf] }
 0x2ed   :  { %6595 = vmatpush.bf16.msra.mxu1 %v9720_v26  ;;  %v7720_v26 = vor.u32 %v10277_v54, %v7719_v0  ;;  %v5115_v33 = vand.u32 %v10953_v45, %v4238_v21  ;;  %v6291_v8 = vpop.f32.mrf.mxu1  ;;  %v10365_v0 = vld [vmem:[#allocation2 + $0x9bc] sm:$0xf]  ;;  %v8121_v21 = vld [vmem:[#allocation2 + $0xa1c] sm:$0xf0] }
 0x2ee   :  { %6557 = vmatpush.bf16.msrb.mxu2 %v7220_v14  ;;  %v11368_v14 = vsel %vm6790_vm3, %v11353_v11, %v6784_v28  ;;  %v10415_v11 = vld [vmem:[#allocation2 + $0xb4c] sm:$0xf]  ;;  %v10140_v28 = vld [vmem:[#allocation2 + $0x2b4] sm:$0xf]  ;;  %v7921_v8 = vld [vmem:[#allocation2 + $0x88c] sm:$0xf0] }
 0x2ef   :  { %6570 = vmatpush.bf16.msrb.mxu3 %v8020_v37  ;;  %v7624_v37 = vor.u32 %v10240_v23, %v7621_v40  ;;  %v8324_v53 = vor.u32 %v10415_v11, %v8321_v44  ;;  %v10765_v23 = vld [vmem:[#allocation2 + $0x163c] sm:$0xf]  ;;  %v9721_v40 = vld [vmem:[#allocation2 + $0x169c] sm:$0xf0] }
 0x2f0   :  { %6583 = vmatpush.bf16.msra.mxu0 %v8820_v50  ;;  %v9221_v50 = vld [vmem:[#allocation2 + $0x12b4] sm:$0xf0]  ;;  %v9724_v6 = vor.u32 %v10765_v23, %v9721_v40 }
 0x2f1   :  { %6596 = vmatpush.bf16.msra.mxu1 %v9620_v52  ;;  %v8424_v52 = vor.u32 %v10440_v56, %v8421_v34  ;;  %v9224_v17 = vor.u32 %v10640_v48, %v9221_v50  ;;  %v10340_v56 = vld [vmem:[#allocation2 + $0x8f4] sm:$0xf]  ;;  %v9624_v50 = vor.u32 %v10740_v30, %v9621_v29  ;;  %v8427_v30 = vld [vmem:[#allocation2 + $0xc18] sm:$0xf] }
 0x2f2   :  { %6558 = vmatpush.bf16.msrb.mxu2 %v7120_v62  ;;  %v9320_v62 = vor.u32 %v10677_v51, %v9319_v35  ;;  %v10115_v51 = vld [vmem:[#allocation2 + $0x1ec] sm:$0xf] }
 0x2f3   :  { %6571 = vmatpush.bf16.msrb.mxu3 %v7920_v12  ;;  %v7524_v12 = vor.u32 %v10215_v27, %v7521_v38  ;;  %v7121_v27 = vld [vmem:[#allocation2 + $0x24c] sm:$0xf0]  ;;  %v10540_v38 = vld [vmem:[#allocation2 + $0xf34] sm:$0xf] }
 0x2f4   :  { %6584 = vmatpush.bf16.msra.mxu0 %v8720_v7  ;;  %v10390_v7 = vld [vmem:[#allocation2 + $0xa84] sm:$0xf]  ;;  %v7124_v11 = vor.u32 %v10115_v51, %v7121_v27  ;;  %v10027_v51 = vld [vmem:[#allocation2 + $0x1898] sm:$0xf]  ;;  %v10853_v27 = vld [vmem:[#allocation2 + $0x18f8] sm:$0xf0] }
 0x2f5   :  { %6597 = vmatpush.bf16.msra.mxu1 %v9520_v18  ;;  %v7424_v18 = vor.u32 %v10190_v1, %v7421_v42  ;;  %v8224_v20 = vor.u32 %v10390_v7, %v8221_v58  ;;  %v3414_v1 = vunpack.c.h.b16 %v11361_v22  ;;  %v10290_v7 = vld [vmem:[#allocation2 + $0x764] sm:$0xf]  ;;  %v10065_v22 = vld [vmem:[#allocation2 + $0x5c] sm:$0xf] }
 0x2f6   :  { %6559 = vmatpush.bf16.msrb.mxu2 %v7020_v4  ;;  %v9124_v4 = vor.u32 %v10615_v63, %v9121_v39  ;;  %v10515_v63 = vld [vmem:[#allocation2 + $0xe6c] sm:$0xf]  ;;  %v8721_v39 = vld [vmem:[#allocation2 + $0xecc] sm:$0xf0] }
 0x2f7   :  { %6572 = vmatpush.bf16.msrb.mxu3 %v7820_v3  ;;  %v10165_v3 = vld [vmem:[#allocation2 + $0x37c] sm:$0xf]  ;;  %v4239_v41 = vpack.c.b16 %v3414_v1, %v3414_v1  ;;  %v9927_v1 = vld [vmem:[#allocation2 + $0x17d0] sm:$0xf] }
 0x2f8   :  { %6585 = vmatpush.bf16.msra.mxu0 %v8620_v61  ;;  %v7324_v54 = vor.u32 %v10165_v3, %v7321_v9  ;;  %v11375_v25 = vpop.f32.mrf.mxu0  ;;  %v7221_v61 = vld [vmem:[#allocation2 + $0x314] sm:$0xf0]  ;;  %v8724_v3 = vor.u32 %v10515_v63, %v8721_v39  ;;  %v6921_v9 = vld [vmem:[#allocation2 + $0xbc] sm:$0xf0] }
 0x2f9   :  { %6598 = vmatpush.bf16.msra.mxu1 %v9420_v24  ;;  %v11377_v24 = vpop.f32.mrf.mxu1  ;;  %v7224_v34 = vor.u32 %v10140_v28, %v7221_v61  ;;  %v6924_v40 = vor.u32 %v10065_v22, %v6921_v9  ;;  %v9321_v28 = vld [vmem:[#allocation2 + $0x137c] sm:$0xf0]  ;;  %v7627_v61 = vld [vmem:[#allocation2 + $0x5d8] sm:$0xf]  ;;  %v903_v22 = vperm.slane %v11328_v49, 2 }
 0x2fa   :  { %6560 = vmatpush.bf16.msrb.mxu2 %v6920_v57  ;;  %v8921_v57 = vld [vmem:[#allocation2 + $0x105c] sm:$0xf0] }
 0x2fb   :  { %6573 = vmatpush.bf16.msrb.mxu3 %v7720_v26  ;;  %v8124_v26 = vor.u32 %v10365_v0, %v8121_v21  ;;  %v8924_v35 = vor.u32 %v10565_v32, %v8921_v57  ;;  %v7721_v21 = vld [vmem:[#allocation2 + $0x6fc] sm:$0xf0]  ;;  %v10253_v57 = vld [vmem:[#allocation2 + $0x638] sm:$0xf0] }
 0x2fc   :  { %6586 = vmatpush.bf16.msra.mxu0 %v8520_v60  ;;  %v8821_v60 = vld [vmem:[#allocation2 + $0xf94] sm:$0xf0] }
 0x2fd   :  { %6561 = vmatmul.bf16.vlgmr.msrb.gmra.mxu2 %v11335_v10  ;;  %6599 = vmatpush.bf16.msra.mxu1 %v9320_v62  ;;  %v10715_v62 = vld [vmem:[#allocation2 + $0x14ac] sm:$0xf]  ;;  %v8824_v43 = vor.u32 %v10540_v38, %v8821_v60  ;;  %v7628_v60 = vor.u32 %v10253_v57, %v7627_v61  ;;  %v10778_v61 = vld [vmem:[#allocation2 + $0x16a0] sm:$0xf0] }
 0x2fe   :  { %6612 = vmatpush.bf16.msra.mxu2 %v5115_v33  ;;  %6574 = vmatmul.bf16.vlgmr.msrb.gmra.mxu3 %v11345_v16  ;;  %v8021_v33 = vld [vmem:[#allocation2 + $0x954] sm:$0xf0] }
 0x2ff   :  { %6618 = vmatpush.bf16.msra.mxu3 %v7624_v37  ;;  %6587 = vmatmul.bf16.vlgmr.msra.gmra.mxu0 %v11338_v5  ;;  %v11379_v37 = vpop.f32.mrf.mxu2  ;;  %v8024_v48 = vor.u32 %v10340_v56, %v8021_v33  ;;  %v5118_v56 = vand.u32 %v10953_v45, %v4239_v41  ;;  %v8521_v33 = vld [vmem:[#allocation2 + $0xd3c] sm:$0xf0] }
 0x300   :  { %6631 = vmatpush.bf16.msrb.mxu0 %v8424_v52  ;;  %6600 = vmatmul.bf16.vlgmr.msra.gmra.mxu1 %v11342_v31  ;;  %v10315_v52 = vld [vmem:[#allocation2 + $0x82c] sm:$0xf]  ;;  %v6330_v44 = vpop.f32.mrf.mxu0 }
 0x301   :  { %6644 = vmatpush.bf16.msrb.mxu1 %v9224_v17  ;;  %v7021_v17 = vld [vmem:[#allocation2 + $0x184] sm:$0xf0]  ;;  %v6343_v42 = vpop.f32.mrf.mxu1  ;;  %v9127_v44 = vld [vmem:[#allocation2 + $0x1190] sm:$0xf] }
 0x302   :  { %6657 = vmatpush.bf16.msrb.mxu2 %v10024_v55  ;;  %v11381_v55 = vpop.f32.mrf.mxu3  ;;  %v10828_v42 = vld [vmem:[#allocation2 + $0x1830] sm:$0xf0] }
 0x303   :  { %6619 = vmatpush.bf16.msra.mxu3 %v7524_v12  ;;  %v9521_v12 = vld [vmem:[#allocation2 + $0x150c] sm:$0xf0] }
 0x304   :  { %6632 = vmatpush.bf16.msrb.mxu0 %v8324_v53  ;;  %v7924_v53 = vor.u32 %v10315_v52, %v7921_v8  ;;  %v10228_v8 = vld [vmem:[#allocation2 + $0x570] sm:$0xf0] }
 0x305   :  { %6645 = vmatpush.bf16.msrb.mxu1 %v9124_v4  ;;  %v9421_v4 = vld [vmem:[#allocation2 + $0x1444] sm:$0xf0] }
 0x306   :  { %6658 = vmatpush.bf16.msrb.mxu2 %v9924_v47  ;;  %v9524_v47 = vor.u32 %v10715_v62, %v9521_v12  ;;  %v9424_v0 = vor.u32 %v10690_v15, %v9421_v4  ;;  %v10028_v12 = vor.u32 %v10853_v27, %v10027_v51  ;;  %v8227_v15 = vld [vmem:[#allocation2 + $0xa88] sm:$0xf]  ;;  %v8027_v51 = vld [vmem:[#allocation2 + $0x8f8] sm:$0xf]  ;;  %v10353_v27 = vld [vmem:[#allocation2 + $0x958] sm:$0xf0] }
 0x307   :  { %6620 = vmatpush.bf16.msra.mxu3 %v7424_v18  ;;  %v7024_v18 = vor.u32 %v10090_v59, %v7021_v17  ;;  %v6304_v58 = vpop.f32.mrf.mxu2  ;;  %v8327_v59 = vld [vmem:[#allocation2 + $0xb50] sm:$0xf]  ;;  %v10428_v17 = vld [vmem:[#allocation2 + $0xbb0] sm:$0xf0]  ;;  %v9827_v4 = vld [vmem:[#allocation2 + $0x1708] sm:$0xf] }
 0x308   :  { %6633 = vmatpush.bf16.msrb.mxu0 %v8224_v20  ;;  %v8621_v20 = vld [vmem:[#allocation2 + $0xe04] sm:$0xf0] }
 0x309   :  { %6646 = vmatpush.bf16.msrb.mxu1 %v9024_v13  ;;  %v10665_v13 = vld [vmem:[#allocation2 + $0x131c] sm:$0xf]  ;;  %v8624_v32 = vor.u32 %v10490_v19, %v8621_v20  ;;  %v9027_v58 = vld [vmem:[#allocation2 + $0x10c8] sm:$0xf]  ;;  %v904_v20 = vperm.slane %v11328_v49, 3 }
 0x30a   :  { %6659 = vmatpush.bf16.msrb.mxu2 %v9824_v46  ;;  %v7824_v46 = vor.u32 %v10290_v7, %v7821_v36  ;;  %v6317_v23 = vpop.f32.mrf.mxu3  ;;  %v9324_v38 = vor.u32 %v10665_v13, %v9321_v28  ;;  %v8328_v7 = vor.u32 %v10428_v17, %v8327_v59  ;;  %v10603_v36 = vld [vmem:[#allocation2 + $0x1128] sm:$0xf0]  ;;  %v10378_v13 = vld [vmem:[#allocation2 + $0xa20] sm:$0xf0]  ;;  %v9727_v28 = vld [vmem:[#allocation2 + $0x1640] sm:$0xf] }
 0x30b   :  { %6621 = vmatpush.bf16.msra.mxu3 %v7324_v54  ;;  %v10265_v54 = vld [vmem:[#allocation2 + $0x69c] sm:$0xf]  ;;  %v9028_v19 = vor.u32 %v10603_v36, %v9027_v58  ;;  %v10578_v23 = vld [vmem:[#allocation2 + $0x1060] sm:$0xf0]  ;;  %v10528_v17 = vld [vmem:[#allocation2 + $0xed0] sm:$0xf0] }
 0x30c   :  { %6634 = vmatpush.bf16.msrb.mxu0 %v8124_v26  ;;  %v9227_v26 = vld [vmem:[#allocation2 + $0x1258] sm:$0xf]  ;;  %v7724_v29 = vor.u32 %v10265_v54, %v7721_v21  ;;  %v8927_v21 = vld [vmem:[#allocation2 + $0x1000] sm:$0xf] }
 0x30d   :  { %6647 = vmatpush.bf16.msrb.mxu1 %v8924_v35  ;;  %10051 = vmatmul.msk.bf16.vlgmr.msra.gmra.mxu2 %vm5041_vm2, %v11348_v2  ;;  %v10453_v35 = vld [vmem:[#allocation2 + $0xc78] sm:$0xf0] }
 0x30e   :  { %6660 = vmatpush.bf16.msrb.mxu2 %v9724_v6  ;;  %v10653_v6 = vld [vmem:[#allocation2 + $0x12b8] sm:$0xf0]  ;;  %v8428_v62 = vor.u32 %v10453_v35, %v8427_v30  ;;  %v9728_v30 = vor.u32 %v10778_v61, %v9727_v28 }
 0x30f   :  { %6622 = vmatpush.bf16.msra.mxu3 %v7224_v34  ;;  %v10465_v34 = vld [vmem:[#allocation2 + $0xcdc] sm:$0xf] }
 0x310   :  { %6635 = vmatpush.bf16.msrb.mxu0 %v8024_v48  ;;  %v11387_v48 = vpop.f32.mrf.mxu2  ;;  %v8524_v52 = vor.u32 %v10465_v34, %v8521_v33  ;;  %v10553_v35 = vld [vmem:[#allocation2 + $0xf98] sm:$0xf0] }
 0x311   :  { %6648 = vmatpush.bf16.msrb.mxu1 %v8824_v43  ;;  %v10628_v43 = vld [vmem:[#allocation2 + $0x11f0] sm:$0xf0] }
 0x312   :  { %6661 = vmatpush.bf16.msrb.mxu2 %v9624_v50  ;;  %v9228_v50 = vor.u32 %v10653_v6, %v9227_v26  ;;  %v9128_v39 = vor.u32 %v10628_v43, %v9127_v44  ;;  %v8928_v26 = vor.u32 %v10578_v23, %v8927_v21  ;;  %v7227_v6 = vld [vmem:[#allocation2 + $0x2b8] sm:$0xf]  ;;  %v8028_v43 = vor.u32 %v10353_v27, %v8027_v51  ;;  %v6927_v21 = vld [vmem:[#allocation2 + $0x60] sm:$0xf]  ;;  %v10078_v23 = vld [vmem:[#allocation2 + $0xc0] sm:$0xf0] }
 0x313   :  { %6623 = vmatpush.bf16.msra.mxu3 %v7124_v11  ;;  %v7527_v11 = vld [vmem:[#allocation2 + $0x510] sm:$0xf] }
 0x314   :  { %6636 = vmatpush.bf16.msrb.mxu0 %v7924_v53  ;;  %v7528_v63 = vor.u32 %v10228_v8, %v7527_v11  ;;  %v7427_v53 = vld [vmem:[#allocation2 + $0x448] sm:$0xf]  ;;  %v7127_v11 = vld [vmem:[#allocation2 + $0x1f0] sm:$0xf]  ;;  %v10128_v8 = vld [vmem:[#allocation2 + $0x250] sm:$0xf0] }
 0x315   :  { %6649 = vmatpush.bf16.msrb.mxu1 %v8724_v3  ;;  %v10803_v3 = vld [vmem:[#allocation2 + $0x1768] sm:$0xf0] }
 0x316   :  { %6662 = vmatpush.bf16.msrb.mxu2 %v9524_v47  ;;  %v10203_v47 = vld [vmem:[#allocation2 + $0x4a8] sm:$0xf0]  ;;  %v9828_v54 = vor.u32 %v10803_v3, %v9827_v4 }
 0x317   :  { %6624 = vmatpush.bf16.msra.mxu3 %v7024_v18  ;;  %v9928_v18 = vor.u32 %v10828_v42, %v9927_v1  ;;  %v7428_v9 = vor.u32 %v10203_v47, %v7427_v53  ;;  %v7927_v42 = vld [vmem:[#allocation2 + $0x830] sm:$0xf]  ;;  %v10728_v53 = vld [vmem:[#allocation2 + $0x1510] sm:$0xf0] }
 0x318   :  { %6637 = vmatpush.bf16.msrb.mxu0 %v7824_v46  ;;  %v6356_v41 = vpop.f32.mrf.mxu2  ;;  %v7327_v46 = vld [vmem:[#allocation2 + $0x380] sm:$0xf] }
 0x319   :  { %6650 = vmatpush.bf16.msrb.mxu1 %v8624_v32  ;;  %v6393_v32 = vpop.f32.mrf.mxu1  ;;  %v10503_v41 = vld [vmem:[#allocation2 + $0xe08] sm:$0xf0] }
 0x31a   :  { %6663 = vmatpush.bf16.msrb.mxu2 %v9424_v0  ;;  %v10178_v0 = vld [vmem:[#allocation2 + $0x3e0] sm:$0xf0] }
 0x31b   :  { %6625 = vmatpush.bf16.msra.mxu3 %v6924_v40  ;;  %v8127_v40 = vld [vmem:[#allocation2 + $0x9c0] sm:$0xf]  ;;  %v7328_v57 = vor.u32 %v10178_v0, %v7327_v46  ;;  %v9427_v46 = vld [vmem:[#allocation2 + $0x13e8] sm:$0xf]  ;;  %v10703_v0 = vld [vmem:[#allocation2 + $0x1448] sm:$0xf0] }
 0x31c   :  { %6638 = vmatpush.bf16.msrb.mxu0 %v7724_v29  ;;  %v8128_v33 = vor.u32 %v10378_v13, %v8127_v40  ;;  %v8827_v29 = vld [vmem:[#allocation2 + $0xf38] sm:$0xf]  ;;  %v9428_v61 = vor.u32 %v10703_v0, %v9427_v46 }
 0x31d   :  { %6651 = vmatpush.bf16.msrb.mxu1 %v8524_v52  ;;  %v6367_v49 = vpop.f32.mrf.mxu3  ;;  %v8828_v52 = vor.u32 %v10553_v35, %v8827_v29 }
 0x31e   :  { %6626 = vmatmul.bf16.vlgmr.msra.gmra.mxu3 %v11335_v10  ;;  %6664 = vmatpush.bf16.msrb.mxu2 %v9324_v38  ;;  %v10403_v10 = vld [vmem:[#allocation2 + $0xae8] sm:$0xf0]  ;;  %v6368_v34 = vadd.f32 %v6367_v49, %v904_v20  ;;  %v9627_v38 = vld [vmem:[#allocation2 + $0x1578] sm:$0xf]  ;;  %v10278_v49 = vld [vmem:[#allocation2 + $0x700] sm:$0xf0] }
 0x31f   :  { %6677 = vmatpush.bf16.msrb.mxu3 %v5118_v56  ;;  %6639 = vmatmul.bf16.vlgmr.msrb.gmra.mxu0 %v11345_v16  ;;  %v8228_v16 = vor.u32 %v10403_v10, %v8227_v15  ;;  %v10153_v56 = vld [vmem:[#allocation2 + $0x318] sm:$0xf0]  ;;  %v7027_v15 = vld [vmem:[#allocation2 + $0x128] sm:$0xf]  ;;  %v10103_v10 = vld [vmem:[#allocation2 + $0x188] sm:$0xf0] }
 0x320   :  { %6683 = vmatpush.bf16.msra.mxu0 %v7628_v60  ;;  %6652 = vmatmul.bf16.vlgmr.msrb.gmra.mxu1 %v11338_v5  ;;  %v6303_v5 = vadd.f32 %v11379_v37, %v903_v22  ;;  %v10753_v60 = vld [vmem:[#allocation2 + $0x15d8] sm:$0xf0]  ;;  %v10303_v20 = vld [vmem:[#allocation2 + $0x7c8] sm:$0xf0] }
 0x321   :  { %6696 = vmatpush.bf16.msra.mxu1 %v8428_v62  ;;  %6665 = vmatmul.bf16.vlgmr.msrb.gmra.mxu2 %v11342_v31  ;;  %v6380_v31 = vpop.f32.mrf.mxu0  ;;  %v8727_v62 = vld [vmem:[#allocation2 + $0xe70] sm:$0xf]  ;;  %v9628_v59 = vor.u32 %v10753_v60, %v9627_v38  ;;  %v6395_v47 = vpop.f32.mrf.mxu1 }
 0x322   :  { %6709 = vmatpush.bf16.msra.mxu2 %v9228_v50  ;;  %v6316_v37 = vadd.f32 %v11381_v55, %v6303_v5  ;;  %v7228_v50 = vor.u32 %v10153_v56, %v7227_v6  ;;  %v6381_v44 = vadd.f32 %v6380_v31, %v6368_v34  ;;  %v10328_v55 = vld [vmem:[#allocation2 + $0x890] sm:$0xf0]  ;;  %v8728_v36 = vor.u32 %v10528_v17, %v8727_v62  ;;  %v10478_v5 = vld [vmem:[#allocation2 + $0xd40] sm:$0xf0] }
 0x323   :  { %6722 = vmatpush.bf16.msra.mxu3 %v10028_v12  ;;  %v6406_v12 = vpop.f32.mrf.mxu2  ;;  %v7928_v3 = vor.u32 %v10328_v55, %v7927_v42  ;;  %v10678_v6 = vld [vmem:[#allocation2 + $0x1380] sm:$0xf0]  ;;  %v6928_v56 = vor.u32 %v10078_v23, %v6927_v21  ;;  %v10891_v55 = vld [vmem:[#allocation1 + $0x24] sm:$0xff] }
 0x324   :  { %6684 = vmatpush.bf16.msra.mxu0 %v7528_v63  ;;  %v876_v63 = vld [vmem:[#allocation2 + $0x1960] sm:$0xf] }
 0x325   :  { %6697 = vmatpush.bf16.msra.mxu1 %v8328_v7  ;;  %v6329_v7 = vadd.f32 %v11375_v25, %v6316_v37  ;;  %v6369_v58 = vpop.f32.mrf.mxu3  ;;  %v3415_v4 = vunpack.c.l.b16 %v876_v63  ;;  %v10886_v37 = vld [vmem:[#allocation1] sm:$0xff] }
 0x326   :  { %6710 = vmatpush.bf16.msra.mxu2 %v9128_v39  ;;  %v9527_v39 = vld [vmem:[#allocation2 + $0x14b0] sm:$0xf] }
 0x327   :  { %6723 = vmatpush.bf16.msra.mxu3 %v9928_v18  ;;  %v7128_v18 = vor.u32 %v10128_v8, %v7127_v11  ;;  %v9528_v22 = vor.u32 %v10728_v53, %v9527_v39  ;;  %v6342_v25 = vadd.f32 %v11377_v24, %v6329_v7  ;;  %v4240_v31 = vpack.c.b16 %v3415_v4, %v3415_v4  ;;  %v10890_v8 = vld [vmem:[%s11427_s2 + $0x10] sm:$0xff] }
 0x328   :  { %6685 = vmatpush.bf16.msra.mxu0 %v7428_v9  ;;  %v6394_v9 = vadd.f32 %v6393_v32, %v6381_v44  ;;  %v8527_v32 = vld [vmem:[#allocation2 + $0xce0] sm:$0xf]  ;;  %v905_v62 = vperm.slane %v10890_v8, 4 }
 0x329   :  { %6698 = vmatpush.bf16.msra.mxu1 %v8228_v16  ;;  %v6382_v1 = vpop.f32.mrf.mxu0  ;;  %v7028_v16 = vor.u32 %v10103_v10, %v7027_v15  ;;  %v6355_v24 = vadd.f32 %v11387_v48, %v6342_v25  ;;  %v906_v15 = vperm.slane %v10890_v8, 5 }
 0x32a   :  { %6711 = vmatpush.bf16.msra.mxu2 %v9028_v19  ;;  %v7827_v19 = vld [vmem:[#allocation2 + $0x768] sm:$0xf]  ;;  %v6407_v13 = vadd.f32 %v6406_v12, %v6394_v9 }
 0x32b   :  { %6724 = vmatpush.bf16.msra.mxu3 %v9828_v54  ;;  %v6408_v40 = vpop.f32.mrf.mxu2  ;;  %v7828_v28 = vor.u32 %v10303_v20, %v7827_v19  ;;  %v6785_v27 = vrot.slane %v6355_v24, 4  ;;  %v908_v24 = vperm.slane %v10890_v8, 7 }
 0x32c   :  { %6686 = vmatpush.bf16.msra.mxu0 %v7328_v57  ;;  %v7727_v57 = vld [vmem:[#allocation2 + $0x6a0] sm:$0xf] }
 0x32d   :  { %6699 = vmatpush.bf16.msra.mxu1 %v8128_v33  ;;  %v6419_v34 = vpop.f32.mrf.mxu3  ;;  %v8528_v33 = vor.u32 %v10478_v5, %v8527_v32  ;;  %v7728_v35 = vor.u32 %v10278_v49, %v7727_v57 }
 0x32e   :  { %6712 = vmatpush.bf16.msra.mxu2 %v8928_v26  ;;  %10052 = vmatmul.msk.bf16.vlgmr.msrb.gmra.mxu3 %vm5041_vm2, %v11348_v2  ;;  %v8627_v2 = vld [vmem:[#allocation2 + $0xda8] sm:$0xf]  ;;  %v9327_v26 = vld [vmem:[#allocation2 + $0x1320] sm:$0xf]  ;;  %v6420_v29 = vadd.f32 %v6419_v34, %v6407_v13 }
 0x32f   :  { %6725 = vmatpush.bf16.msra.mxu3 %v9728_v30  ;;  %v8628_v54 = vor.u32 %v10503_v41, %v8627_v2  ;;  %v5121_v30 = vand.u32 %v10953_v45, %v4240_v31  ;;  %v9328_v51 = vor.u32 %v10678_v6, %v9327_v26  ;;  %v10887_v45 = vld [vmem:[#allocation1 + $0x12] sm:$0xff]  ;;  %v907_v26 = vperm.slane %v10890_v8, 6 }
 0x330   :  { %6687 = vmatpush.bf16.msra.mxu0 %v7228_v50  ;;  %v6786_v38 = vrot.slane %v6420_v29, 2  ;;  %v10888_v50 = vld [vmem:[#allocation1 + $0x9] sm:$0xff] }
 0x331   :  { %6700 = vmatpush.bf16.msra.mxu1 %v8028_v43 }
 0x332   :  { %6713 = vmatpush.bf16.msra.mxu2 %v8828_v52  ;;  %v6805_v60 = vsel %vm6792_vm4, %v6785_v27, %v6786_v38  ;;  %v10889_v52 = vld [vmem:[#allocation1 + $0x1b] sm:$0xff] }
 0x333   :  { %6726 = vmatpush.bf16.msra.mxu3 %v9628_v59  ;;  %v6806_v48 = vsel %vm5045_vm1, %v11368_v14, %v6805_v60 }
 0x334   :  { %6688 = vmatpush.bf16.msra.mxu0 %v7128_v18  ;;  %6820 = vst [vmem:[%s11428_s3 + $0x20] sm:$0xff] %v6806_v48 }
 0x335   :  { %6701 = vmatpush.bf16.msra.mxu1 %v7928_v3  ;;  %v6421_v11 = vpop.f32.mrf.mxu3 }
 0x336   :  { %6714 = vmatpush.bf16.msra.mxu2 %v8728_v36 }
 0x337   :  { %6727 = vmatpush.bf16.msra.mxu3 %v9528_v22 }
 0x338   :  { %6689 = vmatpush.bf16.msra.mxu0 %v7028_v16  ;;  %v6432_v12 = vpop.f32.mrf.mxu0 }
 0x339   :  { %6702 = vmatpush.bf16.msra.mxu1 %v7828_v28  ;;  %v6433_v14 = vadd.f32 %v6432_v12, %v905_v62  ;;  %v6445_v44 = vpop.f32.mrf.mxu1 }
 0x33a   :  { %6715 = vmatpush.bf16.msra.mxu2 %v8628_v54 }
 0x33b   :  { %6728 = vmatpush.bf16.msra.mxu3 %v9428_v61  ;;  %v6446_v43 = vadd.f32 %v6445_v44, %v6433_v14 }
 0x33c   :  { %6690 = vmatpush.bf16.msra.mxu0 %v6928_v56 }
 0x33d   :  { %6703 = vmatpush.bf16.msra.mxu1 %v7728_v35 }
 0x33e   :  { %6716 = vmatpush.bf16.msra.mxu2 %v8528_v33 }
 0x33f   :  { %6729 = vmatpush.bf16.msra.mxu3 %v9328_v51  ;;  %6691 = vmatmul.bf16.vlgmr.msra.gmra.mxu0 %v10886_v37 }
 0x340   :  { %6742 = vmatpush.bf16.msrb.mxu0 %v5121_v30  ;;  %6704 = vmatmul.bf16.vlgmr.msra.gmra.mxu1 %v10888_v50  ;;  %v6458_v59 = vpop.f32.mrf.mxu2  ;;  %v6434_v42 = vpop.f32.mrf.mxu0 }
 0x341   :  { %6717 = vmatmul.bf16.vlgmr.msra.gmra.mxu2 %v10887_v45  ;;  %v6459_v17 = vadd.f32 %v6458_v59, %v6446_v43  ;;  %v6471_v1 = vpop.f32.mrf.mxu3  ;;  %v6447_v39 = vpop.f32.mrf.mxu1  ;;  %v10858_v42 = vld [vmem:[%s11427_s2 + $0x18] ss:$0 sm:$0xff] }
 0x342   :  { %6730 = vmatmul.bf16.vlgmr.msra.gmra.mxu3 %v10889_v52 }
 0x343   :  { %v6472_v63 = vadd.f32 %v6471_v1, %v6459_v17 }
 0x348   :  { %v6460_v53 = vpop.f32.mrf.mxu2  ;;  %v6484_v7 = vpop.f32.mrf.mxu0 }
 0x349   :  { %v6473_v47 = vpop.f32.mrf.mxu3  ;;  %v6485_v18 = vadd.f32 %v6484_v7, %v6472_v63 }
 0x34f   :  { %10053 = vmatmul.msk.bf16.vlgmr.msrb.gmra.mxu0 %vm5041_vm2, %v10891_v55 }
 0x350   :  { %v6486_v58 = vpop.f32.mrf.mxu0 }
 0x359   :  { %v6497_v36 = vpop.f32.mrf.mxu1 }
 0x35a   :  { %v6498_v4 = vadd.f32 %v6497_v36, %v906_v15 }
 0x35c   :  { %v6536_v10 = vpop.f32.mrf.mxu0 }
 0x360   :  { %v6510_v22 = vpop.f32.mrf.mxu2 }
 0x361   :  { %v6499_v3 = vpop.f32.mrf.mxu1  ;;  %v6523_v9 = vpop.f32.mrf.mxu3  ;;  %v6511_v2 = vadd.f32 %v6510_v22, %v6498_v4 }
 0x363   :  { %v6524_v41 = vadd.f32 %v6523_v9, %v6511_v2 }
 0x364   :  { %v6538_v19 = vpop.f32.mrf.mxu0 }
 0x365   :  { %v6537_v20 = vadd.f32 %v6536_v10, %v6524_v41 }
 0x368   :  { %v6512_v25 = vpop.f32.mrf.mxu2 }
 0x369   :  { %v6549_v46 = vpop.f32.mrf.mxu1  ;;  %v6525_v16 = vpop.f32.mrf.mxu3 }
 0x36a   :  { %v6550_v0 = vadd.f32 %v6549_v46, %v6537_v20 }
 0x36c   :  { %v6787_v54 = vrot.slane %v6550_v0, 6 }
 0x36e   :  { %v6807_v21 = vsel %vm6790_vm3, %v6485_v18, %v6787_v54 }
 0x371   :  { %v6551_v23 = vpop.f32.mrf.mxu1 }
 0x37c   :  { %v6588_v31 = vpop.f32.mrf.mxu0 }
 0x37d   :  { %v6601_v13 = vpop.f32.mrf.mxu1 }
 0x380   :  { %v6562_v40 = vpop.f32.mrf.mxu2 }
 0x381   :  { %v6575_v28 = vpop.f32.mrf.mxu3  ;;  %v6563_v34 = vadd.f32 %v6562_v40, %v907_v26 }
 0x383   :  { %v6576_v35 = vadd.f32 %v6575_v28, %v6563_v34 }
 0x384   :  { %v6590_v61 = vpop.f32.mrf.mxu0 }
 0x385   :  { %v6603_v5 = vpop.f32.mrf.mxu1  ;;  %v6589_v60 = vadd.f32 %v6588_v31, %v6576_v35 }
 0x387   :  { %v6602_v50 = vadd.f32 %v6601_v13, %v6589_v60 }
 0x388   :  { %v6564_v32 = vpop.f32.mrf.mxu2 }
 0x389   :  { %v6577_v57 = vpop.f32.mrf.mxu3 }
 0x390   :  { %v6614_v49 = vpop.f32.mrf.mxu2 }
 0x391   :  { %v6615_v62 = vadd.f32 %v6614_v49, %v6602_v50 }
 0x393   :  { %v6788_v8 = vrot.slane %v6615_v62, 4 }
 0x398   :  { %v6616_v6 = vpop.f32.mrf.mxu2 }
 0x39c   :  { %v6640_v56 = vpop.f32.mrf.mxu0 }
 0x39d   :  { %v6653_v33 = vpop.f32.mrf.mxu1 }
 0x3a1   :  { %v6627_v30 = vpop.f32.mrf.mxu3 }
 0x3a2   :  { %v6628_v29 = vadd.f32 %v6627_v30, %v908_v24 }
 0x3a4   :  { %v6666_v51 = vpop.f32.mrf.mxu2  ;;  %v6641_v27 = vadd.f32 %v6640_v56, %v6628_v29  ;;  %v6642_v38 = vpop.f32.mrf.mxu0 }
 0x3a5   :  { %v6655_v48 = vpop.f32.mrf.mxu1 }
 0x3a6   :  { %v6654_v45 = vadd.f32 %v6653_v33, %v6641_v27 }
 0x3a8   :  { %v6667_v11 = vadd.f32 %v6666_v51, %v6654_v45 }
 0x3a9   :  { %v6629_v37 = vpop.f32.mrf.mxu3 }
 0x3ac   :  { %v6668_v52 = vpop.f32.mrf.mxu2 }
 0x3b1   :  { %v6679_v12 = vpop.f32.mrf.mxu3 }
 0x3b2   :  { %v6680_v14 = vadd.f32 %v6679_v12, %v6667_v11 }
 0x3b4   :  { %v6789_v44 = vrot.slane %v6680_v14, 2 }
 0x3b6   :  { %v6808_v43 = vsel %vm6792_vm4, %v6788_v8, %v6789_v44 }
 0x3b7   :  { %v6809_v59 = vsel %vm5045_vm1, %v6807_v21, %v6808_v43 }
 0x3b8   :  { %6821 = vst [vmem:[%s11428_s3 + $0x28] sm:$0xff] %v6809_v59 }
 0x3b9   :  { %v6681_v17 = vpop.f32.mrf.mxu3 }
 0x3bc   :  { %v6692_v1 = vpop.f32.mrf.mxu0 }
 0x3bd   :  { %v6705_v63 = vpop.f32.mrf.mxu1  ;;  %v6693_v55 = vadd.f32 %v10858_v42, %v6692_v1 }
 0x3bf   :  { %v6706_v7 = vadd.f32 %v6705_v63, %v6693_v55 }
 0x3c4   :  { %v6718_v39 = vpop.f32.mrf.mxu2  ;;  %v6694_v53 = vpop.f32.mrf.mxu0 }
 0x3c5   :  { %v6731_v47 = vpop.f32.mrf.mxu3  ;;  %v6707_v18 = vpop.f32.mrf.mxu1  ;;  %v6719_v58 = vadd.f32 %v6718_v39, %v6706_v7 }
 0x3c7   :  { %v6732_v36 = vadd.f32 %v6731_v47, %v6719_v58 }
 0x3cc   :  { %v6720_v15 = vpop.f32.mrf.mxu2  ;;  %v6744_v4 = vpop.f32.mrf.mxu0 }
 0x3cd   :  { %v6733_v10 = vpop.f32.mrf.mxu3  ;;  %v6745_v3 = vadd.f32 %v6744_v4, %v6732_v36 }
 0x3cf   :  { %6823 = vst.msk [vmem:[%s11428_s3 + $0x30] sm:$0x3] %vm6822_vm5, %v6745_v3 }
 0x3d4   :  { %v6746_v22 = vpop.f32.mrf.mxu0 }
 0x3d5   :  { %6828 = vsyncpa [#allocation3], 1 }

// kernel: basic_deconv_forward.7
= control target key start
LH: loop header
LB: loop body
LE: loop exit
PB: predicated region body
PF: predicated region fallthrough
CT: control target
= control target key end

     0   :  { %s851_s12 = smov 0   ;;  %s997_s0 = inlined_call_operand.vmem [shape: bf16[48,128], index: 0, kind: input, shape index: {}]   ;;  %s998_s1 = inlined_call_operand.vmem [shape: bf16[2,128,441], index: 1, kind: input, shape index: {}]   ;;  %s999_s2 = inlined_call_operand.vmem [shape: f32[48,1], index: 2, kind: input, shape index: {}]   ;;  %s1000_s3 = inlined_call_operand.vmem [shape: f32[2,48,441], index: 3, kind: output, shape index: {}]  }
   0x1 LB: > { %s623_s13 = sadd.s32 4294967295, %s828_s12   ;;  %p627_p0 = scmp.ge.s32.totalorder %s828_s12, 1  ;;  %s828_s12 = sphi %s851_s12, %s13_s12  }
   0x2   : > { %p137_p1 = scmp.lt.s32.totalorder %s828_s12, 3 }
   0x4   : > { %p138_p2 = pnand %p627_p0, %p137_p1 }
   0x5   : > { %p161_p3 = scmp.lt.s32.totalorder (!%p138_p2), %s623_s13, 1 }
   0x6   : > { %141 = sbr.rel (%p138_p2) target bundleno = 227 (0xe3), region = 32 }
   0xb   : > { %s1002_s13 = smov (!%p161_p3, %s623_s13), 1  ;;  %vm546_vm0 = vcmask 465920  }
   0xc   : > { %s773_s14 = sshll.u32 %s1002_s13, 8  ;;  %s809_s9 = smul.u32 192, %s1002_s13 }
   0xd   : > { %s865_s17 = scalar_lea.vmem %s998_s1, %s773_s14 }
   0xe   : > { %v757_v0 = vld [vmem:[%s865_s17 + $0xe0] sm:$0xf]  ;;  %v807_v1 = vld [vmem:[%s865_s17 + $0xec] sm:$0xf0]  ;;  %v805_v2 = vld [vmem:[%s865_s17 + $0xe4] sm:$0xf]  ;;  %s962_s14 = scalar_lea.vmem %s1000_s3, %s809_s9 }
   0xf   : > { %v758_v3 = vor.u32 %v807_v1, %v757_v0  ;;  %v759_v4 = vld [vmem:[%s865_s17 + $0xf0] sm:$0xf0]  ;;  %v765_v5 = vld [vmem:[%s865_s17 + $0xe8] sm:$0xf]  ;;  %v808_v6 = vld [vmem:[%s865_s17 + $0xf4] sm:$0xf0] }
  0x10   : > { %v762_v7 = vor.u32 %v805_v2, %v759_v4  ;;  %v766_v8 = vor.u32 %v808_v6, %v765_v5  ;;  %v806_v9 = vld [vmem:[%s865_s17 + $0xec] sm:$0xf]  ;;  %v767_v10 = vld [vmem:[%s865_s17 + $0xf8] sm:$0xf0]  ;;  %v741_v11 = vld [vmem:[%s865_s17 + $0xc0] sm:$0xf] }
  0x11   : > { %423 = vmatpush.bf16.msra.mxu0 %v758_v3  ;;  %v770_v12 = vor.u32 %v806_v9, %v767_v10  ;;  %v803_v13 = vld [vmem:[%s865_s17 + $0xcc] sm:$0xf0]  ;;  %v801_v14 = vld [vmem:[%s865_s17 + $0xc4] sm:$0xf]  ;;  %v743_v15 = vld [vmem:[%s865_s17 + $0xd0] sm:$0xf0] }
  0x12   : > { %447 = vmatpush.bf16.msra.mxu1 %v762_v7  ;;  %471 = vmatpush.bf16.msra.mxu2 %v766_v8  ;;  %v742_v16 = vor.u32 %v803_v13, %v741_v11  ;;  %v746_v17 = vor.u32 %v801_v14, %v743_v15  ;;  %v749_v18 = vld [vmem:[%s865_s17 + $0xc8] sm:$0xf]  ;;  %v804_v19 = vld [vmem:[%s865_s17 + $0xd4] sm:$0xf0]  ;;  %v802_v20 = vld [vmem:[%s865_s17 + $0xcc] sm:$0xf] }
  0x13   : > { %495 = vmatpush.bf16.msra.mxu3 %v770_v12  ;;  %v750_v21 = vor.u32 %v804_v19, %v749_v18  ;;  %v751_v22 = vld [vmem:[%s865_s17 + $0xd8] sm:$0xf0]  ;;  %v725_v23 = vld [vmem:[%s865_s17 + $0xa0] sm:$0xf]  ;;  %v799_v24 = vld [vmem:[%s865_s17 + $0xac] sm:$0xf0] }
  0x14   : > { %v754_v25 = vor.u32 %v802_v20, %v751_v22  ;;  %v797_v26 = vld [vmem:[%s865_s17 + $0xa4] sm:$0xf]  ;;  %v727_v27 = vld [vmem:[%s865_s17 + $0xb0] sm:$0xf0]  ;;  %v733_v28 = vld [vmem:[%s865_s17 + $0xa8] sm:$0xf]  ;;  %v726_v29 = vor.u32 %v799_v24, %v725_v23 }
  0x15   : > { %424 = vmatpush.bf16.msra.mxu0 %v742_v16  ;;  %v800_v30 = vld [vmem:[%s865_s17 + $0xb4] sm:$0xf0]  ;;  %v798_v31 = vld [vmem:[%s865_s17 + $0xac] sm:$0xf]  ;;  %v735_v32 = vld [vmem:[%s865_s17 + $0xb8] sm:$0xf0]  ;;  %v730_v33 = vor.u32 %v797_v26, %v727_v27 }
  0x16   : > { %448 = vmatpush.bf16.msra.mxu1 %v746_v17  ;;  %472 = vmatpush.bf16.msra.mxu2 %v750_v21  ;;  %v734_v34 = vor.u32 %v800_v30, %v733_v28  ;;  %v709_v35 = vld [vmem:[%s865_s17 + $0x80] sm:$0xf]  ;;  %v795_v36 = vld [vmem:[%s865_s17 + $0x8c] sm:$0xf0]  ;;  %v793_v37 = vld [vmem:[%s865_s17 + $0x84] sm:$0xf]  ;;  %v738_v38 = vor.u32 %v798_v31, %v735_v32 }
  0x17   : > { %496 = vmatpush.bf16.msra.mxu3 %v754_v25  ;;  %v711_v39 = vld [vmem:[%s865_s17 + $0x90] sm:$0xf0]  ;;  %v717_v40 = vld [vmem:[%s865_s17 + $0x88] sm:$0xf]  ;;  %v796_v41 = vld [vmem:[%s865_s17 + $0x94] sm:$0xf0]  ;;  %v710_v44 = vor.u32 %v795_v36, %v709_v35 }
  0x18   : > { %v794_v42 = vld [vmem:[%s865_s17 + $0x8c] sm:$0xf]  ;;  %v719_v43 = vld [vmem:[%s865_s17 + $0x98] sm:$0xf0]  ;;  %v714_v45 = vor.u32 %v793_v37, %v711_v39  ;;  %v718_v46 = vor.u32 %v796_v41, %v717_v40  ;;  %v693_v47 = vld [vmem:[%s865_s17 + $0x60] sm:$0xf] }
  0x19   : > { %425 = vmatpush.bf16.msra.mxu0 %v726_v29  ;;  %v791_v48 = vld [vmem:[%s865_s17 + $0x6c] sm:$0xf0]  ;;  %v789_v49 = vld [vmem:[%s865_s17 + $0x64] sm:$0xf]  ;;  %v722_v50 = vor.u32 %v794_v42, %v719_v43  ;;  %v695_v51 = vld [vmem:[%s865_s17 + $0x70] sm:$0xf0] }
  0x1a   : > { %449 = vmatpush.bf16.msra.mxu1 %v730_v33  ;;  %473 = vmatpush.bf16.msra.mxu2 %v734_v34  ;;  %v701_v52 = vld [vmem:[%s865_s17 + $0x68] sm:$0xf]  ;;  %v792_v53 = vld [vmem:[%s865_s17 + $0x74] sm:$0xf0]  ;;  %v790_v54 = vld [vmem:[%s865_s17 + $0x6c] sm:$0xf]  ;;  %v694_v56 = vor.u32 %v791_v48, %v693_v47  ;;  %v698_v57 = vor.u32 %v789_v49, %v695_v51 }
  0x1b   : > { %497 = vmatpush.bf16.msra.mxu3 %v738_v38  ;;  %v703_v55 = vld [vmem:[%s865_s17 + $0x78] sm:$0xf0]  ;;  %v702_v58 = vor.u32 %v792_v53, %v701_v52  ;;  %v677_v59 = vld [vmem:[%s865_s17 + $0x40] sm:$0xf]  ;;  %v787_v60 = vld [vmem:[%s865_s17 + $0x4c] sm:$0xf0] }
  0x1c   : > { %v785_v61 = vld [vmem:[%s865_s17 + $0x44] sm:$0xf]  ;;  %v706_v62 = vor.u32 %v790_v54, %v703_v55  ;;  %v679_v63 = vld [vmem:[%s865_s17 + $0x50] sm:$0xf0]  ;;  %v685_v0 = vld [vmem:[%s865_s17 + $0x48] sm:$0xf]  ;;  %v678_v4 = vor.u32 %v787_v60, %v677_v59 }
  0x1d   : > { %426 = vmatpush.bf16.msra.mxu0 %v710_v44  ;;  %v788_v1 = vld [vmem:[%s865_s17 + $0x54] sm:$0xf0]  ;;  %v786_v2 = vld [vmem:[%s865_s17 + $0x4c] sm:$0xf]  ;;  %v687_v3 = vld [vmem:[%s865_s17 + $0x58] sm:$0xf0]  ;;  %v682_v6 = vor.u32 %v785_v61, %v679_v63 }
  0x1e   : > { %450 = vmatpush.bf16.msra.mxu1 %v714_v45  ;;  %474 = vmatpush.bf16.msra.mxu2 %v718_v46  ;;  %v661_v5 = vld [vmem:[%s865_s17 + $0x20] sm:$0xf]  ;;  %v686_v7 = vor.u32 %v788_v1, %v685_v0  ;;  %v783_v8 = vld [vmem:[%s865_s17 + $0x2c] sm:$0xf0]  ;;  %v781_v9 = vld [vmem:[%s865_s17 + $0x24] sm:$0xf]  ;;  %v690_v11 = vor.u32 %v786_v2, %v687_v3 }
  0x1f   : > { %498 = vmatpush.bf16.msra.mxu3 %v722_v50  ;;  %v663_v10 = vld [vmem:[%s865_s17 + $0x30] sm:$0xf0]  ;;  %v669_v12 = vld [vmem:[%s865_s17 + $0x28] sm:$0xf]  ;;  %v784_v13 = vld [vmem:[%s865_s17 + $0x34] sm:$0xf0]  ;;  %v662_v19 = vor.u32 %v783_v8, %v661_v5 }
  0x20   : > { %v209_v14 = vld [vmem:[%s999_s2] sm:$0xff]  ;;  %v782_v15 = vld [vmem:[%s865_s17 + $0x2c] sm:$0xf]  ;;  %v671_v16 = vld [vmem:[%s865_s17 + $0x38] sm:$0xf0]  ;;  %v830_v17 = vmov 0   ;;  %v666_v20 = vor.u32 %v781_v9, %v663_v10  ;;  %v670_v21 = vor.u32 %v784_v13, %v669_v12 }
  0x21   : > { %427 = vmatpush.bf16.msra.mxu0 %v694_v56  ;;  %819 = vset.pattern.permute.xlu0 %v830_v17  ;;  %v211_v18 = vld [vmem:[%s999_s2 + $0x10] sm:$0xff]  ;;  %v645_v22 = vld [vmem:[%s865_s17] sm:$0xf]  ;;  %v777_v24 = vld [vmem:[%s865_s17 + $0x4] sm:$0xf]  ;;  %v674_v25 = vor.u32 %v782_v15, %v671_v16 }
  0x22   : > { %451 = vmatpush.bf16.msra.mxu1 %v698_v57  ;;  %475 = vmatpush.bf16.msra.mxu2 %v702_v58  ;;  %v779_v23 = vld [vmem:[%s865_s17 + $0xc] sm:$0xf0]  ;;  %v647_v26 = vld [vmem:[%s865_s17 + $0x10] sm:$0xf0]  ;;  %v653_v27 = vld [vmem:[%s865_s17 + $0x8] sm:$0xf] }
  0x23   : > { %499 = vmatpush.bf16.msra.mxu3 %v706_v62  ;;  %820 = vset.pattern.permute.xlu1 %v830_v17  ;;  %v780_v28 = vld [vmem:[%s865_s17 + $0x14] sm:$0xf0]  ;;  %v778_v29 = vld [vmem:[%s865_s17 + $0xc] sm:$0xf]  ;;  %v655_v30 = vld [vmem:[%s865_s17 + $0x18] sm:$0xf0]  ;;  %v646_v31 = vor.u32 %v779_v23, %v645_v22  ;;  %v650_v32 = vor.u32 %v777_v24, %v647_v26 }
  0x24   : > { %217 = vperm.xlu0 %819, %v209_v14   ;;  %227 = vperm.xlu1 %820, %v211_v18   ;;  %v654_v33 = vor.u32 %v780_v28, %v653_v27  ;;  %v210_v34 = vld [vmem:[%s999_s2 + $0x8] sm:$0xff]  ;;  %v658_v35 = vor.u32 %v778_v29, %v655_v30  ;;  %v774_v36 = vld [vmem:[%s997_s0] sm:$0xff]  ;;  %v212_v37 = vld [vmem:[%s999_s2 + $0x18] sm:$0xff] }
  0x25   : > { %428 = vmatpush.bf16.msra.mxu0 %v678_v4  ;;  %821 = vset.pattern.permute.xlu2 %v830_v17  ;;  %v213_v38 = vld [vmem:[%s999_s2 + $0x20] sm:$0xff]  ;;  %v214_v39 = vld [vmem:[%s999_s2 + $0x28] sm:$0xff]  ;;  %v776_v41 = vld [vmem:[%s997_s0 + $0x10] sm:$0xff] }
  0x26   : > { %452 = vmatpush.bf16.msra.mxu1 %v682_v6  ;;  %476 = vmatpush.bf16.msra.mxu2 %v686_v7  ;;  %v775_v40 = vld [vmem:[%s997_s0 + $0x8] sm:$0xff] }
  0x27   : > { %500 = vmatpush.bf16.msra.mxu3 %v690_v11  ;;  %237 = vperm.xlu2 %821, %v213_v38  }
  0x29   : > { %429 = vmatpush.bf16.msra.mxu0 %v662_v19 }
  0x2a   : > { %453 = vmatpush.bf16.msra.mxu1 %v666_v20  ;;  %477 = vmatpush.bf16.msra.mxu2 %v670_v21 }
  0x2b   : > { %501 = vmatpush.bf16.msra.mxu3 %v674_v25 }
  0x2c   : > { %222 = vperm.xlu0 %819, %v210_v34   ;;  %232 = vperm.xlu1 %820, %v212_v37  }
  0x2d   : > { %430 = vmatpush.bf16.msra.mxu0 %v646_v31 }
  0x2e   : > { %454 = vmatpush.bf16.msra.mxu1 %v650_v32  ;;  %478 = vmatpush.bf16.msra.mxu2 %v654_v33 }
  0x2f   : > { %502 = vmatpush.bf16.msra.mxu3 %v658_v35  ;;  %242 = vperm.xlu2 %821, %v214_v39  }
  0x30   : > { %431 = vmatmul.bf16.vlgmr.msra.gmra.mxu0 %v774_v36 }
  0x31   : > { %455 = vmatmul.bf16.vlgmr.msra.gmra.mxu1 %v774_v36  ;;  %479 = vmatmul.bf16.vlgmr.msra.gmra.mxu2 %v774_v36 }
  0x32   : > { %503 = vmatmul.bf16.vlgmr.msra.gmra.mxu3 %v774_v36 }
  0x40   : > { %436 = vmatmul.bf16.gmra.mxu0 %v775_v40 }
  0x41   : > { %460 = vmatmul.bf16.gmra.mxu1 %v775_v40  ;;  %484 = vmatmul.bf16.gmra.mxu2 %v775_v40 }
  0x42   : > { %508 = vmatmul.bf16.gmra.mxu3 %v775_v40 }
  0x50   : > { %441 = vmatmul.bf16.gmra.mxu0 %v776_v41 }
  0x51   : > { %465 = vmatmul.bf16.gmra.mxu1 %v776_v41  ;;  %489 = vmatmul.bf16.gmra.mxu2 %v776_v41 }
  0x52   : > { %513 = vmatmul.bf16.gmra.mxu3 %v776_v41 }
  0x81   : > { %v238_v24 = vpop.permute.xlu2 %237 }
  0x89   : > { %v243_v37 = vpop.permute.xlu2 %242 }
  0x96   : > { %v218_v42 = vpop.permute.xlu0 %217  ;;  %v228_v62 = vpop.permute.xlu1 %227 }
  0x9e   : > { %v223_v49 = vpop.permute.xlu0 %222  ;;  %v233_v11 = vpop.permute.xlu1 %232 }
  0xad   : > { %v432_v43 = vpop.f32.mrf.mxu0 }
  0xae   : > { %v433_v44 = vadd.f32 %v432_v43, %v218_v42  ;;  %v456_v45 = vpop.f32.mrf.mxu1 }
  0xaf   : > { %v457_v46 = vadd.f32 %v456_v45, %v218_v42 }
  0xb0   : > { %v519_v47 = vmax.f32 %v433_v44, 0.0 }
  0xb1   : > { %v520_v48 = vmax.f32 %v457_v46, 0.0 }
  0xb2   : > { %543 = vst [vmem:[%s962_s14] sm:$0xff] %v519_v47 }
  0xb3   : > { %544 = vst [vmem:[%s962_s14 + $0x8] sm:$0xff] %v520_v48 }
  0xb4   : > { %v480_v50 = vpop.f32.mrf.mxu2 }
  0xb5   : > { %v481_v51 = vadd.f32 %v480_v50, %v218_v42  ;;  %v504_v52 = vpop.f32.mrf.mxu3  ;;  %v434_v53 = vpop.f32.mrf.mxu0 }
  0xb6   : > { %v505_v54 = vadd.f32 %v504_v52, %v218_v42  ;;  %v435_v55 = vadd.f32 %v434_v53, %v223_v49  ;;  %v458_v56 = vpop.f32.mrf.mxu1 }
  0xb7   : > { %v521_v57 = vmax.f32 %v481_v51, 0.0  ;;  %v459_v58 = vadd.f32 %v458_v56, %v223_v49 }
  0xb8   : > { %v522_v59 = vmax.f32 %v505_v54, 0.0  ;;  %v523_v60 = vmax.f32 %v435_v55, 0.0 }
  0xb9   : > { %545 = vst [vmem:[%s962_s14 + $0x10] sm:$0xff] %v521_v57  ;;  %v524_v61 = vmax.f32 %v459_v58, 0.0 }
  0xba   : > { %547 = vst.msk [vmem:[%s962_s14 + $0x18] sm:$0xff] %vm546_vm0, %v522_v59 }
  0xbb   : > { %548 = vst [vmem:[%s962_s14 + $0x20] sm:$0xff] %v523_v60 }
  0xbc   : > { %549 = vst [vmem:[%s962_s14 + $0x28] sm:$0xff] %v524_v61  ;;  %v482_v63 = vpop.f32.mrf.mxu2 }
  0xbd   : > { %v483_v0 = vadd.f32 %v482_v63, %v223_v49  ;;  %v506_v1 = vpop.f32.mrf.mxu3  ;;  %v437_v2 = vpop.f32.mrf.mxu0 }
  0xbe   : > { %v507_v3 = vadd.f32 %v506_v1, %v223_v49  ;;  %v438_v4 = vadd.f32 %v437_v2, %v228_v62  ;;  %v461_v5 = vpop.f32.mrf.mxu1 }
  0xbf   : > { %v525_v6 = vmax.f32 %v483_v0, 0.0  ;;  %v462_v7 = vadd.f32 %v461_v5, %v228_v62 }
  0xc0   : > { %v526_v8 = vmax.f32 %v507_v3, 0.0  ;;  %v527_v9 = vmax.f32 %v438_v4, 0.0 }
  0xc1   : > { %550 = vst [vmem:[%s962_s14 + $0x30] sm:$0xff] %v525_v6  ;;  %v528_v10 = vmax.f32 %v462_v7, 0.0 }
  0xc2   : > { %551 = vst.msk [vmem:[%s962_s14 + $0x38] sm:$0xff] %vm546_vm0, %v526_v8 }
  0xc3   : > { %552 = vst [vmem:[%s962_s14 + $0x40] sm:$0xff] %v527_v9 }
  0xc4   : > { %553 = vst [vmem:[%s962_s14 + $0x48] sm:$0xff] %v528_v10  ;;  %v485_v12 = vpop.f32.mrf.mxu2 }
  0xc5   : > { %v486_v13 = vadd.f32 %v485_v12, %v228_v62  ;;  %v509_v14 = vpop.f32.mrf.mxu3  ;;  %v439_v15 = vpop.f32.mrf.mxu0 }
  0xc6   : > { %v510_v16 = vadd.f32 %v509_v14, %v228_v62  ;;  %v440_v17 = vadd.f32 %v439_v15, %v233_v11  ;;  %v463_v18 = vpop.f32.mrf.mxu1 }
  0xc7   : > { %v529_v19 = vmax.f32 %v486_v13, 0.0  ;;  %v464_v20 = vadd.f32 %v463_v18, %v233_v11 }
  0xc8   : > { %v530_v21 = vmax.f32 %v510_v16, 0.0  ;;  %v531_v22 = vmax.f32 %v440_v17, 0.0 }
  0xc9   : > { %554 = vst [vmem:[%s962_s14 + $0x50] sm:$0xff] %v529_v19  ;;  %v532_v23 = vmax.f32 %v464_v20, 0.0 }
  0xca   : > { %555 = vst.msk [vmem:[%s962_s14 + $0x58] sm:$0xff] %vm546_vm0, %v530_v21 }
  0xcb   : > { %556 = vst [vmem:[%s962_s14 + $0x60] sm:$0xff] %v531_v22 }
  0xcc   : > { %557 = vst [vmem:[%s962_s14 + $0x68] sm:$0xff] %v532_v23  ;;  %v487_v25 = vpop.f32.mrf.mxu2 }
  0xcd   : > { %v488_v26 = vadd.f32 %v487_v25, %v233_v11  ;;  %v511_v27 = vpop.f32.mrf.mxu3  ;;  %v442_v28 = vpop.f32.mrf.mxu0 }
  0xce   : > { %v512_v29 = vadd.f32 %v511_v27, %v233_v11  ;;  %v443_v30 = vadd.f32 %v442_v28, %v238_v24  ;;  %v466_v31 = vpop.f32.mrf.mxu1 }
  0xcf   : > { %v533_v32 = vmax.f32 %v488_v26, 0.0  ;;  %v467_v33 = vadd.f32 %v466_v31, %v238_v24 }
  0xd0   : > { %v534_v34 = vmax.f32 %v512_v29, 0.0  ;;  %v535_v35 = vmax.f32 %v443_v30, 0.0 }
  0xd1   : > { %558 = vst [vmem:[%s962_s14 + $0x70] sm:$0xff] %v533_v32  ;;  %v536_v36 = vmax.f32 %v467_v33, 0.0 }
  0xd2   : > { %559 = vst.msk [vmem:[%s962_s14 + $0x78] sm:$0xff] %vm546_vm0, %v534_v34 }
  0xd3   : > { %560 = vst [vmem:[%s962_s14 + $0x80] sm:$0xff] %v535_v35 }
  0xd4   : > { %561 = vst [vmem:[%s962_s14 + $0x88] sm:$0xff] %v536_v36  ;;  %v490_v38 = vpop.f32.mrf.mxu2 }
  0xd5   : > { %v491_v39 = vadd.f32 %v490_v38, %v238_v24  ;;  %v514_v40 = vpop.f32.mrf.mxu3  ;;  %v444_v41 = vpop.f32.mrf.mxu0 }
  0xd6   : > { %v515_v42 = vadd.f32 %v514_v40, %v238_v24  ;;  %v445_v43 = vadd.f32 %v444_v41, %v243_v37  ;;  %v468_v44 = vpop.f32.mrf.mxu1 }
  0xd7   : > { %v537_v45 = vmax.f32 %v491_v39, 0.0  ;;  %v469_v46 = vadd.f32 %v468_v44, %v243_v37 }
  0xd8   : > { %v538_v47 = vmax.f32 %v515_v42, 0.0  ;;  %v539_v48 = vmax.f32 %v445_v43, 0.0 }
  0xd9   : > { %562 = vst [vmem:[%s962_s14 + $0x90] sm:$0xff] %v537_v45  ;;  %v540_v49 = vmax.f32 %v469_v46, 0.0 }
  0xda   : > { %563 = vst.msk [vmem:[%s962_s14 + $0x98] sm:$0xff] %vm546_vm0, %v538_v47 }
  0xdb   : > { %564 = vst [vmem:[%s962_s14 + $0xa0] sm:$0xff] %v539_v48 }
  0xdc   : > { %565 = vst [vmem:[%s962_s14 + $0xa8] sm:$0xff] %v540_v49  ;;  %v492_v50 = vpop.f32.mrf.mxu2 }
  0xdd   : > { %v493_v51 = vadd.f32 %v492_v50, %v243_v37  ;;  %v516_v52 = vpop.f32.mrf.mxu3 }
  0xde   : > { %v517_v53 = vadd.f32 %v516_v52, %v243_v37 }
  0xdf   : > { %v541_v54 = vmax.f32 %v493_v51, 0.0 }
  0xe0   : > { %v542_v55 = vmax.f32 %v517_v53, 0.0 }
  0xe1   : > { %566 = vst [vmem:[%s962_s14 + $0xb0] sm:$0xff] %v541_v54 }
  0xe2   : > { %567 = vst.msk [vmem:[%s962_s14 + $0xb8] sm:$0xff] %vm546_vm0, %v542_v55 }
  0xe3 PF: > { %s13_s12 = sadd.s32 1, %s828_s12  }
  0xe4   : > { %p10_p4 = scmp.ge.s32.totalorder %s13_s12, 4  }
  0xe6   :  { %12 = sbr.rel (!%p10_p4) target bundleno = 1 (0x1), region = 62 }

</bundles_post_ra>
